<compile_context>
chip_gen: v7x
topology: tpu7x:2x2x1
jax: 0.10.0
libtpu: 0.0.40
codegen_flags: <defaults>
</compile_context>

<pallas_src>
import functools
import math

import numpy as np
import jax
import jax.numpy as jnp
from jax.experimental import pallas as pl
from jax.experimental.pallas import tpu as pltpu


_K = 5                       # conv kernel size
_C0, _C1, _C2 = 3, 6, 16     # channels: input, conv1, conv2
_H0 = 32                     # input spatial size
_H1 = _H0 - _K + 1           # 28 : conv1 output
_P1 = _H1 // 2               # 14 : pool1 output
_H2 = _P1 - _K + 1           # 10 : conv2 output
_P2 = _H2 // 2               # 5  : pool2 output
_F1, _F2, _NCLS = 120, 84, 3

_XW = _H0 * _C0              # 96  : folded (w, c) lane width of one input row
_KIN1 = _K * _XW             # 480 : conv1 lhs width (5 kh-unfolded input rows)
_L1 = _H1 * _C1              # 168 : conv1 output lanes  (ow*6 + oc)
_Q1 = _L1 - _C1              # 162 : pool1 lanes (valid at 12*pw + c)
_L2 = _H2 * _C2              # 160 : conv2 output lanes  (ow*16 + oc)
_Q2 = _L2 - _C2              # 144 : pool2 lanes (valid at 32*pw + c)
_NP = 128                    # every fc layer padded to a full 128-lane width
_TB = 8                      # batch tile (images per grid step)


# ---------------------------------------------------------------------------
# Fused forward kernel: one grid step == one batch tile of _TB images
# ---------------------------------------------------------------------------
def _fused_cnn_kernel(xu_ref, w1_ref, b1_ref, w2_ref, b2_ref,
                      f1w_ref, f1b_ref, f2w_ref, f2b_ref, f3w_ref, f3b_ref,
                      o_ref):
    dot = functools.partial(jnp.dot, preferred_element_type=jnp.float32)

    w1 = w1_ref[...]                                     # (480, 168)
    b1 = b1_ref[...]                                     # (1, 168)

    def conv1_row(oh):                                   # -> (TB, 168), relu'd
        return jnp.maximum(dot(xu_ref[oh], w1) + b1, 0.0)

    # conv1 + fused 2x2 max-pool.  p1[ph] valid at lanes 12*pw + c.
    p1 = []
    for ph in range(_P1):
        m = jnp.maximum(conv1_row(2 * ph), conv1_row(2 * ph + 1))   # (TB, 168)
        p1.append(jnp.maximum(m[:, :_Q1], m[:, _C1:]))              # (TB, 162)

    b2 = b2_ref[...]                                     # (1, 160)

    def conv2_row(oh):                                   # -> (TB, 160), relu'd
        acc = dot(p1[oh], w2_ref[0])
        for kh in range(1, _K):
            acc = acc + dot(p1[oh + kh], w2_ref[kh])
        return jnp.maximum(acc + b2, 0.0)

    # conv2 + fused 2x2 max-pool.  p2[ph] valid at lanes 32*pw + c.
    p2 = []
    for ph in range(_P2):
        m = jnp.maximum(conv2_row(2 * ph), conv2_row(2 * ph + 1))   # (TB, 160)
        p2.append(jnp.maximum(m[:, :_Q2], m[:, _C2:]))              # (TB, 144)

    # fc1: torch's (c,h,w) flatten is folded into per-pooled-row weight slabs.
    acc = dot(p2[0], f1w_ref[0])
    for hh in range(1, _P2):
        acc = acc + dot(p2[hh], f1w_ref[hh])
    h = jnp.maximum(acc + f1b_ref[...], 0.0)                        # (TB, 128)

    # fc2, fc3 (both padded to 128 lanes; wrapper slices logits out).
    h = jnp.maximum(dot(h, f2w_ref[...]) + f2b_ref[...], 0.0)       # (TB, 128)
    o_ref[...] = (dot(h, f3w_ref[...]) + f3b_ref[...]).astype(o_ref.dtype)


# ---------------------------------------------------------------------------
# Weight re-layout (pure layout plumbing; scatters of the original values)
# ---------------------------------------------------------------------------
def _pack_params(params):
    f32 = jnp.float32
    w1, w2 = params["conv1_w"], params["conv2_w"]            # torch OIHW

    # conv1 banded weight: (480, 168); row = kh*96 + (ow+kw)*3 + c,
    # col = ow*6 + oc, value = w1[oc, c, kh, kw].
    oc, c, kh, kw, ow = np.meshgrid(np.arange(_C1), np.arange(_C0),
                                    np.arange(_K), np.arange(_K),
                                    np.arange(_H1), indexing="ij")
    w1b = jnp.zeros((_KIN1, _L1), f32).at[
        (kh * _XW + (ow + kw) * _C0 + c).ravel(),
        (ow * _C1 + oc).ravel()].set(w1[oc, c, kh, kw].ravel().astype(f32))

    # conv2 banded weight slabs: (5, 162, 160); slab = kh,
    # row = 12*(ow+kw) + c (pool1 lane), col = ow*16 + oc.
    oc, c, kh, kw, ow = np.meshgrid(np.arange(_C2), np.arange(_C1),
                                    np.arange(_K), np.arange(_K),
                                    np.arange(_H2), indexing="ij")
    w2b = jnp.zeros((_K, _Q1, _L2), f32).at[
        kh.ravel(),
        (2 * _C1 * (ow + kw) + c).ravel(),
        (ow * _C2 + oc).ravel()].set(w2[oc, c, kh, kw].ravel().astype(f32))

    # fc1 weight slabs: (5, 144, 128); slab = h, row = 32*w + c (pool2 lane),
    # sourced from torch flatten row c*25 + h*5 + w; cols padded 120 -> 128.
    c2, hh, ww = np.meshgrid(np.arange(_C2), np.arange(_P2), np.arange(_P2),
                             indexing="ij")
    f1_pad = jnp.zeros((_P2 * _P2 * _C2, _NP), f32).at[:, :_F1].set(
        params["fc1_w"].astype(f32))
    f1w = jnp.zeros((_P2, _Q2, _NP), f32).at[
        hh.ravel(), (2 * _C2 * ww + c2).ravel()].set(
        f1_pad[(c2 * _P2 * _P2 + hh * _P2 + ww).ravel()])

    f2w = jnp.zeros((_NP, _NP), f32).at[:_F1, :_F2].set(params["fc2_w"].astype(f32))
    f3w = jnp.zeros((_NP, _NP), f32).at[:_F2, :_NCLS].set(params["fc3_w"].astype(f32))

    b1 = jnp.tile(params["conv1_b"].astype(f32), _H1).reshape(1, _L1)
    b2 = jnp.tile(params["conv2_b"].astype(f32), _H2).reshape(1, _L2)
    f1b = jnp.zeros((1, _NP), f32).at[0, :_F1].set(params["fc1_b"].astype(f32))
    f2b = jnp.zeros((1, _NP), f32).at[0, :_F2].set(params["fc2_b"].astype(f32))
    f3b = jnp.zeros((1, _NP), f32).at[0, :_NCLS].set(params["fc3_b"].astype(f32))
    return w1b, b1, w2b, b2, f1w, f1b, f2w, f2b, f3w, f3b


def _cnn_pallas(xu, packed):
    Bp = xu.shape[1]
    return pl.pallas_call(
        _fused_cnn_kernel,
        out_shape=jax.ShapeDtypeStruct((Bp, _NP), jnp.float32),
        grid=(Bp // _TB,),
        in_specs=[
            pl.BlockSpec((_H1, _TB, _KIN1), lambda i: (0, i, 0)),   # x, kh-unfolded
            pl.BlockSpec((_KIN1, _L1), lambda i: (0, 0)),           # conv1 banded w
            pl.BlockSpec((1, _L1), lambda i: (0, 0)),               # conv1 bias
            pl.BlockSpec((_K, _Q1, _L2), lambda i: (0, 0, 0)),      # conv2 banded w
            pl.BlockSpec((1, _L2), lambda i: (0, 0)),               # conv2 bias
            pl.BlockSpec((_P2, _Q2, _NP), lambda i: (0, 0, 0)),     # fc1 w slabs
            pl.BlockSpec((1, _NP), lambda i: (0, 0)),               # fc1 bias
            pl.BlockSpec((_NP, _NP), lambda i: (0, 0)),             # fc2 w
            pl.BlockSpec((1, _NP), lambda i: (0, 0)),               # fc2 bias
            pl.BlockSpec((_NP, _NP), lambda i: (0, 0)),             # fc3 w
            pl.BlockSpec((1, _NP), lambda i: (0, 0)),               # fc3 bias
        ],
        out_specs=pl.BlockSpec((_TB, _NP), lambda i: (i, 0)),
        compiler_params=pltpu.CompilerParams(
            dimension_semantics=("parallel",),
            vmem_limit_bytes=32 * 1024 * 1024),
    )(xu, *packed)


# ---------------------------------------------------------------------------
# Public forward (takes PyTorch-layout params / NCHW input)
# ---------------------------------------------------------------------------
@jax.jit
def simple_cnn_forward(params, x):
    """x: (B, 3, 32, 32) NCHW float32 -> (B, 3) logits (matches PyTorch)."""
    B = x.shape[0]
    packed = _pack_params(params)
    # NCHW -> NHWC, fold (w, c) into one lane-dense 96-wide dim, pre-unfold the
    # 5 kh taps, and put the conv1 output-row index leading: (28, B, 480).
    x_rows = jnp.transpose(x, (0, 2, 3, 1)).astype(jnp.float32).reshape(B, _H0, _XW)
    xu = jnp.concatenate([x_rows[:, kh:kh + _H1, :] for kh in range(_K)], axis=-1)
    xu = jnp.transpose(xu, (1, 0, 2))                         # (28, B, 480)
    Bp = pl.cdiv(B, _TB) * _TB
    if Bp != B:
        xu = jnp.pad(xu, ((0, 0), (0, Bp - B), (0, 0)))
    out = _cnn_pallas(xu, packed)
    return out[:B, :_NCLS]


# ---------------------------------------------------------------------------
# Parameters (deterministic synthetic init, PyTorch-default-like bounds)
# ---------------------------------------------------------------------------
def init_params(key):
    def uni(k, shape, fan_in):
        bound = 1.0 / math.sqrt(fan_in)
        return jax.random.uniform(k, shape, jnp.float32, -bound, bound)

    ks = jax.random.split(key, 10)
    return {
        "conv1_w": uni(ks[0], (6, 3, 5, 5), 3 * 5 * 5),
        "conv1_b": uni(ks[1], (6,), 3 * 5 * 5),
        "conv2_w": uni(ks[2], (16, 6, 5, 5), 6 * 5 * 5),
        "conv2_b": uni(ks[3], (16,), 6 * 5 * 5),
        "fc1_w": uni(ks[4], (400, 120), 400),
        "fc1_b": uni(ks[5], (120,), 400),
        "fc2_w": uni(ks[6], (120, 84), 120),
        "fc2_b": uni(ks[7], (84,), 120),
        "fc3_w": uni(ks[8], (84, 3), 84),
        "fc3_b": uni(ks[9], (3,), 84),
    }


# ---------------------------------------------------------------------------
# Pure-JAX reference (numerically equivalent to the PyTorch module)
# ---------------------------------------------------------------------------
def _reference_forward(params, x):
    hp = jax.lax.Precision.HIGHEST
    dn = ("NCHW", "OIHW", "NCHW")
    h = jax.lax.conv_general_dilated(x, params["conv1_w"], (1, 1), "VALID",
                                     dimension_numbers=dn, precision=hp)
    h = jax.nn.relu(h + params["conv1_b"][None, :, None, None])
    h = jax.lax.reduce_window(h, -jnp.inf, jax.lax.max,
                              (1, 1, 2, 2), (1, 1, 2, 2), "VALID")
    h = jax.lax.conv_general_dilated(h, params["conv2_w"], (1, 1), "VALID",
                                     dimension_numbers=dn, precision=hp)
    h = jax.nn.relu(h + params["conv2_b"][None, :, None, None])
    h = jax.lax.reduce_window(h, -jnp.inf, jax.lax.max,
                              (1, 1, 2, 2), (1, 1, 2, 2), "VALID")
    h = h.reshape(h.shape[0], -1)                         # torch (c,h,w) flatten
    h = jax.nn.relu(jnp.dot(h, params["fc1_w"], precision=hp) + params["fc1_b"])
    h = jax.nn.relu(jnp.dot(h, params["fc2_w"], precision=hp) + params["fc2_b"])
    return jnp.dot(h, params["fc3_w"], precision=hp) + params["fc3_b"]


if __name__ == "__main__":
    key = jax.random.PRNGKey(0)
    pkey, xkey = jax.random.split(key)
    params = init_params(pkey)
    # SimpleCNN's 16*5*5 flatten implies a 32x32x3 input; batch = 16 so the
    # batch-blocked grid has 2 (even) steps for the v7x TensorCore pair.
    x = jax.random.normal(xkey, (16, 3, 32, 32), jnp.float32)

    out = simple_cnn_forward(params, x)
    jax.block_until_ready(out)
    assert out.shape == (16, 3) and out.dtype == jnp.float32

    ref = _reference_forward(params, x)
    err = float(jnp.max(jnp.abs(out - ref)))
    assert err < 2e-3, f"mismatch vs pure-JAX reference: max |diff| = {err}"
    print("KERNEL_OK")
</pallas_src>

<mosaic_0001>
module attributes {stable_mosaic.version = 11 : i64} {
  func.func @_fused_cnn_kernel(%arg0: i32, %arg1: memref<28x8x480xf32, #tpu.memory_space<vmem>>, %arg2: memref<480x168xf32, #tpu.memory_space<vmem>>, %arg3: memref<1x168xf32, #tpu.memory_space<vmem>>, %arg4: memref<5x162x160xf32, #tpu.memory_space<vmem>>, %arg5: memref<1x160xf32, #tpu.memory_space<vmem>>, %arg6: memref<5x144x128xf32, #tpu.memory_space<vmem>>, %arg7: memref<1x128xf32, #tpu.memory_space<vmem>>, %arg8: memref<128x128xf32, #tpu.memory_space<vmem>>, %arg9: memref<1x128xf32, #tpu.memory_space<vmem>>, %arg10: memref<128x128xf32, #tpu.memory_space<vmem>>, %arg11: memref<1x128xf32, #tpu.memory_space<vmem>>, %arg12: memref<8x128xf32, #tpu.memory_space<vmem>>) attributes {dimension_semantics = [#tpu.dimension_semantics<parallel>], iteration_bounds = array<i64: 2>, scalar_prefetch = 0 : i64, scratch_operands = 0 : i64, tpu.core_type = #tpu.core_type<tc>, window_params = [{transform_indices = @transform_0, window_bounds = array<i64: 28, 8, 480>}, {pipeline_mode = #tpu.pipeline_mode<synchronous>, transform_indices = @transform_1, window_bounds = array<i64: 480, 168>}, {pipeline_mode = #tpu.pipeline_mode<synchronous>, transform_indices = @transform_2, window_bounds = array<i64: 1, 168>}, {pipeline_mode = #tpu.pipeline_mode<synchronous>, transform_indices = @transform_3, window_bounds = array<i64: 5, 162, 160>}, {pipeline_mode = #tpu.pipeline_mode<synchronous>, transform_indices = @transform_4, window_bounds = array<i64: 1, 160>}, {pipeline_mode = #tpu.pipeline_mode<synchronous>, transform_indices = @transform_5, window_bounds = array<i64: 5, 144, 128>}, {pipeline_mode = #tpu.pipeline_mode<synchronous>, transform_indices = @transform_6, window_bounds = array<i64: 1, 128>}, {pipeline_mode = #tpu.pipeline_mode<synchronous>, transform_indices = @transform_7, window_bounds = array<i64: 128, 128>}, {pipeline_mode = #tpu.pipeline_mode<synchronous>, transform_indices = @transform_8, window_bounds = array<i64: 1, 128>}, {pipeline_mode = #tpu.pipeline_mode<synchronous>, transform_indices = @transform_9, window_bounds = array<i64: 128, 128>}, {pipeline_mode = #tpu.pipeline_mode<synchronous>, transform_indices = @transform_10, window_bounds = array<i64: 1, 128>}, {transform_indices = @transform_11, window_bounds = array<i64: 8, 128>}]} {
    %c0 = arith.constant 0 : index
    %c0_0 = arith.constant 0 : index
    %0 = vector.load %arg2[%c0, %c0_0] : memref<480x168xf32, #tpu.memory_space<vmem>>, vector<480x168xf32>
    %c0_1 = arith.constant 0 : index
    %c0_2 = arith.constant 0 : index
    %1 = vector.load %arg3[%c0_1, %c0_2] : memref<1x168xf32, #tpu.memory_space<vmem>>, vector<1x168xf32>
    %c0_3 = arith.constant 0 : index
    %c0_4 = arith.constant 0 : index
    %c0_5 = arith.constant 0 : index
    %2 = vector.load %arg1[%c0_3, %c0_4, %c0_5] : memref<28x8x480xf32, #tpu.memory_space<vmem>>, vector<1x8x480xf32>
    %3 = vector.shape_cast %2 : vector<1x8x480xf32> to vector<8x480xf32>
    %cst = arith.constant dense<0.000000e+00> : vector<8x168xf32>
    %4 = tpu.matmul %3, %0, %cst {dimension_numbers = #tpu.dot_dimension_numbers<[1], [0], [0], [1], [0, 0, 1, 1], [], []>} : vector<8x480xf32>, vector<480x168xf32>, vector<8x168xf32> -> vector<8x168xf32>
    %5 = vector.broadcast %1 : vector<1x168xf32> to vector<8x168xf32>
    %6 = arith.addf %4, %5 : vector<8x168xf32>
    %cst_6 = arith.constant 0.000000e+00 : f32
    %7 = vector.broadcast %cst_6 : f32 to vector<8x168xf32>
    %8 = arith.maximumf %6, %7 : vector<8x168xf32>
    %c1 = arith.constant 1 : index
    %c0_7 = arith.constant 0 : index
    %c0_8 = arith.constant 0 : index
    %9 = vector.load %arg1[%c1, %c0_7, %c0_8] : memref<28x8x480xf32, #tpu.memory_space<vmem>>, vector<1x8x480xf32>
    %10 = vector.shape_cast %9 : vector<1x8x480xf32> to vector<8x480xf32>
    %cst_9 = arith.constant dense<0.000000e+00> : vector<8x168xf32>
    %11 = tpu.matmul %10, %0, %cst_9 {dimension_numbers = #tpu.dot_dimension_numbers<[1], [0], [0], [1], [0, 0, 1, 1], [], []>} : vector<8x480xf32>, vector<480x168xf32>, vector<8x168xf32> -> vector<8x168xf32>
    %12 = vector.broadcast %1 : vector<1x168xf32> to vector<8x168xf32>
    %13 = arith.addf %11, %12 : vector<8x168xf32>
    %cst_10 = arith.constant 0.000000e+00 : f32
    %14 = vector.broadcast %cst_10 : f32 to vector<8x168xf32>
    %15 = arith.maximumf %13, %14 : vector<8x168xf32>
    %16 = arith.maximumf %8, %15 : vector<8x168xf32>
    %17 = vector.extract_strided_slice %16 {offsets = [0, 0], sizes = [8, 162], strides = [1, 1]} : vector<8x168xf32> to vector<8x162xf32>
    %18 = vector.extract_strided_slice %16 {offsets = [0, 6], sizes = [8, 162], strides = [1, 1]} : vector<8x168xf32> to vector<8x162xf32>
    %19 = arith.maximumf %17, %18 : vector<8x162xf32>
    %c2 = arith.constant 2 : index
    %c0_11 = arith.constant 0 : index
    %c0_12 = arith.constant 0 : index
    %20 = vector.load %arg1[%c2, %c0_11, %c0_12] : memref<28x8x480xf32, #tpu.memory_space<vmem>>, vector<1x8x480xf32>
    %21 = vector.shape_cast %20 : vector<1x8x480xf32> to vector<8x480xf32>
    %cst_13 = arith.constant dense<0.000000e+00> : vector<8x168xf32>
    %22 = tpu.matmul %21, %0, %cst_13 {dimension_numbers = #tpu.dot_dimension_numbers<[1], [0], [0], [1], [0, 0, 1, 1], [], []>} : vector<8x480xf32>, vector<480x168xf32>, vector<8x168xf32> -> vector<8x168xf32>
    %23 = vector.broadcast %1 : vector<1x168xf32> to vector<8x168xf32>
    %24 = arith.addf %22, %23 : vector<8x168xf32>
    %cst_14 = arith.constant 0.000000e+00 : f32
    %25 = vector.broadcast %cst_14 : f32 to vector<8x168xf32>
    %26 = arith.maximumf %24, %25 : vector<8x168xf32>
    %c3 = arith.constant 3 : index
    %c0_15 = arith.constant 0 : index
    %c0_16 = arith.constant 0 : index
    %27 = vector.load %arg1[%c3, %c0_15, %c0_16] : memref<28x8x480xf32, #tpu.memory_space<vmem>>, vector<1x8x480xf32>
    %28 = vector.shape_cast %27 : vector<1x8x480xf32> to vector<8x480xf32>
    %cst_17 = arith.constant dense<0.000000e+00> : vector<8x168xf32>
    %29 = tpu.matmul %28, %0, %cst_17 {dimension_numbers = #tpu.dot_dimension_numbers<[1], [0], [0], [1], [0, 0, 1, 1], [], []>} : vector<8x480xf32>, vector<480x168xf32>, vector<8x168xf32> -> vector<8x168xf32>
    %30 = vector.broadcast %1 : vector<1x168xf32> to vector<8x168xf32>
    %31 = arith.addf %29, %30 : vector<8x168xf32>
    %cst_18 = arith.constant 0.000000e+00 : f32
    %32 = vector.broadcast %cst_18 : f32 to vector<8x168xf32>
    %33 = arith.maximumf %31, %32 : vector<8x168xf32>
    %34 = arith.maximumf %26, %33 : vector<8x168xf32>
    %35 = vector.extract_strided_slice %34 {offsets = [0, 0], sizes = [8, 162], strides = [1, 1]} : vector<8x168xf32> to vector<8x162xf32>
    %36 = vector.extract_strided_slice %34 {offsets = [0, 6], sizes = [8, 162], strides = [1, 1]} : vector<8x168xf32> to vector<8x162xf32>
    %37 = arith.maximumf %35, %36 : vector<8x162xf32>
    %c4 = arith.constant 4 : index
    %c0_19 = arith.constant 0 : index
    %c0_20 = arith.constant 0 : index
    %38 = vector.load %arg1[%c4, %c0_19, %c0_20] : memref<28x8x480xf32, #tpu.memory_space<vmem>>, vector<1x8x480xf32>
    %39 = vector.shape_cast %38 : vector<1x8x480xf32> to vector<8x480xf32>
    %cst_21 = arith.constant dense<0.000000e+00> : vector<8x168xf32>
    %40 = tpu.matmul %39, %0, %cst_21 {dimension_numbers = #tpu.dot_dimension_numbers<[1], [0], [0], [1], [0, 0, 1, 1], [], []>} : vector<8x480xf32>, vector<480x168xf32>, vector<8x168xf32> -> vector<8x168xf32>
    %41 = vector.broadcast %1 : vector<1x168xf32> to vector<8x168xf32>
    %42 = arith.addf %40, %41 : vector<8x168xf32>
    %cst_22 = arith.constant 0.000000e+00 : f32
    %43 = vector.broadcast %cst_22 : f32 to vector<8x168xf32>
    %44 = arith.maximumf %42, %43 : vector<8x168xf32>
    %c5 = arith.constant 5 : index
    %c0_23 = arith.constant 0 : index
    %c0_24 = arith.constant 0 : index
    %45 = vector.load %arg1[%c5, %c0_23, %c0_24] : memref<28x8x480xf32, #tpu.memory_space<vmem>>, vector<1x8x480xf32>
    %46 = vector.shape_cast %45 : vector<1x8x480xf32> to vector<8x480xf32>
    %cst_25 = arith.constant dense<0.000000e+00> : vector<8x168xf32>
    %47 = tpu.matmul %46, %0, %cst_25 {dimension_numbers = #tpu.dot_dimension_numbers<[1], [0], [0], [1], [0, 0, 1, 1], [], []>} : vector<8x480xf32>, vector<480x168xf32>, vector<8x168xf32> -> vector<8x168xf32>
    %48 = vector.broadcast %1 : vector<1x168xf32> to vector<8x168xf32>
    %49 = arith.addf %47, %48 : vector<8x168xf32>
    %cst_26 = arith.constant 0.000000e+00 : f32
    %50 = vector.broadcast %cst_26 : f32 to vector<8x168xf32>
    %51 = arith.maximumf %49, %50 : vector<8x168xf32>
    %52 = arith.maximumf %44, %51 : vector<8x168xf32>
    %53 = vector.extract_strided_slice %52 {offsets = [0, 0], sizes = [8, 162], strides = [1, 1]} : vector<8x168xf32> to vector<8x162xf32>
    %54 = vector.extract_strided_slice %52 {offsets = [0, 6], sizes = [8, 162], strides = [1, 1]} : vector<8x168xf32> to vector<8x162xf32>
    %55 = arith.maximumf %53, %54 : vector<8x162xf32>
    %c6 = arith.constant 6 : index
    %c0_27 = arith.constant 0 : index
    %c0_28 = arith.constant 0 : index
    %56 = vector.load %arg1[%c6, %c0_27, %c0_28] : memref<28x8x480xf32, #tpu.memory_space<vmem>>, vector<1x8x480xf32>
    %57 = vector.shape_cast %56 : vector<1x8x480xf32> to vector<8x480xf32>
    %cst_29 = arith.constant dense<0.000000e+00> : vector<8x168xf32>
    %58 = tpu.matmul %57, %0, %cst_29 {dimension_numbers = #tpu.dot_dimension_numbers<[1], [0], [0], [1], [0, 0, 1, 1], [], []>} : vector<8x480xf32>, vector<480x168xf32>, vector<8x168xf32> -> vector<8x168xf32>
    %59 = vector.broadcast %1 : vector<1x168xf32> to vector<8x168xf32>
    %60 = arith.addf %58, %59 : vector<8x168xf32>
    %cst_30 = arith.constant 0.000000e+00 : f32
    %61 = vector.broadcast %cst_30 : f32 to vector<8x168xf32>
    %62 = arith.maximumf %60, %61 : vector<8x168xf32>
    %c7 = arith.constant 7 : index
    %c0_31 = arith.constant 0 : index
    %c0_32 = arith.constant 0 : index
    %63 = vector.load %arg1[%c7, %c0_31, %c0_32] : memref<28x8x480xf32, #tpu.memory_space<vmem>>, vector<1x8x480xf32>
    %64 = vector.shape_cast %63 : vector<1x8x480xf32> to vector<8x480xf32>
    %cst_33 = arith.constant dense<0.000000e+00> : vector<8x168xf32>
    %65 = tpu.matmul %64, %0, %cst_33 {dimension_numbers = #tpu.dot_dimension_numbers<[1], [0], [0], [1], [0, 0, 1, 1], [], []>} : vector<8x480xf32>, vector<480x168xf32>, vector<8x168xf32> -> vector<8x168xf32>
    %66 = vector.broadcast %1 : vector<1x168xf32> to vector<8x168xf32>
    %67 = arith.addf %65, %66 : vector<8x168xf32>
    %cst_34 = arith.constant 0.000000e+00 : f32
    %68 = vector.broadcast %cst_34 : f32 to vector<8x168xf32>
    %69 = arith.maximumf %67, %68 : vector<8x168xf32>
    %70 = arith.maximumf %62, %69 : vector<8x168xf32>
    %71 = vector.extract_strided_slice %70 {offsets = [0, 0], sizes = [8, 162], strides = [1, 1]} : vector<8x168xf32> to vector<8x162xf32>
    %72 = vector.extract_strided_slice %70 {offsets = [0, 6], sizes = [8, 162], strides = [1, 1]} : vector<8x168xf32> to vector<8x162xf32>
    %73 = arith.maximumf %71, %72 : vector<8x162xf32>
    %c8 = arith.constant 8 : index
    %c0_35 = arith.constant 0 : index
    %c0_36 = arith.constant 0 : index
    %74 = vector.load %arg1[%c8, %c0_35, %c0_36] : memref<28x8x480xf32, #tpu.memory_space<vmem>>, vector<1x8x480xf32>
    %75 = vector.shape_cast %74 : vector<1x8x480xf32> to vector<8x480xf32>
    %cst_37 = arith.constant dense<0.000000e+00> : vector<8x168xf32>
    %76 = tpu.matmul %75, %0, %cst_37 {dimension_numbers = #tpu.dot_dimension_numbers<[1], [0], [0], [1], [0, 0, 1, 1], [], []>} : vector<8x480xf32>, vector<480x168xf32>, vector<8x168xf32> -> vector<8x168xf32>
    %77 = vector.broadcast %1 : vector<1x168xf32> to vector<8x168xf32>
    %78 = arith.addf %76, %77 : vector<8x168xf32>
    %cst_38 = arith.constant 0.000000e+00 : f32
    %79 = vector.broadcast %cst_38 : f32 to vector<8x168xf32>
    %80 = arith.maximumf %78, %79 : vector<8x168xf32>
    %c9 = arith.constant 9 : index
    %c0_39 = arith.constant 0 : index
    %c0_40 = arith.constant 0 : index
    %81 = vector.load %arg1[%c9, %c0_39, %c0_40] : memref<28x8x480xf32, #tpu.memory_space<vmem>>, vector<1x8x480xf32>
    %82 = vector.shape_cast %81 : vector<1x8x480xf32> to vector<8x480xf32>
    %cst_41 = arith.constant dense<0.000000e+00> : vector<8x168xf32>
    %83 = tpu.matmul %82, %0, %cst_41 {dimension_numbers = #tpu.dot_dimension_numbers<[1], [0], [0], [1], [0, 0, 1, 1], [], []>} : vector<8x480xf32>, vector<480x168xf32>, vector<8x168xf32> -> vector<8x168xf32>
    %84 = vector.broadcast %1 : vector<1x168xf32> to vector<8x168xf32>
    %85 = arith.addf %83, %84 : vector<8x168xf32>
    %cst_42 = arith.constant 0.000000e+00 : f32
    %86 = vector.broadcast %cst_42 : f32 to vector<8x168xf32>
    %87 = arith.maximumf %85, %86 : vector<8x168xf32>
    %88 = arith.maximumf %80, %87 : vector<8x168xf32>
    %89 = vector.extract_strided_slice %88 {offsets = [0, 0], sizes = [8, 162], strides = [1, 1]} : vector<8x168xf32> to vector<8x162xf32>
    %90 = vector.extract_strided_slice %88 {offsets = [0, 6], sizes = [8, 162], strides = [1, 1]} : vector<8x168xf32> to vector<8x162xf32>
    %91 = arith.maximumf %89, %90 : vector<8x162xf32>
    %c10 = arith.constant 10 : index
    %c0_43 = arith.constant 0 : index
    %c0_44 = arith.constant 0 : index
    %92 = vector.load %arg1[%c10, %c0_43, %c0_44] : memref<28x8x480xf32, #tpu.memory_space<vmem>>, vector<1x8x480xf32>
    %93 = vector.shape_cast %92 : vector<1x8x480xf32> to vector<8x480xf32>
    %cst_45 = arith.constant dense<0.000000e+00> : vector<8x168xf32>
    %94 = tpu.matmul %93, %0, %cst_45 {dimension_numbers = #tpu.dot_dimension_numbers<[1], [0], [0], [1], [0, 0, 1, 1], [], []>} : vector<8x480xf32>, vector<480x168xf32>, vector<8x168xf32> -> vector<8x168xf32>
    %95 = vector.broadcast %1 : vector<1x168xf32> to vector<8x168xf32>
    %96 = arith.addf %94, %95 : vector<8x168xf32>
    %cst_46 = arith.constant 0.000000e+00 : f32
    %97 = vector.broadcast %cst_46 : f32 to vector<8x168xf32>
    %98 = arith.maximumf %96, %97 : vector<8x168xf32>
    %c11 = arith.constant 11 : index
    %c0_47 = arith.constant 0 : index
    %c0_48 = arith.constant 0 : index
    %99 = vector.load %arg1[%c11, %c0_47, %c0_48] : memref<28x8x480xf32, #tpu.memory_space<vmem>>, vector<1x8x480xf32>
    %100 = vector.shape_cast %99 : vector<1x8x480xf32> to vector<8x480xf32>
    %cst_49 = arith.constant dense<0.000000e+00> : vector<8x168xf32>
    %101 = tpu.matmul %100, %0, %cst_49 {dimension_numbers = #tpu.dot_dimension_numbers<[1], [0], [0], [1], [0, 0, 1, 1], [], []>} : vector<8x480xf32>, vector<480x168xf32>, vector<8x168xf32> -> vector<8x168xf32>
    %102 = vector.broadcast %1 : vector<1x168xf32> to vector<8x168xf32>
    %103 = arith.addf %101, %102 : vector<8x168xf32>
    %cst_50 = arith.constant 0.000000e+00 : f32
    %104 = vector.broadcast %cst_50 : f32 to vector<8x168xf32>
    %105 = arith.maximumf %103, %104 : vector<8x168xf32>
    %106 = arith.maximumf %98, %105 : vector<8x168xf32>
    %107 = vector.extract_strided_slice %106 {offsets = [0, 0], sizes = [8, 162], strides = [1, 1]} : vector<8x168xf32> to vector<8x162xf32>
    %108 = vector.extract_strided_slice %106 {offsets = [0, 6], sizes = [8, 162], strides = [1, 1]} : vector<8x168xf32> to vector<8x162xf32>
    %109 = arith.maximumf %107, %108 : vector<8x162xf32>
    %c12 = arith.constant 12 : index
    %c0_51 = arith.constant 0 : index
    %c0_52 = arith.constant 0 : index
    %110 = vector.load %arg1[%c12, %c0_51, %c0_52] : memref<28x8x480xf32, #tpu.memory_space<vmem>>, vector<1x8x480xf32>
    %111 = vector.shape_cast %110 : vector<1x8x480xf32> to vector<8x480xf32>
    %cst_53 = arith.constant dense<0.000000e+00> : vector<8x168xf32>
    %112 = tpu.matmul %111, %0, %cst_53 {dimension_numbers = #tpu.dot_dimension_numbers<[1], [0], [0], [1], [0, 0, 1, 1], [], []>} : vector<8x480xf32>, vector<480x168xf32>, vector<8x168xf32> -> vector<8x168xf32>
    %113 = vector.broadcast %1 : vector<1x168xf32> to vector<8x168xf32>
    %114 = arith.addf %112, %113 : vector<8x168xf32>
    %cst_54 = arith.constant 0.000000e+00 : f32
    %115 = vector.broadcast %cst_54 : f32 to vector<8x168xf32>
    %116 = arith.maximumf %114, %115 : vector<8x168xf32>
    %c13 = arith.constant 13 : index
    %c0_55 = arith.constant 0 : index
    %c0_56 = arith.constant 0 : index
    %117 = vector.load %arg1[%c13, %c0_55, %c0_56] : memref<28x8x480xf32, #tpu.memory_space<vmem>>, vector<1x8x480xf32>
    %118 = vector.shape_cast %117 : vector<1x8x480xf32> to vector<8x480xf32>
    %cst_57 = arith.constant dense<0.000000e+00> : vector<8x168xf32>
    %119 = tpu.matmul %118, %0, %cst_57 {dimension_numbers = #tpu.dot_dimension_numbers<[1], [0], [0], [1], [0, 0, 1, 1], [], []>} : vector<8x480xf32>, vector<480x168xf32>, vector<8x168xf32> -> vector<8x168xf32>
    %120 = vector.broadcast %1 : vector<1x168xf32> to vector<8x168xf32>
    %121 = arith.addf %119, %120 : vector<8x168xf32>
    %cst_58 = arith.constant 0.000000e+00 : f32
    %122 = vector.broadcast %cst_58 : f32 to vector<8x168xf32>
    %123 = arith.maximumf %121, %122 : vector<8x168xf32>
    %124 = arith.maximumf %116, %123 : vector<8x168xf32>
    %125 = vector.extract_strided_slice %124 {offsets = [0, 0], sizes = [8, 162], strides = [1, 1]} : vector<8x168xf32> to vector<8x162xf32>
    %126 = vector.extract_strided_slice %124 {offsets = [0, 6], sizes = [8, 162], strides = [1, 1]} : vector<8x168xf32> to vector<8x162xf32>
    %127 = arith.maximumf %125, %126 : vector<8x162xf32>
    %c14 = arith.constant 14 : index
    %c0_59 = arith.constant 0 : index
    %c0_60 = arith.constant 0 : index
    %128 = vector.load %arg1[%c14, %c0_59, %c0_60] : memref<28x8x480xf32, #tpu.memory_space<vmem>>, vector<1x8x480xf32>
    %129 = vector.shape_cast %128 : vector<1x8x480xf32> to vector<8x480xf32>
    %cst_61 = arith.constant dense<0.000000e+00> : vector<8x168xf32>
    %130 = tpu.matmul %129, %0, %cst_61 {dimension_numbers = #tpu.dot_dimension_numbers<[1], [0], [0], [1], [0, 0, 1, 1], [], []>} : vector<8x480xf32>, vector<480x168xf32>, vector<8x168xf32> -> vector<8x168xf32>
    %131 = vector.broadcast %1 : vector<1x168xf32> to vector<8x168xf32>
    %132 = arith.addf %130, %131 : vector<8x168xf32>
    %cst_62 = arith.constant 0.000000e+00 : f32
    %133 = vector.broadcast %cst_62 : f32 to vector<8x168xf32>
    %134 = arith.maximumf %132, %133 : vector<8x168xf32>
    %c15 = arith.constant 15 : index
    %c0_63 = arith.constant 0 : index
    %c0_64 = arith.constant 0 : index
    %135 = vector.load %arg1[%c15, %c0_63, %c0_64] : memref<28x8x480xf32, #tpu.memory_space<vmem>>, vector<1x8x480xf32>
    %136 = vector.shape_cast %135 : vector<1x8x480xf32> to vector<8x480xf32>
    %cst_65 = arith.constant dense<0.000000e+00> : vector<8x168xf32>
    %137 = tpu.matmul %136, %0, %cst_65 {dimension_numbers = #tpu.dot_dimension_numbers<[1], [0], [0], [1], [0, 0, 1, 1], [], []>} : vector<8x480xf32>, vector<480x168xf32>, vector<8x168xf32> -> vector<8x168xf32>
    %138 = vector.broadcast %1 : vector<1x168xf32> to vector<8x168xf32>
    %139 = arith.addf %137, %138 : vector<8x168xf32>
    %cst_66 = arith.constant 0.000000e+00 : f32
    %140 = vector.broadcast %cst_66 : f32 to vector<8x168xf32>
    %141 = arith.maximumf %139, %140 : vector<8x168xf32>
    %142 = arith.maximumf %134, %141 : vector<8x168xf32>
    %143 = vector.extract_strided_slice %142 {offsets = [0, 0], sizes = [8, 162], strides = [1, 1]} : vector<8x168xf32> to vector<8x162xf32>
    %144 = vector.extract_strided_slice %142 {offsets = [0, 6], sizes = [8, 162], strides = [1, 1]} : vector<8x168xf32> to vector<8x162xf32>
    %145 = arith.maximumf %143, %144 : vector<8x162xf32>
    %c16 = arith.constant 16 : index
    %c0_67 = arith.constant 0 : index
    %c0_68 = arith.constant 0 : index
    %146 = vector.load %arg1[%c16, %c0_67, %c0_68] : memref<28x8x480xf32, #tpu.memory_space<vmem>>, vector<1x8x480xf32>
    %147 = vector.shape_cast %146 : vector<1x8x480xf32> to vector<8x480xf32>
    %cst_69 = arith.constant dense<0.000000e+00> : vector<8x168xf32>
    %148 = tpu.matmul %147, %0, %cst_69 {dimension_numbers = #tpu.dot_dimension_numbers<[1], [0], [0], [1], [0, 0, 1, 1], [], []>} : vector<8x480xf32>, vector<480x168xf32>, vector<8x168xf32> -> vector<8x168xf32>
    %149 = vector.broadcast %1 : vector<1x168xf32> to vector<8x168xf32>
    %150 = arith.addf %148, %149 : vector<8x168xf32>
    %cst_70 = arith.constant 0.000000e+00 : f32
    %151 = vector.broadcast %cst_70 : f32 to vector<8x168xf32>
    %152 = arith.maximumf %150, %151 : vector<8x168xf32>
    %c17 = arith.constant 17 : index
    %c0_71 = arith.constant 0 : index
    %c0_72 = arith.constant 0 : index
    %153 = vector.load %arg1[%c17, %c0_71, %c0_72] : memref<28x8x480xf32, #tpu.memory_space<vmem>>, vector<1x8x480xf32>
    %154 = vector.shape_cast %153 : vector<1x8x480xf32> to vector<8x480xf32>
    %cst_73 = arith.constant dense<0.000000e+00> : vector<8x168xf32>
    %155 = tpu.matmul %154, %0, %cst_73 {dimension_numbers = #tpu.dot_dimension_numbers<[1], [0], [0], [1], [0, 0, 1, 1], [], []>} : vector<8x480xf32>, vector<480x168xf32>, vector<8x168xf32> -> vector<8x168xf32>
    %156 = vector.broadcast %1 : vector<1x168xf32> to vector<8x168xf32>
    %157 = arith.addf %155, %156 : vector<8x168xf32>
    %cst_74 = arith.constant 0.000000e+00 : f32
    %158 = vector.broadcast %cst_74 : f32 to vector<8x168xf32>
    %159 = arith.maximumf %157, %158 : vector<8x168xf32>
    %160 = arith.maximumf %152, %159 : vector<8x168xf32>
    %161 = vector.extract_strided_slice %160 {offsets = [0, 0], sizes = [8, 162], strides = [1, 1]} : vector<8x168xf32> to vector<8x162xf32>
    %162 = vector.extract_strided_slice %160 {offsets = [0, 6], sizes = [8, 162], strides = [1, 1]} : vector<8x168xf32> to vector<8x162xf32>
    %163 = arith.maximumf %161, %162 : vector<8x162xf32>
    %c18 = arith.constant 18 : index
    %c0_75 = arith.constant 0 : index
    %c0_76 = arith.constant 0 : index
    %164 = vector.load %arg1[%c18, %c0_75, %c0_76] : memref<28x8x480xf32, #tpu.memory_space<vmem>>, vector<1x8x480xf32>
    %165 = vector.shape_cast %164 : vector<1x8x480xf32> to vector<8x480xf32>
    %cst_77 = arith.constant dense<0.000000e+00> : vector<8x168xf32>
    %166 = tpu.matmul %165, %0, %cst_77 {dimension_numbers = #tpu.dot_dimension_numbers<[1], [0], [0], [1], [0, 0, 1, 1], [], []>} : vector<8x480xf32>, vector<480x168xf32>, vector<8x168xf32> -> vector<8x168xf32>
    %167 = vector.broadcast %1 : vector<1x168xf32> to vector<8x168xf32>
    %168 = arith.addf %166, %167 : vector<8x168xf32>
    %cst_78 = arith.constant 0.000000e+00 : f32
    %169 = vector.broadcast %cst_78 : f32 to vector<8x168xf32>
    %170 = arith.maximumf %168, %169 : vector<8x168xf32>
    %c19 = arith.constant 19 : index
    %c0_79 = arith.constant 0 : index
    %c0_80 = arith.constant 0 : index
    %171 = vector.load %arg1[%c19, %c0_79, %c0_80] : memref<28x8x480xf32, #tpu.memory_space<vmem>>, vector<1x8x480xf32>
    %172 = vector.shape_cast %171 : vector<1x8x480xf32> to vector<8x480xf32>
    %cst_81 = arith.constant dense<0.000000e+00> : vector<8x168xf32>
    %173 = tpu.matmul %172, %0, %cst_81 {dimension_numbers = #tpu.dot_dimension_numbers<[1], [0], [0], [1], [0, 0, 1, 1], [], []>} : vector<8x480xf32>, vector<480x168xf32>, vector<8x168xf32> -> vector<8x168xf32>
    %174 = vector.broadcast %1 : vector<1x168xf32> to vector<8x168xf32>
    %175 = arith.addf %173, %174 : vector<8x168xf32>
    %cst_82 = arith.constant 0.000000e+00 : f32
    %176 = vector.broadcast %cst_82 : f32 to vector<8x168xf32>
    %177 = arith.maximumf %175, %176 : vector<8x168xf32>
    %178 = arith.maximumf %170, %177 : vector<8x168xf32>
    %179 = vector.extract_strided_slice %178 {offsets = [0, 0], sizes = [8, 162], strides = [1, 1]} : vector<8x168xf32> to vector<8x162xf32>
    %180 = vector.extract_strided_slice %178 {offsets = [0, 6], sizes = [8, 162], strides = [1, 1]} : vector<8x168xf32> to vector<8x162xf32>
    %181 = arith.maximumf %179, %180 : vector<8x162xf32>
    %c20 = arith.constant 20 : index
    %c0_83 = arith.constant 0 : index
    %c0_84 = arith.constant 0 : index
    %182 = vector.load %arg1[%c20, %c0_83, %c0_84] : memref<28x8x480xf32, #tpu.memory_space<vmem>>, vector<1x8x480xf32>
    %183 = vector.shape_cast %182 : vector<1x8x480xf32> to vector<8x480xf32>
    %cst_85 = arith.constant dense<0.000000e+00> : vector<8x168xf32>
    %184 = tpu.matmul %183, %0, %cst_85 {dimension_numbers = #tpu.dot_dimension_numbers<[1], [0], [0], [1], [0, 0, 1, 1], [], []>} : vector<8x480xf32>, vector<480x168xf32>, vector<8x168xf32> -> vector<8x168xf32>
    %185 = vector.broadcast %1 : vector<1x168xf32> to vector<8x168xf32>
    %186 = arith.addf %184, %185 : vector<8x168xf32>
    %cst_86 = arith.constant 0.000000e+00 : f32
    %187 = vector.broadcast %cst_86 : f32 to vector<8x168xf32>
    %188 = arith.maximumf %186, %187 : vector<8x168xf32>
    %c21 = arith.constant 21 : index
    %c0_87 = arith.constant 0 : index
    %c0_88 = arith.constant 0 : index
    %189 = vector.load %arg1[%c21, %c0_87, %c0_88] : memref<28x8x480xf32, #tpu.memory_space<vmem>>, vector<1x8x480xf32>
    %190 = vector.shape_cast %189 : vector<1x8x480xf32> to vector<8x480xf32>
    %cst_89 = arith.constant dense<0.000000e+00> : vector<8x168xf32>
    %191 = tpu.matmul %190, %0, %cst_89 {dimension_numbers = #tpu.dot_dimension_numbers<[1], [0], [0], [1], [0, 0, 1, 1], [], []>} : vector<8x480xf32>, vector<480x168xf32>, vector<8x168xf32> -> vector<8x168xf32>
    %192 = vector.broadcast %1 : vector<1x168xf32> to vector<8x168xf32>
    %193 = arith.addf %191, %192 : vector<8x168xf32>
    %cst_90 = arith.constant 0.000000e+00 : f32
    %194 = vector.broadcast %cst_90 : f32 to vector<8x168xf32>
    %195 = arith.maximumf %193, %194 : vector<8x168xf32>
    %196 = arith.maximumf %188, %195 : vector<8x168xf32>
    %197 = vector.extract_strided_slice %196 {offsets = [0, 0], sizes = [8, 162], strides = [1, 1]} : vector<8x168xf32> to vector<8x162xf32>
    %198 = vector.extract_strided_slice %196 {offsets = [0, 6], sizes = [8, 162], strides = [1, 1]} : vector<8x168xf32> to vector<8x162xf32>
    %199 = arith.maximumf %197, %198 : vector<8x162xf32>
    %c22 = arith.constant 22 : index
    %c0_91 = arith.constant 0 : index
    %c0_92 = arith.constant 0 : index
    %200 = vector.load %arg1[%c22, %c0_91, %c0_92] : memref<28x8x480xf32, #tpu.memory_space<vmem>>, vector<1x8x480xf32>
    %201 = vector.shape_cast %200 : vector<1x8x480xf32> to vector<8x480xf32>
    %cst_93 = arith.constant dense<0.000000e+00> : vector<8x168xf32>
    %202 = tpu.matmul %201, %0, %cst_93 {dimension_numbers = #tpu.dot_dimension_numbers<[1], [0], [0], [1], [0, 0, 1, 1], [], []>} : vector<8x480xf32>, vector<480x168xf32>, vector<8x168xf32> -> vector<8x168xf32>
    %203 = vector.broadcast %1 : vector<1x168xf32> to vector<8x168xf32>
    %204 = arith.addf %202, %203 : vector<8x168xf32>
    %cst_94 = arith.constant 0.000000e+00 : f32
    %205 = vector.broadcast %cst_94 : f32 to vector<8x168xf32>
    %206 = arith.maximumf %204, %205 : vector<8x168xf32>
    %c23 = arith.constant 23 : index
    %c0_95 = arith.constant 0 : index
    %c0_96 = arith.constant 0 : index
    %207 = vector.load %arg1[%c23, %c0_95, %c0_96] : memref<28x8x480xf32, #tpu.memory_space<vmem>>, vector<1x8x480xf32>
    %208 = vector.shape_cast %207 : vector<1x8x480xf32> to vector<8x480xf32>
    %cst_97 = arith.constant dense<0.000000e+00> : vector<8x168xf32>
    %209 = tpu.matmul %208, %0, %cst_97 {dimension_numbers = #tpu.dot_dimension_numbers<[1], [0], [0], [1], [0, 0, 1, 1], [], []>} : vector<8x480xf32>, vector<480x168xf32>, vector<8x168xf32> -> vector<8x168xf32>
    %210 = vector.broadcast %1 : vector<1x168xf32> to vector<8x168xf32>
    %211 = arith.addf %209, %210 : vector<8x168xf32>
    %cst_98 = arith.constant 0.000000e+00 : f32
    %212 = vector.broadcast %cst_98 : f32 to vector<8x168xf32>
    %213 = arith.maximumf %211, %212 : vector<8x168xf32>
    %214 = arith.maximumf %206, %213 : vector<8x168xf32>
    %215 = vector.extract_strided_slice %214 {offsets = [0, 0], sizes = [8, 162], strides = [1, 1]} : vector<8x168xf32> to vector<8x162xf32>
    %216 = vector.extract_strided_slice %214 {offsets = [0, 6], sizes = [8, 162], strides = [1, 1]} : vector<8x168xf32> to vector<8x162xf32>
    %217 = arith.maximumf %215, %216 : vector<8x162xf32>
    %c24 = arith.constant 24 : index
    %c0_99 = arith.constant 0 : index
    %c0_100 = arith.constant 0 : index
    %218 = vector.load %arg1[%c24, %c0_99, %c0_100] : memref<28x8x480xf32, #tpu.memory_space<vmem>>, vector<1x8x480xf32>
    %219 = vector.shape_cast %218 : vector<1x8x480xf32> to vector<8x480xf32>
    %cst_101 = arith.constant dense<0.000000e+00> : vector<8x168xf32>
    %220 = tpu.matmul %219, %0, %cst_101 {dimension_numbers = #tpu.dot_dimension_numbers<[1], [0], [0], [1], [0, 0, 1, 1], [], []>} : vector<8x480xf32>, vector<480x168xf32>, vector<8x168xf32> -> vector<8x168xf32>
    %221 = vector.broadcast %1 : vector<1x168xf32> to vector<8x168xf32>
    %222 = arith.addf %220, %221 : vector<8x168xf32>
    %cst_102 = arith.constant 0.000000e+00 : f32
    %223 = vector.broadcast %cst_102 : f32 to vector<8x168xf32>
    %224 = arith.maximumf %222, %223 : vector<8x168xf32>
    %c25 = arith.constant 25 : index
    %c0_103 = arith.constant 0 : index
    %c0_104 = arith.constant 0 : index
    %225 = vector.load %arg1[%c25, %c0_103, %c0_104] : memref<28x8x480xf32, #tpu.memory_space<vmem>>, vector<1x8x480xf32>
    %226 = vector.shape_cast %225 : vector<1x8x480xf32> to vector<8x480xf32>
    %cst_105 = arith.constant dense<0.000000e+00> : vector<8x168xf32>
    %227 = tpu.matmul %226, %0, %cst_105 {dimension_numbers = #tpu.dot_dimension_numbers<[1], [0], [0], [1], [0, 0, 1, 1], [], []>} : vector<8x480xf32>, vector<480x168xf32>, vector<8x168xf32> -> vector<8x168xf32>
    %228 = vector.broadcast %1 : vector<1x168xf32> to vector<8x168xf32>
    %229 = arith.addf %227, %228 : vector<8x168xf32>
    %cst_106 = arith.constant 0.000000e+00 : f32
    %230 = vector.broadcast %cst_106 : f32 to vector<8x168xf32>
    %231 = arith.maximumf %229, %230 : vector<8x168xf32>
    %232 = arith.maximumf %224, %231 : vector<8x168xf32>
    %233 = vector.extract_strided_slice %232 {offsets = [0, 0], sizes = [8, 162], strides = [1, 1]} : vector<8x168xf32> to vector<8x162xf32>
    %234 = vector.extract_strided_slice %232 {offsets = [0, 6], sizes = [8, 162], strides = [1, 1]} : vector<8x168xf32> to vector<8x162xf32>
    %235 = arith.maximumf %233, %234 : vector<8x162xf32>
    %c26 = arith.constant 26 : index
    %c0_107 = arith.constant 0 : index
    %c0_108 = arith.constant 0 : index
    %236 = vector.load %arg1[%c26, %c0_107, %c0_108] : memref<28x8x480xf32, #tpu.memory_space<vmem>>, vector<1x8x480xf32>
    %237 = vector.shape_cast %236 : vector<1x8x480xf32> to vector<8x480xf32>
    %cst_109 = arith.constant dense<0.000000e+00> : vector<8x168xf32>
    %238 = tpu.matmul %237, %0, %cst_109 {dimension_numbers = #tpu.dot_dimension_numbers<[1], [0], [0], [1], [0, 0, 1, 1], [], []>} : vector<8x480xf32>, vector<480x168xf32>, vector<8x168xf32> -> vector<8x168xf32>
    %239 = vector.broadcast %1 : vector<1x168xf32> to vector<8x168xf32>
    %240 = arith.addf %238, %239 : vector<8x168xf32>
    %cst_110 = arith.constant 0.000000e+00 : f32
    %241 = vector.broadcast %cst_110 : f32 to vector<8x168xf32>
    %242 = arith.maximumf %240, %241 : vector<8x168xf32>
    %c27 = arith.constant 27 : index
    %c0_111 = arith.constant 0 : index
    %c0_112 = arith.constant 0 : index
    %243 = vector.load %arg1[%c27, %c0_111, %c0_112] : memref<28x8x480xf32, #tpu.memory_space<vmem>>, vector<1x8x480xf32>
    %244 = vector.shape_cast %243 : vector<1x8x480xf32> to vector<8x480xf32>
    %cst_113 = arith.constant dense<0.000000e+00> : vector<8x168xf32>
    %245 = tpu.matmul %244, %0, %cst_113 {dimension_numbers = #tpu.dot_dimension_numbers<[1], [0], [0], [1], [0, 0, 1, 1], [], []>} : vector<8x480xf32>, vector<480x168xf32>, vector<8x168xf32> -> vector<8x168xf32>
    %246 = vector.broadcast %1 : vector<1x168xf32> to vector<8x168xf32>
    %247 = arith.addf %245, %246 : vector<8x168xf32>
    %cst_114 = arith.constant 0.000000e+00 : f32
    %248 = vector.broadcast %cst_114 : f32 to vector<8x168xf32>
    %249 = arith.maximumf %247, %248 : vector<8x168xf32>
    %250 = arith.maximumf %242, %249 : vector<8x168xf32>
    %251 = vector.extract_strided_slice %250 {offsets = [0, 0], sizes = [8, 162], strides = [1, 1]} : vector<8x168xf32> to vector<8x162xf32>
    %252 = vector.extract_strided_slice %250 {offsets = [0, 6], sizes = [8, 162], strides = [1, 1]} : vector<8x168xf32> to vector<8x162xf32>
    %253 = arith.maximumf %251, %252 : vector<8x162xf32>
    %c0_115 = arith.constant 0 : index
    %c0_116 = arith.constant 0 : index
    %254 = vector.load %arg5[%c0_115, %c0_116] : memref<1x160xf32, #tpu.memory_space<vmem>>, vector<1x160xf32>
    %c0_117 = arith.constant 0 : index
    %c0_118 = arith.constant 0 : index
    %c0_119 = arith.constant 0 : index
    %255 = vector.load %arg4[%c0_117, %c0_118, %c0_119] : memref<5x162x160xf32, #tpu.memory_space<vmem>>, vector<1x162x160xf32>
    %256 = vector.shape_cast %255 : vector<1x162x160xf32> to vector<162x160xf32>
    %cst_120 = arith.constant dense<0.000000e+00> : vector<8x160xf32>
    %257 = tpu.matmul %19, %256, %cst_120 {dimension_numbers = #tpu.dot_dimension_numbers<[1], [0], [0], [1], [0, 0, 1, 1], [], []>} : vector<8x162xf32>, vector<162x160xf32>, vector<8x160xf32> -> vector<8x160xf32>
    %c1_121 = arith.constant 1 : index
    %c0_122 = arith.constant 0 : index
    %c0_123 = arith.constant 0 : index
    %258 = vector.load %arg4[%c1_121, %c0_122, %c0_123] : memref<5x162x160xf32, #tpu.memory_space<vmem>>, vector<1x162x160xf32>
    %259 = vector.shape_cast %258 : vector<1x162x160xf32> to vector<162x160xf32>
    %cst_124 = arith.constant dense<0.000000e+00> : vector<8x160xf32>
    %260 = tpu.matmul %37, %259, %cst_124 {dimension_numbers = #tpu.dot_dimension_numbers<[1], [0], [0], [1], [0, 0, 1, 1], [], []>} : vector<8x162xf32>, vector<162x160xf32>, vector<8x160xf32> -> vector<8x160xf32>
    %261 = arith.addf %257, %260 : vector<8x160xf32>
    %c2_125 = arith.constant 2 : index
    %c0_126 = arith.constant 0 : index
    %c0_127 = arith.constant 0 : index
    %262 = vector.load %arg4[%c2_125, %c0_126, %c0_127] : memref<5x162x160xf32, #tpu.memory_space<vmem>>, vector<1x162x160xf32>
    %263 = vector.shape_cast %262 : vector<1x162x160xf32> to vector<162x160xf32>
    %cst_128 = arith.constant dense<0.000000e+00> : vector<8x160xf32>
    %264 = tpu.matmul %55, %263, %cst_128 {dimension_numbers = #tpu.dot_dimension_numbers<[1], [0], [0], [1], [0, 0, 1, 1], [], []>} : vector<8x162xf32>, vector<162x160xf32>, vector<8x160xf32> -> vector<8x160xf32>
    %265 = arith.addf %261, %264 : vector<8x160xf32>
    %c3_129 = arith.constant 3 : index
    %c0_130 = arith.constant 0 : index
    %c0_131 = arith.constant 0 : index
    %266 = vector.load %arg4[%c3_129, %c0_130, %c0_131] : memref<5x162x160xf32, #tpu.memory_space<vmem>>, vector<1x162x160xf32>
    %267 = vector.shape_cast %266 : vector<1x162x160xf32> to vector<162x160xf32>
    %cst_132 = arith.constant dense<0.000000e+00> : vector<8x160xf32>
    %268 = tpu.matmul %73, %267, %cst_132 {dimension_numbers = #tpu.dot_dimension_numbers<[1], [0], [0], [1], [0, 0, 1, 1], [], []>} : vector<8x162xf32>, vector<162x160xf32>, vector<8x160xf32> -> vector<8x160xf32>
    %269 = arith.addf %265, %268 : vector<8x160xf32>
    %c4_133 = arith.constant 4 : index
    %c0_134 = arith.constant 0 : index
    %c0_135 = arith.constant 0 : index
    %270 = vector.load %arg4[%c4_133, %c0_134, %c0_135] : memref<5x162x160xf32, #tpu.memory_space<vmem>>, vector<1x162x160xf32>
    %271 = vector.shape_cast %270 : vector<1x162x160xf32> to vector<162x160xf32>
    %cst_136 = arith.constant dense<0.000000e+00> : vector<8x160xf32>
    %272 = tpu.matmul %91, %271, %cst_136 {dimension_numbers = #tpu.dot_dimension_numbers<[1], [0], [0], [1], [0, 0, 1, 1], [], []>} : vector<8x162xf32>, vector<162x160xf32>, vector<8x160xf32> -> vector<8x160xf32>
    %273 = arith.addf %269, %272 : vector<8x160xf32>
    %274 = vector.broadcast %254 : vector<1x160xf32> to vector<8x160xf32>
    %275 = arith.addf %273, %274 : vector<8x160xf32>
    %cst_137 = arith.constant 0.000000e+00 : f32
    %276 = vector.broadcast %cst_137 : f32 to vector<8x160xf32>
    %277 = arith.maximumf %275, %276 : vector<8x160xf32>
    %c0_138 = arith.constant 0 : index
    %c0_139 = arith.constant 0 : index
    %c0_140 = arith.constant 0 : index
    %278 = vector.load %arg4[%c0_138, %c0_139, %c0_140] : memref<5x162x160xf32, #tpu.memory_space<vmem>>, vector<1x162x160xf32>
    %279 = vector.shape_cast %278 : vector<1x162x160xf32> to vector<162x160xf32>
    %cst_141 = arith.constant dense<0.000000e+00> : vector<8x160xf32>
    %280 = tpu.matmul %37, %279, %cst_141 {dimension_numbers = #tpu.dot_dimension_numbers<[1], [0], [0], [1], [0, 0, 1, 1], [], []>} : vector<8x162xf32>, vector<162x160xf32>, vector<8x160xf32> -> vector<8x160xf32>
    %c1_142 = arith.constant 1 : index
    %c0_143 = arith.constant 0 : index
    %c0_144 = arith.constant 0 : index
    %281 = vector.load %arg4[%c1_142, %c0_143, %c0_144] : memref<5x162x160xf32, #tpu.memory_space<vmem>>, vector<1x162x160xf32>
    %282 = vector.shape_cast %281 : vector<1x162x160xf32> to vector<162x160xf32>
    %cst_145 = arith.constant dense<0.000000e+00> : vector<8x160xf32>
    %283 = tpu.matmul %55, %282, %cst_145 {dimension_numbers = #tpu.dot_dimension_numbers<[1], [0], [0], [1], [0, 0, 1, 1], [], []>} : vector<8x162xf32>, vector<162x160xf32>, vector<8x160xf32> -> vector<8x160xf32>
    %284 = arith.addf %280, %283 : vector<8x160xf32>
    %c2_146 = arith.constant 2 : index
    %c0_147 = arith.constant 0 : index
    %c0_148 = arith.constant 0 : index
    %285 = vector.load %arg4[%c2_146, %c0_147, %c0_148] : memref<5x162x160xf32, #tpu.memory_space<vmem>>, vector<1x162x160xf32>
    %286 = vector.shape_cast %285 : vector<1x162x160xf32> to vector<162x160xf32>
    %cst_149 = arith.constant dense<0.000000e+00> : vector<8x160xf32>
    %287 = tpu.matmul %73, %286, %cst_149 {dimension_numbers = #tpu.dot_dimension_numbers<[1], [0], [0], [1], [0, 0, 1, 1], [], []>} : vector<8x162xf32>, vector<162x160xf32>, vector<8x160xf32> -> vector<8x160xf32>
    %288 = arith.addf %284, %287 : vector<8x160xf32>
    %c3_150 = arith.constant 3 : index
    %c0_151 = arith.constant 0 : index
    %c0_152 = arith.constant 0 : index
    %289 = vector.load %arg4[%c3_150, %c0_151, %c0_152] : memref<5x162x160xf32, #tpu.memory_space<vmem>>, vector<1x162x160xf32>
    %290 = vector.shape_cast %289 : vector<1x162x160xf32> to vector<162x160xf32>
    %cst_153 = arith.constant dense<0.000000e+00> : vector<8x160xf32>
    %291 = tpu.matmul %91, %290, %cst_153 {dimension_numbers = #tpu.dot_dimension_numbers<[1], [0], [0], [1], [0, 0, 1, 1], [], []>} : vector<8x162xf32>, vector<162x160xf32>, vector<8x160xf32> -> vector<8x160xf32>
    %292 = arith.addf %288, %291 : vector<8x160xf32>
    %c4_154 = arith.constant 4 : index
    %c0_155 = arith.constant 0 : index
    %c0_156 = arith.constant 0 : index
    %293 = vector.load %arg4[%c4_154, %c0_155, %c0_156] : memref<5x162x160xf32, #tpu.memory_space<vmem>>, vector<1x162x160xf32>
    %294 = vector.shape_cast %293 : vector<1x162x160xf32> to vector<162x160xf32>
    %cst_157 = arith.constant dense<0.000000e+00> : vector<8x160xf32>
    %295 = tpu.matmul %109, %294, %cst_157 {dimension_numbers = #tpu.dot_dimension_numbers<[1], [0], [0], [1], [0, 0, 1, 1], [], []>} : vector<8x162xf32>, vector<162x160xf32>, vector<8x160xf32> -> vector<8x160xf32>
    %296 = arith.addf %292, %295 : vector<8x160xf32>
    %297 = vector.broadcast %254 : vector<1x160xf32> to vector<8x160xf32>
    %298 = arith.addf %296, %297 : vector<8x160xf32>
    %cst_158 = arith.constant 0.000000e+00 : f32
    %299 = vector.broadcast %cst_158 : f32 to vector<8x160xf32>
    %300 = arith.maximumf %298, %299 : vector<8x160xf32>
    %301 = arith.maximumf %277, %300 : vector<8x160xf32>
    %302 = vector.extract_strided_slice %301 {offsets = [0, 0], sizes = [8, 144], strides = [1, 1]} : vector<8x160xf32> to vector<8x144xf32>
    %303 = vector.extract_strided_slice %301 {offsets = [0, 16], sizes = [8, 144], strides = [1, 1]} : vector<8x160xf32> to vector<8x144xf32>
    %304 = arith.maximumf %302, %303 : vector<8x144xf32>
    %c0_159 = arith.constant 0 : index
    %c0_160 = arith.constant 0 : index
    %c0_161 = arith.constant 0 : index
    %305 = vector.load %arg4[%c0_159, %c0_160, %c0_161] : memref<5x162x160xf32, #tpu.memory_space<vmem>>, vector<1x162x160xf32>
    %306 = vector.shape_cast %305 : vector<1x162x160xf32> to vector<162x160xf32>
    %cst_162 = arith.constant dense<0.000000e+00> : vector<8x160xf32>
    %307 = tpu.matmul %55, %306, %cst_162 {dimension_numbers = #tpu.dot_dimension_numbers<[1], [0], [0], [1], [0, 0, 1, 1], [], []>} : vector<8x162xf32>, vector<162x160xf32>, vector<8x160xf32> -> vector<8x160xf32>
    %c1_163 = arith.constant 1 : index
    %c0_164 = arith.constant 0 : index
    %c0_165 = arith.constant 0 : index
    %308 = vector.load %arg4[%c1_163, %c0_164, %c0_165] : memref<5x162x160xf32, #tpu.memory_space<vmem>>, vector<1x162x160xf32>
    %309 = vector.shape_cast %308 : vector<1x162x160xf32> to vector<162x160xf32>
    %cst_166 = arith.constant dense<0.000000e+00> : vector<8x160xf32>
    %310 = tpu.matmul %73, %309, %cst_166 {dimension_numbers = #tpu.dot_dimension_numbers<[1], [0], [0], [1], [0, 0, 1, 1], [], []>} : vector<8x162xf32>, vector<162x160xf32>, vector<8x160xf32> -> vector<8x160xf32>
    %311 = arith.addf %307, %310 : vector<8x160xf32>
    %c2_167 = arith.constant 2 : index
    %c0_168 = arith.constant 0 : index
    %c0_169 = arith.constant 0 : index
    %312 = vector.load %arg4[%c2_167, %c0_168, %c0_169] : memref<5x162x160xf32, #tpu.memory_space<vmem>>, vector<1x162x160xf32>
    %313 = vector.shape_cast %312 : vector<1x162x160xf32> to vector<162x160xf32>
    %cst_170 = arith.constant dense<0.000000e+00> : vector<8x160xf32>
    %314 = tpu.matmul %91, %313, %cst_170 {dimension_numbers = #tpu.dot_dimension_numbers<[1], [0], [0], [1], [0, 0, 1, 1], [], []>} : vector<8x162xf32>, vector<162x160xf32>, vector<8x160xf32> -> vector<8x160xf32>
    %315 = arith.addf %311, %314 : vector<8x160xf32>
    %c3_171 = arith.constant 3 : index
    %c0_172 = arith.constant 0 : index
    %c0_173 = arith.constant 0 : index
    %316 = vector.load %arg4[%c3_171, %c0_172, %c0_173] : memref<5x162x160xf32, #tpu.memory_space<vmem>>, vector<1x162x160xf32>
    %317 = vector.shape_cast %316 : vector<1x162x160xf32> to vector<162x160xf32>
    %cst_174 = arith.constant dense<0.000000e+00> : vector<8x160xf32>
    %318 = tpu.matmul %109, %317, %cst_174 {dimension_numbers = #tpu.dot_dimension_numbers<[1], [0], [0], [1], [0, 0, 1, 1], [], []>} : vector<8x162xf32>, vector<162x160xf32>, vector<8x160xf32> -> vector<8x160xf32>
    %319 = arith.addf %315, %318 : vector<8x160xf32>
    %c4_175 = arith.constant 4 : index
    %c0_176 = arith.constant 0 : index
    %c0_177 = arith.constant 0 : index
    %320 = vector.load %arg4[%c4_175, %c0_176, %c0_177] : memref<5x162x160xf32, #tpu.memory_space<vmem>>, vector<1x162x160xf32>
    %321 = vector.shape_cast %320 : vector<1x162x160xf32> to vector<162x160xf32>
    %cst_178 = arith.constant dense<0.000000e+00> : vector<8x160xf32>
    %322 = tpu.matmul %127, %321, %cst_178 {dimension_numbers = #tpu.dot_dimension_numbers<[1], [0], [0], [1], [0, 0, 1, 1], [], []>} : vector<8x162xf32>, vector<162x160xf32>, vector<8x160xf32> -> vector<8x160xf32>
    %323 = arith.addf %319, %322 : vector<8x160xf32>
    %324 = vector.broadcast %254 : vector<1x160xf32> to vector<8x160xf32>
    %325 = arith.addf %323, %324 : vector<8x160xf32>
    %cst_179 = arith.constant 0.000000e+00 : f32
    %326 = vector.broadcast %cst_179 : f32 to vector<8x160xf32>
    %327 = arith.maximumf %325, %326 : vector<8x160xf32>
    %c0_180 = arith.constant 0 : index
    %c0_181 = arith.constant 0 : index
    %c0_182 = arith.constant 0 : index
    %328 = vector.load %arg4[%c0_180, %c0_181, %c0_182] : memref<5x162x160xf32, #tpu.memory_space<vmem>>, vector<1x162x160xf32>
    %329 = vector.shape_cast %328 : vector<1x162x160xf32> to vector<162x160xf32>
    %cst_183 = arith.constant dense<0.000000e+00> : vector<8x160xf32>
    %330 = tpu.matmul %73, %329, %cst_183 {dimension_numbers = #tpu.dot_dimension_numbers<[1], [0], [0], [1], [0, 0, 1, 1], [], []>} : vector<8x162xf32>, vector<162x160xf32>, vector<8x160xf32> -> vector<8x160xf32>
    %c1_184 = arith.constant 1 : index
    %c0_185 = arith.constant 0 : index
    %c0_186 = arith.constant 0 : index
    %331 = vector.load %arg4[%c1_184, %c0_185, %c0_186] : memref<5x162x160xf32, #tpu.memory_space<vmem>>, vector<1x162x160xf32>
    %332 = vector.shape_cast %331 : vector<1x162x160xf32> to vector<162x160xf32>
    %cst_187 = arith.constant dense<0.000000e+00> : vector<8x160xf32>
    %333 = tpu.matmul %91, %332, %cst_187 {dimension_numbers = #tpu.dot_dimension_numbers<[1], [0], [0], [1], [0, 0, 1, 1], [], []>} : vector<8x162xf32>, vector<162x160xf32>, vector<8x160xf32> -> vector<8x160xf32>
    %334 = arith.addf %330, %333 : vector<8x160xf32>
    %c2_188 = arith.constant 2 : index
    %c0_189 = arith.constant 0 : index
    %c0_190 = arith.constant 0 : index
    %335 = vector.load %arg4[%c2_188, %c0_189, %c0_190] : memref<5x162x160xf32, #tpu.memory_space<vmem>>, vector<1x162x160xf32>
    %336 = vector.shape_cast %335 : vector<1x162x160xf32> to vector<162x160xf32>
    %cst_191 = arith.constant dense<0.000000e+00> : vector<8x160xf32>
    %337 = tpu.matmul %109, %336, %cst_191 {dimension_numbers = #tpu.dot_dimension_numbers<[1], [0], [0], [1], [0, 0, 1, 1], [], []>} : vector<8x162xf32>, vector<162x160xf32>, vector<8x160xf32> -> vector<8x160xf32>
    %338 = arith.addf %334, %337 : vector<8x160xf32>
    %c3_192 = arith.constant 3 : index
    %c0_193 = arith.constant 0 : index
    %c0_194 = arith.constant 0 : index
    %339 = vector.load %arg4[%c3_192, %c0_193, %c0_194] : memref<5x162x160xf32, #tpu.memory_space<vmem>>, vector<1x162x160xf32>
    %340 = vector.shape_cast %339 : vector<1x162x160xf32> to vector<162x160xf32>
    %cst_195 = arith.constant dense<0.000000e+00> : vector<8x160xf32>
    %341 = tpu.matmul %127, %340, %cst_195 {dimension_numbers = #tpu.dot_dimension_numbers<[1], [0], [0], [1], [0, 0, 1, 1], [], []>} : vector<8x162xf32>, vector<162x160xf32>, vector<8x160xf32> -> vector<8x160xf32>
    %342 = arith.addf %338, %341 : vector<8x160xf32>
    %c4_196 = arith.constant 4 : index
    %c0_197 = arith.constant 0 : index
    %c0_198 = arith.constant 0 : index
    %343 = vector.load %arg4[%c4_196, %c0_197, %c0_198] : memref<5x162x160xf32, #tpu.memory_space<vmem>>, vector<1x162x160xf32>
    %344 = vector.shape_cast %343 : vector<1x162x160xf32> to vector<162x160xf32>
    %cst_199 = arith.constant dense<0.000000e+00> : vector<8x160xf32>
    %345 = tpu.matmul %145, %344, %cst_199 {dimension_numbers = #tpu.dot_dimension_numbers<[1], [0], [0], [1], [0, 0, 1, 1], [], []>} : vector<8x162xf32>, vector<162x160xf32>, vector<8x160xf32> -> vector<8x160xf32>
    %346 = arith.addf %342, %345 : vector<8x160xf32>
    %347 = vector.broadcast %254 : vector<1x160xf32> to vector<8x160xf32>
    %348 = arith.addf %346, %347 : vector<8x160xf32>
    %cst_200 = arith.constant 0.000000e+00 : f32
    %349 = vector.broadcast %cst_200 : f32 to vector<8x160xf32>
    %350 = arith.maximumf %348, %349 : vector<8x160xf32>
    %351 = arith.maximumf %327, %350 : vector<8x160xf32>
    %352 = vector.extract_strided_slice %351 {offsets = [0, 0], sizes = [8, 144], strides = [1, 1]} : vector<8x160xf32> to vector<8x144xf32>
    %353 = vector.extract_strided_slice %351 {offsets = [0, 16], sizes = [8, 144], strides = [1, 1]} : vector<8x160xf32> to vector<8x144xf32>
    %354 = arith.maximumf %352, %353 : vector<8x144xf32>
    %c0_201 = arith.constant 0 : index
    %c0_202 = arith.constant 0 : index
    %c0_203 = arith.constant 0 : index
    %355 = vector.load %arg4[%c0_201, %c0_202, %c0_203] : memref<5x162x160xf32, #tpu.memory_space<vmem>>, vector<1x162x160xf32>
    %356 = vector.shape_cast %355 : vector<1x162x160xf32> to vector<162x160xf32>
    %cst_204 = arith.constant dense<0.000000e+00> : vector<8x160xf32>
    %357 = tpu.matmul %91, %356, %cst_204 {dimension_numbers = #tpu.dot_dimension_numbers<[1], [0], [0], [1], [0, 0, 1, 1], [], []>} : vector<8x162xf32>, vector<162x160xf32>, vector<8x160xf32> -> vector<8x160xf32>
    %c1_205 = arith.constant 1 : index
    %c0_206 = arith.constant 0 : index
    %c0_207 = arith.constant 0 : index
    %358 = vector.load %arg4[%c1_205, %c0_206, %c0_207] : memref<5x162x160xf32, #tpu.memory_space<vmem>>, vector<1x162x160xf32>
    %359 = vector.shape_cast %358 : vector<1x162x160xf32> to vector<162x160xf32>
    %cst_208 = arith.constant dense<0.000000e+00> : vector<8x160xf32>
    %360 = tpu.matmul %109, %359, %cst_208 {dimension_numbers = #tpu.dot_dimension_numbers<[1], [0], [0], [1], [0, 0, 1, 1], [], []>} : vector<8x162xf32>, vector<162x160xf32>, vector<8x160xf32> -> vector<8x160xf32>
    %361 = arith.addf %357, %360 : vector<8x160xf32>
    %c2_209 = arith.constant 2 : index
    %c0_210 = arith.constant 0 : index
    %c0_211 = arith.constant 0 : index
    %362 = vector.load %arg4[%c2_209, %c0_210, %c0_211] : memref<5x162x160xf32, #tpu.memory_space<vmem>>, vector<1x162x160xf32>
    %363 = vector.shape_cast %362 : vector<1x162x160xf32> to vector<162x160xf32>
    %cst_212 = arith.constant dense<0.000000e+00> : vector<8x160xf32>
    %364 = tpu.matmul %127, %363, %cst_212 {dimension_numbers = #tpu.dot_dimension_numbers<[1], [0], [0], [1], [0, 0, 1, 1], [], []>} : vector<8x162xf32>, vector<162x160xf32>, vector<8x160xf32> -> vector<8x160xf32>
    %365 = arith.addf %361, %364 : vector<8x160xf32>
    %c3_213 = arith.constant 3 : index
    %c0_214 = arith.constant 0 : index
    %c0_215 = arith.constant 0 : index
    %366 = vector.load %arg4[%c3_213, %c0_214, %c0_215] : memref<5x162x160xf32, #tpu.memory_space<vmem>>, vector<1x162x160xf32>
    %367 = vector.shape_cast %366 : vector<1x162x160xf32> to vector<162x160xf32>
    %cst_216 = arith.constant dense<0.000000e+00> : vector<8x160xf32>
    %368 = tpu.matmul %145, %367, %cst_216 {dimension_numbers = #tpu.dot_dimension_numbers<[1], [0], [0], [1], [0, 0, 1, 1], [], []>} : vector<8x162xf32>, vector<162x160xf32>, vector<8x160xf32> -> vector<8x160xf32>
    %369 = arith.addf %365, %368 : vector<8x160xf32>
    %c4_217 = arith.constant 4 : index
    %c0_218 = arith.constant 0 : index
    %c0_219 = arith.constant 0 : index
    %370 = vector.load %arg4[%c4_217, %c0_218, %c0_219] : memref<5x162x160xf32, #tpu.memory_space<vmem>>, vector<1x162x160xf32>
    %371 = vector.shape_cast %370 : vector<1x162x160xf32> to vector<162x160xf32>
    %cst_220 = arith.constant dense<0.000000e+00> : vector<8x160xf32>
    %372 = tpu.matmul %163, %371, %cst_220 {dimension_numbers = #tpu.dot_dimension_numbers<[1], [0], [0], [1], [0, 0, 1, 1], [], []>} : vector<8x162xf32>, vector<162x160xf32>, vector<8x160xf32> -> vector<8x160xf32>
    %373 = arith.addf %369, %372 : vector<8x160xf32>
    %374 = vector.broadcast %254 : vector<1x160xf32> to vector<8x160xf32>
    %375 = arith.addf %373, %374 : vector<8x160xf32>
    %cst_221 = arith.constant 0.000000e+00 : f32
    %376 = vector.broadcast %cst_221 : f32 to vector<8x160xf32>
    %377 = arith.maximumf %375, %376 : vector<8x160xf32>
    %c0_222 = arith.constant 0 : index
    %c0_223 = arith.constant 0 : index
    %c0_224 = arith.constant 0 : index
    %378 = vector.load %arg4[%c0_222, %c0_223, %c0_224] : memref<5x162x160xf32, #tpu.memory_space<vmem>>, vector<1x162x160xf32>
    %379 = vector.shape_cast %378 : vector<1x162x160xf32> to vector<162x160xf32>
    %cst_225 = arith.constant dense<0.000000e+00> : vector<8x160xf32>
    %380 = tpu.matmul %109, %379, %cst_225 {dimension_numbers = #tpu.dot_dimension_numbers<[1], [0], [0], [1], [0, 0, 1, 1], [], []>} : vector<8x162xf32>, vector<162x160xf32>, vector<8x160xf32> -> vector<8x160xf32>
    %c1_226 = arith.constant 1 : index
    %c0_227 = arith.constant 0 : index
    %c0_228 = arith.constant 0 : index
    %381 = vector.load %arg4[%c1_226, %c0_227, %c0_228] : memref<5x162x160xf32, #tpu.memory_space<vmem>>, vector<1x162x160xf32>
    %382 = vector.shape_cast %381 : vector<1x162x160xf32> to vector<162x160xf32>
    %cst_229 = arith.constant dense<0.000000e+00> : vector<8x160xf32>
    %383 = tpu.matmul %127, %382, %cst_229 {dimension_numbers = #tpu.dot_dimension_numbers<[1], [0], [0], [1], [0, 0, 1, 1], [], []>} : vector<8x162xf32>, vector<162x160xf32>, vector<8x160xf32> -> vector<8x160xf32>
    %384 = arith.addf %380, %383 : vector<8x160xf32>
    %c2_230 = arith.constant 2 : index
    %c0_231 = arith.constant 0 : index
    %c0_232 = arith.constant 0 : index
    %385 = vector.load %arg4[%c2_230, %c0_231, %c0_232] : memref<5x162x160xf32, #tpu.memory_space<vmem>>, vector<1x162x160xf32>
    %386 = vector.shape_cast %385 : vector<1x162x160xf32> to vector<162x160xf32>
    %cst_233 = arith.constant dense<0.000000e+00> : vector<8x160xf32>
    %387 = tpu.matmul %145, %386, %cst_233 {dimension_numbers = #tpu.dot_dimension_numbers<[1], [0], [0], [1], [0, 0, 1, 1], [], []>} : vector<8x162xf32>, vector<162x160xf32>, vector<8x160xf32> -> vector<8x160xf32>
    %388 = arith.addf %384, %387 : vector<8x160xf32>
    %c3_234 = arith.constant 3 : index
    %c0_235 = arith.constant 0 : index
    %c0_236 = arith.constant 0 : index
    %389 = vector.load %arg4[%c3_234, %c0_235, %c0_236] : memref<5x162x160xf32, #tpu.memory_space<vmem>>, vector<1x162x160xf32>
    %390 = vector.shape_cast %389 : vector<1x162x160xf32> to vector<162x160xf32>
    %cst_237 = arith.constant dense<0.000000e+00> : vector<8x160xf32>
    %391 = tpu.matmul %163, %390, %cst_237 {dimension_numbers = #tpu.dot_dimension_numbers<[1], [0], [0], [1], [0, 0, 1, 1], [], []>} : vector<8x162xf32>, vector<162x160xf32>, vector<8x160xf32> -> vector<8x160xf32>
    %392 = arith.addf %388, %391 : vector<8x160xf32>
    %c4_238 = arith.constant 4 : index
    %c0_239 = arith.constant 0 : index
    %c0_240 = arith.constant 0 : index
    %393 = vector.load %arg4[%c4_238, %c0_239, %c0_240] : memref<5x162x160xf32, #tpu.memory_space<vmem>>, vector<1x162x160xf32>
    %394 = vector.shape_cast %393 : vector<1x162x160xf32> to vector<162x160xf32>
    %cst_241 = arith.constant dense<0.000000e+00> : vector<8x160xf32>
    %395 = tpu.matmul %181, %394, %cst_241 {dimension_numbers = #tpu.dot_dimension_numbers<[1], [0], [0], [1], [0, 0, 1, 1], [], []>} : vector<8x162xf32>, vector<162x160xf32>, vector<8x160xf32> -> vector<8x160xf32>
    %396 = arith.addf %392, %395 : vector<8x160xf32>
    %397 = vector.broadcast %254 : vector<1x160xf32> to vector<8x160xf32>
    %398 = arith.addf %396, %397 : vector<8x160xf32>
    %cst_242 = arith.constant 0.000000e+00 : f32
    %399 = vector.broadcast %cst_242 : f32 to vector<8x160xf32>
    %400 = arith.maximumf %398, %399 : vector<8x160xf32>
    %401 = arith.maximumf %377, %400 : vector<8x160xf32>
    %402 = vector.extract_strided_slice %401 {offsets = [0, 0], sizes = [8, 144], strides = [1, 1]} : vector<8x160xf32> to vector<8x144xf32>
    %403 = vector.extract_strided_slice %401 {offsets = [0, 16], sizes = [8, 144], strides = [1, 1]} : vector<8x160xf32> to vector<8x144xf32>
    %404 = arith.maximumf %402, %403 : vector<8x144xf32>
    %c0_243 = arith.constant 0 : index
    %c0_244 = arith.constant 0 : index
    %c0_245 = arith.constant 0 : index
    %405 = vector.load %arg4[%c0_243, %c0_244, %c0_245] : memref<5x162x160xf32, #tpu.memory_space<vmem>>, vector<1x162x160xf32>
    %406 = vector.shape_cast %405 : vector<1x162x160xf32> to vector<162x160xf32>
    %cst_246 = arith.constant dense<0.000000e+00> : vector<8x160xf32>
    %407 = tpu.matmul %127, %406, %cst_246 {dimension_numbers = #tpu.dot_dimension_numbers<[1], [0], [0], [1], [0, 0, 1, 1], [], []>} : vector<8x162xf32>, vector<162x160xf32>, vector<8x160xf32> -> vector<8x160xf32>
    %c1_247 = arith.constant 1 : index
    %c0_248 = arith.constant 0 : index
    %c0_249 = arith.constant 0 : index
    %408 = vector.load %arg4[%c1_247, %c0_248, %c0_249] : memref<5x162x160xf32, #tpu.memory_space<vmem>>, vector<1x162x160xf32>
    %409 = vector.shape_cast %408 : vector<1x162x160xf32> to vector<162x160xf32>
    %cst_250 = arith.constant dense<0.000000e+00> : vector<8x160xf32>
    %410 = tpu.matmul %145, %409, %cst_250 {dimension_numbers = #tpu.dot_dimension_numbers<[1], [0], [0], [1], [0, 0, 1, 1], [], []>} : vector<8x162xf32>, vector<162x160xf32>, vector<8x160xf32> -> vector<8x160xf32>
    %411 = arith.addf %407, %410 : vector<8x160xf32>
    %c2_251 = arith.constant 2 : index
    %c0_252 = arith.constant 0 : index
    %c0_253 = arith.constant 0 : index
    %412 = vector.load %arg4[%c2_251, %c0_252, %c0_253] : memref<5x162x160xf32, #tpu.memory_space<vmem>>, vector<1x162x160xf32>
    %413 = vector.shape_cast %412 : vector<1x162x160xf32> to vector<162x160xf32>
    %cst_254 = arith.constant dense<0.000000e+00> : vector<8x160xf32>
    %414 = tpu.matmul %163, %413, %cst_254 {dimension_numbers = #tpu.dot_dimension_numbers<[1], [0], [0], [1], [0, 0, 1, 1], [], []>} : vector<8x162xf32>, vector<162x160xf32>, vector<8x160xf32> -> vector<8x160xf32>
    %415 = arith.addf %411, %414 : vector<8x160xf32>
    %c3_255 = arith.constant 3 : index
    %c0_256 = arith.constant 0 : index
    %c0_257 = arith.constant 0 : index
    %416 = vector.load %arg4[%c3_255, %c0_256, %c0_257] : memref<5x162x160xf32, #tpu.memory_space<vmem>>, vector<1x162x160xf32>
    %417 = vector.shape_cast %416 : vector<1x162x160xf32> to vector<162x160xf32>
    %cst_258 = arith.constant dense<0.000000e+00> : vector<8x160xf32>
    %418 = tpu.matmul %181, %417, %cst_258 {dimension_numbers = #tpu.dot_dimension_numbers<[1], [0], [0], [1], [0, 0, 1, 1], [], []>} : vector<8x162xf32>, vector<162x160xf32>, vector<8x160xf32> -> vector<8x160xf32>
    %419 = arith.addf %415, %418 : vector<8x160xf32>
    %c4_259 = arith.constant 4 : index
    %c0_260 = arith.constant 0 : index
    %c0_261 = arith.constant 0 : index
    %420 = vector.load %arg4[%c4_259, %c0_260, %c0_261] : memref<5x162x160xf32, #tpu.memory_space<vmem>>, vector<1x162x160xf32>
    %421 = vector.shape_cast %420 : vector<1x162x160xf32> to vector<162x160xf32>
    %cst_262 = arith.constant dense<0.000000e+00> : vector<8x160xf32>
    %422 = tpu.matmul %199, %421, %cst_262 {dimension_numbers = #tpu.dot_dimension_numbers<[1], [0], [0], [1], [0, 0, 1, 1], [], []>} : vector<8x162xf32>, vector<162x160xf32>, vector<8x160xf32> -> vector<8x160xf32>
    %423 = arith.addf %419, %422 : vector<8x160xf32>
    %424 = vector.broadcast %254 : vector<1x160xf32> to vector<8x160xf32>
    %425 = arith.addf %423, %424 : vector<8x160xf32>
    %cst_263 = arith.constant 0.000000e+00 : f32
    %426 = vector.broadcast %cst_263 : f32 to vector<8x160xf32>
    %427 = arith.maximumf %425, %426 : vector<8x160xf32>
    %c0_264 = arith.constant 0 : index
    %c0_265 = arith.constant 0 : index
    %c0_266 = arith.constant 0 : index
    %428 = vector.load %arg4[%c0_264, %c0_265, %c0_266] : memref<5x162x160xf32, #tpu.memory_space<vmem>>, vector<1x162x160xf32>
    %429 = vector.shape_cast %428 : vector<1x162x160xf32> to vector<162x160xf32>
    %cst_267 = arith.constant dense<0.000000e+00> : vector<8x160xf32>
    %430 = tpu.matmul %145, %429, %cst_267 {dimension_numbers = #tpu.dot_dimension_numbers<[1], [0], [0], [1], [0, 0, 1, 1], [], []>} : vector<8x162xf32>, vector<162x160xf32>, vector<8x160xf32> -> vector<8x160xf32>
    %c1_268 = arith.constant 1 : index
    %c0_269 = arith.constant 0 : index
    %c0_270 = arith.constant 0 : index
    %431 = vector.load %arg4[%c1_268, %c0_269, %c0_270] : memref<5x162x160xf32, #tpu.memory_space<vmem>>, vector<1x162x160xf32>
    %432 = vector.shape_cast %431 : vector<1x162x160xf32> to vector<162x160xf32>
    %cst_271 = arith.constant dense<0.000000e+00> : vector<8x160xf32>
    %433 = tpu.matmul %163, %432, %cst_271 {dimension_numbers = #tpu.dot_dimension_numbers<[1], [0], [0], [1], [0, 0, 1, 1], [], []>} : vector<8x162xf32>, vector<162x160xf32>, vector<8x160xf32> -> vector<8x160xf32>
    %434 = arith.addf %430, %433 : vector<8x160xf32>
    %c2_272 = arith.constant 2 : index
    %c0_273 = arith.constant 0 : index
    %c0_274 = arith.constant 0 : index
    %435 = vector.load %arg4[%c2_272, %c0_273, %c0_274] : memref<5x162x160xf32, #tpu.memory_space<vmem>>, vector<1x162x160xf32>
    %436 = vector.shape_cast %435 : vector<1x162x160xf32> to vector<162x160xf32>
    %cst_275 = arith.constant dense<0.000000e+00> : vector<8x160xf32>
    %437 = tpu.matmul %181, %436, %cst_275 {dimension_numbers = #tpu.dot_dimension_numbers<[1], [0], [0], [1], [0, 0, 1, 1], [], []>} : vector<8x162xf32>, vector<162x160xf32>, vector<8x160xf32> -> vector<8x160xf32>
    %438 = arith.addf %434, %437 : vector<8x160xf32>
    %c3_276 = arith.constant 3 : index
    %c0_277 = arith.constant 0 : index
    %c0_278 = arith.constant 0 : index
    %439 = vector.load %arg4[%c3_276, %c0_277, %c0_278] : memref<5x162x160xf32, #tpu.memory_space<vmem>>, vector<1x162x160xf32>
    %440 = vector.shape_cast %439 : vector<1x162x160xf32> to vector<162x160xf32>
    %cst_279 = arith.constant dense<0.000000e+00> : vector<8x160xf32>
    %441 = tpu.matmul %199, %440, %cst_279 {dimension_numbers = #tpu.dot_dimension_numbers<[1], [0], [0], [1], [0, 0, 1, 1], [], []>} : vector<8x162xf32>, vector<162x160xf32>, vector<8x160xf32> -> vector<8x160xf32>
    %442 = arith.addf %438, %441 : vector<8x160xf32>
    %c4_280 = arith.constant 4 : index
    %c0_281 = arith.constant 0 : index
    %c0_282 = arith.constant 0 : index
    %443 = vector.load %arg4[%c4_280, %c0_281, %c0_282] : memref<5x162x160xf32, #tpu.memory_space<vmem>>, vector<1x162x160xf32>
    %444 = vector.shape_cast %443 : vector<1x162x160xf32> to vector<162x160xf32>
    %cst_283 = arith.constant dense<0.000000e+00> : vector<8x160xf32>
    %445 = tpu.matmul %217, %444, %cst_283 {dimension_numbers = #tpu.dot_dimension_numbers<[1], [0], [0], [1], [0, 0, 1, 1], [], []>} : vector<8x162xf32>, vector<162x160xf32>, vector<8x160xf32> -> vector<8x160xf32>
    %446 = arith.addf %442, %445 : vector<8x160xf32>
    %447 = vector.broadcast %254 : vector<1x160xf32> to vector<8x160xf32>
    %448 = arith.addf %446, %447 : vector<8x160xf32>
    %cst_284 = arith.constant 0.000000e+00 : f32
    %449 = vector.broadcast %cst_284 : f32 to vector<8x160xf32>
    %450 = arith.maximumf %448, %449 : vector<8x160xf32>
    %451 = arith.maximumf %427, %450 : vector<8x160xf32>
    %452 = vector.extract_strided_slice %451 {offsets = [0, 0], sizes = [8, 144], strides = [1, 1]} : vector<8x160xf32> to vector<8x144xf32>
    %453 = vector.extract_strided_slice %451 {offsets = [0, 16], sizes = [8, 144], strides = [1, 1]} : vector<8x160xf32> to vector<8x144xf32>
    %454 = arith.maximumf %452, %453 : vector<8x144xf32>
    %c0_285 = arith.constant 0 : index
    %c0_286 = arith.constant 0 : index
    %c0_287 = arith.constant 0 : index
    %455 = vector.load %arg4[%c0_285, %c0_286, %c0_287] : memref<5x162x160xf32, #tpu.memory_space<vmem>>, vector<1x162x160xf32>
    %456 = vector.shape_cast %455 : vector<1x162x160xf32> to vector<162x160xf32>
    %cst_288 = arith.constant dense<0.000000e+00> : vector<8x160xf32>
    %457 = tpu.matmul %163, %456, %cst_288 {dimension_numbers = #tpu.dot_dimension_numbers<[1], [0], [0], [1], [0, 0, 1, 1], [], []>} : vector<8x162xf32>, vector<162x160xf32>, vector<8x160xf32> -> vector<8x160xf32>
    %c1_289 = arith.constant 1 : index
    %c0_290 = arith.constant 0 : index
    %c0_291 = arith.constant 0 : index
    %458 = vector.load %arg4[%c1_289, %c0_290, %c0_291] : memref<5x162x160xf32, #tpu.memory_space<vmem>>, vector<1x162x160xf32>
    %459 = vector.shape_cast %458 : vector<1x162x160xf32> to vector<162x160xf32>
    %cst_292 = arith.constant dense<0.000000e+00> : vector<8x160xf32>
    %460 = tpu.matmul %181, %459, %cst_292 {dimension_numbers = #tpu.dot_dimension_numbers<[1], [0], [0], [1], [0, 0, 1, 1], [], []>} : vector<8x162xf32>, vector<162x160xf32>, vector<8x160xf32> -> vector<8x160xf32>
    %461 = arith.addf %457, %460 : vector<8x160xf32>
    %c2_293 = arith.constant 2 : index
    %c0_294 = arith.constant 0 : index
    %c0_295 = arith.constant 0 : index
    %462 = vector.load %arg4[%c2_293, %c0_294, %c0_295] : memref<5x162x160xf32, #tpu.memory_space<vmem>>, vector<1x162x160xf32>
    %463 = vector.shape_cast %462 : vector<1x162x160xf32> to vector<162x160xf32>
    %cst_296 = arith.constant dense<0.000000e+00> : vector<8x160xf32>
    %464 = tpu.matmul %199, %463, %cst_296 {dimension_numbers = #tpu.dot_dimension_numbers<[1], [0], [0], [1], [0, 0, 1, 1], [], []>} : vector<8x162xf32>, vector<162x160xf32>, vector<8x160xf32> -> vector<8x160xf32>
    %465 = arith.addf %461, %464 : vector<8x160xf32>
    %c3_297 = arith.constant 3 : index
    %c0_298 = arith.constant 0 : index
    %c0_299 = arith.constant 0 : index
    %466 = vector.load %arg4[%c3_297, %c0_298, %c0_299] : memref<5x162x160xf32, #tpu.memory_space<vmem>>, vector<1x162x160xf32>
    %467 = vector.shape_cast %466 : vector<1x162x160xf32> to vector<162x160xf32>
    %cst_300 = arith.constant dense<0.000000e+00> : vector<8x160xf32>
    %468 = tpu.matmul %217, %467, %cst_300 {dimension_numbers = #tpu.dot_dimension_numbers<[1], [0], [0], [1], [0, 0, 1, 1], [], []>} : vector<8x162xf32>, vector<162x160xf32>, vector<8x160xf32> -> vector<8x160xf32>
    %469 = arith.addf %465, %468 : vector<8x160xf32>
    %c4_301 = arith.constant 4 : index
    %c0_302 = arith.constant 0 : index
    %c0_303 = arith.constant 0 : index
    %470 = vector.load %arg4[%c4_301, %c0_302, %c0_303] : memref<5x162x160xf32, #tpu.memory_space<vmem>>, vector<1x162x160xf32>
    %471 = vector.shape_cast %470 : vector<1x162x160xf32> to vector<162x160xf32>
    %cst_304 = arith.constant dense<0.000000e+00> : vector<8x160xf32>
    %472 = tpu.matmul %235, %471, %cst_304 {dimension_numbers = #tpu.dot_dimension_numbers<[1], [0], [0], [1], [0, 0, 1, 1], [], []>} : vector<8x162xf32>, vector<162x160xf32>, vector<8x160xf32> -> vector<8x160xf32>
    %473 = arith.addf %469, %472 : vector<8x160xf32>
    %474 = vector.broadcast %254 : vector<1x160xf32> to vector<8x160xf32>
    %475 = arith.addf %473, %474 : vector<8x160xf32>
    %cst_305 = arith.constant 0.000000e+00 : f32
    %476 = vector.broadcast %cst_305 : f32 to vector<8x160xf32>
    %477 = arith.maximumf %475, %476 : vector<8x160xf32>
    %c0_306 = arith.constant 0 : index
    %c0_307 = arith.constant 0 : index
    %c0_308 = arith.constant 0 : index
    %478 = vector.load %arg4[%c0_306, %c0_307, %c0_308] : memref<5x162x160xf32, #tpu.memory_space<vmem>>, vector<1x162x160xf32>
    %479 = vector.shape_cast %478 : vector<1x162x160xf32> to vector<162x160xf32>
    %cst_309 = arith.constant dense<0.000000e+00> : vector<8x160xf32>
    %480 = tpu.matmul %181, %479, %cst_309 {dimension_numbers = #tpu.dot_dimension_numbers<[1], [0], [0], [1], [0, 0, 1, 1], [], []>} : vector<8x162xf32>, vector<162x160xf32>, vector<8x160xf32> -> vector<8x160xf32>
    %c1_310 = arith.constant 1 : index
    %c0_311 = arith.constant 0 : index
    %c0_312 = arith.constant 0 : index
    %481 = vector.load %arg4[%c1_310, %c0_311, %c0_312] : memref<5x162x160xf32, #tpu.memory_space<vmem>>, vector<1x162x160xf32>
    %482 = vector.shape_cast %481 : vector<1x162x160xf32> to vector<162x160xf32>
    %cst_313 = arith.constant dense<0.000000e+00> : vector<8x160xf32>
    %483 = tpu.matmul %199, %482, %cst_313 {dimension_numbers = #tpu.dot_dimension_numbers<[1], [0], [0], [1], [0, 0, 1, 1], [], []>} : vector<8x162xf32>, vector<162x160xf32>, vector<8x160xf32> -> vector<8x160xf32>
    %484 = arith.addf %480, %483 : vector<8x160xf32>
    %c2_314 = arith.constant 2 : index
    %c0_315 = arith.constant 0 : index
    %c0_316 = arith.constant 0 : index
    %485 = vector.load %arg4[%c2_314, %c0_315, %c0_316] : memref<5x162x160xf32, #tpu.memory_space<vmem>>, vector<1x162x160xf32>
    %486 = vector.shape_cast %485 : vector<1x162x160xf32> to vector<162x160xf32>
    %cst_317 = arith.constant dense<0.000000e+00> : vector<8x160xf32>
    %487 = tpu.matmul %217, %486, %cst_317 {dimension_numbers = #tpu.dot_dimension_numbers<[1], [0], [0], [1], [0, 0, 1, 1], [], []>} : vector<8x162xf32>, vector<162x160xf32>, vector<8x160xf32> -> vector<8x160xf32>
    %488 = arith.addf %484, %487 : vector<8x160xf32>
    %c3_318 = arith.constant 3 : index
    %c0_319 = arith.constant 0 : index
    %c0_320 = arith.constant 0 : index
    %489 = vector.load %arg4[%c3_318, %c0_319, %c0_320] : memref<5x162x160xf32, #tpu.memory_space<vmem>>, vector<1x162x160xf32>
    %490 = vector.shape_cast %489 : vector<1x162x160xf32> to vector<162x160xf32>
    %cst_321 = arith.constant dense<0.000000e+00> : vector<8x160xf32>
    %491 = tpu.matmul %235, %490, %cst_321 {dimension_numbers = #tpu.dot_dimension_numbers<[1], [0], [0], [1], [0, 0, 1, 1], [], []>} : vector<8x162xf32>, vector<162x160xf32>, vector<8x160xf32> -> vector<8x160xf32>
    %492 = arith.addf %488, %491 : vector<8x160xf32>
    %c4_322 = arith.constant 4 : index
    %c0_323 = arith.constant 0 : index
    %c0_324 = arith.constant 0 : index
    %493 = vector.load %arg4[%c4_322, %c0_323, %c0_324] : memref<5x162x160xf32, #tpu.memory_space<vmem>>, vector<1x162x160xf32>
    %494 = vector.shape_cast %493 : vector<1x162x160xf32> to vector<162x160xf32>
    %cst_325 = arith.constant dense<0.000000e+00> : vector<8x160xf32>
    %495 = tpu.matmul %253, %494, %cst_325 {dimension_numbers = #tpu.dot_dimension_numbers<[1], [0], [0], [1], [0, 0, 1, 1], [], []>} : vector<8x162xf32>, vector<162x160xf32>, vector<8x160xf32> -> vector<8x160xf32>
    %496 = arith.addf %492, %495 : vector<8x160xf32>
    %497 = vector.broadcast %254 : vector<1x160xf32> to vector<8x160xf32>
    %498 = arith.addf %496, %497 : vector<8x160xf32>
    %cst_326 = arith.constant 0.000000e+00 : f32
    %499 = vector.broadcast %cst_326 : f32 to vector<8x160xf32>
    %500 = arith.maximumf %498, %499 : vector<8x160xf32>
    %501 = arith.maximumf %477, %500 : vector<8x160xf32>
    %502 = vector.extract_strided_slice %501 {offsets = [0, 0], sizes = [8, 144], strides = [1, 1]} : vector<8x160xf32> to vector<8x144xf32>
    %503 = vector.extract_strided_slice %501 {offsets = [0, 16], sizes = [8, 144], strides = [1, 1]} : vector<8x160xf32> to vector<8x144xf32>
    %504 = arith.maximumf %502, %503 : vector<8x144xf32>
    %c0_327 = arith.constant 0 : index
    %c0_328 = arith.constant 0 : index
    %c0_329 = arith.constant 0 : index
    %505 = vector.load %arg6[%c0_327, %c0_328, %c0_329] : memref<5x144x128xf32, #tpu.memory_space<vmem>>, vector<1x144x128xf32>
    %506 = vector.shape_cast %505 : vector<1x144x128xf32> to vector<144x128xf32>
    %cst_330 = arith.constant dense<0.000000e+00> : vector<8x128xf32>
    %507 = tpu.matmul %304, %506, %cst_330 {dimension_numbers = #tpu.dot_dimension_numbers<[1], [0], [0], [1], [0, 0, 1, 1], [], []>} : vector<8x144xf32>, vector<144x128xf32>, vector<8x128xf32> -> vector<8x128xf32>
    %c1_331 = arith.constant 1 : index
    %c0_332 = arith.constant 0 : index
    %c0_333 = arith.constant 0 : index
    %508 = vector.load %arg6[%c1_331, %c0_332, %c0_333] : memref<5x144x128xf32, #tpu.memory_space<vmem>>, vector<1x144x128xf32>
    %509 = vector.shape_cast %508 : vector<1x144x128xf32> to vector<144x128xf32>
    %cst_334 = arith.constant dense<0.000000e+00> : vector<8x128xf32>
    %510 = tpu.matmul %354, %509, %cst_334 {dimension_numbers = #tpu.dot_dimension_numbers<[1], [0], [0], [1], [0, 0, 1, 1], [], []>} : vector<8x144xf32>, vector<144x128xf32>, vector<8x128xf32> -> vector<8x128xf32>
    %511 = arith.addf %507, %510 : vector<8x128xf32>
    %c2_335 = arith.constant 2 : index
    %c0_336 = arith.constant 0 : index
    %c0_337 = arith.constant 0 : index
    %512 = vector.load %arg6[%c2_335, %c0_336, %c0_337] : memref<5x144x128xf32, #tpu.memory_space<vmem>>, vector<1x144x128xf32>
    %513 = vector.shape_cast %512 : vector<1x144x128xf32> to vector<144x128xf32>
    %cst_338 = arith.constant dense<0.000000e+00> : vector<8x128xf32>
    %514 = tpu.matmul %404, %513, %cst_338 {dimension_numbers = #tpu.dot_dimension_numbers<[1], [0], [0], [1], [0, 0, 1, 1], [], []>} : vector<8x144xf32>, vector<144x128xf32>, vector<8x128xf32> -> vector<8x128xf32>
    %515 = arith.addf %511, %514 : vector<8x128xf32>
    %c3_339 = arith.constant 3 : index
    %c0_340 = arith.constant 0 : index
    %c0_341 = arith.constant 0 : index
    %516 = vector.load %arg6[%c3_339, %c0_340, %c0_341] : memref<5x144x128xf32, #tpu.memory_space<vmem>>, vector<1x144x128xf32>
    %517 = vector.shape_cast %516 : vector<1x144x128xf32> to vector<144x128xf32>
    %cst_342 = arith.constant dense<0.000000e+00> : vector<8x128xf32>
    %518 = tpu.matmul %454, %517, %cst_342 {dimension_numbers = #tpu.dot_dimension_numbers<[1], [0], [0], [1], [0, 0, 1, 1], [], []>} : vector<8x144xf32>, vector<144x128xf32>, vector<8x128xf32> -> vector<8x128xf32>
    %519 = arith.addf %515, %518 : vector<8x128xf32>
    %c4_343 = arith.constant 4 : index
    %c0_344 = arith.constant 0 : index
    %c0_345 = arith.constant 0 : index
    %520 = vector.load %arg6[%c4_343, %c0_344, %c0_345] : memref<5x144x128xf32, #tpu.memory_space<vmem>>, vector<1x144x128xf32>
    %521 = vector.shape_cast %520 : vector<1x144x128xf32> to vector<144x128xf32>
    %cst_346 = arith.constant dense<0.000000e+00> : vector<8x128xf32>
    %522 = tpu.matmul %504, %521, %cst_346 {dimension_numbers = #tpu.dot_dimension_numbers<[1], [0], [0], [1], [0, 0, 1, 1], [], []>} : vector<8x144xf32>, vector<144x128xf32>, vector<8x128xf32> -> vector<8x128xf32>
    %523 = arith.addf %519, %522 : vector<8x128xf32>
    %c0_347 = arith.constant 0 : index
    %c0_348 = arith.constant 0 : index
    %524 = vector.load %arg7[%c0_347, %c0_348] : memref<1x128xf32, #tpu.memory_space<vmem>>, vector<1x128xf32>
    %525 = vector.broadcast %524 : vector<1x128xf32> to vector<8x128xf32>
    %526 = arith.addf %523, %525 : vector<8x128xf32>
    %cst_349 = arith.constant 0.000000e+00 : f32
    %527 = vector.broadcast %cst_349 : f32 to vector<8x128xf32>
    %528 = arith.maximumf %526, %527 : vector<8x128xf32>
    %c0_350 = arith.constant 0 : index
    %c0_351 = arith.constant 0 : index
    %529 = vector.load %arg8[%c0_350, %c0_351] : memref<128x128xf32, #tpu.memory_space<vmem>>, vector<128x128xf32>
    %cst_352 = arith.constant dense<0.000000e+00> : vector<8x128xf32>
    %530 = tpu.matmul %528, %529, %cst_352 {dimension_numbers = #tpu.dot_dimension_numbers<[1], [0], [0], [1], [0, 0, 1, 1], [], []>} : vector<8x128xf32>, vector<128x128xf32>, vector<8x128xf32> -> vector<8x128xf32>
    %c0_353 = arith.constant 0 : index
    %c0_354 = arith.constant 0 : index
    %531 = vector.load %arg9[%c0_353, %c0_354] : memref<1x128xf32, #tpu.memory_space<vmem>>, vector<1x128xf32>
    %532 = vector.broadcast %531 : vector<1x128xf32> to vector<8x128xf32>
    %533 = arith.addf %530, %532 : vector<8x128xf32>
    %cst_355 = arith.constant 0.000000e+00 : f32
    %534 = vector.broadcast %cst_355 : f32 to vector<8x128xf32>
    %535 = arith.maximumf %533, %534 : vector<8x128xf32>
    %c0_356 = arith.constant 0 : index
    %c0_357 = arith.constant 0 : index
    %536 = vector.load %arg10[%c0_356, %c0_357] : memref<128x128xf32, #tpu.memory_space<vmem>>, vector<128x128xf32>
    %cst_358 = arith.constant dense<0.000000e+00> : vector<8x128xf32>
    %537 = tpu.matmul %535, %536, %cst_358 {dimension_numbers = #tpu.dot_dimension_numbers<[1], [0], [0], [1], [0, 0, 1, 1], [], []>} : vector<8x128xf32>, vector<128x128xf32>, vector<8x128xf32> -> vector<8x128xf32>
    %c0_359 = arith.constant 0 : index
    %c0_360 = arith.constant 0 : index
    %538 = vector.load %arg11[%c0_359, %c0_360] : memref<1x128xf32, #tpu.memory_space<vmem>>, vector<1x128xf32>
    %539 = vector.broadcast %538 : vector<1x128xf32> to vector<8x128xf32>
    %540 = arith.addf %537, %539 : vector<8x128xf32>
    %c0_361 = arith.constant 0 : index
    %c0_362 = arith.constant 0 : index
    %541 = vector.load %arg12[%c0_361, %c0_362] : memref<8x128xf32, #tpu.memory_space<vmem>>, vector<8x128xf32>
    tpu.vector_store %arg12[%c0_361, %c0_362], %540 {strides = array<i32>} : memref<8x128xf32, #tpu.memory_space<vmem>>, vector<8x128xf32>,
    return
  }
  func.func @transform_0(%arg0: i32) -> (i32, i32, i32) {
    %c0_i32 = arith.constant 0 : i32
    %c0_i32_0 = arith.constant 0 : i32
    %c0_i32_1 = arith.constant 0 : i32
    return %c0_i32, %arg0, %c0_i32_0 : i32, i32, i32
  }
  func.func @transform_1(%arg0: i32) -> (i32, i32) {
    %c0_i32 = arith.constant 0 : i32
    %c0_i32_0 = arith.constant 0 : i32
    %c0_i32_1 = arith.constant 0 : i32
    return %c0_i32, %c0_i32_0 : i32, i32
  }
  func.func @transform_2(%arg0: i32) -> (i32, i32) {
    %c0_i32 = arith.constant 0 : i32
    %c0_i32_0 = arith.constant 0 : i32
    %c0_i32_1 = arith.constant 0 : i32
    return %c0_i32, %c0_i32_0 : i32, i32
  }
  func.func @transform_3(%arg0: i32) -> (i32, i32, i32) {
    %c0_i32 = arith.constant 0 : i32
    %c0_i32_0 = arith.constant 0 : i32
    %c0_i32_1 = arith.constant 0 : i32
    %c0_i32_2 = arith.constant 0 : i32
    return %c0_i32, %c0_i32_0, %c0_i32_1 : i32, i32, i32
  }
  func.func @transform_4(%arg0: i32) -> (i32, i32) {
    %c0_i32 = arith.constant 0 : i32
    %c0_i32_0 = arith.constant 0 : i32
    %c0_i32_1 = arith.constant 0 : i32
    return %c0_i32, %c0_i32_0 : i32, i32
  }
  func.func @transform_5(%arg0: i32) -> (i32, i32, i32) {
    %c0_i32 = arith.constant 0 : i32
    %c0_i32_0 = arith.constant 0 : i32
    %c0_i32_1 = arith.constant 0 : i32
    %c0_i32_2 = arith.constant 0 : i32
    return %c0_i32, %c0_i32_0, %c0_i32_1 : i32, i32, i32
  }
  func.func @transform_6(%arg0: i32) -> (i32, i32) {
    %c0_i32 = arith.constant 0 : i32
    %c0_i32_0 = arith.constant 0 : i32
    %c0_i32_1 = arith.constant 0 : i32
    return %c0_i32, %c0_i32_0 : i32, i32
  }
  func.func @transform_7(%arg0: i32) -> (i32, i32) {
    %c0_i32 = arith.constant 0 : i32
    %c0_i32_0 = arith.constant 0 : i32
    %c0_i32_1 = arith.constant 0 : i32
    return %c0_i32, %c0_i32_0 : i32, i32
  }
  func.func @transform_8(%arg0: i32) -> (i32, i32) {
    %c0_i32 = arith.constant 0 : i32
    %c0_i32_0 = arith.constant 0 : i32
    %c0_i32_1 = arith.constant 0 : i32
    return %c0_i32, %c0_i32_0 : i32, i32
  }
  func.func @transform_9(%arg0: i32) -> (i32, i32) {
    %c0_i32 = arith.constant 0 : i32
    %c0_i32_0 = arith.constant 0 : i32
    %c0_i32_1 = arith.constant 0 : i32
    return %c0_i32, %c0_i32_0 : i32, i32
  }
  func.func @transform_10(%arg0: i32) -> (i32, i32) {
    %c0_i32 = arith.constant 0 : i32
    %c0_i32_0 = arith.constant 0 : i32
    %c0_i32_1 = arith.constant 0 : i32
    return %c0_i32, %c0_i32_0 : i32, i32
  }
  func.func @transform_11(%arg0: i32) -> (i32, i32) {
    %c0_i32 = arith.constant 0 : i32
    %c0_i32_0 = arith.constant 0 : i32
    return %arg0, %c0_i32 : i32, i32
  }
}

</mosaic_0001>

<bundles_post_ra>
// kernel: tile.13
= control target key start
LH: loop header
LB: loop body
LE: loop exit
PB: predicated region body
PF: predicated region fallthrough
CT: control target
= control target key end

     0   :  { %s40_s0 = inlined_call_operand.vmem [shape: f32[6], index: 0, kind: input, shape index: {}]   ;;  %s41_s1 = inlined_call_operand.vmem [shape: f32[28,6], index: 1, kind: output, shape index: {}]  }
   0x1   :  { %v4_v0 = vld [vmem:[%s40_s0] ss:$0 sm:$0xff] }
   0x2   :  { %5 = vst [vmem:[%s41_s1] sm:$0xff] %v4_v0  ;;  %12 = vst [vmem:[%s41_s1 + $0x8] sm:$0xff] %v4_v0 }
   0x3   :  { %13 = vst [vmem:[%s41_s1 + $0x10] sm:$0xff] %v4_v0  ;;  %14 = vst [vmem:[%s41_s1 + $0x18] sm:$0xff] %v4_v0 }

// kernel: tile.14
= control target key start
LH: loop header
LB: loop body
LE: loop exit
PB: predicated region body
PF: predicated region fallthrough
CT: control target
= control target key end

     0   :  { %vm9_vm0 = vcmask 15360   ;;  %s247_s12 = smov 126   ;;  %s248_s13 = smov 114   ;;  %vm3_vm1 = vcmask 48128   ;;  %vm13_vm2 = vcmask 31744   ;;  %vm16_vm3 = vcmask 1048560   ;;  %s377_s0 = inlined_call_operand.vmem [shape: f32[28,6], index: 0, kind: input, shape index: {}]   ;;  %s378_s1 = inlined_call_operand.vmem [shape: f32[1,168], index: 1, kind: output, shape index: {}]  }
   0x1   :  { %v191_v0 = vld [vmem:[%s377_s0 + $0x15] sm:$0x1]   ;;  %v194_v3 = vld [vmem:[%s377_s0 + $0x13] sm:$0x1]   ;;  %v193_v4 = vld [vmem:[%s377_s0 + $0x14] sm:$0x1]  }
   0x2   :  { %v192_v1 = vld [vmem:[%s377_s0 + $0x15] sm:$0x1]   ;;  %26 = vrot.lane.b32.xlu1 %v194_v3, %s248_s13  ;;  %v195_v5 = vld [vmem:[%s377_s0 + $0x12] sm:$0x1]   ;;  %s249_s18 = smov 120   ;;  %s250_s19 = smov 108  }
   0x3   :  { %v10_v2 = vsel %vm9_vm0, %v192_v1, %v191_v0  ;;  %v196_v6 = vld [vmem:[%s377_s0 + $0x11] sm:$0x1]   ;;  %v197_v7 = vld [vmem:[%s377_s0 + $0x10] sm:$0x1]   ;;  %s251_s24 = smov 102   ;;  %s252_s25 = smov 96  }
   0x4   :  { %11 = vrot.lane.b32.xlu0 %v10_v2, %s247_s12  ;;  %v198_v8 = vld [vmem:[%s377_s0 + $0xf] sm:$0x1]   ;;  %v199_v9 = vld [vmem:[%s377_s0 + $0xe] sm:$0x1]   ;;  %s253_s30 = smov 90   ;;  %s254_s2 = smov 84  }
   0x5   :  { %v2_v10 = vld [vmem:[%s377_s0] sm:$0x1]   ;;  %v200_v11 = vld [vmem:[%s377_s0 + $0xd] sm:$0x1]   ;;  %v201_v12 = vld [vmem:[%s377_s0 + $0xc] sm:$0x1]  }
   0x6   :  { %32 = vrot.lane.b32.xlu1 %v195_v5, %s250_s19  ;;  %4 = vst.msk [vmem:[#allocation0] sm:$0x1] %vm3_vm1, %v2_v10   ;;  %s255_s9 = smov 78   ;;  %s256_s10 = smov 72   ;;  %v202_v13 = vld [vmem:[%s377_s0 + $0xb] sm:$0x1]  }
   0x7   :  { %v203_v14 = vld [vmem:[%s377_s0 + $0xa] sm:$0x1]   ;;  %s257_s15 = smov 66   ;;  %s258_s16 = smov 60   ;;  %v204_v15 = vld [vmem:[%s377_s0 + $0x9] sm:$0x1]  }
   0x8   :  { %20 = vrot.lane.b32.xlu0 %v193_v4, %s249_s18  ;;  %v205_v16 = vld [vmem:[%s377_s0 + $0x8] sm:$0x1]   ;;  %s259_s21 = smov 54   ;;  %s260_s22 = smov 48   ;;  %v206_v17 = vld [vmem:[%s377_s0 + $0x7] sm:$0x1]  }
   0x9   :  { %v207_v18 = vld [vmem:[%s377_s0 + $0x6] sm:$0x1]   ;;  %s261_s27 = smov 42   ;;  %s262_s28 = smov 36   ;;  %v208_v19 = vld [vmem:[%s377_s0 + $0x1b] sm:$0x1]  }
   0xa   :  { %44 = vrot.lane.b32.xlu1 %v197_v7, %s252_s25  ;;  %v209_v20 = vld [vmem:[%s377_s0 + $0x5] sm:$0x1]   ;;  %s263_s4 = smov 34   ;;  %s264_s5 = smov 30   ;;  %v210_v21 = vld [vmem:[%s377_s0 + $0x1a] sm:$0x1]  }
   0xb   :  { %v211_v22 = vld [vmem:[%s377_s0 + $0x4] sm:$0x1]   ;;  %s266_s11 = smov 24   ;;  %v212_v23 = vld [vmem:[%s377_s0 + $0x19] sm:$0x1]   ;;  %s268_s17 = smov 18  }
   0xc   :  { %38 = vrot.lane.b32.xlu0 %v196_v6, %s251_s24  ;;  %v213_v24 = vld [vmem:[%s377_s0 + $0x3] sm:$0x1]   ;;  %v214_v25 = vld [vmem:[%s377_s0 + $0x18] sm:$0x1]   ;;  %v215_v26 = vld [vmem:[%s377_s0 + $0x2] sm:$0x1]  }
   0xd   :  { %s270_s23 = smov 12   ;;  %v216_v27 = vld [vmem:[%s377_s0 + $0x17] sm:$0x1]   ;;  %v217_v28 = vld [vmem:[%s377_s0 + $0x1] sm:$0x1]   ;;  %s272_s29 = smov 6  }
   0xe   :  { %56 = vrot.lane.b32.xlu1 %v199_v9, %s254_s2  ;;  %v218_v29 = vld [vmem:[%s377_s0 + $0x16] sm:$0x1]   ;;  %s273_s0 = smov 4   ;;  %vm22_vm4 = vcmask 1032128   ;;  %vm28_vm5 = vcmask 982928   ;;  %vm34_vm6 = vcmask 933728  }
   0xf   :  { %vm40_vm7 = vcmask 884528   ;;  %vm46_vm8 = vcmask 835328   ;;  %vm52_vm9 = vcmask 786128   ;;  %vm58_vm10 = vcmask 736928  }
  0x10   :  { %50 = vrot.lane.b32.xlu0 %v198_v8, %s253_s30  ;;  %vm64_vm11 = vcmask 687728   ;;  %vm70_vm12 = vcmask 638528   ;;  %vm76_vm13 = vcmask 589328   ;;  %vm82_vm14 = vcmask 540128  }
  0x11   :  { %vm88_vm15 = vcmask 490928   ;;  %vm94_vm0 = vcmask 441728   ;;  %vm100_vm1 = vcmask 392528  }
  0x12   :  { %68 = vrot.lane.b32.xlu1 %v201_v12, %s256_s10  ;;  %s265_s10 = smov 28  }
  0x14   :  { %62 = vrot.lane.b32.xlu0 %v200_v11, %s255_s9 }
  0x16   :  { %80 = vrot.lane.b32.xlu1 %v203_v14, %s258_s16  ;;  %s267_s16 = smov 22  }
  0x18   :  { %74 = vrot.lane.b32.xlu0 %v202_v13, %s257_s15 }
  0x1a   :  { %92 = vrot.lane.b32.xlu1 %v205_v16, %s260_s22  ;;  %s269_s22 = smov 16  }
  0x1c   :  { %86 = vrot.lane.b32.xlu0 %v204_v15, %s259_s21 }
  0x1e   :  { %104 = vrot.lane.b32.xlu1 %v207_v18, %s262_s28  ;;  %s271_s28 = smov 10  }
  0x20   :  { %98 = vrot.lane.b32.xlu0 %v206_v17, %s261_s27 }
  0x22   :  { %117 = vrot.lane.b32.xlu1 %v209_v20, %s264_s5 }
  0x24   :  { %110 = vrot.lane.b32.xlu0 %v208_v19, %s263_s4 }
  0x26   :  { %130 = vrot.lane.b32.xlu1 %v211_v22, %s266_s11 }
  0x28   :  { %123 = vrot.lane.b32.xlu0 %v210_v21, %s265_s10 }
  0x2a   :  { %143 = vrot.lane.b32.xlu1 %v213_v24, %s268_s17 }
  0x2c   :  { %136 = vrot.lane.b32.xlu0 %v212_v23, %s267_s16 }
  0x2e   :  { %156 = vrot.lane.b32.xlu1 %v215_v26, %s270_s23 }
  0x30   :  { %149 = vrot.lane.b32.xlu0 %v214_v25, %s269_s22 }
  0x32   :  { %169 = vrot.lane.b32.xlu1 %v217_v28, %s272_s29 }
  0x34   :  { %162 = vrot.lane.b32.xlu0 %v216_v27, %s271_s28 }
  0x38   :  { %175 = vrot.lane.b32.xlu0 %v218_v29, %s273_s0 }
  0x74   :  { %v27_v31 = vpop.permute.xlu1 %26  }
  0x76   :  { %v12_v30 = vpop.permute.xlu0 %11  }
  0x77   :  { %15 = vst.msk [vmem:[#allocation0 + $0x8] sm:$0x1] %vm13_vm2, %v12_v30   ;;  %vm106_vm2 = vcmask 343328  }
  0x78   :  { %17 = vst.msk [vmem:[#allocation0] sm:$0x1] %vm16_vm3, %v12_v30   ;;  %v33_v33 = vpop.permute.xlu1 %32   ;;  %vm112_vm3 = vcmask 326928  }
  0x7a   :  { %v21_v32 = vpop.permute.xlu0 %20  }
  0x7b   :  { %23 = vst.msk [vmem:[#allocation0] sm:$0x1] %vm22_vm4, %v21_v32   ;;  %vm119_vm4 = vcmask 294128  }
  0x7c   :  { %29 = vst.msk [vmem:[#allocation0] sm:$0x1] %vm28_vm5, %v27_v31   ;;  %v45_v35 = vpop.permute.xlu1 %44   ;;  %vm125_vm5 = vcmask 277728  }
  0x7d   :  { %35 = vst.msk [vmem:[#allocation0] sm:$0x1] %vm34_vm6, %v33_v33   ;;  %vm132_vm6 = vcmask 244928  }
  0x7e   :  { %v39_v34 = vpop.permute.xlu0 %38  }
  0x7f   :  { %41 = vst.msk [vmem:[#allocation0] sm:$0x1] %vm40_vm7, %v39_v34   ;;  %vm138_vm7 = vcmask 228528  }
  0x80   :  { %47 = vst.msk [vmem:[#allocation0] sm:$0x1] %vm46_vm8, %v45_v35   ;;  %v57_v37 = vpop.permute.xlu1 %56   ;;  %vm145_vm8 = vcmask 195728  }
  0x82   :  { %v51_v36 = vpop.permute.xlu0 %50  }
  0x83   :  { %53 = vst.msk [vmem:[#allocation0] sm:$0x1] %vm52_vm9, %v51_v36   ;;  %vm151_vm9 = vcmask 179328  }
  0x84   :  { %59 = vst.msk [vmem:[#allocation0] sm:$0x1] %vm58_vm10, %v57_v37   ;;  %v69_v39 = vpop.permute.xlu1 %68   ;;  %vm158_vm10 = vcmask 146528  }
  0x86   :  { %v63_v38 = vpop.permute.xlu0 %62  }
  0x87   :  { %65 = vst.msk [vmem:[#allocation0] sm:$0x1] %vm64_vm11, %v63_v38   ;;  %vm164_vm11 = vcmask 130128  }
  0x88   :  { %71 = vst.msk [vmem:[#allocation0] sm:$0x1] %vm70_vm12, %v69_v39   ;;  %v81_v41 = vpop.permute.xlu1 %80   ;;  %vm171_vm12 = vcmask 97328  }
  0x8a   :  { %v75_v40 = vpop.permute.xlu0 %74  }
  0x8b   :  { %77 = vst.msk [vmem:[#allocation0] sm:$0x1] %vm76_vm13, %v75_v40   ;;  %vm177_vm13 = vcmask 80928  }
  0x8c   :  { %83 = vst.msk [vmem:[#allocation0] sm:$0x1] %vm82_vm14, %v81_v41   ;;  %v93_v43 = vpop.permute.xlu1 %92  }
  0x8e   :  { %v87_v42 = vpop.permute.xlu0 %86  }
  0x8f   :  { %89 = vst.msk [vmem:[#allocation0] sm:$0x1] %vm88_vm15, %v87_v42  }
  0x90   :  { %95 = vst.msk [vmem:[#allocation0] sm:$0x1] %vm94_vm0, %v93_v43   ;;  %v105_v45 = vpop.permute.xlu1 %104  }
  0x92   :  { %v99_v44 = vpop.permute.xlu0 %98  }
  0x93   :  { %101 = vst.msk [vmem:[#allocation0] sm:$0x1] %vm100_vm1, %v99_v44  }
  0x94   :  { %107 = vst.msk [vmem:[#allocation0] sm:$0x1] %vm106_vm2, %v105_v45   ;;  %v118_v47 = vpop.permute.xlu1 %117  }
  0x95   :  { %120 = vst.msk [vmem:[#allocation0] sm:$0x1] %vm119_vm4, %v118_v47  }
  0x96   :  { %v111_v46 = vpop.permute.xlu0 %110  }
  0x97   :  { %114 = vst.msk [vmem:[#allocation0 + $0x8] sm:$0x1] %vm112_vm3, %v111_v46  }
  0x98   :  { %v131_v49 = vpop.permute.xlu1 %130  }
  0x99   :  { %133 = vst.msk [vmem:[#allocation0] sm:$0x1] %vm132_vm6, %v131_v49  }
  0x9a   :  { %v124_v48 = vpop.permute.xlu0 %123  }
  0x9b   :  { %127 = vst.msk [vmem:[#allocation0 + $0x8] sm:$0x1] %vm125_vm5, %v124_v48  }
  0x9c   :  { %v144_v51 = vpop.permute.xlu1 %143  }
  0x9d   :  { %146 = vst.msk [vmem:[#allocation0] sm:$0x1] %vm145_vm8, %v144_v51  }
  0x9e   :  { %v137_v50 = vpop.permute.xlu0 %136  }
  0x9f   :  { %140 = vst.msk [vmem:[#allocation0 + $0x8] sm:$0x1] %vm138_vm7, %v137_v50  }
  0xa0   :  { %v157_v53 = vpop.permute.xlu1 %156  }
  0xa1   :  { %159 = vst.msk [vmem:[#allocation0] sm:$0x1] %vm158_vm10, %v157_v53  }
  0xa2   :  { %v150_v52 = vpop.permute.xlu0 %149  }
  0xa3   :  { %153 = vst.msk [vmem:[#allocation0 + $0x8] sm:$0x1] %vm151_vm9, %v150_v52  }
  0xa4   :  { %v170_v55 = vpop.permute.xlu1 %169  }
  0xa5   :  { %172 = vst.msk [vmem:[#allocation0] sm:$0x1] %vm171_vm12, %v170_v55  }
  0xa6   :  { %v163_v54 = vpop.permute.xlu0 %162  }
  0xa7   :  { %166 = vst.msk [vmem:[#allocation0 + $0x8] sm:$0x1] %vm164_vm11, %v163_v54  }
  0xaa   :  { %v176_v56 = vpop.permute.xlu0 %175  }
  0xab   :  { %179 = vst.msk [vmem:[#allocation0 + $0x8] sm:$0x1] %vm177_vm13, %v176_v56  }
  0xac   :  { %v183_v57 = vld [vmem:[#allocation0] sm:$0x1] }
  0xad   :  { %185 = vst [vmem:[%s378_s1] sm:$0x1] %v183_v57 }
  0xb2   :  { %v187_v58 = vld [vmem:[#allocation0 + $0x8] sm:$0x1] }
  0xb3   :  { %219 = vst [vmem:[%s378_s1 + $0x1] sm:$0x1] %v187_v58 }

// kernel: tile.18
= control target key start
LH: loop header
LB: loop body
LE: loop exit
PB: predicated region body
PF: predicated region fallthrough
CT: control target
= control target key end

     0   :  { %s28_s0 = inlined_call_operand.vmem [shape: f32[16], index: 0, kind: input, shape index: {}]   ;;  %s29_s1 = inlined_call_operand.vmem [shape: f32[10,16], index: 1, kind: output, shape index: {}]  }
   0x1   :  { %v4_v0 = vld [vmem:[%s28_s0] ss:$0 sm:$0xff] }
   0x2   :  { %5 = vst [vmem:[%s29_s1] sm:$0xff] %v4_v0  ;;  %8 = vst [vmem:[%s29_s1 + $0x8] sm:$0xff] %v4_v0 }

// kernel: tile.19
= control target key start
LH: loop header
LB: loop body
LE: loop exit
PB: predicated region body
PF: predicated region fallthrough
CT: control target
= control target key end

     0   :  { %s75_s10 = smov 112   ;;  %s76_s11 = smov 80   ;;  %vm4_vm0 = vcmask 130048   ;;  %vm10_vm1 = vcmask 1048448   ;;  %vm16_vm2 = vcmask 917248   ;;  %vm22_vm3 = vcmask 786048   ;;  %s122_s0 = inlined_call_operand.vmem [shape: f32[10,16], index: 0, kind: input, shape index: {}]   ;;  %s123_s1 = inlined_call_operand.vmem [shape: f32[1,160], index: 1, kind: output, shape index: {}]  }
   0x1   :  { %v60_v0 = vld [vmem:[%s122_s0 + $0x7] sm:$0x1]   ;;  %v62_v1 = vld [vmem:[%s122_s0 + $0x5] sm:$0x1]   ;;  %v61_v2 = vld [vmem:[%s122_s0 + $0x6] sm:$0x1]  }
   0x2   :  { %8 = vrot.lane.b32.xlu0 %v60_v0, %s75_s10  ;;  %20 = vrot.lane.b32.xlu1 %v62_v1, %s76_s11  ;;  %v63_v3 = vld [vmem:[%s122_s0 + $0x4] sm:$0x1]   ;;  %s2_s16 = smov 3  ;;  %s77_s17 = smov 96   ;;  %v64_v5 = vld [vmem:[%s122_s0 + $0x3] sm:$0x1]  }
   0x3   :  { %s78_s18 = smov 64   ;;  %v3_v4 = vld [vmem:[%s122_s0] ss:$8 sm:%s2_s16]   ;;  %v65_v6 = vld [vmem:[%s122_s0 + $0x2] sm:$0x1]   ;;  %s43_s25 = smov 3 }
   0x4   :  { %5 = vst.msk [vmem:[#allocation0] ss:$8 sm:$0x3] %vm4_vm0, %v3_v4   ;;  %s79_s26 = smov 48   ;;  %s80_s27 = smov 32   ;;  %vm28_vm4 = vcmask 654848  }
   0x5   :  { %v66_v7 = vld [vmem:[%s122_s0 + $0x1] ss:$8 sm:%s43_s25]   ;;  %s81_s0 = smov 16   ;;  %vm34_vm5 = vcmask 523648   ;;  %vm40_vm6 = vcmask 392448   ;;  %vm47_vm7 = vcmask 261248  }
   0x6   :  { %14 = vrot.lane.b32.xlu0 %v61_v2, %s77_s17  ;;  %26 = vrot.lane.b32.xlu1 %v63_v3, %s78_s18 }
   0xa   :  { %32 = vrot.lane.b32.xlu0 %v64_v5, %s79_s26  ;;  %38 = vrot.lane.b32.xlu1 %v65_v6, %s80_s27 }
   0xe   :  { %45 = vrot.lane.b32.xlu0 %v66_v7, %s81_s0 }
  0x74   :  { %v9_v8 = vpop.permute.xlu0 %8   ;;  %v21_v9 = vpop.permute.xlu1 %20  }
  0x75   :  { %11 = vst.msk [vmem:[#allocation0] sm:$0x1] %vm10_vm1, %v9_v8  }
  0x78   :  { %v15_v10 = vpop.permute.xlu0 %14   ;;  %v27_v11 = vpop.permute.xlu1 %26  }
  0x79   :  { %17 = vst.msk [vmem:[#allocation0] sm:$0x1] %vm16_vm2, %v15_v10  }
  0x7a   :  { %23 = vst.msk [vmem:[#allocation0] sm:$0x1] %vm22_vm3, %v21_v9  }
  0x7b   :  { %29 = vst.msk [vmem:[#allocation0] sm:$0x1] %vm28_vm4, %v27_v11  }
  0x7c   :  { %v33_v12 = vpop.permute.xlu0 %32   ;;  %v39_v13 = vpop.permute.xlu1 %38  }
  0x7d   :  { %35 = vst.msk [vmem:[#allocation0] sm:$0x1] %vm34_vm5, %v33_v12  }
  0x7e   :  { %41 = vst.msk [vmem:[#allocation0] sm:$0x1] %vm40_vm6, %v39_v13  }
  0x80   :  { %v46_v14 = vpop.permute.xlu0 %45  }
  0x81   :  { %48 = vst.msk [vmem:[#allocation0] ss:$8 sm:$0x3] %vm47_vm7, %v46_v14  }
  0x88   :  { %v52_v15 = vld [vmem:[#allocation0] sm:$0x1]  ;;  %v56_v16 = vld [vmem:[#allocation0 + $0x8] sm:$0x1] }
  0x89   :  { %54 = vst [vmem:[%s123_s1] sm:$0x1] %v52_v15  ;;  %67 = vst [vmem:[%s123_s1 + $0x1] sm:$0x1] %v56_v16 }

// kernel: simple_cnn_forward.1
= control target key start
LH: loop header
LB: loop body
LE: loop exit
PB: predicated region body
PF: predicated region fallthrough
CT: control target
= control target key end

     0   :  { %s16472_s17 = smov 0   ;;  %s16474_s18 = smov 0   ;;  %s22143_s0 = inlined_call_operand.vmem [shape: f32[28,16,480], index: 0, kind: input, shape index: {}]   ;;  %s22144_s1 = inlined_call_operand.vmem [shape: f32[480,168], index: 1, kind: input, shape index: {}]   ;;  %s22145_s2 = inlined_call_operand.vmem [shape: f32[1,168], index: 2, kind: input, shape index: {}]   ;;  %s22146_s3 = inlined_call_operand.vmem [shape: f32[5,162,160], index: 3, kind: input, shape index: {}]   ;;  %s22147_s4 = inlined_call_operand.vmem [shape: f32[1,160], index: 4, kind: input, shape index: {}]   ;;  %s22148_s5 = inlined_call_operand.vmem [shape: f32[5,144,128], index: 5, kind: input, shape index: {}]   ;;  %s22149_s6 = inlined_call_operand.vmem [shape: f32[1,128], index: 6, kind: input, shape index: {}]   ;;  %s22150_s7 = inlined_call_operand.vmem [shape: f32[128,128], index: 7, kind: input, shape index: {}]   ;;  %s22151_s8 = inlined_call_operand.vmem [shape: f32[1,128], index: 8, kind: input, shape index: {}]   ;;  %s22152_s9 = inlined_call_operand.vmem [shape: f32[128,128], index: 9, kind: input, shape index: {}]   ;;  %s22153_s10 = inlined_call_operand.vmem [shape: f32[1,128], index: 10, kind: input, shape index: {}]   ;;  %s22154_s11 = inlined_call_operand.vmem [shape: f32[16,128], index: 11, kind: output, shape index: {}]  }
   0x1   :  { %s16476_s19 = smov 0  }
   0x2 LB: > { %s9933_s20 = sadd.s32 4294967295, %s16405_s19   ;;  %s16489_s21 = sadd.s32 1, %s16405_s19   ;;  %s16405_s19 = sphi %s16476_s19, %s23173_s19   ;;  %s16401_s18 = sphi %s16474_s18, %s23172_s18   ;;  %s16397_s17 = sphi %s16472_s17, %s23171_s17  }
   0x3   : > { %s25_s22 = ssub.s32 %s16405_s19, %s16489_s21  ;;  %s28_s23 = sadd.s32 1, %s16401_s18 }
   0x4   : > { %p26_p0 = scmp.eq.s32.totalorder %s25_s22, 0  ;;  %p35_p1 = scmp.ne.s32.totalorder %s16401_s18, %s16397_s17 }
   0x5   : > { %p36_p2 = scmp.eq.s32.totalorder %s16405_s19, 0  ;;  %p9936_p4 = scmp.ge.s32.totalorder %s16405_s19, 2 }
   0x6   : > { %s16498_s24 = scalar_select %p26_p0, %s16401_s18, %s28_s23  }
   0x7   : > { %p37_p3 = por %p36_p2, %p35_p1  ;;  %327 = sbr.rel (%p9936_p4) target bundleno = 75 (0x4b), region = 56 }
   0xe   : > { %330 = sbr.rel (!%p37_p3) target bundleno = 75 (0x4b), region = 60  ;;  %s332_s25 = sand.u32 (%p37_p3), 1, %s16401_s18  }
   0xf   : > { %s10477_s26 = sshll.u32 (%p37_p3), %s16405_s19, 5  ;;  %s16317_s27 = smul.u32 (%p37_p3), 896, %s332_s25 }
  0x10   : > { %s16506_s30 = scalar_lea.vmem (%p37_p3), %s22143_s0, %s10477_s26 }
  0x11   : > { %v350_v0 = vld [vmem:[%s16506_s30] sm:$0xff] (%p37_p3)  ;;  %v352_v1 = vld [vmem:[%s16506_s30 + $0x8] sm:$0xff] (%p37_p3)  ;;  %v354_v2 = vld [vmem:[%s16506_s30 + $0x10] sm:$0xff] (%p37_p3)  ;;  %s16514_s12 = scalar_lea.vmem (%p37_p3), [#allocation2], %s16317_s27 }
  0x12   : > { %v356_v3 = vld [vmem:[%s16506_s30 + $0x18] sm:$0xff] (%p37_p3)  ;;  %v358_v4 = vld [vmem:[%s16506_s30 + $0x40] sm:$0xff] (%p37_p3)  ;;  %v360_v5 = vld [vmem:[%s16506_s30 + $0x48] sm:$0xff] (%p37_p3)  ;;  %351 = vst [vmem:[%s16514_s12] sm:$0xff] (%p37_p3), %v350_v0 }
  0x13   : > { %353 = vst [vmem:[%s16514_s12 + $0x8] sm:$0xff] (%p37_p3), %v352_v1  ;;  %355 = vst [vmem:[%s16514_s12 + $0x10] sm:$0xff] (%p37_p3), %v354_v2  ;;  %v362_v6 = vld [vmem:[%s16506_s30 + $0x50] sm:$0xff] (%p37_p3)  ;;  %v364_v7 = vld [vmem:[%s16506_s30 + $0x58] sm:$0xff] (%p37_p3) }
  0x14   : > { %357 = vst [vmem:[%s16514_s12 + $0x18] sm:$0xff] (%p37_p3), %v356_v3  ;;  %359 = vst [vmem:[%s16514_s12 + $0x20] sm:$0xff] (%p37_p3), %v358_v4  ;;  %v366_v8 = vld [vmem:[%s16506_s30 + $0x80] sm:$0xff] (%p37_p3)  ;;  %v368_v9 = vld [vmem:[%s16506_s30 + $0x88] sm:$0xff] (%p37_p3) }
  0x15   : > { %361 = vst [vmem:[%s16514_s12 + $0x28] sm:$0xff] %v360_v5  ;;  %363 = vst [vmem:[%s16514_s12 + $0x30] sm:$0xff] %v362_v6  ;;  %v370_v10 = vld [vmem:[%s16506_s30 + $0x90] sm:$0xff]  ;;  %v372_v11 = vld [vmem:[%s16506_s30 + $0x98] sm:$0xff] }
  0x16   : > { %365 = vst [vmem:[%s16514_s12 + $0x38] sm:$0xff] %v364_v7  ;;  %367 = vst [vmem:[%s16514_s12 + $0x40] sm:$0xff] %v366_v8  ;;  %v374_v12 = vld [vmem:[%s16506_s30 + $0xc0] sm:$0xff]  ;;  %v376_v13 = vld [vmem:[%s16506_s30 + $0xc8] sm:$0xff] }
  0x17   : > { %369 = vst [vmem:[%s16514_s12 + $0x48] sm:$0xff] %v368_v9  ;;  %371 = vst [vmem:[%s16514_s12 + $0x50] sm:$0xff] %v370_v10  ;;  %v378_v14 = vld [vmem:[%s16506_s30 + $0xd0] sm:$0xff]  ;;  %v380_v15 = vld [vmem:[%s16506_s30 + $0xd8] sm:$0xff] }
  0x18   : > { %373 = vst [vmem:[%s16514_s12 + $0x58] sm:$0xff] %v372_v11  ;;  %375 = vst [vmem:[%s16514_s12 + $0x60] sm:$0xff] %v374_v12  ;;  %v382_v16 = vld [vmem:[%s16506_s30 + $0x100] sm:$0xff]  ;;  %v384_v17 = vld [vmem:[%s16506_s30 + $0x108] sm:$0xff] }
  0x19   : > { %377 = vst [vmem:[%s16514_s12 + $0x68] sm:$0xff] %v376_v13  ;;  %379 = vst [vmem:[%s16514_s12 + $0x70] sm:$0xff] %v378_v14  ;;  %v386_v18 = vld [vmem:[%s16506_s30 + $0x110] sm:$0xff]  ;;  %v388_v19 = vld [vmem:[%s16506_s30 + $0x118] sm:$0xff] }
  0x1a   : > { %381 = vst [vmem:[%s16514_s12 + $0x78] sm:$0xff] %v380_v15  ;;  %383 = vst [vmem:[%s16514_s12 + $0x80] sm:$0xff] %v382_v16  ;;  %v390_v20 = vld [vmem:[%s16506_s30 + $0x140] sm:$0xff]  ;;  %v392_v21 = vld [vmem:[%s16506_s30 + $0x148] sm:$0xff] }
  0x1b   : > { %385 = vst [vmem:[%s16514_s12 + $0x88] sm:$0xff] %v384_v17  ;;  %387 = vst [vmem:[%s16514_s12 + $0x90] sm:$0xff] %v386_v18  ;;  %v394_v22 = vld [vmem:[%s16506_s30 + $0x150] sm:$0xff]  ;;  %v396_v23 = vld [vmem:[%s16506_s30 + $0x158] sm:$0xff] }
  0x1c   : > { %389 = vst [vmem:[%s16514_s12 + $0x98] sm:$0xff] %v388_v19  ;;  %391 = vst [vmem:[%s16514_s12 + $0xa0] sm:$0xff] %v390_v20  ;;  %v398_v24 = vld [vmem:[%s16506_s30 + $0x180] sm:$0xff]  ;;  %v400_v25 = vld [vmem:[%s16506_s30 + $0x188] sm:$0xff] }
  0x1d   : > { %393 = vst [vmem:[%s16514_s12 + $0xa8] sm:$0xff] %v392_v21  ;;  %395 = vst [vmem:[%s16514_s12 + $0xb0] sm:$0xff] %v394_v22  ;;  %v402_v26 = vld [vmem:[%s16506_s30 + $0x190] sm:$0xff]  ;;  %v404_v27 = vld [vmem:[%s16506_s30 + $0x198] sm:$0xff] }
  0x1e   : > { %397 = vst [vmem:[%s16514_s12 + $0xb8] sm:$0xff] %v396_v23  ;;  %399 = vst [vmem:[%s16514_s12 + $0xc0] sm:$0xff] %v398_v24  ;;  %v406_v28 = vld [vmem:[%s16506_s30 + $0x1c0] sm:$0xff]  ;;  %v408_v29 = vld [vmem:[%s16506_s30 + $0x1c8] sm:$0xff] }
  0x1f   : > { %401 = vst [vmem:[%s16514_s12 + $0xc8] sm:$0xff] %v400_v25  ;;  %403 = vst [vmem:[%s16514_s12 + $0xd0] sm:$0xff] %v402_v26  ;;  %v410_v30 = vld [vmem:[%s16506_s30 + $0x1d0] sm:$0xff]  ;;  %v412_v31 = vld [vmem:[%s16506_s30 + $0x1d8] sm:$0xff] }
  0x20   : > { %405 = vst [vmem:[%s16514_s12 + $0xd8] sm:$0xff] %v404_v27  ;;  %407 = vst [vmem:[%s16514_s12 + $0xe0] sm:$0xff] %v406_v28  ;;  %v414_v32 = vld [vmem:[%s16506_s30 + $0x200] sm:$0xff]  ;;  %v416_v33 = vld [vmem:[%s16506_s30 + $0x208] sm:$0xff] }
  0x21   : > { %409 = vst [vmem:[%s16514_s12 + $0xe8] sm:$0xff] %v408_v29  ;;  %411 = vst [vmem:[%s16514_s12 + $0xf0] sm:$0xff] %v410_v30  ;;  %v418_v34 = vld [vmem:[%s16506_s30 + $0x210] sm:$0xff]  ;;  %v420_v35 = vld [vmem:[%s16506_s30 + $0x218] sm:$0xff] }
  0x22   : > { %413 = vst [vmem:[%s16514_s12 + $0xf8] sm:$0xff] %v412_v31  ;;  %415 = vst [vmem:[%s16514_s12 + $0x100] sm:$0xff] %v414_v32  ;;  %v422_v36 = vld [vmem:[%s16506_s30 + $0x240] sm:$0xff]  ;;  %v424_v37 = vld [vmem:[%s16506_s30 + $0x248] sm:$0xff] }
  0x23   : > { %417 = vst [vmem:[%s16514_s12 + $0x108] sm:$0xff] %v416_v33  ;;  %419 = vst [vmem:[%s16514_s12 + $0x110] sm:$0xff] %v418_v34  ;;  %v426_v38 = vld [vmem:[%s16506_s30 + $0x250] sm:$0xff]  ;;  %v428_v39 = vld [vmem:[%s16506_s30 + $0x258] sm:$0xff] }
  0x24   : > { %421 = vst [vmem:[%s16514_s12 + $0x118] sm:$0xff] %v420_v35  ;;  %423 = vst [vmem:[%s16514_s12 + $0x120] sm:$0xff] %v422_v36  ;;  %v430_v40 = vld [vmem:[%s16506_s30 + $0x280] sm:$0xff]  ;;  %v432_v41 = vld [vmem:[%s16506_s30 + $0x288] sm:$0xff] }
  0x25   : > { %425 = vst [vmem:[%s16514_s12 + $0x128] sm:$0xff] %v424_v37  ;;  %427 = vst [vmem:[%s16514_s12 + $0x130] sm:$0xff] %v426_v38  ;;  %v434_v42 = vld [vmem:[%s16506_s30 + $0x290] sm:$0xff]  ;;  %v436_v43 = vld [vmem:[%s16506_s30 + $0x298] sm:$0xff] }
  0x26   : > { %429 = vst [vmem:[%s16514_s12 + $0x138] sm:$0xff] %v428_v39  ;;  %431 = vst [vmem:[%s16514_s12 + $0x140] sm:$0xff] %v430_v40  ;;  %v438_v44 = vld [vmem:[%s16506_s30 + $0x2c0] sm:$0xff]  ;;  %v440_v45 = vld [vmem:[%s16506_s30 + $0x2c8] sm:$0xff] }
  0x27   : > { %433 = vst [vmem:[%s16514_s12 + $0x148] sm:$0xff] %v432_v41  ;;  %435 = vst [vmem:[%s16514_s12 + $0x150] sm:$0xff] %v434_v42  ;;  %v442_v46 = vld [vmem:[%s16506_s30 + $0x2d0] sm:$0xff]  ;;  %v444_v47 = vld [vmem:[%s16506_s30 + $0x2d8] sm:$0xff] }
  0x28   : > { %437 = vst [vmem:[%s16514_s12 + $0x158] sm:$0xff] %v436_v43  ;;  %439 = vst [vmem:[%s16514_s12 + $0x160] sm:$0xff] %v438_v44  ;;  %v446_v48 = vld [vmem:[%s16506_s30 + $0x300] sm:$0xff]  ;;  %v448_v49 = vld [vmem:[%s16506_s30 + $0x308] sm:$0xff] }
  0x29   : > { %441 = vst [vmem:[%s16514_s12 + $0x168] sm:$0xff] %v440_v45  ;;  %443 = vst [vmem:[%s16514_s12 + $0x170] sm:$0xff] %v442_v46  ;;  %v450_v50 = vld [vmem:[%s16506_s30 + $0x310] sm:$0xff]  ;;  %v452_v51 = vld [vmem:[%s16506_s30 + $0x318] sm:$0xff] }
  0x2a   : > { %445 = vst [vmem:[%s16514_s12 + $0x178] sm:$0xff] %v444_v47  ;;  %447 = vst [vmem:[%s16514_s12 + $0x180] sm:$0xff] %v446_v48  ;;  %v454_v52 = vld [vmem:[%s16506_s30 + $0x340] sm:$0xff]  ;;  %v456_v53 = vld [vmem:[%s16506_s30 + $0x348] sm:$0xff] }
  0x2b   : > { %449 = vst [vmem:[%s16514_s12 + $0x188] sm:$0xff] %v448_v49  ;;  %451 = vst [vmem:[%s16514_s12 + $0x190] sm:$0xff] %v450_v50  ;;  %v458_v54 = vld [vmem:[%s16506_s30 + $0x350] sm:$0xff]  ;;  %v460_v55 = vld [vmem:[%s16506_s30 + $0x358] sm:$0xff] }
  0x2c   : > { %453 = vst [vmem:[%s16514_s12 + $0x198] sm:$0xff] %v452_v51  ;;  %455 = vst [vmem:[%s16514_s12 + $0x1a0] sm:$0xff] %v454_v52  ;;  %v462_v56 = vld [vmem:[%s16506_s30 + $0x380] sm:$0xff]  ;;  %v464_v57 = vld [vmem:[%s16506_s30 + $0x388] sm:$0xff] }
  0x2d   : > { %457 = vst [vmem:[%s16514_s12 + $0x1a8] sm:$0xff] %v456_v53  ;;  %459 = vst [vmem:[%s16514_s12 + $0x1b0] sm:$0xff] %v458_v54  ;;  %v466_v58 = vld [vmem:[%s16506_s30 + $0x390] sm:$0xff]  ;;  %v468_v59 = vld [vmem:[%s16506_s30 + $0x398] sm:$0xff] }
  0x2e   : > { %461 = vst [vmem:[%s16514_s12 + $0x1b8] sm:$0xff] %v460_v55  ;;  %463 = vst [vmem:[%s16514_s12 + $0x1c0] sm:$0xff] %v462_v56  ;;  %v470_v60 = vld [vmem:[%s16506_s30 + $0x3c0] sm:$0xff]  ;;  %v472_v61 = vld [vmem:[%s16506_s30 + $0x3c8] sm:$0xff] }
  0x2f   : > { %465 = vst [vmem:[%s16514_s12 + $0x1c8] sm:$0xff] %v464_v57  ;;  %467 = vst [vmem:[%s16514_s12 + $0x1d0] sm:$0xff] %v466_v58  ;;  %v474_v62 = vld [vmem:[%s16506_s30 + $0x3d0] sm:$0xff]  ;;  %v476_v63 = vld [vmem:[%s16506_s30 + $0x3d8] sm:$0xff] }
  0x30   : > { %469 = vst [vmem:[%s16514_s12 + $0x1d8] sm:$0xff] %v468_v59  ;;  %471 = vst [vmem:[%s16514_s12 + $0x1e0] sm:$0xff] %v470_v60  ;;  %v478_v0 = vld [vmem:[%s16506_s30 + $0x400] sm:$0xff]  ;;  %v480_v1 = vld [vmem:[%s16506_s30 + $0x408] sm:$0xff] }
  0x31   : > { %473 = vst [vmem:[%s16514_s12 + $0x1e8] sm:$0xff] %v472_v61  ;;  %475 = vst [vmem:[%s16514_s12 + $0x1f0] sm:$0xff] %v474_v62  ;;  %v482_v2 = vld [vmem:[%s16506_s30 + $0x410] sm:$0xff]  ;;  %v484_v3 = vld [vmem:[%s16506_s30 + $0x418] sm:$0xff] }
  0x32   : > { %477 = vst [vmem:[%s16514_s12 + $0x1f8] sm:$0xff] %v476_v63  ;;  %479 = vst [vmem:[%s16514_s12 + $0x200] sm:$0xff] %v478_v0  ;;  %v486_v4 = vld [vmem:[%s16506_s30 + $0x440] sm:$0xff]  ;;  %v488_v5 = vld [vmem:[%s16506_s30 + $0x448] sm:$0xff] }
  0x33   : > { %481 = vst [vmem:[%s16514_s12 + $0x208] sm:$0xff] %v480_v1  ;;  %483 = vst [vmem:[%s16514_s12 + $0x210] sm:$0xff] %v482_v2  ;;  %v490_v6 = vld [vmem:[%s16506_s30 + $0x450] sm:$0xff]  ;;  %v492_v7 = vld [vmem:[%s16506_s30 + $0x458] sm:$0xff] }
  0x34   : > { %485 = vst [vmem:[%s16514_s12 + $0x218] sm:$0xff] %v484_v3  ;;  %487 = vst [vmem:[%s16514_s12 + $0x220] sm:$0xff] %v486_v4  ;;  %v494_v8 = vld [vmem:[%s16506_s30 + $0x480] sm:$0xff]  ;;  %v496_v9 = vld [vmem:[%s16506_s30 + $0x488] sm:$0xff] }
  0x35   : > { %489 = vst [vmem:[%s16514_s12 + $0x228] sm:$0xff] %v488_v5  ;;  %491 = vst [vmem:[%s16514_s12 + $0x230] sm:$0xff] %v490_v6  ;;  %v498_v10 = vld [vmem:[%s16506_s30 + $0x490] sm:$0xff]  ;;  %v500_v11 = vld [vmem:[%s16506_s30 + $0x498] sm:$0xff] }
  0x36   : > { %493 = vst [vmem:[%s16514_s12 + $0x238] sm:$0xff] %v492_v7  ;;  %495 = vst [vmem:[%s16514_s12 + $0x240] sm:$0xff] %v494_v8  ;;  %v502_v12 = vld [vmem:[%s16506_s30 + $0x4c0] sm:$0xff]  ;;  %v504_v13 = vld [vmem:[%s16506_s30 + $0x4c8] sm:$0xff] }
  0x37   : > { %497 = vst [vmem:[%s16514_s12 + $0x248] sm:$0xff] %v496_v9  ;;  %499 = vst [vmem:[%s16514_s12 + $0x250] sm:$0xff] %v498_v10  ;;  %v506_v14 = vld [vmem:[%s16506_s30 + $0x4d0] sm:$0xff]  ;;  %v508_v15 = vld [vmem:[%s16506_s30 + $0x4d8] sm:$0xff] }
  0x38   : > { %501 = vst [vmem:[%s16514_s12 + $0x258] sm:$0xff] %v500_v11  ;;  %503 = vst [vmem:[%s16514_s12 + $0x260] sm:$0xff] %v502_v12  ;;  %v510_v16 = vld [vmem:[%s16506_s30 + $0x500] sm:$0xff]  ;;  %v512_v17 = vld [vmem:[%s16506_s30 + $0x508] sm:$0xff] }
  0x39   : > { %505 = vst [vmem:[%s16514_s12 + $0x268] sm:$0xff] %v504_v13  ;;  %507 = vst [vmem:[%s16514_s12 + $0x270] sm:$0xff] %v506_v14  ;;  %v514_v18 = vld [vmem:[%s16506_s30 + $0x510] sm:$0xff]  ;;  %v516_v19 = vld [vmem:[%s16506_s30 + $0x518] sm:$0xff] }
  0x3a   : > { %509 = vst [vmem:[%s16514_s12 + $0x278] sm:$0xff] %v508_v15  ;;  %511 = vst [vmem:[%s16514_s12 + $0x280] sm:$0xff] %v510_v16  ;;  %v518_v20 = vld [vmem:[%s16506_s30 + $0x540] sm:$0xff]  ;;  %v520_v21 = vld [vmem:[%s16506_s30 + $0x548] sm:$0xff] }
  0x3b   : > { %513 = vst [vmem:[%s16514_s12 + $0x288] sm:$0xff] %v512_v17  ;;  %515 = vst [vmem:[%s16514_s12 + $0x290] sm:$0xff] %v514_v18  ;;  %v522_v22 = vld [vmem:[%s16506_s30 + $0x550] sm:$0xff]  ;;  %v524_v23 = vld [vmem:[%s16506_s30 + $0x558] sm:$0xff] }
  0x3c   : > { %517 = vst [vmem:[%s16514_s12 + $0x298] sm:$0xff] %v516_v19  ;;  %519 = vst [vmem:[%s16514_s12 + $0x2a0] sm:$0xff] %v518_v20  ;;  %v526_v24 = vld [vmem:[%s16506_s30 + $0x580] sm:$0xff]  ;;  %v528_v25 = vld [vmem:[%s16506_s30 + $0x588] sm:$0xff] }
  0x3d   : > { %521 = vst [vmem:[%s16514_s12 + $0x2a8] sm:$0xff] %v520_v21  ;;  %523 = vst [vmem:[%s16514_s12 + $0x2b0] sm:$0xff] %v522_v22  ;;  %v530_v26 = vld [vmem:[%s16506_s30 + $0x590] sm:$0xff]  ;;  %v532_v27 = vld [vmem:[%s16506_s30 + $0x598] sm:$0xff] }
  0x3e   : > { %525 = vst [vmem:[%s16514_s12 + $0x2b8] sm:$0xff] %v524_v23  ;;  %527 = vst [vmem:[%s16514_s12 + $0x2c0] sm:$0xff] %v526_v24  ;;  %v534_v28 = vld [vmem:[%s16506_s30 + $0x5c0] sm:$0xff]  ;;  %v536_v29 = vld [vmem:[%s16506_s30 + $0x5c8] sm:$0xff] }
  0x3f   : > { %529 = vst [vmem:[%s16514_s12 + $0x2c8] sm:$0xff] %v528_v25  ;;  %531 = vst [vmem:[%s16514_s12 + $0x2d0] sm:$0xff] %v530_v26  ;;  %v538_v30 = vld [vmem:[%s16506_s30 + $0x5d0] sm:$0xff]  ;;  %v540_v31 = vld [vmem:[%s16506_s30 + $0x5d8] sm:$0xff] }
  0x40   : > { %533 = vst [vmem:[%s16514_s12 + $0x2d8] sm:$0xff] %v532_v27  ;;  %535 = vst [vmem:[%s16514_s12 + $0x2e0] sm:$0xff] %v534_v28  ;;  %v542_v32 = vld [vmem:[%s16506_s30 + $0x600] sm:$0xff]  ;;  %v544_v33 = vld [vmem:[%s16506_s30 + $0x608] sm:$0xff] }
  0x41   : > { %537 = vst [vmem:[%s16514_s12 + $0x2e8] sm:$0xff] %v536_v29  ;;  %539 = vst [vmem:[%s16514_s12 + $0x2f0] sm:$0xff] %v538_v30  ;;  %v546_v34 = vld [vmem:[%s16506_s30 + $0x610] sm:$0xff]  ;;  %v548_v35 = vld [vmem:[%s16506_s30 + $0x618] sm:$0xff] }
  0x42   : > { %541 = vst [vmem:[%s16514_s12 + $0x2f8] sm:$0xff] %v540_v31  ;;  %543 = vst [vmem:[%s16514_s12 + $0x300] sm:$0xff] %v542_v32  ;;  %v550_v36 = vld [vmem:[%s16506_s30 + $0x640] sm:$0xff]  ;;  %v552_v37 = vld [vmem:[%s16506_s30 + $0x648] sm:$0xff] }
  0x43   : > { %545 = vst [vmem:[%s16514_s12 + $0x308] sm:$0xff] %v544_v33  ;;  %547 = vst [vmem:[%s16514_s12 + $0x310] sm:$0xff] %v546_v34  ;;  %v554_v38 = vld [vmem:[%s16506_s30 + $0x650] sm:$0xff]  ;;  %v556_v39 = vld [vmem:[%s16506_s30 + $0x658] sm:$0xff] }
  0x44   : > { %549 = vst [vmem:[%s16514_s12 + $0x318] sm:$0xff] %v548_v35  ;;  %551 = vst [vmem:[%s16514_s12 + $0x320] sm:$0xff] %v550_v36  ;;  %v558_v40 = vld [vmem:[%s16506_s30 + $0x680] sm:$0xff]  ;;  %v560_v41 = vld [vmem:[%s16506_s30 + $0x688] sm:$0xff] }
  0x45   : > { %553 = vst [vmem:[%s16514_s12 + $0x328] sm:$0xff] %v552_v37  ;;  %555 = vst [vmem:[%s16514_s12 + $0x330] sm:$0xff] %v554_v38  ;;  %v562_v42 = vld [vmem:[%s16506_s30 + $0x690] sm:$0xff]  ;;  %v564_v43 = vld [vmem:[%s16506_s30 + $0x698] sm:$0xff] }
  0x46   : > { %557 = vst [vmem:[%s16514_s12 + $0x338] sm:$0xff] %v556_v39  ;;  %559 = vst [vmem:[%s16514_s12 + $0x340] sm:$0xff] %v558_v40  ;;  %v566_v44 = vld [vmem:[%s16506_s30 + $0x6c0] sm:$0xff]  ;;  %v568_v45 = vld [vmem:[%s16506_s30 + $0x6c8] sm:$0xff] }
  0x47   : > { %561 = vst [vmem:[%s16514_s12 + $0x348] sm:$0xff] %v560_v41  ;;  %563 = vst [vmem:[%s16514_s12 + $0x350] sm:$0xff] %v562_v42  ;;  %v570_v46 = vld [vmem:[%s16506_s30 + $0x6d0] sm:$0xff]  ;;  %v572_v47 = vld [vmem:[%s16506_s30 + $0x6d8] sm:$0xff] }
  0x48   : > { %565 = vst [vmem:[%s16514_s12 + $0x358] sm:$0xff] %v564_v43  ;;  %567 = vst [vmem:[%s16514_s12 + $0x360] sm:$0xff] %v566_v44 }
  0x49   : > { %569 = vst [vmem:[%s16514_s12 + $0x368] sm:$0xff] %v568_v45  ;;  %571 = vst [vmem:[%s16514_s12 + $0x370] sm:$0xff] %v570_v46 }
  0x4a   : > { %573 = vst [vmem:[%s16514_s12 + $0x378] sm:$0xff] %v572_v47 }
  0x4b PF: > { %p9939_p5 = scmp.ge.s32.totalorder %s16405_s19, 1  ;;  %p578_p6 = scmp.lt.s32.totalorder %s16405_s19, 3 }
  0x4d   : > { %p579_p7 = pnand %p9939_p5, %p578_p6 }
  0x4f   : > { %582 = sbr.rel (%p579_p7) target bundleno = 3835 (0xefb), region = 83 }
  0x56   : > { %v628_v48 = vld [vmem:[%s22144_s1 + $0x8] sm:$0xff]  ;;  %v630_v49 = vld [vmem:[%s22144_s1 + $0x18] sm:$0xff]  ;;  %v627_v50 = vld [vmem:[%s22144_s1] sm:$0xff]  ;;  %s585_s29 = sand.u32 1, %s16397_s17   ;;  %vm763_vm0 = vcmask 785408   ;;  %vm5284_vm1 = vcmask 277504  }
  0x57   : > { %v16745_v51 = vpack.c.bf16 %v630_v49, %v628_v48  ;;  %v629_v52 = vld [vmem:[%s22144_s1 + $0x10] sm:$0xff]  ;;  %v632_v53 = vld [vmem:[%s22144_s1 + $0x28] sm:$0xff]  ;;  %v634_v54 = vld [vmem:[%s22144_s1 + $0x38] sm:$0xff]  ;;  %s16318_s23 = smul.u32 896, %s585_s29  ;;  %vm1071_vm2 = vcmask 998400   ;;  %vm5288_vm3 = vcmask 1041408  }
  0x58   : > { %v16756_v55 = vpack.c.bf16 %v629_v52, %v627_v50  ;;  %v16758_v56 = vpack.c.bf16 %v634_v54, %v632_v53  ;;  %v631_v57 = vld [vmem:[%s22144_s1 + $0x20] sm:$0xff]  ;;  %v633_v58 = vld [vmem:[%s22144_s1 + $0x30] sm:$0xff]  ;;  %v636_v59 = vld [vmem:[%s22144_s1 + $0x48] sm:$0xff]  ;;  %s16408_s28 = smov 112   ;;  %vm9251_vm4 = vcmask 130048   ;;  %vm6212_vm5 = vcmask 916480  }
  0x59   : > { %10583 = vmatprep.subr.bf16.mxu0 %v16745_v51  ;;  %10703 = vmatprep.subr.bf16.mxu1 %v16745_v51  ;;  %v638_v60 = vld [vmem:[%s22144_s1 + $0x58] sm:$0xff]  ;;  %v16776_v61 = vpack.c.bf16 %v633_v58, %v631_v57  ;;  %v635_v63 = vld [vmem:[%s22144_s1 + $0x40] sm:$0xff]  ;;  %v637_v0 = vld [vmem:[%s22144_s1 + $0x50] sm:$0xff]  ;;  %s16869_s22 = scalar_lea.vmem [#allocation2], %s16318_s23  ;;  %s16407_s23 = smov 122   ;;  %vm16410_vm6 = vmmov 0  }
  0x5a   : > { %10585 = vmatpush1.bf16.msra.mxu0 %v16756_v55  ;;  %10705 = vmatpush1.bf16.msra.mxu1 %v16756_v55  ;;  %v16780_v62 = vpack.c.bf16 %v638_v60, %v636_v59  ;;  %v640_v1 = vld [vmem:[%s22144_s1 + $0x68] sm:$0xff]  ;;  %v642_v2 = vld [vmem:[%s22144_s1 + $0x78] sm:$0xff]  ;;  %v16796_v3 = vpack.c.bf16 %v637_v0, %v635_v63  ;;  %v639_v5 = vld [vmem:[%s22144_s1 + $0x60] sm:$0xff]  ;;  %p623_p8 = scmp.lt.s32.totalorder %s9933_s20, 1 }
  0x5b   : > { %10587 = vmatprep.subr.bf16.mxu0 %v16758_v56  ;;  %10707 = vmatprep.subr.bf16.mxu1 %v16758_v56  ;;  %v16800_v4 = vpack.c.bf16 %v642_v2, %v640_v1  ;;  %v641_v6 = vld [vmem:[%s22144_s1 + $0x70] sm:$0xff]  ;;  %v644_v7 = vld [vmem:[%s22144_s1 + $0x88] sm:$0xff]  ;;  %v646_v8 = vld [vmem:[%s22144_s1 + $0x98] sm:$0xff] }
  0x5c   : > { %v16817_v9 = vpack.c.bf16 %v641_v6, %v639_v5  ;;  %v16821_v10 = vpack.c.bf16 %v646_v8, %v644_v7  ;;  %v643_v11 = vld [vmem:[%s22144_s1 + $0x80] sm:$0xff]  ;;  %v645_v12 = vld [vmem:[%s22144_s1 + $0x90] sm:$0xff]  ;;  %v648_v13 = vld [vmem:[%s22144_s1 + $0xa8] sm:$0xff]  ;;  %s23175_s20 = smov (!%p623_p8, %s9933_s20), 1 }
  0x5d   : > { %v650_v14 = vld [vmem:[%s22144_s1 + $0xb8] sm:$0xff]  ;;  %v16837_v15 = vpack.c.bf16 %v645_v12, %v643_v11  ;;  %v647_v17 = vld [vmem:[%s22144_s1 + $0xa0] sm:$0xff]  ;;  %v649_v18 = vld [vmem:[%s22144_s1 + $0xb0] sm:$0xff]  ;;  %s9940_s13 = sshll.u32 %s23175_s20, 3 }
  0x5e   : > { %10589 = vmatpush1.bf16.msra.mxu0 %v16776_v61  ;;  %10709 = vmatpush1.bf16.msra.mxu1 %v16776_v61  ;;  %v16841_v16 = vpack.c.bf16 %v650_v14, %v648_v13  ;;  %v652_v19 = vld [vmem:[%s22144_s1 + $0xc8] sm:$0xff]  ;;  %v654_v20 = vld [vmem:[%s22144_s1 + $0xd8] sm:$0xff]  ;;  %v16857_v21 = vpack.c.bf16 %v649_v18, %v647_v17  ;;  %v651_v23 = vld [vmem:[%s22144_s1 + $0xc0] sm:$0xff]  ;;  %s626_s15 = scalar_lea.vmem %s22154_s11, %s9940_s13 }
  0x5f   : > { %10591 = vmatprep.subr.bf16.mxu0 %v16780_v62  ;;  %10711 = vmatprep.subr.bf16.mxu1 %v16780_v62  ;;  %v16861_v22 = vpack.c.bf16 %v654_v20, %v652_v19  ;;  %v653_v24 = vld [vmem:[%s22144_s1 + $0xd0] sm:$0xff]  ;;  %v749_v25 = vld [vmem:[%s16869_s22 + $0x8] sm:$0xff]  ;;  %v658_v27 = vld [vmem:[%s22144_s1 + $0xf8] sm:$0xff] }
  0x60   : > { %v656_v26 = vld [vmem:[%s22144_s1 + $0xe8] sm:$0xff]  ;;  %831 = vmatprep.mubr.f32.mxu0 %v749_v25  ;;  %v16881_v29 = vpack.c.bf16 %v653_v24, %v651_v23  ;;  %v655_v31 = vld [vmem:[%s22144_s1 + $0xe0] sm:$0xff]  ;;  %v657_v32 = vld [vmem:[%s22144_s1 + $0xf0] sm:$0xff] }
  0x61   : > { %v9943_v28 = vld [vmem:[%s16869_s22 + $0x28] sm:$0xff]  ;;  %v16885_v30 = vpack.c.bf16 %v658_v27, %v656_v26  ;;  %v662_v34 = vld [vmem:[%s22144_s1 + $0x118] sm:$0xff]  ;;  %v16901_v35 = vpack.c.bf16 %v657_v32, %v655_v31  ;;  %v659_v37 = vld [vmem:[%s22144_s1 + $0x100] sm:$0xff] }
  0x62   : > { %10593 = vmatpush1.bf16.msra.mxu0 %v16796_v3  ;;  %10713 = vmatpush1.bf16.msra.mxu1 %v16796_v3  ;;  %v660_v33 = vld [vmem:[%s22144_s1 + $0x108] sm:$0xff]  ;;  %v661_v38 = vld [vmem:[%s22144_s1 + $0x110] sm:$0xff]  ;;  %v666_v40 = vld [vmem:[%s22144_s1 + $0x138] sm:$0xff] }
  0x63   : > { %10595 = vmatprep.subr.bf16.mxu0 %v16800_v4  ;;  %10715 = vmatprep.subr.bf16.mxu1 %v16800_v4  ;;  %v16905_v36 = vpack.c.bf16 %v662_v34, %v660_v33  ;;  %v664_v39 = vld [vmem:[%s22144_s1 + $0x128] sm:$0xff]  ;;  %v16921_v41 = vpack.c.bf16 %v661_v38, %v659_v37  ;;  %v663_v43 = vld [vmem:[%s22144_s1 + $0x120] sm:$0xff]  ;;  %v665_v44 = vld [vmem:[%s22144_s1 + $0x130] sm:$0xff] }
  0x64   : > { %983 = vmatprep.mubr.f32.mxu1 %v9943_v28  ;;  %v16925_v42 = vpack.c.bf16 %v666_v40, %v664_v39  ;;  %v668_v45 = vld [vmem:[%s22144_s1 + $0x148] sm:$0xff]  ;;  %v670_v46 = vld [vmem:[%s22144_s1 + $0x158] sm:$0xff]  ;;  %v16941_v47 = vpack.c.bf16 %v665_v44, %v663_v43  ;;  %v667_v49 = vld [vmem:[%s22144_s1 + $0x140] sm:$0xff] }
  0x65   : > { %v16945_v48 = vpack.c.bf16 %v670_v46, %v668_v45  ;;  %v669_v50 = vld [vmem:[%s22144_s1 + $0x150] sm:$0xff]  ;;  %v672_v52 = vld [vmem:[%s22144_s1 + $0x168] sm:$0xff]  ;;  %v674_v53 = vld [vmem:[%s22144_s1 + $0x178] sm:$0xff] }
  0x66   : > { %10597 = vmatpush1.bf16.msra.mxu0 %v16817_v9  ;;  %10717 = vmatpush1.bf16.msra.mxu1 %v16817_v9  ;;  %v16961_v54 = vpack.c.bf16 %v669_v50, %v667_v49  ;;  %v16965_v57 = vpack.c.bf16 %v674_v53, %v672_v52  ;;  %v671_v58 = vld [vmem:[%s22144_s1 + $0x160] sm:$0xff]  ;;  %v673_v59 = vld [vmem:[%s22144_s1 + $0x170] sm:$0xff]  ;;  %v676_v60 = vld [vmem:[%s22144_s1 + $0x188] sm:$0xff] }
  0x67   : > { %10599 = vmatprep.subr.bf16.mxu0 %v16821_v10  ;;  %10719 = vmatprep.subr.bf16.mxu1 %v16821_v10  ;;  %v678_v63 = vld [vmem:[%s22144_s1 + $0x198] sm:$0xff]  ;;  %v16981_v0 = vpack.c.bf16 %v673_v59, %v671_v58  ;;  %v675_v2 = vld [vmem:[%s22144_s1 + $0x180] sm:$0xff]  ;;  %v677_v5 = vld [vmem:[%s22144_s1 + $0x190] sm:$0xff] }
  0x68   : > { %v16985_v1 = vpack.c.bf16 %v678_v63, %v676_v60  ;;  %v680_v6 = vld [vmem:[%s22144_s1 + $0x1a8] sm:$0xff]  ;;  %v682_v7 = vld [vmem:[%s22144_s1 + $0x1b8] sm:$0xff]  ;;  %v17001_v8 = vpack.c.bf16 %v677_v5, %v675_v2  ;;  %v679_v12 = vld [vmem:[%s22144_s1 + $0x1a0] sm:$0xff] }
  0x69   : > { %v17005_v11 = vpack.c.bf16 %v682_v7, %v680_v6  ;;  %v681_v13 = vld [vmem:[%s22144_s1 + $0x1b0] sm:$0xff]  ;;  %v684_v14 = vld [vmem:[%s22144_s1 + $0x1c8] sm:$0xff]  ;;  %v686_v17 = vld [vmem:[%s22144_s1 + $0x1d8] sm:$0xff] }
  0x6a   : > { %10601 = vmatpush1.bf16.msra.mxu0 %v16837_v15  ;;  %10721 = vmatpush1.bf16.msra.mxu1 %v16837_v15  ;;  %v17021_v18 = vpack.c.bf16 %v681_v13, %v679_v12  ;;  %v17025_v19 = vpack.c.bf16 %v686_v17, %v684_v14  ;;  %v683_v20 = vld [vmem:[%s22144_s1 + $0x1c0] sm:$0xff]  ;;  %v685_v23 = vld [vmem:[%s22144_s1 + $0x1d0] sm:$0xff]  ;;  %v688_v24 = vld [vmem:[%s22144_s1 + $0x1e8] sm:$0xff] }
  0x6b   : > { %10603 = vmatprep.subr.bf16.mxu0 %v16841_v16  ;;  %10723 = vmatprep.subr.bf16.mxu1 %v16841_v16  ;;  %v690_v25 = vld [vmem:[%s22144_s1 + $0x1f8] sm:$0xff]  ;;  %v17041_v26 = vpack.c.bf16 %v685_v23, %v683_v20  ;;  %v687_v28 = vld [vmem:[%s22144_s1 + $0x1e0] sm:$0xff]  ;;  %v689_v31 = vld [vmem:[%s22144_s1 + $0x1f0] sm:$0xff] }
  0x6c   : > { %v17045_v27 = vpack.c.bf16 %v690_v25, %v688_v24  ;;  %v692_v32 = vld [vmem:[%s22144_s1 + $0x208] sm:$0xff]  ;;  %v694_v33 = vld [vmem:[%s22144_s1 + $0x218] sm:$0xff]  ;;  %v17061_v34 = vpack.c.bf16 %v689_v31, %v687_v28  ;;  %v691_v38 = vld [vmem:[%s22144_s1 + $0x200] sm:$0xff] }
  0x6d   : > { %v17065_v37 = vpack.c.bf16 %v694_v33, %v692_v32  ;;  %v693_v39 = vld [vmem:[%s22144_s1 + $0x210] sm:$0xff]  ;;  %v696_v40 = vld [vmem:[%s22144_s1 + $0x228] sm:$0xff]  ;;  %v698_v43 = vld [vmem:[%s22144_s1 + $0x238] sm:$0xff] }
  0x6e   : > { %10605 = vmatpush1.bf16.msra.mxu0 %v16857_v21  ;;  %10725 = vmatpush1.bf16.msra.mxu1 %v16857_v21  ;;  %v748_v44 = vld [vmem:[%s16869_s22] sm:$0xff]  ;;  %v17082_v45 = vpack.c.bf16 %v693_v39, %v691_v38  ;;  %v17087_v49 = vpack.c.bf16 %v698_v43, %v696_v40  ;;  %v697_v52 = vld [vmem:[%s22144_s1 + $0x230] sm:$0xff]  ;;  %v700_v53 = vld [vmem:[%s22144_s1 + $0x248] sm:$0xff] }
  0x6f   : > { %10607 = vmatprep.subr.bf16.mxu0 %v16861_v22  ;;  %10727 = vmatprep.subr.bf16.mxu1 %v16861_v22  ;;  %v9942_v46 = vld [vmem:[%s16869_s22 + $0x20] sm:$0xff]  ;;  %v702_v58 = vld [vmem:[%s22144_s1 + $0x258] sm:$0xff]  ;;  %v701_v6 = vld [vmem:[%s22144_s1 + $0x250] sm:$0xff] }
  0x70   : > { %v695_v50 = vld [vmem:[%s22144_s1 + $0x220] sm:$0xff]  ;;  %v751_v59 = vld [vmem:[%s16869_s22 + $0x18] sm:$0xff]  ;;  %v17109_v2 = vpack.c.bf16 %v702_v58, %v700_v53  ;;  %v704_v7 = vld [vmem:[%s22144_s1 + $0x268] sm:$0xff] }
  0x71   : > { %v9945_v60 = vld [vmem:[%s16869_s22 + $0x38] sm:$0xff]  ;;  %v17105_v63 = vpack.c.bf16 %v697_v52, %v695_v50  ;;  %v699_v5 = vld [vmem:[%s22144_s1 + $0x240] sm:$0xff]  ;;  %v705_v20 = vld [vmem:[%s22144_s1 + $0x270] sm:$0xff] }
  0x72   : > { %10609 = vmatpush1.bf16.msra.mxu0 %v16881_v29  ;;  %10729 = vmatpush1.bf16.msra.mxu1 %v16881_v29  ;;  %22647 = vst [vmem:[#allocation4_spill] sm:$0xff] %v17109_v2  ;;  %v706_v12 = vld [vmem:[%s22144_s1 + $0x278] sm:$0xff]  ;;  %v17127_v13 = vpack.c.bf16 %v701_v6, %v699_v5  ;;  %v703_v17 = vld [vmem:[%s22144_s1 + $0x260] sm:$0xff]  ;;  %v708_v23 = vld [vmem:[%s22144_s1 + $0x288] sm:$0xff] }
  0x73   : > { %10611 = vmatprep.subr.bf16.mxu0 %v16885_v30  ;;  %10731 = vmatprep.subr.bf16.mxu1 %v16885_v30  ;;  %22646 = vst [vmem:[#allocation3_spill] sm:$0xff] %v17105_v63  ;;  %v17131_v14 = vpack.c.bf16 %v706_v12, %v704_v7  ;;  %v710_v24 = vld [vmem:[%s22144_s1 + $0x298] sm:$0xff]  ;;  %v17147_v25 = vpack.c.bf16 %v705_v20, %v703_v17  ;;  %v707_v31 = vld [vmem:[%s22144_s1 + $0x280] sm:$0xff]  ;;  %v709_v32 = vld [vmem:[%s22144_s1 + $0x290] sm:$0xff] }
  0x74   : > { %22648 = vst [vmem:[#allocation5_spill] sm:$0xff] %v17127_v13  ;;  %v17151_v28 = vpack.c.bf16 %v710_v24, %v708_v23  ;;  %v712_v33 = vld [vmem:[%s22144_s1 + $0x2a8] sm:$0xff]  ;;  %v714_v38 = vld [vmem:[%s22144_s1 + $0x2b8] sm:$0xff]  ;;  %v17167_v39 = vpack.c.bf16 %v709_v32, %v707_v31  ;;  %v711_v43 = vld [vmem:[%s22144_s1 + $0x2a0] sm:$0xff] }
  0x75   : > { %22649 = vst [vmem:[#allocation6_spill] sm:$0xff] %v17131_v14  ;;  %22650 = vst [vmem:[#allocation7_spill] sm:$0xff] %v17147_v25  ;;  %v17171_v40 = vpack.c.bf16 %v714_v38, %v712_v33  ;;  %v718_v50 = vld [vmem:[%s22144_s1 + $0x2d8] sm:$0xff]  ;;  %v715_v58 = vld [vmem:[%s22144_s1 + $0x2c0] sm:$0xff] }
  0x76   : > { %10613 = vmatpush1.bf16.msra.mxu0 %v16901_v35  ;;  %10733 = vmatpush1.bf16.msra.mxu1 %v16901_v35  ;;  %22651 = vst [vmem:[#allocation8_spill] sm:$0xff] %v17151_v28  ;;  %22652 = vst [vmem:[#allocation9_spill] sm:$0xff] %v17167_v39  ;;  %v722_v5 = vld [vmem:[%s22144_s1 + $0x2f8] sm:$0xff]  ;;  %v719_v12 = vld [vmem:[%s22144_s1 + $0x2e0] sm:$0xff] }
  0x77   : > { %10615 = vmatprep.subr.bf16.mxu0 %v16905_v36  ;;  %10735 = vmatprep.subr.bf16.mxu1 %v16905_v36  ;;  %22653 = vst [vmem:[#allocation10_spill] sm:$0xff] %v17171_v40  ;;  %v721_v17 = vld [vmem:[%s22144_s1 + $0x2f0] sm:$0xff]  ;;  %v724_v20 = vld [vmem:[%s22144_s1 + $0x308] sm:$0xff]  ;;  %v726_v23 = vld [vmem:[%s22144_s1 + $0x318] sm:$0xff] }
  0x78   : > { %v17227_v24 = vpack.c.bf16 %v721_v17, %v719_v12  ;;  %v17231_v31 = vpack.c.bf16 %v726_v23, %v724_v20  ;;  %v723_v32 = vld [vmem:[%s22144_s1 + $0x300] sm:$0xff]  ;;  %v725_v33 = vld [vmem:[%s22144_s1 + $0x310] sm:$0xff]  ;;  %v728_v38 = vld [vmem:[%s22144_s1 + $0x328] sm:$0xff] }
  0x79   : > { %v731_v17 = vld [vmem:[%s22144_s1 + $0x340] sm:$0xff]  ;;  %v733_v20 = vld [vmem:[%s22144_s1 + $0x350] sm:$0xff]  ;;  %v736_v23 = vld [vmem:[%s22144_s1 + $0x368] sm:$0xff] }
  0x7a   : > { %10617 = vmatpush1.bf16.msra.mxu0 %v16921_v41  ;;  %10737 = vmatpush1.bf16.msra.mxu1 %v16921_v41 }
  0x7b   : > { %10619 = vmatprep.subr.bf16.mxu0 %v16925_v42  ;;  %10739 = vmatprep.subr.bf16.mxu1 %v16925_v42 }
  0x7e   : > { %10621 = vmatpush1.bf16.msra.mxu0 %v16941_v47  ;;  %10741 = vmatpush1.bf16.msra.mxu1 %v16941_v47 }
  0x7f   : > { %10623 = vmatprep.subr.bf16.mxu0 %v16945_v48  ;;  %10743 = vmatprep.subr.bf16.mxu1 %v16945_v48 }
  0x82   : > { %10625 = vmatpush1.bf16.msra.mxu0 %v16961_v54  ;;  %10745 = vmatpush1.bf16.msra.mxu1 %v16961_v54 }
  0x83   : > { %10627 = vmatprep.subr.bf16.mxu0 %v16965_v57  ;;  %10747 = vmatprep.subr.bf16.mxu1 %v16965_v57 }
  0x86   : > { %10629 = vmatpush1.bf16.msra.mxu0 %v16981_v0  ;;  %10749 = vmatpush1.bf16.msra.mxu1 %v16981_v0 }
  0x87   : > { %10631 = vmatprep.subr.bf16.mxu0 %v16985_v1  ;;  %10751 = vmatprep.subr.bf16.mxu1 %v16985_v1 }
  0x8a   : > { %10633 = vmatpush1.bf16.msra.mxu0 %v17001_v8  ;;  %10753 = vmatpush1.bf16.msra.mxu1 %v17001_v8 }
  0x8b   : > { %10635 = vmatprep.subr.bf16.mxu0 %v17005_v11  ;;  %10755 = vmatprep.subr.bf16.mxu1 %v17005_v11 }
  0x8e   : > { %10637 = vmatpush1.bf16.msra.mxu0 %v17021_v18  ;;  %10757 = vmatpush1.bf16.msra.mxu1 %v17021_v18 }
  0x8f   : > { %10639 = vmatprep.subr.bf16.mxu0 %v17025_v19  ;;  %10759 = vmatprep.subr.bf16.mxu1 %v17025_v19 }
  0x92   : > { %10641 = vmatpush1.bf16.msra.mxu0 %v17041_v26  ;;  %10761 = vmatpush1.bf16.msra.mxu1 %v17041_v26 }
  0x93   : > { %10643 = vmatprep.subr.bf16.mxu0 %v17045_v27  ;;  %10763 = vmatprep.subr.bf16.mxu1 %v17045_v27 }
  0x96   : > { %10645 = vmatpush1.bf16.msra.mxu0 %v17061_v34  ;;  %10765 = vmatpush1.bf16.msra.mxu1 %v17061_v34 }
  0x97   : > { %10647 = vmatprep.subr.bf16.mxu0 %v17065_v37  ;;  %10767 = vmatprep.subr.bf16.mxu1 %v17065_v37 }
  0x99   : > { %832 = vmatmul.mubr.f32.vlgmr.msra.gmra.mrb[0].mxu0 %v748_v44  ;;  %984 = vmatmul.mubr.f32.vlgmr.msra.gmra.mrb[0].mxu1 %v9942_v46  ;;  %v713_v44 = vld [vmem:[%s22144_s1 + $0x2b0] sm:$0xff]  ;;  %v716_v46 = vld [vmem:[%s22144_s1 + $0x2c8] sm:$0xff] }
  0x9a   : > { %10649 = vmatpush1.bf16.msra.mxu0 %v17082_v45  ;;  %10769 = vmatpush1.bf16.msra.mxu1 %v17082_v45  ;;  %v17187_v52 = vpack.c.bf16 %v713_v44, %v711_v43  ;;  %v17191_v53 = vpack.c.bf16 %v718_v50, %v716_v46  ;;  %v730_v43 = vld [vmem:[%s22144_s1 + $0x338] sm:$0xff]  ;;  %v17247_v44 = vpack.c.bf16 %v725_v33, %v723_v32  ;;  %v727_v50 = vld [vmem:[%s22144_s1 + $0x320] sm:$0xff] }
  0x9b   : > { %10651 = vmatprep.subr.bf16.mxu0 %v17087_v49  ;;  %10771 = vmatprep.subr.bf16.mxu1 %v17087_v49  ;;  %v17251_v46 = vpack.c.bf16 %v730_v43, %v728_v38  ;;  %v738_v32 = vld [vmem:[%s22144_s1 + $0x378] sm:$0xff]  ;;  %v17287_v33 = vpack.c.bf16 %v733_v20, %v731_v17  ;;  %v735_v43 = vld [vmem:[%s22144_s1 + $0x360] sm:$0xff] }
  0x9c   : > { %9941 = vmatprep.mubr.msk.f32.mxu0 %vm763_vm0, %v751_v59  ;;  %9946 = vmatprep.mubr.msk.f32.mxu1 %vm763_vm0, %v9945_v60  ;;  %22654 = vst [vmem:[#allocation11_spill] sm:$0xff] %v17187_v52  ;;  %22655 = vst [vmem:[#allocation12_spill] sm:$0xff] %v17191_v53  ;;  %v717_v59 = vld [vmem:[%s22144_s1 + $0x2d0] sm:$0xff]  ;;  %v720_v60 = vld [vmem:[%s22144_s1 + $0x2e8] sm:$0xff]  ;;  %v17291_v38 = vpack.c.bf16 %v738_v32, %v736_v23 }
  0x9d   : > { %v17207_v6 = vpack.c.bf16 %v717_v59, %v715_v58  ;;  %v17211_v7 = vpack.c.bf16 %v722_v5, %v720_v60  ;;  %v729_v58 = vld [vmem:[%s22144_s1 + $0x330] sm:$0xff]  ;;  %v732_v59 = vld [vmem:[%s22144_s1 + $0x348] sm:$0xff]  ;;  %v734_v60 = vld [vmem:[%s22144_s1 + $0x358] sm:$0xff] }
  0x9e   : > { %10653 = vmatpush1.bf16.msra.mxu0 %v17105_v63  ;;  %10773 = vmatpush1.bf16.msra.mxu1 %v17105_v63  ;;  %v17267_v5 = vpack.c.bf16 %v729_v58, %v727_v50  ;;  %v17271_v12 = vpack.c.bf16 %v734_v60, %v732_v59  ;;  %22658 = vst [vmem:[#allocation15_spill] sm:$0xff] %v17291_v38  ;;  %v737_v50 = vld [vmem:[%s22144_s1 + $0x370] sm:$0xff]  ;;  %v740_v58 = vld [vmem:[%s22144_s1 + $0x388] sm:$0xff]  ;;  %v742_v59 = vld [vmem:[%s22144_s1 + $0x398] sm:$0xff] }
  0x9f   : > { %10655 = vmatprep.subr.bf16.mxu0 %v17109_v2  ;;  %10775 = vmatprep.subr.bf16.mxu1 %v17109_v2  ;;  %22656 = vst [vmem:[#allocation13_spill] sm:$0xff] %v17207_v6  ;;  %22657 = vst [vmem:[#allocation14_spill] sm:$0xff] %v17211_v7  ;;  %v17307_v60 = vpack.c.bf16 %v737_v50, %v735_v43  ;;  %v17311_v17 = vpack.c.bf16 %v742_v59, %v740_v58  ;;  %v739_v20 = vld [vmem:[%s22144_s1 + $0x380] sm:$0xff]  ;;  %v741_v23 = vld [vmem:[%s22144_s1 + $0x390] sm:$0xff] }
  0xa0   : > { %v744_v32 = vld [vmem:[%s22144_s1 + $0x3a8] sm:$0xff]  ;;  %v746_v43 = vld [vmem:[%s22144_s1 + $0x3b8] sm:$0xff]  ;;  %v17327_v50 = vpack.c.bf16 %v741_v23, %v739_v20  ;;  %v743_v59 = vld [vmem:[%s22144_s1 + $0x3a0] sm:$0xff] }
  0xa1   : > { %v17331_v58 = vpack.c.bf16 %v746_v43, %v744_v32  ;;  %v750_v23 = vld [vmem:[%s16869_s22 + $0x10] sm:$0xff]  ;;  %v9948_v43 = vld [vmem:[%s16869_s22 + $0x48] sm:$0xff] }
  0xa2   : > { %10657 = vmatpush1.bf16.msra.mxu0 %v17127_v13  ;;  %10777 = vmatpush1.bf16.msra.mxu1 %v17127_v13  ;;  %22659 = vst [vmem:[#allocation16_spill] sm:$0xff] %v17327_v50  ;;  %v9944_v32 = vld [vmem:[%s16869_s22 + $0x30] sm:$0xff] }
  0xa3   : > { %10659 = vmatprep.subr.bf16.mxu0 %v17131_v14  ;;  %10779 = vmatprep.subr.bf16.mxu1 %v17131_v14 }
  0xa6   : > { %10661 = vmatpush1.bf16.msra.mxu0 %v17147_v25  ;;  %10781 = vmatpush1.bf16.msra.mxu1 %v17147_v25 }
  0xa7   : > { %10663 = vmatprep.subr.bf16.mxu0 %v17151_v28  ;;  %10783 = vmatprep.subr.bf16.mxu1 %v17151_v28 }
  0xaa   : > { %10665 = vmatpush1.bf16.msra.mxu0 %v17167_v39  ;;  %10785 = vmatpush1.bf16.msra.mxu1 %v17167_v39 }
  0xab   : > { %10667 = vmatprep.subr.bf16.mxu0 %v17171_v40  ;;  %10787 = vmatprep.subr.bf16.mxu1 %v17171_v40 }
  0xae   : > { %10669 = vmatpush1.bf16.msra.mxu0 %v17187_v52  ;;  %10789 = vmatpush1.bf16.msra.mxu1 %v17187_v52 }
  0xaf   : > { %10671 = vmatprep.subr.bf16.mxu0 %v17191_v53  ;;  %10791 = vmatprep.subr.bf16.mxu1 %v17191_v53 }
  0xb2   : > { %10673 = vmatpush1.bf16.msra.mxu0 %v17207_v6  ;;  %10793 = vmatpush1.bf16.msra.mxu1 %v17207_v6 }
  0xb3   : > { %10675 = vmatprep.subr.bf16.mxu0 %v17211_v7  ;;  %10795 = vmatprep.subr.bf16.mxu1 %v17211_v7 }
  0xb6   : > { %10677 = vmatpush1.bf16.msra.mxu0 %v17227_v24  ;;  %10797 = vmatpush1.bf16.msra.mxu1 %v17227_v24 }
  0xb7   : > { %10679 = vmatprep.subr.bf16.mxu0 %v17231_v31  ;;  %10799 = vmatprep.subr.bf16.mxu1 %v17231_v31 }
  0xba   : > { %10681 = vmatpush1.bf16.msra.mxu0 %v17247_v44  ;;  %10801 = vmatpush1.bf16.msra.mxu1 %v17247_v44 }
  0xbb   : > { %10683 = vmatprep.subr.bf16.mxu0 %v17251_v46  ;;  %10803 = vmatprep.subr.bf16.mxu1 %v17251_v46 }
  0xbe   : > { %10685 = vmatpush1.bf16.msra.mxu0 %v17267_v5  ;;  %10805 = vmatpush1.bf16.msra.mxu1 %v17267_v5 }
  0xbf   : > { %10687 = vmatprep.subr.bf16.mxu0 %v17271_v12  ;;  %10807 = vmatprep.subr.bf16.mxu1 %v17271_v12 }
  0xc2   : > { %10689 = vmatpush1.bf16.msra.mxu0 %v17287_v33  ;;  %10809 = vmatpush1.bf16.msra.mxu1 %v17287_v33 }
  0xc3   : > { %10691 = vmatprep.subr.bf16.mxu0 %v17291_v38  ;;  %10811 = vmatprep.subr.bf16.mxu1 %v17291_v38  ;;  %v745_v38 = vld [vmem:[%s22144_s1 + $0x3b0] sm:$0xff] }
  0xc4   : > { %v17341_v20 = vpack.c.bf16 %v745_v38, %v743_v59  ;;  %v9947_v38 = vld [vmem:[%s16869_s22 + $0x40] sm:$0xff]  ;;  %v9950_v59 = vld [vmem:[%s16869_s22 + $0x58] sm:$0xff] }
  0xc6   : > { %10693 = vmatpush1.bf16.msra.mxu0 %v17307_v60  ;;  %10813 = vmatpush1.bf16.msra.mxu1 %v17307_v60 }
  0xc7   : > { %10695 = vmatprep.subr.bf16.mxu0 %v17311_v17  ;;  %10815 = vmatprep.subr.bf16.mxu1 %v17311_v17 }
  0xca   : > { %10697 = vmatpush1.bf16.msra.mxu0 %v17327_v50  ;;  %10817 = vmatpush1.bf16.msra.mxu1 %v17327_v50  ;;  %v9953_v50 = vld [vmem:[%s16869_s22 + $0x68] sm:$0xff] }
  0xcb   : > { %10699 = vmatprep.subr.bf16.mxu0 %v17331_v58  ;;  %10819 = vmatprep.subr.bf16.mxu1 %v17331_v58 }
  0xce   : > { %10701 = vmatpush1.bf16.msra.mxu0 %v17341_v20  ;;  %10821 = vmatpush1.bf16.msra.mxu1 %v17341_v20 }
  0xcf   : > { %10823 = vmatprep.subr.bf16.mxu0 %v16745_v51  ;;  %10943 = vmatprep.subr.bf16.mxu1 %v16745_v51 }
  0xd1   : > { %903 = vmatmul.mubr.f32.vlgmr.msra.gmra.mrb[0].mxu0 %v750_v23  ;;  %1055 = vmatmul.mubr.f32.vlgmr.msra.gmra.mrb[0].mxu1 %v9944_v32  ;;  %v9955_v23 = vld [vmem:[%s16869_s22 + $0x78] sm:$0xff]  ;;  %v22660_v32 = vld [vmem:[#allocation15_spill] sm:$0xff] }
  0xd2   : > { %10825 = vmatpush1.bf16.msra.mxu0 %v16756_v55  ;;  %10945 = vmatpush1.bf16.msra.mxu1 %v16756_v55 }
  0xd3   : > { %10827 = vmatprep.subr.bf16.mxu0 %v16758_v56  ;;  %10947 = vmatprep.subr.bf16.mxu1 %v16758_v56 }
  0xd4   : > { %1149 = vmatprep.mubr.f32.mxu0 %v9948_v43  ;;  %1301 = vmatprep.mubr.f32.mxu1 %v9953_v50  ;;  %v9952_v50 = vld [vmem:[%s16869_s22 + $0x60] sm:$0xff]  ;;  %v22661_v43 = vld [vmem:[#allocation16_spill] sm:$0xff] }
  0xd6   : > { %10829 = vmatpush1.bf16.msra.mxu0 %v16776_v61  ;;  %10949 = vmatpush1.bf16.msra.mxu1 %v16776_v61 }
  0xd7   : > { %10831 = vmatprep.subr.bf16.mxu0 %v16780_v62  ;;  %10951 = vmatprep.subr.bf16.mxu1 %v16780_v62 }
  0xda   : > { %10833 = vmatpush1.bf16.msra.mxu0 %v16796_v3  ;;  %10953 = vmatpush1.bf16.msra.mxu1 %v16796_v3 }
  0xdb   : > { %10835 = vmatprep.subr.bf16.mxu0 %v16800_v4  ;;  %10955 = vmatprep.subr.bf16.mxu1 %v16800_v4 }
  0xde   : > { %10837 = vmatpush1.bf16.msra.mxu0 %v16817_v9  ;;  %10957 = vmatpush1.bf16.msra.mxu1 %v16817_v9 }
  0xdf   : > { %10839 = vmatprep.subr.bf16.mxu0 %v16821_v10  ;;  %10959 = vmatprep.subr.bf16.mxu1 %v16821_v10 }
  0xe2   : > { %10841 = vmatpush1.bf16.msra.mxu0 %v16837_v15  ;;  %10961 = vmatpush1.bf16.msra.mxu1 %v16837_v15 }
  0xe3   : > { %10843 = vmatprep.subr.bf16.mxu0 %v16841_v16  ;;  %10963 = vmatprep.subr.bf16.mxu1 %v16841_v16 }
  0xe6   : > { %10845 = vmatpush1.bf16.msra.mxu0 %v16857_v21  ;;  %10965 = vmatpush1.bf16.msra.mxu1 %v16857_v21 }
  0xe7   : > { %10847 = vmatprep.subr.bf16.mxu0 %v16861_v22  ;;  %10967 = vmatprep.subr.bf16.mxu1 %v16861_v22 }
  0xea   : > { %10849 = vmatpush1.bf16.msra.mxu0 %v16881_v29  ;;  %10969 = vmatpush1.bf16.msra.mxu1 %v16881_v29 }
  0xeb   : > { %10851 = vmatprep.subr.bf16.mxu0 %v16885_v30  ;;  %10971 = vmatprep.subr.bf16.mxu1 %v16885_v30 }
  0xee   : > { %10853 = vmatpush1.bf16.msra.mxu0 %v16901_v35  ;;  %10973 = vmatpush1.bf16.msra.mxu1 %v16901_v35 }
  0xef   : > { %10855 = vmatprep.subr.bf16.mxu0 %v16905_v36  ;;  %10975 = vmatprep.subr.bf16.mxu1 %v16905_v36 }
  0xf2   : > { %10857 = vmatpush1.bf16.msra.mxu0 %v16921_v41  ;;  %10977 = vmatpush1.bf16.msra.mxu1 %v16921_v41 }
  0xf3   : > { %10859 = vmatprep.subr.bf16.mxu0 %v16925_v42  ;;  %10979 = vmatprep.subr.bf16.mxu1 %v16925_v42 }
  0xf6   : > { %10861 = vmatpush1.bf16.msra.mxu0 %v16941_v47  ;;  %10981 = vmatpush1.bf16.msra.mxu1 %v16941_v47 }
  0xf7   : > { %10863 = vmatprep.subr.bf16.mxu0 %v16945_v48  ;;  %10983 = vmatprep.subr.bf16.mxu1 %v16945_v48 }
  0xfa   : > { %10865 = vmatpush1.bf16.msra.mxu0 %v16961_v54  ;;  %10985 = vmatpush1.bf16.msra.mxu1 %v16961_v54 }
  0xfb   : > { %10867 = vmatprep.subr.bf16.mxu0 %v16965_v57  ;;  %10987 = vmatprep.subr.bf16.mxu1 %v16965_v57 }
  0xfe   : > { %10869 = vmatpush1.bf16.msra.mxu0 %v16981_v0  ;;  %10989 = vmatpush1.bf16.msra.mxu1 %v16981_v0 }
  0xff   : > { %10871 = vmatprep.subr.bf16.mxu0 %v16985_v1  ;;  %10991 = vmatprep.subr.bf16.mxu1 %v16985_v1 }
 0x102   : > { %10873 = vmatpush1.bf16.msra.mxu0 %v17001_v8  ;;  %10993 = vmatpush1.bf16.msra.mxu1 %v17001_v8 }
 0x103   : > { %10875 = vmatprep.subr.bf16.mxu0 %v17005_v11  ;;  %10995 = vmatprep.subr.bf16.mxu1 %v17005_v11 }
 0x106   : > { %10877 = vmatpush1.bf16.msra.mxu0 %v17021_v18  ;;  %10997 = vmatpush1.bf16.msra.mxu1 %v17021_v18 }
 0x107   : > { %10879 = vmatprep.subr.bf16.mxu0 %v17025_v19  ;;  %10999 = vmatprep.subr.bf16.mxu1 %v17025_v19 }
 0x10a   : > { %10881 = vmatpush1.bf16.msra.mxu0 %v17041_v26  ;;  %11001 = vmatpush1.bf16.msra.mxu1 %v17041_v26 }
 0x10b   : > { %10883 = vmatprep.subr.bf16.mxu0 %v17045_v27  ;;  %11003 = vmatprep.subr.bf16.mxu1 %v17045_v27 }
 0x10e   : > { %10885 = vmatpush1.bf16.msra.mxu0 %v17061_v34  ;;  %11005 = vmatpush1.bf16.msra.mxu1 %v17061_v34 }
 0x10f   : > { %10887 = vmatprep.subr.bf16.mxu0 %v17065_v37  ;;  %11007 = vmatprep.subr.bf16.mxu1 %v17065_v37 }
 0x111   : > { %1150 = vmatmul.mubr.f32.vlgmr.msra.gmra.mrb[2].mxu0 %v9947_v38  ;;  %1302 = vmatmul.mubr.f32.vlgmr.msra.gmra.mrb[2].mxu1 %v9952_v50  ;;  %v9949_v38 = vld [vmem:[%s16869_s22 + $0x50] sm:$0xff] }
 0x112   : > { %10889 = vmatpush1.bf16.msra.mxu0 %v17082_v45  ;;  %11009 = vmatpush1.bf16.msra.mxu1 %v17082_v45  ;;  %v9954_v50 = vld [vmem:[%s16869_s22 + $0x70] sm:$0xff] }
 0x113   : > { %10891 = vmatprep.subr.bf16.mxu0 %v17087_v49  ;;  %11011 = vmatprep.subr.bf16.mxu1 %v17087_v49 }
 0x114   : > { %9951 = vmatprep.mubr.msk.f32.mxu0 %vm763_vm0, %v9950_v59  ;;  %9956 = vmatprep.mubr.msk.f32.mxu1 %vm763_vm0, %v9955_v23  ;;  %v9958_v59 = vld [vmem:[%s16869_s22 + $0x88] sm:$0xff] }
 0x115   : > { %v9963_v23 = vld [vmem:[%s16869_s22 + $0xa8] sm:$0xff] }
 0x116   : > { %10893 = vmatpush1.bf16.msra.mxu0 %v17105_v63  ;;  %11013 = vmatpush1.bf16.msra.mxu1 %v17105_v63 }
 0x117   : > { %10895 = vmatprep.subr.bf16.mxu0 %v17109_v2  ;;  %11015 = vmatprep.subr.bf16.mxu1 %v17109_v2 }
 0x11a   : > { %10897 = vmatpush1.bf16.msra.mxu0 %v17127_v13  ;;  %11017 = vmatpush1.bf16.msra.mxu1 %v17127_v13 }
 0x11b   : > { %10899 = vmatprep.subr.bf16.mxu0 %v17131_v14  ;;  %11019 = vmatprep.subr.bf16.mxu1 %v17131_v14 }
 0x11e   : > { %10901 = vmatpush1.bf16.msra.mxu0 %v17147_v25  ;;  %11021 = vmatpush1.bf16.msra.mxu1 %v17147_v25 }
 0x11f   : > { %10903 = vmatprep.subr.bf16.mxu0 %v17151_v28  ;;  %11023 = vmatprep.subr.bf16.mxu1 %v17151_v28 }
 0x122   : > { %10905 = vmatpush1.bf16.msra.mxu0 %v17167_v39  ;;  %11025 = vmatpush1.bf16.msra.mxu1 %v17167_v39 }
 0x123   : > { %10907 = vmatprep.subr.bf16.mxu0 %v17171_v40  ;;  %11027 = vmatprep.subr.bf16.mxu1 %v17171_v40 }
 0x126   : > { %10909 = vmatpush1.bf16.msra.mxu0 %v17187_v52  ;;  %11029 = vmatpush1.bf16.msra.mxu1 %v17187_v52 }
 0x127   : > { %10911 = vmatprep.subr.bf16.mxu0 %v17191_v53  ;;  %11031 = vmatprep.subr.bf16.mxu1 %v17191_v53 }
 0x12a   : > { %10913 = vmatpush1.bf16.msra.mxu0 %v17207_v6  ;;  %11033 = vmatpush1.bf16.msra.mxu1 %v17207_v6 }
 0x12b   : > { %10915 = vmatprep.subr.bf16.mxu0 %v17211_v7  ;;  %11035 = vmatprep.subr.bf16.mxu1 %v17211_v7 }
 0x12e   : > { %10917 = vmatpush1.bf16.msra.mxu0 %v17227_v24  ;;  %11037 = vmatpush1.bf16.msra.mxu1 %v17227_v24 }
 0x12f   : > { %10919 = vmatprep.subr.bf16.mxu0 %v17231_v31  ;;  %11039 = vmatprep.subr.bf16.mxu1 %v17231_v31 }
 0x132   : > { %10921 = vmatpush1.bf16.msra.mxu0 %v17247_v44  ;;  %11041 = vmatpush1.bf16.msra.mxu1 %v17247_v44 }
 0x133   : > { %10923 = vmatprep.subr.bf16.mxu0 %v17251_v46  ;;  %11043 = vmatprep.subr.bf16.mxu1 %v17251_v46 }
 0x136   : > { %10925 = vmatpush1.bf16.msra.mxu0 %v17267_v5  ;;  %11045 = vmatpush1.bf16.msra.mxu1 %v17267_v5 }
 0x137   : > { %10927 = vmatprep.subr.bf16.mxu0 %v17271_v12  ;;  %11047 = vmatprep.subr.bf16.mxu1 %v17271_v12 }
 0x13a   : > { %10929 = vmatpush1.bf16.msra.mxu0 %v17287_v33  ;;  %11049 = vmatpush1.bf16.msra.mxu1 %v17287_v33 }
 0x13b   : > { %10931 = vmatprep.subr.bf16.mxu0 %v22660_v32  ;;  %11051 = vmatprep.subr.bf16.mxu1 %v22660_v32 }
 0x13e   : > { %10933 = vmatpush1.bf16.msra.mxu0 %v17307_v60  ;;  %11053 = vmatpush1.bf16.msra.mxu1 %v17307_v60 }
 0x13f   : > { %10935 = vmatprep.subr.bf16.mxu0 %v17311_v17  ;;  %11055 = vmatprep.subr.bf16.mxu1 %v17311_v17 }
 0x142   : > { %10937 = vmatpush1.bf16.msra.mxu0 %v22661_v43  ;;  %11057 = vmatpush1.bf16.msra.mxu1 %v22661_v43 }
 0x143   : > { %10939 = vmatprep.subr.bf16.mxu0 %v17331_v58  ;;  %11059 = vmatprep.subr.bf16.mxu1 %v17331_v58 }
 0x146   : > { %10941 = vmatpush1.bf16.msra.mxu0 %v17341_v20  ;;  %11061 = vmatpush1.bf16.msra.mxu1 %v17341_v20 }
 0x147   : > { %11063 = vmatprep.subr.bf16.mxu0 %v16745_v51  ;;  %11183 = vmatprep.subr.bf16.mxu1 %v16745_v51 }
 0x149   : > { %1221 = vmatmul.mubr.f32.vlgmr.msra.gmra.mrb[2].mxu0 %v9949_v38  ;;  %1373 = vmatmul.mubr.f32.vlgmr.msra.gmra.mrb[2].mxu1 %v9954_v50  ;;  %v9957_v38 = vld [vmem:[%s16869_s22 + $0x80] sm:$0xff] }
 0x14a   : > { %11065 = vmatpush1.bf16.msra.mxu0 %v16756_v55  ;;  %11185 = vmatpush1.bf16.msra.mxu1 %v16756_v55  ;;  %v9962_v50 = vld [vmem:[%s16869_s22 + $0xa0] sm:$0xff] }
 0x14b   : > { %11067 = vmatprep.subr.bf16.mxu0 %v16758_v56  ;;  %11187 = vmatprep.subr.bf16.mxu1 %v16758_v56 }
 0x14c   : > { %1466 = vmatprep.mubr.f32.mxu0 %v9958_v59  ;;  %1618 = vmatprep.mubr.f32.mxu1 %v9963_v23  ;;  %v9960_v59 = vld [vmem:[%s16869_s22 + $0x98] sm:$0xff] }
 0x14d   : > { %v9965_v23 = vld [vmem:[%s16869_s22 + $0xb8] sm:$0xff] }
 0x14e   : > { %11069 = vmatpush1.bf16.msra.mxu0 %v16776_v61  ;;  %11189 = vmatpush1.bf16.msra.mxu1 %v16776_v61 }
 0x14f   : > { %11071 = vmatprep.subr.bf16.mxu0 %v16780_v62  ;;  %11191 = vmatprep.subr.bf16.mxu1 %v16780_v62 }
 0x152   : > { %11073 = vmatpush1.bf16.msra.mxu0 %v16796_v3  ;;  %11193 = vmatpush1.bf16.msra.mxu1 %v16796_v3 }
 0x153   : > { %11075 = vmatprep.subr.bf16.mxu0 %v16800_v4  ;;  %11195 = vmatprep.subr.bf16.mxu1 %v16800_v4 }
 0x156   : > { %11077 = vmatpush1.bf16.msra.mxu0 %v16817_v9  ;;  %11197 = vmatpush1.bf16.msra.mxu1 %v16817_v9 }
 0x157   : > { %11079 = vmatprep.subr.bf16.mxu0 %v16821_v10  ;;  %11199 = vmatprep.subr.bf16.mxu1 %v16821_v10 }
 0x15a   : > { %11081 = vmatpush1.bf16.msra.mxu0 %v16837_v15  ;;  %11201 = vmatpush1.bf16.msra.mxu1 %v16837_v15 }
 0x15b   : > { %11083 = vmatprep.subr.bf16.mxu0 %v16841_v16  ;;  %11203 = vmatprep.subr.bf16.mxu1 %v16841_v16 }
 0x15e   : > { %11085 = vmatpush1.bf16.msra.mxu0 %v16857_v21  ;;  %11205 = vmatpush1.bf16.msra.mxu1 %v16857_v21 }
 0x15f   : > { %11087 = vmatprep.subr.bf16.mxu0 %v16861_v22  ;;  %11207 = vmatprep.subr.bf16.mxu1 %v16861_v22 }
 0x162   : > { %11089 = vmatpush1.bf16.msra.mxu0 %v16881_v29  ;;  %11209 = vmatpush1.bf16.msra.mxu1 %v16881_v29 }
 0x163   : > { %11091 = vmatprep.subr.bf16.mxu0 %v16885_v30  ;;  %11211 = vmatprep.subr.bf16.mxu1 %v16885_v30 }
 0x166   : > { %11093 = vmatpush1.bf16.msra.mxu0 %v16901_v35  ;;  %11213 = vmatpush1.bf16.msra.mxu1 %v16901_v35 }
 0x167   : > { %11095 = vmatprep.subr.bf16.mxu0 %v16905_v36  ;;  %11215 = vmatprep.subr.bf16.mxu1 %v16905_v36 }
 0x16a   : > { %11097 = vmatpush1.bf16.msra.mxu0 %v16921_v41  ;;  %11217 = vmatpush1.bf16.msra.mxu1 %v16921_v41 }
 0x16b   : > { %11099 = vmatprep.subr.bf16.mxu0 %v16925_v42  ;;  %11219 = vmatprep.subr.bf16.mxu1 %v16925_v42 }
 0x16e   : > { %11101 = vmatpush1.bf16.msra.mxu0 %v16941_v47  ;;  %11221 = vmatpush1.bf16.msra.mxu1 %v16941_v47 }
 0x16f   : > { %11103 = vmatprep.subr.bf16.mxu0 %v16945_v48  ;;  %11223 = vmatprep.subr.bf16.mxu1 %v16945_v48 }
 0x172   : > { %11105 = vmatpush1.bf16.msra.mxu0 %v16961_v54  ;;  %11225 = vmatpush1.bf16.msra.mxu1 %v16961_v54 }
 0x173   : > { %11107 = vmatprep.subr.bf16.mxu0 %v16965_v57  ;;  %11227 = vmatprep.subr.bf16.mxu1 %v16965_v57 }
 0x176   : > { %11109 = vmatpush1.bf16.msra.mxu0 %v16981_v0  ;;  %11229 = vmatpush1.bf16.msra.mxu1 %v16981_v0 }
 0x177   : > { %11111 = vmatprep.subr.bf16.mxu0 %v16985_v1  ;;  %11231 = vmatprep.subr.bf16.mxu1 %v16985_v1 }
 0x17a   : > { %11113 = vmatpush1.bf16.msra.mxu0 %v17001_v8  ;;  %11233 = vmatpush1.bf16.msra.mxu1 %v17001_v8 }
 0x17b   : > { %11115 = vmatprep.subr.bf16.mxu0 %v17005_v11  ;;  %11235 = vmatprep.subr.bf16.mxu1 %v17005_v11 }
 0x17e   : > { %11117 = vmatpush1.bf16.msra.mxu0 %v17021_v18  ;;  %11237 = vmatpush1.bf16.msra.mxu1 %v17021_v18 }
 0x17f   : > { %11119 = vmatprep.subr.bf16.mxu0 %v17025_v19  ;;  %11239 = vmatprep.subr.bf16.mxu1 %v17025_v19 }
 0x182   : > { %11121 = vmatpush1.bf16.msra.mxu0 %v17041_v26  ;;  %11241 = vmatpush1.bf16.msra.mxu1 %v17041_v26 }
 0x183   : > { %11123 = vmatprep.subr.bf16.mxu0 %v17045_v27  ;;  %11243 = vmatprep.subr.bf16.mxu1 %v17045_v27 }
 0x186   : > { %11125 = vmatpush1.bf16.msra.mxu0 %v17061_v34  ;;  %11245 = vmatpush1.bf16.msra.mxu1 %v17061_v34 }
 0x187   : > { %11127 = vmatprep.subr.bf16.mxu0 %v17065_v37  ;;  %11247 = vmatprep.subr.bf16.mxu1 %v17065_v37 }
 0x189   : > { %1467 = vmatmul.mubr.f32.vlgmr.msra.gmra.mrb[4].mxu0 %v9957_v38  ;;  %1619 = vmatmul.mubr.f32.vlgmr.msra.gmra.mrb[4].mxu1 %v9962_v50  ;;  %v753_v38 = vlaneseq }
 0x18a   : > { %11129 = vmatpush1.bf16.msra.mxu0 %v17082_v45  ;;  %11249 = vmatpush1.bf16.msra.mxu1 %v17082_v45 }
 0x18b   : > { %11131 = vmatprep.subr.bf16.mxu0 %v17087_v49  ;;  %11251 = vmatprep.subr.bf16.mxu1 %v17087_v49  ;;  %v17569_v50 = vshrl.u32 %v753_v38, 7 }
 0x18c   : > { %9961 = vmatprep.mubr.msk.f32.mxu0 %vm763_vm0, %v9960_v59  ;;  %9966 = vmatprep.mubr.msk.f32.mxu1 %vm763_vm0, %v9965_v23  ;;  %v747_v23 = vld [vmem:[%s22145_s2] sm:$0x3] }
 0x18d   : > { %22662 = vst [vmem:[#allocation15_spill] sm:$0xff] %v17569_v50  ;;  %v22171_v59 = vsub.s32 0, %v17569_v50  ;;  %v22178_v38 = vsub.s32 1, %v17569_v50 }
 0x18e   : > { %11133 = vmatpush1.bf16.msra.mxu0 %v17105_v63  ;;  %11253 = vmatpush1.bf16.msra.mxu1 %v17105_v63 }
 0x18f   : > { %11135 = vmatprep.subr.bf16.mxu0 %v17109_v2  ;;  %11255 = vmatprep.subr.bf16.mxu1 %v17109_v2 }
 0x192   : > { %11137 = vmatpush1.bf16.msra.mxu0 %v17127_v13  ;;  %11257 = vmatpush1.bf16.msra.mxu1 %v17127_v13 }
 0x193   : > { %11139 = vmatprep.subr.bf16.mxu0 %v17131_v14  ;;  %11259 = vmatprep.subr.bf16.mxu1 %v17131_v14 }
 0x196   : > { %11141 = vmatpush1.bf16.msra.mxu0 %v17147_v25  ;;  %11261 = vmatpush1.bf16.msra.mxu1 %v17147_v25 }
 0x197   : > { %11143 = vmatprep.subr.bf16.mxu0 %v17151_v28  ;;  %11263 = vmatprep.subr.bf16.mxu1 %v17151_v28 }
 0x19a   : > { %11145 = vmatpush1.bf16.msra.mxu0 %v17167_v39  ;;  %11265 = vmatpush1.bf16.msra.mxu1 %v17167_v39  ;;  %v17586_v39 = vrot.slane %v747_v23, %v22171_v59 }
 0x19b   : > { %11147 = vmatprep.subr.bf16.mxu0 %v17171_v40  ;;  %11267 = vmatprep.subr.bf16.mxu1 %v17171_v40 }
 0x19e   : > { %11149 = vmatpush1.bf16.msra.mxu0 %v17187_v52  ;;  %11269 = vmatpush1.bf16.msra.mxu1 %v17187_v52  ;;  %v17592_v52 = vrot.slane %v747_v23, %v22178_v38 }
 0x19f   : > { %11151 = vmatprep.subr.bf16.mxu0 %v17191_v53  ;;  %11271 = vmatprep.subr.bf16.mxu1 %v17191_v53 }
 0x1a2   : > { %11153 = vmatpush1.bf16.msra.mxu0 %v17207_v6  ;;  %11273 = vmatpush1.bf16.msra.mxu1 %v17207_v6 }
 0x1a3   : > { %11155 = vmatprep.subr.bf16.mxu0 %v17211_v7  ;;  %11275 = vmatprep.subr.bf16.mxu1 %v17211_v7 }
 0x1a4   : > { %v904_v40 = vpop.f32.mrb[0].mxu0  ;;  %v1056_v28 = vpop.f32.mrb[0].mxu1 }
 0x1a5   : > { %v16125_v53 = vadd.f32 %v904_v40, %v17586_v39  ;;  %v16127_v25 = vadd.f32 %v1056_v28, %v17586_v39  ;;  %v906_v59 = vpop.f32.mrb[1].mxu0  ;;  %v1058_v14 = vpop.f32.mrb[1].mxu1 }
 0x1a6   : > { %v16126_v13 = vadd.f32 %v906_v59, %v17592_v52  ;;  %v16128_v6 = vadd.f32 %v1058_v14, %v17592_v52  ;;  %11157 = vmatpush1.bf16.msra.mxu0 %v17227_v24  ;;  %11277 = vmatpush1.bf16.msra.mxu1 %v17227_v24  ;;  %v9964_v14 = vld [vmem:[%s16869_s22 + $0xb0] sm:$0xff]  ;;  %v9970_v59 = vld [vmem:[%s16869_s22 + $0xd8] sm:$0xff] }
 0x1a7   : > { %v909_v23 = vmax.f32 %v16125_v53, 0.0  ;;  %v1061_v38 = vmax.f32 %v16127_v25, 0.0  ;;  %11159 = vmatprep.subr.bf16.mxu0 %v17231_v31  ;;  %11279 = vmatprep.subr.bf16.mxu1 %v17231_v31  ;;  %v9968_v25 = vld [vmem:[%s16869_s22 + $0xc8] sm:$0xff] }
 0x1a8   : > { %v910_v50 = vmax.f32 %v16126_v13, 0.0  ;;  %v1062_v40 = vmax.f32 %v16128_v6, 0.0  ;;  %v9959_v13 = vld [vmem:[%s16869_s22 + $0x90] sm:$0xff]  ;;  %v9973_v53 = vld [vmem:[%s16869_s22 + $0xe8] sm:$0xff]  ;;  %v9967_v6 = vld [vmem:[%s16869_s22 + $0xc0] sm:$0xff] }
 0x1a9   : > { %v17604_v7 = vmax.f32 %v909_v23, %v1061_v38  ;;  %v9975_v38 = vld [vmem:[%s16869_s22 + $0xf8] sm:$0xff]  ;;  %v22665_v23 = vld [vmem:[#allocation5_spill] sm:$0xff] }
 0x1aa   : > { %v17606_v28 = vmax.f32 %v910_v50, %v1062_v40  ;;  %11161 = vmatpush1.bf16.msra.mxu0 %v17247_v44  ;;  %11281 = vmatpush1.bf16.msra.mxu1 %v17247_v44  ;;  %v9972_v50 = vld [vmem:[%s16869_s22 + $0xe0] sm:$0xff]  ;;  %v22666_v40 = vld [vmem:[#allocation6_spill] sm:$0xff] }
 0x1ab   : > { %22663 = vst [vmem:[#allocation16_spill] sm:$0xff] %v17604_v7  ;;  %11163 = vmatprep.subr.bf16.mxu0 %v17251_v46  ;;  %11283 = vmatprep.subr.bf16.mxu1 %v17251_v46 }
 0x1ac   : > { %22664 = vst [vmem:[#allocation17_spill] sm:$0xff] %v17606_v28 }
 0x1ae   : > { %11165 = vmatpush1.bf16.msra.mxu0 %v17267_v5  ;;  %11285 = vmatpush1.bf16.msra.mxu1 %v17267_v5 }
 0x1af   : > { %11167 = vmatprep.subr.bf16.mxu0 %v17271_v12  ;;  %11287 = vmatprep.subr.bf16.mxu1 %v17271_v12 }
 0x1b2   : > { %11169 = vmatpush1.bf16.msra.mxu0 %v17287_v33  ;;  %11289 = vmatpush1.bf16.msra.mxu1 %v17287_v33 }
 0x1b3   : > { %11171 = vmatprep.subr.bf16.mxu0 %v22660_v32  ;;  %11291 = vmatprep.subr.bf16.mxu1 %v22660_v32 }
 0x1b6   : > { %11173 = vmatpush1.bf16.msra.mxu0 %v17307_v60  ;;  %11293 = vmatpush1.bf16.msra.mxu1 %v17307_v60 }
 0x1b7   : > { %11175 = vmatprep.subr.bf16.mxu0 %v17311_v17  ;;  %11295 = vmatprep.subr.bf16.mxu1 %v17311_v17 }
 0x1ba   : > { %11177 = vmatpush1.bf16.msra.mxu0 %v22661_v43  ;;  %11297 = vmatpush1.bf16.msra.mxu1 %v22661_v43 }
 0x1bb   : > { %11179 = vmatprep.subr.bf16.mxu0 %v17331_v58  ;;  %11299 = vmatprep.subr.bf16.mxu1 %v17331_v58 }
 0x1be   : > { %11181 = vmatpush1.bf16.msra.mxu0 %v17341_v20  ;;  %11301 = vmatpush1.bf16.msra.mxu1 %v17341_v20 }
 0x1bf   : > { %11303 = vmatprep.subr.bf16.mxu0 %v16745_v51  ;;  %11423 = vmatprep.subr.bf16.mxu1 %v16745_v51 }
 0x1c1   : > { %1538 = vmatmul.mubr.f32.vlgmr.msra.gmra.mrb[4].mxu0 %v9959_v13  ;;  %1690 = vmatmul.mubr.f32.vlgmr.msra.gmra.mrb[4].mxu1 %v9964_v14  ;;  %v22667_v13 = vld [vmem:[#allocation7_spill] sm:$0xff]  ;;  %v22668_v14 = vld [vmem:[#allocation8_spill] sm:$0xff] }
 0x1c2   : > { %11305 = vmatpush1.bf16.msra.mxu0 %v16756_v55  ;;  %11425 = vmatpush1.bf16.msra.mxu1 %v16756_v55 }
 0x1c3   : > { %11307 = vmatprep.subr.bf16.mxu0 %v16758_v56  ;;  %11427 = vmatprep.subr.bf16.mxu1 %v16758_v56 }
 0x1c4   : > { %1783 = vmatprep.mubr.f32.mxu0 %v9968_v25  ;;  %1935 = vmatprep.mubr.f32.mxu1 %v9973_v53  ;;  %v22669_v25 = vld [vmem:[#allocation9_spill] sm:$0xff]  ;;  %v22670_v53 = vld [vmem:[#allocation10_spill] sm:$0xff] }
 0x1c6   : > { %11309 = vmatpush1.bf16.msra.mxu0 %v16776_v61  ;;  %11429 = vmatpush1.bf16.msra.mxu1 %v16776_v61 }
 0x1c7   : > { %11311 = vmatprep.subr.bf16.mxu0 %v16780_v62  ;;  %11431 = vmatprep.subr.bf16.mxu1 %v16780_v62 }
 0x1ca   : > { %11313 = vmatpush1.bf16.msra.mxu0 %v16796_v3  ;;  %11433 = vmatpush1.bf16.msra.mxu1 %v16796_v3 }
 0x1cb   : > { %11315 = vmatprep.subr.bf16.mxu0 %v16800_v4  ;;  %11435 = vmatprep.subr.bf16.mxu1 %v16800_v4 }
 0x1ce   : > { %11317 = vmatpush1.bf16.msra.mxu0 %v16817_v9  ;;  %11437 = vmatpush1.bf16.msra.mxu1 %v16817_v9 }
 0x1cf   : > { %11319 = vmatprep.subr.bf16.mxu0 %v16821_v10  ;;  %11439 = vmatprep.subr.bf16.mxu1 %v16821_v10 }
 0x1d2   : > { %11321 = vmatpush1.bf16.msra.mxu0 %v16837_v15  ;;  %11441 = vmatpush1.bf16.msra.mxu1 %v16837_v15 }
 0x1d3   : > { %11323 = vmatprep.subr.bf16.mxu0 %v16841_v16  ;;  %11443 = vmatprep.subr.bf16.mxu1 %v16841_v16 }
 0x1d6   : > { %11325 = vmatpush1.bf16.msra.mxu0 %v16857_v21  ;;  %11445 = vmatpush1.bf16.msra.mxu1 %v16857_v21 }
 0x1d7   : > { %11327 = vmatprep.subr.bf16.mxu0 %v16861_v22  ;;  %11447 = vmatprep.subr.bf16.mxu1 %v16861_v22 }
 0x1da   : > { %11329 = vmatpush1.bf16.msra.mxu0 %v16881_v29  ;;  %11449 = vmatpush1.bf16.msra.mxu1 %v16881_v29 }
 0x1db   : > { %11331 = vmatprep.subr.bf16.mxu0 %v16885_v30  ;;  %11451 = vmatprep.subr.bf16.mxu1 %v16885_v30 }
 0x1de   : > { %11333 = vmatpush1.bf16.msra.mxu0 %v16901_v35  ;;  %11453 = vmatpush1.bf16.msra.mxu1 %v16901_v35 }
 0x1df   : > { %11335 = vmatprep.subr.bf16.mxu0 %v16905_v36  ;;  %11455 = vmatprep.subr.bf16.mxu1 %v16905_v36 }
 0x1e2   : > { %11337 = vmatpush1.bf16.msra.mxu0 %v16921_v41  ;;  %11457 = vmatpush1.bf16.msra.mxu1 %v16921_v41 }
 0x1e3   : > { %11339 = vmatprep.subr.bf16.mxu0 %v16925_v42  ;;  %11459 = vmatprep.subr.bf16.mxu1 %v16925_v42 }
 0x1e6   : > { %11341 = vmatpush1.bf16.msra.mxu0 %v16941_v47  ;;  %11461 = vmatpush1.bf16.msra.mxu1 %v16941_v47 }
 0x1e7   : > { %11343 = vmatprep.subr.bf16.mxu0 %v16945_v48  ;;  %11463 = vmatprep.subr.bf16.mxu1 %v16945_v48 }
 0x1ea   : > { %11345 = vmatpush1.bf16.msra.mxu0 %v16961_v54  ;;  %11465 = vmatpush1.bf16.msra.mxu1 %v16961_v54 }
 0x1eb   : > { %11347 = vmatprep.subr.bf16.mxu0 %v16965_v57  ;;  %11467 = vmatprep.subr.bf16.mxu1 %v16965_v57 }
 0x1ee   : > { %11349 = vmatpush1.bf16.msra.mxu0 %v16981_v0  ;;  %11469 = vmatpush1.bf16.msra.mxu1 %v16981_v0 }
 0x1ef   : > { %11351 = vmatprep.subr.bf16.mxu0 %v16985_v1  ;;  %11471 = vmatprep.subr.bf16.mxu1 %v16985_v1 }
 0x1f2   : > { %11353 = vmatpush1.bf16.msra.mxu0 %v17001_v8  ;;  %11473 = vmatpush1.bf16.msra.mxu1 %v17001_v8 }
 0x1f3   : > { %11355 = vmatprep.subr.bf16.mxu0 %v17005_v11  ;;  %11475 = vmatprep.subr.bf16.mxu1 %v17005_v11 }
 0x1f6   : > { %11357 = vmatpush1.bf16.msra.mxu0 %v17021_v18  ;;  %11477 = vmatpush1.bf16.msra.mxu1 %v17021_v18 }
 0x1f7   : > { %11359 = vmatprep.subr.bf16.mxu0 %v17025_v19  ;;  %11479 = vmatprep.subr.bf16.mxu1 %v17025_v19 }
 0x1fa   : > { %11361 = vmatpush1.bf16.msra.mxu0 %v17041_v26  ;;  %11481 = vmatpush1.bf16.msra.mxu1 %v17041_v26 }
 0x1fb   : > { %11363 = vmatprep.subr.bf16.mxu0 %v17045_v27  ;;  %11483 = vmatprep.subr.bf16.mxu1 %v17045_v27 }
 0x1fe   : > { %11365 = vmatpush1.bf16.msra.mxu0 %v17061_v34  ;;  %11485 = vmatpush1.bf16.msra.mxu1 %v17061_v34 }
 0x1ff   : > { %11367 = vmatprep.subr.bf16.mxu0 %v17065_v37  ;;  %11487 = vmatprep.subr.bf16.mxu1 %v17065_v37 }
 0x201   : > { %1784 = vmatmul.mubr.f32.vlgmr.msra.gmra.mrb[6].mxu0 %v9967_v6  ;;  %1936 = vmatmul.mubr.f32.vlgmr.msra.gmra.mrb[6].mxu1 %v9972_v50  ;;  %v22671_v6 = vld [vmem:[#allocation11_spill] sm:$0xff]  ;;  %v22672_v50 = vld [vmem:[#allocation12_spill] sm:$0xff] }
 0x202   : > { %11369 = vmatpush1.bf16.msra.mxu0 %v17082_v45  ;;  %11489 = vmatpush1.bf16.msra.mxu1 %v17082_v45 }
 0x203   : > { %11371 = vmatprep.subr.bf16.mxu0 %v17087_v49  ;;  %11491 = vmatprep.subr.bf16.mxu1 %v17087_v49 }
 0x204   : > { %9971 = vmatprep.mubr.msk.f32.mxu0 %vm763_vm0, %v9970_v59  ;;  %9976 = vmatprep.mubr.msk.f32.mxu1 %vm763_vm0, %v9975_v38  ;;  %v22673_v59 = vld [vmem:[#allocation13_spill] sm:$0xff]  ;;  %v22674_v38 = vld [vmem:[#allocation14_spill] sm:$0xff] }
 0x206   : > { %11373 = vmatpush1.bf16.msra.mxu0 %v17105_v63  ;;  %11493 = vmatpush1.bf16.msra.mxu1 %v17105_v63 }
 0x207   : > { %11375 = vmatprep.subr.bf16.mxu0 %v17109_v2  ;;  %11495 = vmatprep.subr.bf16.mxu1 %v17109_v2 }
 0x20a   : > { %11377 = vmatpush1.bf16.msra.mxu0 %v22665_v23  ;;  %11497 = vmatpush1.bf16.msra.mxu1 %v22665_v23 }
 0x20b   : > { %11379 = vmatprep.subr.bf16.mxu0 %v22666_v40  ;;  %11499 = vmatprep.subr.bf16.mxu1 %v22666_v40 }
 0x20e   : > { %11381 = vmatpush1.bf16.msra.mxu0 %v22667_v13  ;;  %11501 = vmatpush1.bf16.msra.mxu1 %v22667_v13 }
 0x20f   : > { %11383 = vmatprep.subr.bf16.mxu0 %v22668_v14  ;;  %11503 = vmatprep.subr.bf16.mxu1 %v22668_v14 }
 0x212   : > { %11385 = vmatpush1.bf16.msra.mxu0 %v22669_v25  ;;  %11505 = vmatpush1.bf16.msra.mxu1 %v22669_v25 }
 0x213   : > { %11387 = vmatprep.subr.bf16.mxu0 %v22670_v53  ;;  %11507 = vmatprep.subr.bf16.mxu1 %v22670_v53 }
 0x216   : > { %11389 = vmatpush1.bf16.msra.mxu0 %v22671_v6  ;;  %11509 = vmatpush1.bf16.msra.mxu1 %v22671_v6 }
 0x217   : > { %11391 = vmatprep.subr.bf16.mxu0 %v22672_v50  ;;  %11511 = vmatprep.subr.bf16.mxu1 %v22672_v50 }
 0x21a   : > { %11393 = vmatpush1.bf16.msra.mxu0 %v22673_v59  ;;  %11513 = vmatpush1.bf16.msra.mxu1 %v22673_v59 }
 0x21b   : > { %11395 = vmatprep.subr.bf16.mxu0 %v22674_v38  ;;  %11515 = vmatprep.subr.bf16.mxu1 %v22674_v38 }
 0x21c   : > { %v1222_v28 = vpop.f32.mrb[2].mxu0  ;;  %v1374_v7 = vpop.f32.mrb[2].mxu1 }
 0x21d   : > { %v16129_v53 = vadd.f32 %v1222_v28, %v17586_v39  ;;  %v16131_v25 = vadd.f32 %v1374_v7, %v17586_v39  ;;  %v1224_v14 = vpop.f32.mrb[3].mxu0  ;;  %v1376_v6 = vpop.f32.mrb[3].mxu1 }
 0x21e   : > { %v16130_v13 = vadd.f32 %v1224_v14, %v17592_v52  ;;  %v16132_v50 = vadd.f32 %v1376_v6, %v17592_v52  ;;  %11397 = vmatpush1.bf16.msra.mxu0 %v17227_v24  ;;  %11517 = vmatpush1.bf16.msra.mxu1 %v17227_v24  ;;  %v9978_v14 = vld [vmem:[%s16869_s22 + $0x108] sm:$0xff]  ;;  %v9982_v6 = vld [vmem:[%s16869_s22 + $0x120] sm:$0xff] }
 0x21f   : > { %v1227_v59 = vmax.f32 %v16129_v53, 0.0  ;;  %v1379_v40 = vmax.f32 %v16131_v25, 0.0  ;;  %11399 = vmatprep.subr.bf16.mxu0 %v17231_v31  ;;  %11519 = vmatprep.subr.bf16.mxu1 %v17231_v31  ;;  %v9983_v25 = vld [vmem:[%s16869_s22 + $0x128] sm:$0xff]  ;;  %v9977_v53 = vld [vmem:[%s16869_s22 + $0x100] sm:$0xff] }
 0x220   : > { %v1228_v38 = vmax.f32 %v16130_v13, 0.0  ;;  %v1380_v28 = vmax.f32 %v16132_v50, 0.0  ;;  %v9974_v13 = vld [vmem:[%s16869_s22 + $0xf0] sm:$0xff]  ;;  %v9980_v50 = vld [vmem:[%s16869_s22 + $0x118] sm:$0xff] }
 0x221   : > { %v17742_v23 = vmax.f32 %v1227_v59, %v1379_v40  ;;  %v9969_v40 = vld [vmem:[%s16869_s22 + $0xd0] sm:$0xff]  ;;  %v9985_v59 = vld [vmem:[%s16869_s22 + $0x138] sm:$0xff] }
 0x222   : > { %v17744_v7 = vmax.f32 %v1228_v38, %v1380_v28  ;;  %11401 = vmatpush1.bf16.msra.mxu0 %v17247_v44  ;;  %11521 = vmatpush1.bf16.msra.mxu1 %v17247_v44  ;;  %v22677_v38 = vld [vmem:[#allocation5_spill] sm:$0xff]  ;;  %v22678_v28 = vld [vmem:[#allocation6_spill] sm:$0xff] }
 0x223   : > { %22675 = vst [vmem:[#allocation18_spill] sm:$0xff] %v17742_v23  ;;  %11403 = vmatprep.subr.bf16.mxu0 %v17251_v46  ;;  %11523 = vmatprep.subr.bf16.mxu1 %v17251_v46 }
 0x224   : > { %22676 = vst [vmem:[#allocation19_spill] sm:$0xff] %v17744_v7 }
 0x226   : > { %11405 = vmatpush1.bf16.msra.mxu0 %v17267_v5  ;;  %11525 = vmatpush1.bf16.msra.mxu1 %v17267_v5 }
 0x227   : > { %11407 = vmatprep.subr.bf16.mxu0 %v17271_v12  ;;  %11527 = vmatprep.subr.bf16.mxu1 %v17271_v12 }
 0x22a   : > { %11409 = vmatpush1.bf16.msra.mxu0 %v17287_v33  ;;  %11529 = vmatpush1.bf16.msra.mxu1 %v17287_v33 }
 0x22b   : > { %11411 = vmatprep.subr.bf16.mxu0 %v22660_v32  ;;  %11531 = vmatprep.subr.bf16.mxu1 %v22660_v32 }
 0x22e   : > { %11413 = vmatpush1.bf16.msra.mxu0 %v17307_v60  ;;  %11533 = vmatpush1.bf16.msra.mxu1 %v17307_v60 }
 0x22f   : > { %11415 = vmatprep.subr.bf16.mxu0 %v17311_v17  ;;  %11535 = vmatprep.subr.bf16.mxu1 %v17311_v17 }
 0x232   : > { %11417 = vmatpush1.bf16.msra.mxu0 %v22661_v43  ;;  %11537 = vmatpush1.bf16.msra.mxu1 %v22661_v43 }
 0x233   : > { %11419 = vmatprep.subr.bf16.mxu0 %v17331_v58  ;;  %11539 = vmatprep.subr.bf16.mxu1 %v17331_v58 }
 0x236   : > { %11421 = vmatpush1.bf16.msra.mxu0 %v17341_v20  ;;  %11541 = vmatpush1.bf16.msra.mxu1 %v17341_v20 }
 0x237   : > { %11543 = vmatprep.subr.bf16.mxu0 %v16745_v51  ;;  %11663 = vmatprep.subr.bf16.mxu1 %v16745_v51 }
 0x239   : > { %1855 = vmatmul.mubr.f32.vlgmr.msra.gmra.mrb[6].mxu0 %v9969_v40  ;;  %2007 = vmatmul.mubr.f32.vlgmr.msra.gmra.mrb[6].mxu1 %v9974_v13  ;;  %v22679_v40 = vld [vmem:[#allocation7_spill] sm:$0xff]  ;;  %v22680_v13 = vld [vmem:[#allocation8_spill] sm:$0xff] }
 0x23a   : > { %11545 = vmatpush1.bf16.msra.mxu0 %v16756_v55  ;;  %11665 = vmatpush1.bf16.msra.mxu1 %v16756_v55 }
 0x23b   : > { %11547 = vmatprep.subr.bf16.mxu0 %v16758_v56  ;;  %11667 = vmatprep.subr.bf16.mxu1 %v16758_v56 }
 0x23c   : > { %2100 = vmatprep.mubr.f32.mxu0 %v9978_v14  ;;  %2252 = vmatprep.mubr.f32.mxu1 %v9983_v25  ;;  %v22681_v14 = vld [vmem:[#allocation9_spill] sm:$0xff]  ;;  %v22682_v25 = vld [vmem:[#allocation10_spill] sm:$0xff] }
 0x23e   : > { %11549 = vmatpush1.bf16.msra.mxu0 %v16776_v61  ;;  %11669 = vmatpush1.bf16.msra.mxu1 %v16776_v61 }
 0x23f   : > { %11551 = vmatprep.subr.bf16.mxu0 %v16780_v62  ;;  %11671 = vmatprep.subr.bf16.mxu1 %v16780_v62 }
 0x242   : > { %11553 = vmatpush1.bf16.msra.mxu0 %v16796_v3  ;;  %11673 = vmatpush1.bf16.msra.mxu1 %v16796_v3 }
 0x243   : > { %11555 = vmatprep.subr.bf16.mxu0 %v16800_v4  ;;  %11675 = vmatprep.subr.bf16.mxu1 %v16800_v4 }
 0x246   : > { %11557 = vmatpush1.bf16.msra.mxu0 %v16817_v9  ;;  %11677 = vmatpush1.bf16.msra.mxu1 %v16817_v9 }
 0x247   : > { %11559 = vmatprep.subr.bf16.mxu0 %v16821_v10  ;;  %11679 = vmatprep.subr.bf16.mxu1 %v16821_v10 }
 0x24a   : > { %11561 = vmatpush1.bf16.msra.mxu0 %v16837_v15  ;;  %11681 = vmatpush1.bf16.msra.mxu1 %v16837_v15 }
 0x24b   : > { %11563 = vmatprep.subr.bf16.mxu0 %v16841_v16  ;;  %11683 = vmatprep.subr.bf16.mxu1 %v16841_v16 }
 0x24e   : > { %11565 = vmatpush1.bf16.msra.mxu0 %v16857_v21  ;;  %11685 = vmatpush1.bf16.msra.mxu1 %v16857_v21 }
 0x24f   : > { %11567 = vmatprep.subr.bf16.mxu0 %v16861_v22  ;;  %11687 = vmatprep.subr.bf16.mxu1 %v16861_v22 }
 0x252   : > { %11569 = vmatpush1.bf16.msra.mxu0 %v16881_v29  ;;  %11689 = vmatpush1.bf16.msra.mxu1 %v16881_v29 }
 0x253   : > { %11571 = vmatprep.subr.bf16.mxu0 %v16885_v30  ;;  %11691 = vmatprep.subr.bf16.mxu1 %v16885_v30 }
 0x256   : > { %11573 = vmatpush1.bf16.msra.mxu0 %v16901_v35  ;;  %11693 = vmatpush1.bf16.msra.mxu1 %v16901_v35 }
 0x257   : > { %11575 = vmatprep.subr.bf16.mxu0 %v16905_v36  ;;  %11695 = vmatprep.subr.bf16.mxu1 %v16905_v36 }
 0x25a   : > { %11577 = vmatpush1.bf16.msra.mxu0 %v16921_v41  ;;  %11697 = vmatpush1.bf16.msra.mxu1 %v16921_v41 }
 0x25b   : > { %11579 = vmatprep.subr.bf16.mxu0 %v16925_v42  ;;  %11699 = vmatprep.subr.bf16.mxu1 %v16925_v42 }
 0x25e   : > { %11581 = vmatpush1.bf16.msra.mxu0 %v16941_v47  ;;  %11701 = vmatpush1.bf16.msra.mxu1 %v16941_v47 }
 0x25f   : > { %11583 = vmatprep.subr.bf16.mxu0 %v16945_v48  ;;  %11703 = vmatprep.subr.bf16.mxu1 %v16945_v48 }
 0x262   : > { %11585 = vmatpush1.bf16.msra.mxu0 %v16961_v54  ;;  %11705 = vmatpush1.bf16.msra.mxu1 %v16961_v54 }
 0x263   : > { %11587 = vmatprep.subr.bf16.mxu0 %v16965_v57  ;;  %11707 = vmatprep.subr.bf16.mxu1 %v16965_v57 }
 0x266   : > { %11589 = vmatpush1.bf16.msra.mxu0 %v16981_v0  ;;  %11709 = vmatpush1.bf16.msra.mxu1 %v16981_v0 }
 0x267   : > { %11591 = vmatprep.subr.bf16.mxu0 %v16985_v1  ;;  %11711 = vmatprep.subr.bf16.mxu1 %v16985_v1 }
 0x26a   : > { %11593 = vmatpush1.bf16.msra.mxu0 %v17001_v8  ;;  %11713 = vmatpush1.bf16.msra.mxu1 %v17001_v8 }
 0x26b   : > { %11595 = vmatprep.subr.bf16.mxu0 %v17005_v11  ;;  %11715 = vmatprep.subr.bf16.mxu1 %v17005_v11 }
 0x26e   : > { %11597 = vmatpush1.bf16.msra.mxu0 %v17021_v18  ;;  %11717 = vmatpush1.bf16.msra.mxu1 %v17021_v18 }
 0x26f   : > { %11599 = vmatprep.subr.bf16.mxu0 %v17025_v19  ;;  %11719 = vmatprep.subr.bf16.mxu1 %v17025_v19 }
 0x272   : > { %11601 = vmatpush1.bf16.msra.mxu0 %v17041_v26  ;;  %11721 = vmatpush1.bf16.msra.mxu1 %v17041_v26 }
 0x273   : > { %11603 = vmatprep.subr.bf16.mxu0 %v17045_v27  ;;  %11723 = vmatprep.subr.bf16.mxu1 %v17045_v27 }
 0x276   : > { %11605 = vmatpush1.bf16.msra.mxu0 %v17061_v34  ;;  %11725 = vmatpush1.bf16.msra.mxu1 %v17061_v34 }
 0x277   : > { %11607 = vmatprep.subr.bf16.mxu0 %v17065_v37  ;;  %11727 = vmatprep.subr.bf16.mxu1 %v17065_v37 }
 0x279   : > { %2101 = vmatmul.mubr.f32.vlgmr.msra.gmra.mrb[8].mxu0 %v9977_v53  ;;  %2253 = vmatmul.mubr.f32.vlgmr.msra.gmra.mrb[8].mxu1 %v9982_v6  ;;  %v22683_v53 = vld [vmem:[#allocation11_spill] sm:$0xff]  ;;  %v22684_v6 = vld [vmem:[#allocation12_spill] sm:$0xff] }
 0x27a   : > { %11609 = vmatpush1.bf16.msra.mxu0 %v17082_v45  ;;  %11729 = vmatpush1.bf16.msra.mxu1 %v17082_v45 }
 0x27b   : > { %11611 = vmatprep.subr.bf16.mxu0 %v17087_v49  ;;  %11731 = vmatprep.subr.bf16.mxu1 %v17087_v49 }
 0x27c   : > { %9981 = vmatprep.mubr.msk.f32.mxu0 %vm763_vm0, %v9980_v50  ;;  %9986 = vmatprep.mubr.msk.f32.mxu1 %vm763_vm0, %v9985_v59  ;;  %v22685_v50 = vld [vmem:[#allocation13_spill] sm:$0xff]  ;;  %v22686_v59 = vld [vmem:[#allocation14_spill] sm:$0xff] }
 0x27e   : > { %11613 = vmatpush1.bf16.msra.mxu0 %v17105_v63  ;;  %11733 = vmatpush1.bf16.msra.mxu1 %v17105_v63 }
 0x27f   : > { %11615 = vmatprep.subr.bf16.mxu0 %v17109_v2  ;;  %11735 = vmatprep.subr.bf16.mxu1 %v17109_v2 }
 0x282   : > { %11617 = vmatpush1.bf16.msra.mxu0 %v22677_v38  ;;  %11737 = vmatpush1.bf16.msra.mxu1 %v22677_v38 }
 0x283   : > { %11619 = vmatprep.subr.bf16.mxu0 %v22678_v28  ;;  %11739 = vmatprep.subr.bf16.mxu1 %v22678_v28 }
 0x286   : > { %11621 = vmatpush1.bf16.msra.mxu0 %v22679_v40  ;;  %11741 = vmatpush1.bf16.msra.mxu1 %v22679_v40 }
 0x287   : > { %11623 = vmatprep.subr.bf16.mxu0 %v22680_v13  ;;  %11743 = vmatprep.subr.bf16.mxu1 %v22680_v13 }
 0x28a   : > { %11625 = vmatpush1.bf16.msra.mxu0 %v22681_v14  ;;  %11745 = vmatpush1.bf16.msra.mxu1 %v22681_v14 }
 0x28b   : > { %11627 = vmatprep.subr.bf16.mxu0 %v22682_v25  ;;  %11747 = vmatprep.subr.bf16.mxu1 %v22682_v25 }
 0x28e   : > { %11629 = vmatpush1.bf16.msra.mxu0 %v22683_v53  ;;  %11749 = vmatpush1.bf16.msra.mxu1 %v22683_v53 }
 0x28f   : > { %11631 = vmatprep.subr.bf16.mxu0 %v22684_v6  ;;  %11751 = vmatprep.subr.bf16.mxu1 %v22684_v6 }
 0x292   : > { %11633 = vmatpush1.bf16.msra.mxu0 %v22685_v50  ;;  %11753 = vmatpush1.bf16.msra.mxu1 %v22685_v50 }
 0x293   : > { %11635 = vmatprep.subr.bf16.mxu0 %v22686_v59  ;;  %11755 = vmatprep.subr.bf16.mxu1 %v22686_v59 }
 0x294   : > { %v1539_v14 = vpop.f32.mrb[4].mxu0  ;;  %v1691_v13 = vpop.f32.mrb[4].mxu1 }
 0x295   : > { %v16133_v25 = vadd.f32 %v1539_v14, %v17586_v39  ;;  %v16135_v40 = vadd.f32 %v1691_v13, %v17586_v39  ;;  %v1541_v28 = vpop.f32.mrb[5].mxu0  ;;  %v1693_v53 = vpop.f32.mrb[5].mxu1  ;;  %v9979_v13 = vld [vmem:[%s16869_s22 + $0x110] sm:$0xff] }
 0x296   : > { %v16134_v38 = vadd.f32 %v1541_v28, %v17592_v52  ;;  %v16136_v6 = vadd.f32 %v1693_v53, %v17592_v52  ;;  %11637 = vmatpush1.bf16.msra.mxu0 %v17227_v24  ;;  %11757 = vmatpush1.bf16.msra.mxu1 %v17227_v24  ;;  %v9988_v53 = vld [vmem:[%s16869_s22 + $0x148] sm:$0xff] }
 0x297   : > { %v1544_v50 = vmax.f32 %v16133_v25, 0.0  ;;  %v1696_v2 = vmax.f32 %v16135_v40, 0.0  ;;  %11639 = vmatprep.subr.bf16.mxu0 %v17231_v31  ;;  %11759 = vmatprep.subr.bf16.mxu1 %v17231_v31  ;;  %v9984_v25 = vld [vmem:[%s16869_s22 + $0x130] sm:$0xff] }
 0x298   : > { %v1545_v59 = vmax.f32 %v16134_v38, 0.0  ;;  %v1697_v14 = vmax.f32 %v16136_v6, 0.0  ;;  %v22690_v38 = vld [vmem:[#allocation17_spill] sm:$0xff]  ;;  %v9993_v6 = vld [vmem:[%s16869_s22 + $0x168] sm:$0xff] }
 0x299   : > { %v17880_v63 = vmax.f32 %v1544_v50, %v1696_v2  ;;  %v22689_v2 = vld [vmem:[#allocation16_spill] sm:$0xff]  ;;  %v9987_v50 = vld [vmem:[%s16869_s22 + $0x140] sm:$0xff] }
 0x29a   : > { %11641 = vmatpush1.bf16.msra.mxu0 %v17247_v44  ;;  %11761 = vmatpush1.bf16.msra.mxu1 %v17247_v44  ;;  %v17884_v28 = vmax.f32 %v1545_v59, %v1697_v14  ;;  %v9992_v59 = vld [vmem:[%s16869_s22 + $0x160] sm:$0xff]  ;;  %v9990_v14 = vld [vmem:[%s16869_s22 + $0x158] sm:$0xff] }
 0x29b   : > { %22687 = vst [vmem:[#allocation20_spill] sm:$0xff] %v17880_v63  ;;  %11643 = vmatprep.subr.bf16.mxu0 %v17251_v46  ;;  %11763 = vmatprep.subr.bf16.mxu1 %v17251_v46  ;;  %v16348_v40 = vpack.i.bf16 %v17880_v63, %v17742_v23  ;;  %v22701_v63 = vld [vmem:[#allocation13_spill] sm:$0xff]  ;;  %v22702_v23 = vld [vmem:[#allocation14_spill] sm:$0xff] }
 0x29c   : > { %22688 = vst [vmem:[#allocation21_spill] sm:$0xff] %v17884_v28  ;;  %1704 = vrot.lane.b32.xlu1 %v17884_v28, %s16407_s23 }
 0x29d   : > { %16349 = vrot.lane.b32.xlu0 %v16348_v40, %s16407_s23  ;;  %v9995_v40 = vld [vmem:[%s16869_s22 + $0x178] sm:$0xff] }
 0x29e   : > { %11645 = vmatpush1.bf16.msra.mxu0 %v17267_v5  ;;  %11765 = vmatpush1.bf16.msra.mxu1 %v17267_v5 }
 0x29f   : > { %11647 = vmatprep.subr.bf16.mxu0 %v17271_v12  ;;  %11767 = vmatprep.subr.bf16.mxu1 %v17271_v12 }
 0x2a0   : > { %1067 = vrot.lane.b32.xlu1 %v22689_v2, %s16407_s23  ;;  %v22699_v2 = vld [vmem:[#allocation11_spill] sm:$0xff] }
 0x2a1   : > { %1387 = vrot.lane.b32.xlu0 %v17744_v7, %s16407_s23 }
 0x2a2   : > { %11649 = vmatpush1.bf16.msra.mxu0 %v17287_v33  ;;  %11769 = vmatpush1.bf16.msra.mxu1 %v17287_v33 }
 0x2a3   : > { %11651 = vmatprep.subr.bf16.mxu0 %v22660_v32  ;;  %11771 = vmatprep.subr.bf16.mxu1 %v22660_v32 }
 0x2a5   : > { %1069 = vrot.lane.b32.xlu0 %v22690_v38, %s16407_s23  ;;  %v22700_v38 = vld [vmem:[#allocation12_spill] sm:$0xff] }
 0x2a6   : > { %11653 = vmatpush1.bf16.msra.mxu0 %v17307_v60  ;;  %11773 = vmatpush1.bf16.msra.mxu1 %v17307_v60 }
 0x2a7   : > { %11655 = vmatprep.subr.bf16.mxu0 %v17311_v17  ;;  %11775 = vmatprep.subr.bf16.mxu1 %v17311_v17 }
 0x2aa   : > { %11657 = vmatpush1.bf16.msra.mxu0 %v22661_v43  ;;  %11777 = vmatpush1.bf16.msra.mxu1 %v22661_v43 }
 0x2ab   : > { %11659 = vmatprep.subr.bf16.mxu0 %v17331_v58  ;;  %11779 = vmatprep.subr.bf16.mxu1 %v17331_v58 }
 0x2ae   : > { %11661 = vmatpush1.bf16.msra.mxu0 %v17341_v20  ;;  %11781 = vmatpush1.bf16.msra.mxu1 %v17341_v20 }
 0x2af   : > { %11783 = vmatprep.subr.bf16.mxu0 %v16745_v51  ;;  %11903 = vmatprep.subr.bf16.mxu1 %v16745_v51 }
 0x2b1   : > { %2172 = vmatmul.mubr.f32.vlgmr.msra.gmra.mrb[8].mxu0 %v9979_v13  ;;  %2324 = vmatmul.mubr.f32.vlgmr.msra.gmra.mrb[8].mxu1 %v9984_v25  ;;  %v22691_v13 = vld [vmem:[#allocation3_spill] sm:$0xff]  ;;  %v22692_v25 = vld [vmem:[#allocation4_spill] sm:$0xff] }
 0x2b2   : > { %11785 = vmatpush1.bf16.msra.mxu0 %v16756_v55  ;;  %11905 = vmatpush1.bf16.msra.mxu1 %v16756_v55 }
 0x2b3   : > { %11787 = vmatprep.subr.bf16.mxu0 %v16758_v56  ;;  %11907 = vmatprep.subr.bf16.mxu1 %v16758_v56 }
 0x2b4   : > { %2417 = vmatprep.mubr.f32.mxu0 %v9988_v53  ;;  %2569 = vmatprep.mubr.f32.mxu1 %v9993_v6  ;;  %v22693_v53 = vld [vmem:[#allocation5_spill] sm:$0xff]  ;;  %v22694_v6 = vld [vmem:[#allocation6_spill] sm:$0xff] }
 0x2b6   : > { %11789 = vmatpush1.bf16.msra.mxu0 %v16776_v61  ;;  %11909 = vmatpush1.bf16.msra.mxu1 %v16776_v61 }
 0x2b7   : > { %11791 = vmatprep.subr.bf16.mxu0 %v16780_v62  ;;  %11911 = vmatprep.subr.bf16.mxu1 %v16780_v62 }
 0x2ba   : > { %11793 = vmatpush1.bf16.msra.mxu0 %v16796_v3  ;;  %11913 = vmatpush1.bf16.msra.mxu1 %v16796_v3 }
 0x2bb   : > { %11795 = vmatprep.subr.bf16.mxu0 %v16800_v4  ;;  %11915 = vmatprep.subr.bf16.mxu1 %v16800_v4 }
 0x2be   : > { %11797 = vmatpush1.bf16.msra.mxu0 %v16817_v9  ;;  %11917 = vmatpush1.bf16.msra.mxu1 %v16817_v9 }
 0x2bf   : > { %11799 = vmatprep.subr.bf16.mxu0 %v16821_v10  ;;  %11919 = vmatprep.subr.bf16.mxu1 %v16821_v10 }
 0x2c2   : > { %11801 = vmatpush1.bf16.msra.mxu0 %v16837_v15  ;;  %11921 = vmatpush1.bf16.msra.mxu1 %v16837_v15 }
 0x2c3   : > { %11803 = vmatprep.subr.bf16.mxu0 %v16841_v16  ;;  %11923 = vmatprep.subr.bf16.mxu1 %v16841_v16 }
 0x2c6   : > { %11805 = vmatpush1.bf16.msra.mxu0 %v16857_v21  ;;  %11925 = vmatpush1.bf16.msra.mxu1 %v16857_v21 }
 0x2c7   : > { %11807 = vmatprep.subr.bf16.mxu0 %v16861_v22  ;;  %11927 = vmatprep.subr.bf16.mxu1 %v16861_v22 }
 0x2ca   : > { %11809 = vmatpush1.bf16.msra.mxu0 %v16881_v29  ;;  %11929 = vmatpush1.bf16.msra.mxu1 %v16881_v29 }
 0x2cb   : > { %11811 = vmatprep.subr.bf16.mxu0 %v16885_v30  ;;  %11931 = vmatprep.subr.bf16.mxu1 %v16885_v30 }
 0x2ce   : > { %11813 = vmatpush1.bf16.msra.mxu0 %v16901_v35  ;;  %11933 = vmatpush1.bf16.msra.mxu1 %v16901_v35 }
 0x2cf   : > { %11815 = vmatprep.subr.bf16.mxu0 %v16905_v36  ;;  %11935 = vmatprep.subr.bf16.mxu1 %v16905_v36 }
 0x2d2   : > { %11817 = vmatpush1.bf16.msra.mxu0 %v16921_v41  ;;  %11937 = vmatpush1.bf16.msra.mxu1 %v16921_v41 }
 0x2d3   : > { %11819 = vmatprep.subr.bf16.mxu0 %v16925_v42  ;;  %11939 = vmatprep.subr.bf16.mxu1 %v16925_v42 }
 0x2d6   : > { %11821 = vmatpush1.bf16.msra.mxu0 %v16941_v47  ;;  %11941 = vmatpush1.bf16.msra.mxu1 %v16941_v47 }
 0x2d7   : > { %11823 = vmatprep.subr.bf16.mxu0 %v16945_v48  ;;  %11943 = vmatprep.subr.bf16.mxu1 %v16945_v48 }
 0x2da   : > { %11825 = vmatpush1.bf16.msra.mxu0 %v16961_v54  ;;  %11945 = vmatpush1.bf16.msra.mxu1 %v16961_v54 }
 0x2db   : > { %11827 = vmatprep.subr.bf16.mxu0 %v16965_v57  ;;  %11947 = vmatprep.subr.bf16.mxu1 %v16965_v57 }
 0x2de   : > { %11829 = vmatpush1.bf16.msra.mxu0 %v16981_v0  ;;  %11949 = vmatpush1.bf16.msra.mxu1 %v16981_v0 }
 0x2df   : > { %11831 = vmatprep.subr.bf16.mxu0 %v16985_v1  ;;  %11951 = vmatprep.subr.bf16.mxu1 %v16985_v1 }
 0x2e2   : > { %11833 = vmatpush1.bf16.msra.mxu0 %v17001_v8  ;;  %11953 = vmatpush1.bf16.msra.mxu1 %v17001_v8 }
 0x2e3   : > { %11835 = vmatprep.subr.bf16.mxu0 %v17005_v11  ;;  %11955 = vmatprep.subr.bf16.mxu1 %v17005_v11 }
 0x2e6   : > { %11837 = vmatpush1.bf16.msra.mxu0 %v17021_v18  ;;  %11957 = vmatpush1.bf16.msra.mxu1 %v17021_v18 }
 0x2e7   : > { %11839 = vmatprep.subr.bf16.mxu0 %v17025_v19  ;;  %11959 = vmatprep.subr.bf16.mxu1 %v17025_v19 }
 0x2ea   : > { %11841 = vmatpush1.bf16.msra.mxu0 %v17041_v26  ;;  %11961 = vmatpush1.bf16.msra.mxu1 %v17041_v26 }
 0x2eb   : > { %11843 = vmatprep.subr.bf16.mxu0 %v17045_v27  ;;  %11963 = vmatprep.subr.bf16.mxu1 %v17045_v27 }
 0x2ee   : > { %11845 = vmatpush1.bf16.msra.mxu0 %v17061_v34  ;;  %11965 = vmatpush1.bf16.msra.mxu1 %v17061_v34 }
 0x2ef   : > { %11847 = vmatprep.subr.bf16.mxu0 %v17065_v37  ;;  %11967 = vmatprep.subr.bf16.mxu1 %v17065_v37 }
 0x2f1   : > { %2418 = vmatmul.mubr.f32.vlgmr.msra.gmra.mrb[10].mxu0 %v9987_v50  ;;  %2570 = vmatmul.mubr.f32.vlgmr.msra.gmra.mrb[10].mxu1 %v9992_v59  ;;  %v22695_v50 = vld [vmem:[#allocation7_spill] sm:$0xff]  ;;  %v22696_v59 = vld [vmem:[#allocation8_spill] sm:$0xff] }
 0x2f2   : > { %11849 = vmatpush1.bf16.msra.mxu0 %v17082_v45  ;;  %11969 = vmatpush1.bf16.msra.mxu1 %v17082_v45 }
 0x2f3   : > { %11851 = vmatprep.subr.bf16.mxu0 %v17087_v49  ;;  %11971 = vmatprep.subr.bf16.mxu1 %v17087_v49 }
 0x2f4   : > { %9991 = vmatprep.mubr.msk.f32.mxu0 %vm763_vm0, %v9990_v14  ;;  %9996 = vmatprep.mubr.msk.f32.mxu1 %vm763_vm0, %v9995_v40  ;;  %v22697_v14 = vld [vmem:[#allocation9_spill] sm:$0xff]  ;;  %v22698_v40 = vld [vmem:[#allocation10_spill] sm:$0xff] }
 0x2f6   : > { %11853 = vmatpush1.bf16.msra.mxu0 %v22691_v13  ;;  %11973 = vmatpush1.bf16.msra.mxu1 %v22691_v13 }
 0x2f7   : > { %11855 = vmatprep.subr.bf16.mxu0 %v22692_v25  ;;  %11975 = vmatprep.subr.bf16.mxu1 %v22692_v25 }
 0x2fa   : > { %11857 = vmatpush1.bf16.msra.mxu0 %v22693_v53  ;;  %11977 = vmatpush1.bf16.msra.mxu1 %v22693_v53 }
 0x2fb   : > { %11859 = vmatprep.subr.bf16.mxu0 %v22694_v6  ;;  %11979 = vmatprep.subr.bf16.mxu1 %v22694_v6 }
 0x2fe   : > { %11861 = vmatpush1.bf16.msra.mxu0 %v22695_v50  ;;  %11981 = vmatpush1.bf16.msra.mxu1 %v22695_v50 }
 0x2ff   : > { %11863 = vmatprep.subr.bf16.mxu0 %v22696_v59  ;;  %11983 = vmatprep.subr.bf16.mxu1 %v22696_v59 }
 0x302   : > { %11865 = vmatpush1.bf16.msra.mxu0 %v22697_v14  ;;  %11985 = vmatpush1.bf16.msra.mxu1 %v22697_v14 }
 0x303   : > { %11867 = vmatprep.subr.bf16.mxu0 %v22698_v40  ;;  %11987 = vmatprep.subr.bf16.mxu1 %v22698_v40 }
 0x306   : > { %11869 = vmatpush1.bf16.msra.mxu0 %v22699_v2  ;;  %11989 = vmatpush1.bf16.msra.mxu1 %v22699_v2 }
 0x307   : > { %11871 = vmatprep.subr.bf16.mxu0 %v22700_v38  ;;  %11991 = vmatprep.subr.bf16.mxu1 %v22700_v38 }
 0x30a   : > { %11873 = vmatpush1.bf16.msra.mxu0 %v22701_v63  ;;  %11993 = vmatpush1.bf16.msra.mxu1 %v22701_v63 }
 0x30b   : > { %11875 = vmatprep.subr.bf16.mxu0 %v22702_v23  ;;  %11995 = vmatprep.subr.bf16.mxu1 %v22702_v23 }
 0x30c   : > { %v1856_v28 = vpop.f32.mrb[6].mxu0  ;;  %v2008_v7 = vpop.f32.mrb[6].mxu1 }
 0x30d   : > { %v16137_v40 = vadd.f32 %v1856_v28, %v17586_v39  ;;  %v16139_v14 = vadd.f32 %v2008_v7, %v17586_v39  ;;  %v1858_v59 = vpop.f32.mrb[7].mxu0  ;;  %v2010_v2 = vpop.f32.mrb[7].mxu1 }
 0x30e   : > { %v16138_v50 = vadd.f32 %v1858_v59, %v17592_v52  ;;  %v16140_v38 = vadd.f32 %v2010_v2, %v17592_v52  ;;  %11877 = vmatpush1.bf16.msra.mxu0 %v17227_v24  ;;  %11997 = vmatpush1.bf16.msra.mxu1 %v17227_v24  ;;  %v9998_v2 = vld [vmem:[%s16869_s22 + $0x188] sm:$0xff]  ;;  %v10000_v59 = vld [vmem:[%s16869_s22 + $0x198] sm:$0xff] }
 0x30f   : > { %v1861_v63 = vmax.f32 %v16137_v40, 0.0  ;;  %v2013_v6 = vmax.f32 %v16139_v14, 0.0  ;;  %11879 = vmatprep.subr.bf16.mxu0 %v17231_v31  ;;  %11999 = vmatprep.subr.bf16.mxu1 %v17231_v31  ;;  %v10005_v14 = vld [vmem:[%s16869_s22 + $0x1b8] sm:$0xff]  ;;  %v22705_v40 = vld [vmem:[#allocation5_spill] sm:$0xff] }
 0x310   : > { %v1862_v23 = vmax.f32 %v16138_v50, 0.0  ;;  %v2014_v28 = vmax.f32 %v16140_v38, 0.0  ;;  %v10003_v38 = vld [vmem:[%s16869_s22 + $0x1a8] sm:$0xff]  ;;  %v10002_v50 = vld [vmem:[%s16869_s22 + $0x1a0] sm:$0xff] }
 0x311   : > { %v18029_v53 = vmax.f32 %v1861_v63, %v2013_v6  ;;  %v9989_v63 = vld [vmem:[%s16869_s22 + $0x150] sm:$0xff]  ;;  %v9997_v6 = vld [vmem:[%s16869_s22 + $0x180] sm:$0xff] }
 0x312   : > { %v18031_v7 = vmax.f32 %v1862_v23, %v2014_v28  ;;  %11881 = vmatpush1.bf16.msra.mxu0 %v17247_v44  ;;  %12001 = vmatpush1.bf16.msra.mxu1 %v17247_v44  ;;  %v9994_v23 = vld [vmem:[%s16869_s22 + $0x170] sm:$0xff]  ;;  %v22706_v28 = vld [vmem:[#allocation6_spill] sm:$0xff] }
 0x313   : > { %22703 = vst [vmem:[#allocation3_spill] sm:$0xff] %v18029_v53  ;;  %2019 = vrot.lane.b32.xlu1 %v18029_v53, %s16407_s23  ;;  %11883 = vmatprep.subr.bf16.mxu0 %v17251_v46 }
 0x314   : > { %22704 = vst [vmem:[#allocation4_spill] sm:$0xff] %v18031_v7  ;;  %2021 = vrot.lane.b32.xlu0 %v18031_v7, %s16407_s23  ;;  %12003 = vmatprep.subr.bf16.mxu1 %v17251_v46 }
 0x316   : > { %11885 = vmatpush1.bf16.msra.mxu0 %v17267_v5  ;;  %12005 = vmatpush1.bf16.msra.mxu1 %v17267_v5 }
 0x317   : > { %11887 = vmatprep.subr.bf16.mxu0 %v17271_v12  ;;  %12007 = vmatprep.subr.bf16.mxu1 %v17271_v12 }
 0x31a   : > { %11889 = vmatpush1.bf16.msra.mxu0 %v17287_v33  ;;  %12009 = vmatpush1.bf16.msra.mxu1 %v17287_v33 }
 0x31b   : > { %11891 = vmatprep.subr.bf16.mxu0 %v22660_v32  ;;  %12011 = vmatprep.subr.bf16.mxu1 %v22660_v32 }
 0x31e   : > { %11893 = vmatpush1.bf16.msra.mxu0 %v17307_v60  ;;  %12013 = vmatpush1.bf16.msra.mxu1 %v17307_v60 }
 0x31f   : > { %11895 = vmatprep.subr.bf16.mxu0 %v17311_v17  ;;  %12015 = vmatprep.subr.bf16.mxu1 %v17311_v17 }
 0x322   : > { %11897 = vmatpush1.bf16.msra.mxu0 %v22661_v43  ;;  %12017 = vmatpush1.bf16.msra.mxu1 %v22661_v43 }
 0x323   : > { %11899 = vmatprep.subr.bf16.mxu0 %v17331_v58  ;;  %12019 = vmatprep.subr.bf16.mxu1 %v17331_v58 }
 0x326   : > { %11901 = vmatpush1.bf16.msra.mxu0 %v17341_v20  ;;  %12021 = vmatpush1.bf16.msra.mxu1 %v17341_v20 }
 0x327   : > { %12023 = vmatprep.subr.bf16.mxu0 %v16745_v51  ;;  %12143 = vmatprep.subr.bf16.mxu1 %v16745_v51 }
 0x329   : > { %2489 = vmatmul.mubr.f32.vlgmr.msra.gmra.mrb[10].mxu0 %v9989_v63  ;;  %2641 = vmatmul.mubr.f32.vlgmr.msra.gmra.mrb[10].mxu1 %v9994_v23  ;;  %v22707_v63 = vld [vmem:[#allocation7_spill] sm:$0xff]  ;;  %v22708_v23 = vld [vmem:[#allocation8_spill] sm:$0xff] }
 0x32a   : > { %12025 = vmatpush1.bf16.msra.mxu0 %v16756_v55  ;;  %12145 = vmatpush1.bf16.msra.mxu1 %v16756_v55 }
 0x32b   : > { %12027 = vmatprep.subr.bf16.mxu0 %v16758_v56  ;;  %12147 = vmatprep.subr.bf16.mxu1 %v16758_v56 }
 0x32c   : > { %2734 = vmatprep.mubr.f32.mxu0 %v9998_v2  ;;  %2886 = vmatprep.mubr.f32.mxu1 %v10003_v38  ;;  %v22709_v2 = vld [vmem:[#allocation9_spill] sm:$0xff]  ;;  %v22710_v38 = vld [vmem:[#allocation10_spill] sm:$0xff] }
 0x32e   : > { %12029 = vmatpush1.bf16.msra.mxu0 %v16776_v61  ;;  %12149 = vmatpush1.bf16.msra.mxu1 %v16776_v61 }
 0x32f   : > { %12031 = vmatprep.subr.bf16.mxu0 %v16780_v62  ;;  %12151 = vmatprep.subr.bf16.mxu1 %v16780_v62 }
 0x332   : > { %12033 = vmatpush1.bf16.msra.mxu0 %v16796_v3  ;;  %12153 = vmatpush1.bf16.msra.mxu1 %v16796_v3 }
 0x333   : > { %12035 = vmatprep.subr.bf16.mxu0 %v16800_v4  ;;  %12155 = vmatprep.subr.bf16.mxu1 %v16800_v4 }
 0x336   : > { %12037 = vmatpush1.bf16.msra.mxu0 %v16817_v9  ;;  %12157 = vmatpush1.bf16.msra.mxu1 %v16817_v9 }
 0x337   : > { %12039 = vmatprep.subr.bf16.mxu0 %v16821_v10  ;;  %12159 = vmatprep.subr.bf16.mxu1 %v16821_v10 }
 0x33a   : > { %12041 = vmatpush1.bf16.msra.mxu0 %v16837_v15  ;;  %12161 = vmatpush1.bf16.msra.mxu1 %v16837_v15 }
 0x33b   : > { %12043 = vmatprep.subr.bf16.mxu0 %v16841_v16  ;;  %12163 = vmatprep.subr.bf16.mxu1 %v16841_v16 }
 0x33e   : > { %12045 = vmatpush1.bf16.msra.mxu0 %v16857_v21  ;;  %12165 = vmatpush1.bf16.msra.mxu1 %v16857_v21 }
 0x33f   : > { %12047 = vmatprep.subr.bf16.mxu0 %v16861_v22  ;;  %12167 = vmatprep.subr.bf16.mxu1 %v16861_v22 }
 0x342   : > { %12049 = vmatpush1.bf16.msra.mxu0 %v16881_v29  ;;  %12169 = vmatpush1.bf16.msra.mxu1 %v16881_v29 }
 0x343   : > { %12051 = vmatprep.subr.bf16.mxu0 %v16885_v30  ;;  %12171 = vmatprep.subr.bf16.mxu1 %v16885_v30 }
 0x346   : > { %12053 = vmatpush1.bf16.msra.mxu0 %v16901_v35  ;;  %12173 = vmatpush1.bf16.msra.mxu1 %v16901_v35 }
 0x347   : > { %12055 = vmatprep.subr.bf16.mxu0 %v16905_v36  ;;  %12175 = vmatprep.subr.bf16.mxu1 %v16905_v36 }
 0x34a   : > { %12057 = vmatpush1.bf16.msra.mxu0 %v16921_v41  ;;  %12177 = vmatpush1.bf16.msra.mxu1 %v16921_v41 }
 0x34b   : > { %12059 = vmatprep.subr.bf16.mxu0 %v16925_v42  ;;  %12179 = vmatprep.subr.bf16.mxu1 %v16925_v42 }
 0x34e   : > { %12061 = vmatpush1.bf16.msra.mxu0 %v16941_v47  ;;  %12181 = vmatpush1.bf16.msra.mxu1 %v16941_v47 }
 0x34f   : > { %12063 = vmatprep.subr.bf16.mxu0 %v16945_v48  ;;  %12183 = vmatprep.subr.bf16.mxu1 %v16945_v48 }
 0x352   : > { %12065 = vmatpush1.bf16.msra.mxu0 %v16961_v54  ;;  %12185 = vmatpush1.bf16.msra.mxu1 %v16961_v54 }
 0x353   : > { %12067 = vmatprep.subr.bf16.mxu0 %v16965_v57  ;;  %12187 = vmatprep.subr.bf16.mxu1 %v16965_v57 }
 0x356   : > { %12069 = vmatpush1.bf16.msra.mxu0 %v16981_v0  ;;  %12189 = vmatpush1.bf16.msra.mxu1 %v16981_v0 }
 0x357   : > { %12071 = vmatprep.subr.bf16.mxu0 %v16985_v1  ;;  %12191 = vmatprep.subr.bf16.mxu1 %v16985_v1 }
 0x35a   : > { %12073 = vmatpush1.bf16.msra.mxu0 %v17001_v8  ;;  %12193 = vmatpush1.bf16.msra.mxu1 %v17001_v8 }
 0x35b   : > { %12075 = vmatprep.subr.bf16.mxu0 %v17005_v11  ;;  %12195 = vmatprep.subr.bf16.mxu1 %v17005_v11 }
 0x35e   : > { %12077 = vmatpush1.bf16.msra.mxu0 %v17021_v18  ;;  %12197 = vmatpush1.bf16.msra.mxu1 %v17021_v18 }
 0x35f   : > { %12079 = vmatprep.subr.bf16.mxu0 %v17025_v19  ;;  %12199 = vmatprep.subr.bf16.mxu1 %v17025_v19 }
 0x362   : > { %12081 = vmatpush1.bf16.msra.mxu0 %v17041_v26  ;;  %12201 = vmatpush1.bf16.msra.mxu1 %v17041_v26 }
 0x363   : > { %12083 = vmatprep.subr.bf16.mxu0 %v17045_v27  ;;  %12203 = vmatprep.subr.bf16.mxu1 %v17045_v27 }
 0x366   : > { %12085 = vmatpush1.bf16.msra.mxu0 %v17061_v34  ;;  %12205 = vmatpush1.bf16.msra.mxu1 %v17061_v34 }
 0x367   : > { %12087 = vmatprep.subr.bf16.mxu0 %v17065_v37  ;;  %12207 = vmatprep.subr.bf16.mxu1 %v17065_v37 }
 0x369   : > { %2735 = vmatmul.mubr.f32.vlgmr.msra.gmra.mrb[12].mxu0 %v9997_v6  ;;  %2887 = vmatmul.mubr.f32.vlgmr.msra.gmra.mrb[12].mxu1 %v10002_v50  ;;  %v22711_v6 = vld [vmem:[#allocation11_spill] sm:$0xff]  ;;  %v22712_v50 = vld [vmem:[#allocation12_spill] sm:$0xff] }
 0x36a   : > { %12089 = vmatpush1.bf16.msra.mxu0 %v17082_v45  ;;  %12209 = vmatpush1.bf16.msra.mxu1 %v17082_v45 }
 0x36b   : > { %12091 = vmatprep.subr.bf16.mxu0 %v17087_v49  ;;  %12211 = vmatprep.subr.bf16.mxu1 %v17087_v49 }
 0x36c   : > { %10001 = vmatprep.mubr.msk.f32.mxu0 %vm763_vm0, %v10000_v59  ;;  %10006 = vmatprep.mubr.msk.f32.mxu1 %vm763_vm0, %v10005_v14  ;;  %v22713_v59 = vld [vmem:[#allocation13_spill] sm:$0xff]  ;;  %v22714_v14 = vld [vmem:[#allocation14_spill] sm:$0xff] }
 0x36e   : > { %12093 = vmatpush1.bf16.msra.mxu0 %v22691_v13  ;;  %12213 = vmatpush1.bf16.msra.mxu1 %v22691_v13 }
 0x36f   : > { %12095 = vmatprep.subr.bf16.mxu0 %v22692_v25  ;;  %12215 = vmatprep.subr.bf16.mxu1 %v22692_v25 }
 0x372   : > { %12097 = vmatpush1.bf16.msra.mxu0 %v22705_v40  ;;  %12217 = vmatpush1.bf16.msra.mxu1 %v22705_v40 }
 0x373   : > { %12099 = vmatprep.subr.bf16.mxu0 %v22706_v28  ;;  %12219 = vmatprep.subr.bf16.mxu1 %v22706_v28 }
 0x376   : > { %12101 = vmatpush1.bf16.msra.mxu0 %v22707_v63  ;;  %12221 = vmatpush1.bf16.msra.mxu1 %v22707_v63 }
 0x377   : > { %12103 = vmatprep.subr.bf16.mxu0 %v22708_v23  ;;  %12223 = vmatprep.subr.bf16.mxu1 %v22708_v23 }
 0x37a   : > { %12105 = vmatpush1.bf16.msra.mxu0 %v22709_v2  ;;  %12225 = vmatpush1.bf16.msra.mxu1 %v22709_v2 }
 0x37b   : > { %12107 = vmatprep.subr.bf16.mxu0 %v22710_v38  ;;  %12227 = vmatprep.subr.bf16.mxu1 %v22710_v38 }
 0x37e   : > { %12109 = vmatpush1.bf16.msra.mxu0 %v22711_v6  ;;  %12229 = vmatpush1.bf16.msra.mxu1 %v22711_v6 }
 0x37f   : > { %12111 = vmatprep.subr.bf16.mxu0 %v22712_v50  ;;  %12231 = vmatprep.subr.bf16.mxu1 %v22712_v50 }
 0x382   : > { %12113 = vmatpush1.bf16.msra.mxu0 %v22713_v59  ;;  %12233 = vmatpush1.bf16.msra.mxu1 %v22713_v59 }
 0x383   : > { %12115 = vmatprep.subr.bf16.mxu0 %v22714_v14  ;;  %12235 = vmatprep.subr.bf16.mxu1 %v22714_v14 }
 0x384   : > { %v2173_v53 = vpop.f32.mrb[8].mxu0  ;;  %v2325_v7 = vpop.f32.mrb[8].mxu1 }
 0x385   : > { %v16141_v38 = vadd.f32 %v2173_v53, %v17586_v39  ;;  %v16143_v2 = vadd.f32 %v2325_v7, %v17586_v39  ;;  %v2175_v23 = vpop.f32.mrb[9].mxu0  ;;  %v2327_v6 = vpop.f32.mrb[9].mxu1 }
 0x386   : > { %v16142_v63 = vadd.f32 %v2175_v23, %v17592_v52  ;;  %v16144_v50 = vadd.f32 %v2327_v6, %v17592_v52  ;;  %12117 = vmatpush1.bf16.msra.mxu0 %v17227_v24  ;;  %12237 = vmatpush1.bf16.msra.mxu1 %v17227_v24  ;;  %v10008_v23 = vld [vmem:[%s16869_s22 + $0x1c8] sm:$0xff]  ;;  %v10012_v6 = vld [vmem:[%s16869_s22 + $0x1e0] sm:$0xff] }
 0x387   : > { %v2178_v59 = vmax.f32 %v16141_v38, 0.0  ;;  %v2330_v28 = vmax.f32 %v16143_v2, 0.0  ;;  %12119 = vmatprep.subr.bf16.mxu0 %v17231_v31  ;;  %12239 = vmatprep.subr.bf16.mxu1 %v17231_v31  ;;  %v10013_v2 = vld [vmem:[%s16869_s22 + $0x1e8] sm:$0xff]  ;;  %v10007_v38 = vld [vmem:[%s16869_s22 + $0x1c0] sm:$0xff] }
 0x388   : > { %v2179_v14 = vmax.f32 %v16142_v63, 0.0  ;;  %v2331_v53 = vmax.f32 %v16144_v50, 0.0  ;;  %v10004_v63 = vld [vmem:[%s16869_s22 + $0x1b0] sm:$0xff]  ;;  %v10010_v50 = vld [vmem:[%s16869_s22 + $0x1d8] sm:$0xff] }
 0x389   : > { %v18171_v40 = vmax.f32 %v2178_v59, %v2330_v28  ;;  %v9999_v28 = vld [vmem:[%s16869_s22 + $0x190] sm:$0xff]  ;;  %v10015_v59 = vld [vmem:[%s16869_s22 + $0x1f8] sm:$0xff] }
 0x38a   : > { %v18173_v7 = vmax.f32 %v2179_v14, %v2331_v53  ;;  %12121 = vmatpush1.bf16.msra.mxu0 %v17247_v44  ;;  %12241 = vmatpush1.bf16.msra.mxu1 %v17247_v44  ;;  %v22717_v14 = vld [vmem:[#allocation5_spill] sm:$0xff]  ;;  %v22718_v53 = vld [vmem:[#allocation6_spill] sm:$0xff] }
 0x38b   : > { %22715 = vst [vmem:[#allocation22_spill] sm:$0xff] %v18171_v40  ;;  %2336 = vrot.lane.b32.xlu1 %v18171_v40, %s16407_s23  ;;  %12123 = vmatprep.subr.bf16.mxu0 %v17251_v46 }
 0x38c   : > { %22716 = vst [vmem:[#allocation23_spill] sm:$0xff] %v18173_v7  ;;  %2338 = vrot.lane.b32.xlu0 %v18173_v7, %s16407_s23  ;;  %12243 = vmatprep.subr.bf16.mxu1 %v17251_v46 }
 0x38e   : > { %12125 = vmatpush1.bf16.msra.mxu0 %v17267_v5  ;;  %12245 = vmatpush1.bf16.msra.mxu1 %v17267_v5 }
 0x38f   : > { %12127 = vmatprep.subr.bf16.mxu0 %v17271_v12  ;;  %12247 = vmatprep.subr.bf16.mxu1 %v17271_v12 }
 0x392   : > { %12129 = vmatpush1.bf16.msra.mxu0 %v17287_v33  ;;  %12249 = vmatpush1.bf16.msra.mxu1 %v17287_v33 }
 0x393   : > { %12131 = vmatprep.subr.bf16.mxu0 %v22660_v32  ;;  %12251 = vmatprep.subr.bf16.mxu1 %v22660_v32 }
 0x396   : > { %12133 = vmatpush1.bf16.msra.mxu0 %v17307_v60  ;;  %12253 = vmatpush1.bf16.msra.mxu1 %v17307_v60 }
 0x397   : > { %12135 = vmatprep.subr.bf16.mxu0 %v17311_v17  ;;  %12255 = vmatprep.subr.bf16.mxu1 %v17311_v17 }
 0x39a   : > { %12137 = vmatpush1.bf16.msra.mxu0 %v22661_v43  ;;  %12257 = vmatpush1.bf16.msra.mxu1 %v22661_v43 }
 0x39b   : > { %12139 = vmatprep.subr.bf16.mxu0 %v17331_v58  ;;  %12259 = vmatprep.subr.bf16.mxu1 %v17331_v58 }
 0x39e   : > { %12141 = vmatpush1.bf16.msra.mxu0 %v17341_v20  ;;  %12261 = vmatpush1.bf16.msra.mxu1 %v17341_v20 }
 0x39f   : > { %12263 = vmatprep.subr.bf16.mxu0 %v16745_v51  ;;  %12383 = vmatprep.subr.bf16.mxu1 %v16745_v51 }
 0x3a1   : > { %2806 = vmatmul.mubr.f32.vlgmr.msra.gmra.mrb[12].mxu0 %v9999_v28  ;;  %2958 = vmatmul.mubr.f32.vlgmr.msra.gmra.mrb[12].mxu1 %v10004_v63  ;;  %v22719_v28 = vld [vmem:[#allocation7_spill] sm:$0xff]  ;;  %v22720_v63 = vld [vmem:[#allocation8_spill] sm:$0xff] }
 0x3a2   : > { %12265 = vmatpush1.bf16.msra.mxu0 %v16756_v55  ;;  %12385 = vmatpush1.bf16.msra.mxu1 %v16756_v55 }
 0x3a3   : > { %12267 = vmatprep.subr.bf16.mxu0 %v16758_v56  ;;  %12387 = vmatprep.subr.bf16.mxu1 %v16758_v56 }
 0x3a4   : > { %3051 = vmatprep.mubr.f32.mxu0 %v10008_v23  ;;  %3203 = vmatprep.mubr.f32.mxu1 %v10013_v2  ;;  %v22721_v23 = vld [vmem:[#allocation9_spill] sm:$0xff]  ;;  %v22722_v2 = vld [vmem:[#allocation10_spill] sm:$0xff] }
 0x3a6   : > { %12269 = vmatpush1.bf16.msra.mxu0 %v16776_v61  ;;  %12389 = vmatpush1.bf16.msra.mxu1 %v16776_v61 }
 0x3a7   : > { %12271 = vmatprep.subr.bf16.mxu0 %v16780_v62  ;;  %12391 = vmatprep.subr.bf16.mxu1 %v16780_v62 }
 0x3aa   : > { %12273 = vmatpush1.bf16.msra.mxu0 %v16796_v3  ;;  %12393 = vmatpush1.bf16.msra.mxu1 %v16796_v3 }
 0x3ab   : > { %12275 = vmatprep.subr.bf16.mxu0 %v16800_v4  ;;  %12395 = vmatprep.subr.bf16.mxu1 %v16800_v4 }
 0x3ae   : > { %12277 = vmatpush1.bf16.msra.mxu0 %v16817_v9  ;;  %12397 = vmatpush1.bf16.msra.mxu1 %v16817_v9 }
 0x3af   : > { %12279 = vmatprep.subr.bf16.mxu0 %v16821_v10  ;;  %12399 = vmatprep.subr.bf16.mxu1 %v16821_v10 }
 0x3b2   : > { %12281 = vmatpush1.bf16.msra.mxu0 %v16837_v15  ;;  %12401 = vmatpush1.bf16.msra.mxu1 %v16837_v15 }
 0x3b3   : > { %12283 = vmatprep.subr.bf16.mxu0 %v16841_v16  ;;  %12403 = vmatprep.subr.bf16.mxu1 %v16841_v16 }
 0x3b6   : > { %12285 = vmatpush1.bf16.msra.mxu0 %v16857_v21  ;;  %12405 = vmatpush1.bf16.msra.mxu1 %v16857_v21 }
 0x3b7   : > { %12287 = vmatprep.subr.bf16.mxu0 %v16861_v22  ;;  %12407 = vmatprep.subr.bf16.mxu1 %v16861_v22 }
 0x3ba   : > { %12289 = vmatpush1.bf16.msra.mxu0 %v16881_v29  ;;  %12409 = vmatpush1.bf16.msra.mxu1 %v16881_v29 }
 0x3bb   : > { %12291 = vmatprep.subr.bf16.mxu0 %v16885_v30  ;;  %12411 = vmatprep.subr.bf16.mxu1 %v16885_v30 }
 0x3be   : > { %12293 = vmatpush1.bf16.msra.mxu0 %v16901_v35  ;;  %12413 = vmatpush1.bf16.msra.mxu1 %v16901_v35 }
 0x3bf   : > { %12295 = vmatprep.subr.bf16.mxu0 %v16905_v36  ;;  %12415 = vmatprep.subr.bf16.mxu1 %v16905_v36 }
 0x3c2   : > { %12297 = vmatpush1.bf16.msra.mxu0 %v16921_v41  ;;  %12417 = vmatpush1.bf16.msra.mxu1 %v16921_v41 }
 0x3c3   : > { %12299 = vmatprep.subr.bf16.mxu0 %v16925_v42  ;;  %12419 = vmatprep.subr.bf16.mxu1 %v16925_v42 }
 0x3c6   : > { %12301 = vmatpush1.bf16.msra.mxu0 %v16941_v47  ;;  %12421 = vmatpush1.bf16.msra.mxu1 %v16941_v47 }
 0x3c7   : > { %12303 = vmatprep.subr.bf16.mxu0 %v16945_v48  ;;  %12423 = vmatprep.subr.bf16.mxu1 %v16945_v48 }
 0x3ca   : > { %12305 = vmatpush1.bf16.msra.mxu0 %v16961_v54  ;;  %12425 = vmatpush1.bf16.msra.mxu1 %v16961_v54 }
 0x3cb   : > { %12307 = vmatprep.subr.bf16.mxu0 %v16965_v57  ;;  %12427 = vmatprep.subr.bf16.mxu1 %v16965_v57 }
 0x3ce   : > { %12309 = vmatpush1.bf16.msra.mxu0 %v16981_v0  ;;  %12429 = vmatpush1.bf16.msra.mxu1 %v16981_v0 }
 0x3cf   : > { %12311 = vmatprep.subr.bf16.mxu0 %v16985_v1  ;;  %12431 = vmatprep.subr.bf16.mxu1 %v16985_v1 }
 0x3d2   : > { %12313 = vmatpush1.bf16.msra.mxu0 %v17001_v8  ;;  %12433 = vmatpush1.bf16.msra.mxu1 %v17001_v8 }
 0x3d3   : > { %12315 = vmatprep.subr.bf16.mxu0 %v17005_v11  ;;  %12435 = vmatprep.subr.bf16.mxu1 %v17005_v11 }
 0x3d6   : > { %12317 = vmatpush1.bf16.msra.mxu0 %v17021_v18  ;;  %12437 = vmatpush1.bf16.msra.mxu1 %v17021_v18 }
 0x3d7   : > { %12319 = vmatprep.subr.bf16.mxu0 %v17025_v19  ;;  %12439 = vmatprep.subr.bf16.mxu1 %v17025_v19 }
 0x3da   : > { %12321 = vmatpush1.bf16.msra.mxu0 %v17041_v26  ;;  %12441 = vmatpush1.bf16.msra.mxu1 %v17041_v26 }
 0x3db   : > { %12323 = vmatprep.subr.bf16.mxu0 %v17045_v27  ;;  %12443 = vmatprep.subr.bf16.mxu1 %v17045_v27 }
 0x3de   : > { %12325 = vmatpush1.bf16.msra.mxu0 %v17061_v34  ;;  %12445 = vmatpush1.bf16.msra.mxu1 %v17061_v34 }
 0x3df   : > { %12327 = vmatprep.subr.bf16.mxu0 %v17065_v37  ;;  %12447 = vmatprep.subr.bf16.mxu1 %v17065_v37 }
 0x3e1   : > { %3052 = vmatmul.mubr.f32.vlgmr.msra.gmra.mrb[14].mxu0 %v10007_v38  ;;  %3204 = vmatmul.mubr.f32.vlgmr.msra.gmra.mrb[14].mxu1 %v10012_v6  ;;  %v22723_v38 = vld [vmem:[#allocation11_spill] sm:$0xff]  ;;  %v22724_v6 = vld [vmem:[#allocation12_spill] sm:$0xff] }
 0x3e2   : > { %12329 = vmatpush1.bf16.msra.mxu0 %v17082_v45  ;;  %12449 = vmatpush1.bf16.msra.mxu1 %v17082_v45 }
 0x3e3   : > { %12331 = vmatprep.subr.bf16.mxu0 %v17087_v49  ;;  %12451 = vmatprep.subr.bf16.mxu1 %v17087_v49 }
 0x3e4   : > { %10011 = vmatprep.mubr.msk.f32.mxu0 %vm763_vm0, %v10010_v50  ;;  %10016 = vmatprep.mubr.msk.f32.mxu1 %vm763_vm0, %v10015_v59  ;;  %v22725_v50 = vld [vmem:[#allocation13_spill] sm:$0xff]  ;;  %v22726_v59 = vld [vmem:[#allocation14_spill] sm:$0xff] }
 0x3e6   : > { %12333 = vmatpush1.bf16.msra.mxu0 %v22691_v13  ;;  %12453 = vmatpush1.bf16.msra.mxu1 %v22691_v13 }
 0x3e7   : > { %12335 = vmatprep.subr.bf16.mxu0 %v22692_v25  ;;  %12455 = vmatprep.subr.bf16.mxu1 %v22692_v25 }
 0x3ea   : > { %12337 = vmatpush1.bf16.msra.mxu0 %v22717_v14  ;;  %12457 = vmatpush1.bf16.msra.mxu1 %v22717_v14 }
 0x3eb   : > { %12339 = vmatprep.subr.bf16.mxu0 %v22718_v53  ;;  %12459 = vmatprep.subr.bf16.mxu1 %v22718_v53 }
 0x3ee   : > { %12341 = vmatpush1.bf16.msra.mxu0 %v22719_v28  ;;  %12461 = vmatpush1.bf16.msra.mxu1 %v22719_v28 }
 0x3ef   : > { %12343 = vmatprep.subr.bf16.mxu0 %v22720_v63  ;;  %12463 = vmatprep.subr.bf16.mxu1 %v22720_v63 }
 0x3f2   : > { %12345 = vmatpush1.bf16.msra.mxu0 %v22721_v23  ;;  %12465 = vmatpush1.bf16.msra.mxu1 %v22721_v23 }
 0x3f3   : > { %12347 = vmatprep.subr.bf16.mxu0 %v22722_v2  ;;  %12467 = vmatprep.subr.bf16.mxu1 %v22722_v2 }
 0x3f6   : > { %12349 = vmatpush1.bf16.msra.mxu0 %v22723_v38  ;;  %12469 = vmatpush1.bf16.msra.mxu1 %v22723_v38 }
 0x3f7   : > { %12351 = vmatprep.subr.bf16.mxu0 %v22724_v6  ;;  %12471 = vmatprep.subr.bf16.mxu1 %v22724_v6 }
 0x3fa   : > { %12353 = vmatpush1.bf16.msra.mxu0 %v22725_v50  ;;  %12473 = vmatpush1.bf16.msra.mxu1 %v22725_v50 }
 0x3fb   : > { %12355 = vmatprep.subr.bf16.mxu0 %v22726_v59  ;;  %12475 = vmatprep.subr.bf16.mxu1 %v22726_v59 }
 0x3fc   : > { %v2490_v40 = vpop.f32.mrb[10].mxu0  ;;  %v2642_v7 = vpop.f32.mrb[10].mxu1 }
 0x3fd   : > { %v16145_v2 = vadd.f32 %v2490_v40, %v17586_v39  ;;  %v16147_v23 = vadd.f32 %v2642_v7, %v17586_v39  ;;  %v2492_v63 = vpop.f32.mrb[11].mxu0  ;;  %v2644_v38 = vpop.f32.mrb[11].mxu1 }
 0x3fe   : > { %v16146_v28 = vadd.f32 %v2492_v63, %v17592_v52  ;;  %v16148_v6 = vadd.f32 %v2644_v38, %v17592_v52  ;;  %12357 = vmatpush1.bf16.msra.mxu0 %v17227_v24  ;;  %12477 = vmatpush1.bf16.msra.mxu1 %v17227_v24  ;;  %v10018_v63 = vld [vmem:[%s16869_s22 + $0x208] sm:$0xff]  ;;  %v10022_v38 = vld [vmem:[%s16869_s22 + $0x220] sm:$0xff] }
 0x3ff   : > { %v2495_v50 = vmax.f32 %v16145_v2, 0.0  ;;  %v2647_v53 = vmax.f32 %v16147_v23, 0.0  ;;  %12359 = vmatprep.subr.bf16.mxu0 %v17231_v31  ;;  %12479 = vmatprep.subr.bf16.mxu1 %v17231_v31  ;;  %v10023_v23 = vld [vmem:[%s16869_s22 + $0x228] sm:$0xff]  ;;  %v10017_v2 = vld [vmem:[%s16869_s22 + $0x200] sm:$0xff] }
 0x400   : > { %v2496_v59 = vmax.f32 %v16146_v28, 0.0  ;;  %v2648_v40 = vmax.f32 %v16148_v6, 0.0  ;;  %v10014_v28 = vld [vmem:[%s16869_s22 + $0x1f0] sm:$0xff]  ;;  %v10020_v6 = vld [vmem:[%s16869_s22 + $0x218] sm:$0xff] }
 0x401   : > { %v18313_v14 = vmax.f32 %v2495_v50, %v2647_v53  ;;  %v10009_v53 = vld [vmem:[%s16869_s22 + $0x1d0] sm:$0xff]  ;;  %v10025_v50 = vld [vmem:[%s16869_s22 + $0x238] sm:$0xff] }
 0x402   : > { %v18315_v7 = vmax.f32 %v2496_v59, %v2648_v40  ;;  %12361 = vmatpush1.bf16.msra.mxu0 %v17247_v44  ;;  %12481 = vmatpush1.bf16.msra.mxu1 %v17247_v44  ;;  %v22729_v59 = vld [vmem:[#allocation5_spill] sm:$0xff]  ;;  %v22730_v40 = vld [vmem:[#allocation6_spill] sm:$0xff] }
 0x403   : > { %22727 = vst [vmem:[#allocation24_spill] sm:$0xff] %v18313_v14  ;;  %2653 = vrot.lane.b32.xlu1 %v18313_v14, %s16407_s23  ;;  %12363 = vmatprep.subr.bf16.mxu0 %v17251_v46 }
 0x404   : > { %22728 = vst [vmem:[#allocation25_spill] sm:$0xff] %v18315_v7  ;;  %2655 = vrot.lane.b32.xlu0 %v18315_v7, %s16407_s23  ;;  %12483 = vmatprep.subr.bf16.mxu1 %v17251_v46 }
 0x406   : > { %12365 = vmatpush1.bf16.msra.mxu0 %v17267_v5  ;;  %12485 = vmatpush1.bf16.msra.mxu1 %v17267_v5 }
 0x407   : > { %12367 = vmatprep.subr.bf16.mxu0 %v17271_v12  ;;  %12487 = vmatprep.subr.bf16.mxu1 %v17271_v12 }
 0x40a   : > { %12369 = vmatpush1.bf16.msra.mxu0 %v17287_v33  ;;  %12489 = vmatpush1.bf16.msra.mxu1 %v17287_v33 }
 0x40b   : > { %12371 = vmatprep.subr.bf16.mxu0 %v22660_v32  ;;  %12491 = vmatprep.subr.bf16.mxu1 %v22660_v32 }
 0x40e   : > { %12373 = vmatpush1.bf16.msra.mxu0 %v17307_v60  ;;  %12493 = vmatpush1.bf16.msra.mxu1 %v17307_v60 }
 0x40f   : > { %12375 = vmatprep.subr.bf16.mxu0 %v17311_v17  ;;  %12495 = vmatprep.subr.bf16.mxu1 %v17311_v17 }
 0x412   : > { %12377 = vmatpush1.bf16.msra.mxu0 %v22661_v43  ;;  %12497 = vmatpush1.bf16.msra.mxu1 %v22661_v43 }
 0x413   : > { %12379 = vmatprep.subr.bf16.mxu0 %v17331_v58  ;;  %12499 = vmatprep.subr.bf16.mxu1 %v17331_v58 }
 0x416   : > { %12381 = vmatpush1.bf16.msra.mxu0 %v17341_v20  ;;  %12501 = vmatpush1.bf16.msra.mxu1 %v17341_v20 }
 0x417   : > { %12503 = vmatprep.subr.bf16.mxu0 %v16745_v51  ;;  %12623 = vmatprep.subr.bf16.mxu1 %v16745_v51 }
 0x419   : > { %3123 = vmatmul.mubr.f32.vlgmr.msra.gmra.mrb[14].mxu0 %v10009_v53  ;;  %3275 = vmatmul.mubr.f32.vlgmr.msra.gmra.mrb[14].mxu1 %v10014_v28  ;;  %v22731_v53 = vld [vmem:[#allocation7_spill] sm:$0xff]  ;;  %v22732_v28 = vld [vmem:[#allocation8_spill] sm:$0xff] }
 0x41a   : > { %12505 = vmatpush1.bf16.msra.mxu0 %v16756_v55  ;;  %12625 = vmatpush1.bf16.msra.mxu1 %v16756_v55 }
 0x41b   : > { %12507 = vmatprep.subr.bf16.mxu0 %v16758_v56  ;;  %12627 = vmatprep.subr.bf16.mxu1 %v16758_v56 }
 0x41c   : > { %3368 = vmatprep.mubr.f32.mxu0 %v10018_v63  ;;  %3520 = vmatprep.mubr.f32.mxu1 %v10023_v23  ;;  %v22733_v63 = vld [vmem:[#allocation9_spill] sm:$0xff]  ;;  %v22734_v23 = vld [vmem:[#allocation10_spill] sm:$0xff] }
 0x41e   : > { %12509 = vmatpush1.bf16.msra.mxu0 %v16776_v61  ;;  %12629 = vmatpush1.bf16.msra.mxu1 %v16776_v61 }
 0x41f   : > { %12511 = vmatprep.subr.bf16.mxu0 %v16780_v62  ;;  %12631 = vmatprep.subr.bf16.mxu1 %v16780_v62 }
 0x422   : > { %12513 = vmatpush1.bf16.msra.mxu0 %v16796_v3  ;;  %12633 = vmatpush1.bf16.msra.mxu1 %v16796_v3 }
 0x423   : > { %12515 = vmatprep.subr.bf16.mxu0 %v16800_v4  ;;  %12635 = vmatprep.subr.bf16.mxu1 %v16800_v4 }
 0x426   : > { %12517 = vmatpush1.bf16.msra.mxu0 %v16817_v9  ;;  %12637 = vmatpush1.bf16.msra.mxu1 %v16817_v9 }
 0x427   : > { %12519 = vmatprep.subr.bf16.mxu0 %v16821_v10  ;;  %12639 = vmatprep.subr.bf16.mxu1 %v16821_v10 }
 0x42a   : > { %12521 = vmatpush1.bf16.msra.mxu0 %v16837_v15  ;;  %12641 = vmatpush1.bf16.msra.mxu1 %v16837_v15 }
 0x42b   : > { %12523 = vmatprep.subr.bf16.mxu0 %v16841_v16  ;;  %12643 = vmatprep.subr.bf16.mxu1 %v16841_v16 }
 0x42e   : > { %12525 = vmatpush1.bf16.msra.mxu0 %v16857_v21  ;;  %12645 = vmatpush1.bf16.msra.mxu1 %v16857_v21 }
 0x42f   : > { %12527 = vmatprep.subr.bf16.mxu0 %v16861_v22  ;;  %12647 = vmatprep.subr.bf16.mxu1 %v16861_v22 }
 0x432   : > { %12529 = vmatpush1.bf16.msra.mxu0 %v16881_v29  ;;  %12649 = vmatpush1.bf16.msra.mxu1 %v16881_v29 }
 0x433   : > { %12531 = vmatprep.subr.bf16.mxu0 %v16885_v30  ;;  %12651 = vmatprep.subr.bf16.mxu1 %v16885_v30 }
 0x436   : > { %12533 = vmatpush1.bf16.msra.mxu0 %v16901_v35  ;;  %12653 = vmatpush1.bf16.msra.mxu1 %v16901_v35 }
 0x437   : > { %12535 = vmatprep.subr.bf16.mxu0 %v16905_v36  ;;  %12655 = vmatprep.subr.bf16.mxu1 %v16905_v36 }
 0x43a   : > { %12537 = vmatpush1.bf16.msra.mxu0 %v16921_v41  ;;  %12657 = vmatpush1.bf16.msra.mxu1 %v16921_v41 }
 0x43b   : > { %12539 = vmatprep.subr.bf16.mxu0 %v16925_v42  ;;  %12659 = vmatprep.subr.bf16.mxu1 %v16925_v42 }
 0x43e   : > { %12541 = vmatpush1.bf16.msra.mxu0 %v16941_v47  ;;  %12661 = vmatpush1.bf16.msra.mxu1 %v16941_v47 }
 0x43f   : > { %12543 = vmatprep.subr.bf16.mxu0 %v16945_v48  ;;  %12663 = vmatprep.subr.bf16.mxu1 %v16945_v48 }
 0x442   : > { %12545 = vmatpush1.bf16.msra.mxu0 %v16961_v54  ;;  %12665 = vmatpush1.bf16.msra.mxu1 %v16961_v54 }
 0x443   : > { %12547 = vmatprep.subr.bf16.mxu0 %v16965_v57  ;;  %12667 = vmatprep.subr.bf16.mxu1 %v16965_v57 }
 0x446   : > { %12549 = vmatpush1.bf16.msra.mxu0 %v16981_v0  ;;  %12669 = vmatpush1.bf16.msra.mxu1 %v16981_v0 }
 0x447   : > { %12551 = vmatprep.subr.bf16.mxu0 %v16985_v1  ;;  %12671 = vmatprep.subr.bf16.mxu1 %v16985_v1 }
 0x44a   : > { %12553 = vmatpush1.bf16.msra.mxu0 %v17001_v8  ;;  %12673 = vmatpush1.bf16.msra.mxu1 %v17001_v8 }
 0x44b   : > { %12555 = vmatprep.subr.bf16.mxu0 %v17005_v11  ;;  %12675 = vmatprep.subr.bf16.mxu1 %v17005_v11 }
 0x44e   : > { %12557 = vmatpush1.bf16.msra.mxu0 %v17021_v18  ;;  %12677 = vmatpush1.bf16.msra.mxu1 %v17021_v18 }
 0x44f   : > { %12559 = vmatprep.subr.bf16.mxu0 %v17025_v19  ;;  %12679 = vmatprep.subr.bf16.mxu1 %v17025_v19 }
 0x452   : > { %12561 = vmatpush1.bf16.msra.mxu0 %v17041_v26  ;;  %12681 = vmatpush1.bf16.msra.mxu1 %v17041_v26 }
 0x453   : > { %12563 = vmatprep.subr.bf16.mxu0 %v17045_v27  ;;  %12683 = vmatprep.subr.bf16.mxu1 %v17045_v27 }
 0x456   : > { %12565 = vmatpush1.bf16.msra.mxu0 %v17061_v34  ;;  %12685 = vmatpush1.bf16.msra.mxu1 %v17061_v34 }
 0x457   : > { %12567 = vmatprep.subr.bf16.mxu0 %v17065_v37  ;;  %12687 = vmatprep.subr.bf16.mxu1 %v17065_v37 }
 0x459   : > { %3369 = vmatmul.mubr.f32.vlgmr.msra.gmra.mrb[16].mxu0 %v10017_v2  ;;  %3521 = vmatmul.mubr.f32.vlgmr.msra.gmra.mrb[16].mxu1 %v10022_v38  ;;  %v22735_v2 = vld [vmem:[#allocation11_spill] sm:$0xff]  ;;  %v22736_v38 = vld [vmem:[#allocation12_spill] sm:$0xff] }
 0x45a   : > { %12569 = vmatpush1.bf16.msra.mxu0 %v17082_v45  ;;  %12689 = vmatpush1.bf16.msra.mxu1 %v17082_v45 }
 0x45b   : > { %12571 = vmatprep.subr.bf16.mxu0 %v17087_v49  ;;  %12691 = vmatprep.subr.bf16.mxu1 %v17087_v49 }
 0x45c   : > { %10021 = vmatprep.mubr.msk.f32.mxu0 %vm763_vm0, %v10020_v6  ;;  %10026 = vmatprep.mubr.msk.f32.mxu1 %vm763_vm0, %v10025_v50  ;;  %v22737_v6 = vld [vmem:[#allocation13_spill] sm:$0xff]  ;;  %v22738_v50 = vld [vmem:[#allocation14_spill] sm:$0xff] }
 0x45e   : > { %12573 = vmatpush1.bf16.msra.mxu0 %v22691_v13  ;;  %12693 = vmatpush1.bf16.msra.mxu1 %v22691_v13 }
 0x45f   : > { %12575 = vmatprep.subr.bf16.mxu0 %v22692_v25  ;;  %12695 = vmatprep.subr.bf16.mxu1 %v22692_v25 }
 0x462   : > { %12577 = vmatpush1.bf16.msra.mxu0 %v22729_v59  ;;  %12697 = vmatpush1.bf16.msra.mxu1 %v22729_v59 }
 0x463   : > { %12579 = vmatprep.subr.bf16.mxu0 %v22730_v40  ;;  %12699 = vmatprep.subr.bf16.mxu1 %v22730_v40 }
 0x466   : > { %12581 = vmatpush1.bf16.msra.mxu0 %v22731_v53  ;;  %12701 = vmatpush1.bf16.msra.mxu1 %v22731_v53 }
 0x467   : > { %12583 = vmatprep.subr.bf16.mxu0 %v22732_v28  ;;  %12703 = vmatprep.subr.bf16.mxu1 %v22732_v28 }
 0x46a   : > { %12585 = vmatpush1.bf16.msra.mxu0 %v22733_v63  ;;  %12705 = vmatpush1.bf16.msra.mxu1 %v22733_v63 }
 0x46b   : > { %12587 = vmatprep.subr.bf16.mxu0 %v22734_v23  ;;  %12707 = vmatprep.subr.bf16.mxu1 %v22734_v23 }
 0x46e   : > { %12589 = vmatpush1.bf16.msra.mxu0 %v22735_v2  ;;  %12709 = vmatpush1.bf16.msra.mxu1 %v22735_v2 }
 0x46f   : > { %12591 = vmatprep.subr.bf16.mxu0 %v22736_v38  ;;  %12711 = vmatprep.subr.bf16.mxu1 %v22736_v38 }
 0x472   : > { %12593 = vmatpush1.bf16.msra.mxu0 %v22737_v6  ;;  %12713 = vmatpush1.bf16.msra.mxu1 %v22737_v6 }
 0x473   : > { %12595 = vmatprep.subr.bf16.mxu0 %v22738_v50  ;;  %12715 = vmatprep.subr.bf16.mxu1 %v22738_v50 }
 0x474   : > { %v2807_v14 = vpop.f32.mrb[12].mxu0  ;;  %v2959_v7 = vpop.f32.mrb[12].mxu1 }
 0x475   : > { %v16149_v23 = vadd.f32 %v2807_v14, %v17586_v39  ;;  %v16151_v63 = vadd.f32 %v2959_v7, %v17586_v39  ;;  %v2809_v28 = vpop.f32.mrb[13].mxu0  ;;  %v2961_v2 = vpop.f32.mrb[13].mxu1 }
 0x476   : > { %v16150_v53 = vadd.f32 %v2809_v28, %v17592_v52  ;;  %v16152_v38 = vadd.f32 %v2961_v2, %v17592_v52  ;;  %12597 = vmatpush1.bf16.msra.mxu0 %v17227_v24  ;;  %12717 = vmatpush1.bf16.msra.mxu1 %v17227_v24  ;;  %v10028_v28 = vld [vmem:[%s16869_s22 + $0x248] sm:$0xff]  ;;  %v10032_v2 = vld [vmem:[%s16869_s22 + $0x260] sm:$0xff] }
 0x477   : > { %v2812_v6 = vmax.f32 %v16149_v23, 0.0  ;;  %v2964_v40 = vmax.f32 %v16151_v63, 0.0  ;;  %12599 = vmatprep.subr.bf16.mxu0 %v17231_v31  ;;  %12719 = vmatprep.subr.bf16.mxu1 %v17231_v31  ;;  %v10033_v63 = vld [vmem:[%s16869_s22 + $0x268] sm:$0xff]  ;;  %v10027_v23 = vld [vmem:[%s16869_s22 + $0x240] sm:$0xff] }
 0x478   : > { %v2813_v50 = vmax.f32 %v16150_v53, 0.0  ;;  %v2965_v14 = vmax.f32 %v16152_v38, 0.0  ;;  %v10024_v53 = vld [vmem:[%s16869_s22 + $0x230] sm:$0xff]  ;;  %v10030_v38 = vld [vmem:[%s16869_s22 + $0x258] sm:$0xff] }
 0x479   : > { %v18455_v59 = vmax.f32 %v2812_v6, %v2964_v40  ;;  %v10019_v40 = vld [vmem:[%s16869_s22 + $0x210] sm:$0xff]  ;;  %v10035_v6 = vld [vmem:[%s16869_s22 + $0x278] sm:$0xff] }
 0x47a   : > { %v18457_v7 = vmax.f32 %v2813_v50, %v2965_v14  ;;  %12601 = vmatpush1.bf16.msra.mxu0 %v17247_v44  ;;  %12721 = vmatpush1.bf16.msra.mxu1 %v17247_v44  ;;  %v22741_v50 = vld [vmem:[#allocation5_spill] sm:$0xff]  ;;  %v22742_v14 = vld [vmem:[#allocation6_spill] sm:$0xff] }
 0x47b   : > { %22739 = vst [vmem:[#allocation26_spill] sm:$0xff] %v18455_v59  ;;  %2970 = vrot.lane.b32.xlu1 %v18455_v59, %s16407_s23  ;;  %12603 = vmatprep.subr.bf16.mxu0 %v17251_v46 }
 0x47c   : > { %22740 = vst [vmem:[#allocation27_spill] sm:$0xff] %v18457_v7  ;;  %2972 = vrot.lane.b32.xlu0 %v18457_v7, %s16407_s23  ;;  %12723 = vmatprep.subr.bf16.mxu1 %v17251_v46 }
 0x47e   : > { %12605 = vmatpush1.bf16.msra.mxu0 %v17267_v5  ;;  %12725 = vmatpush1.bf16.msra.mxu1 %v17267_v5 }
 0x47f   : > { %12607 = vmatprep.subr.bf16.mxu0 %v17271_v12  ;;  %12727 = vmatprep.subr.bf16.mxu1 %v17271_v12 }
 0x482   : > { %12609 = vmatpush1.bf16.msra.mxu0 %v17287_v33  ;;  %12729 = vmatpush1.bf16.msra.mxu1 %v17287_v33 }
 0x483   : > { %12611 = vmatprep.subr.bf16.mxu0 %v22660_v32  ;;  %12731 = vmatprep.subr.bf16.mxu1 %v22660_v32 }
 0x486   : > { %12613 = vmatpush1.bf16.msra.mxu0 %v17307_v60  ;;  %12733 = vmatpush1.bf16.msra.mxu1 %v17307_v60 }
 0x487   : > { %12615 = vmatprep.subr.bf16.mxu0 %v17311_v17  ;;  %12735 = vmatprep.subr.bf16.mxu1 %v17311_v17 }
 0x48a   : > { %12617 = vmatpush1.bf16.msra.mxu0 %v22661_v43  ;;  %12737 = vmatpush1.bf16.msra.mxu1 %v22661_v43 }
 0x48b   : > { %12619 = vmatprep.subr.bf16.mxu0 %v17331_v58  ;;  %12739 = vmatprep.subr.bf16.mxu1 %v17331_v58 }
 0x48e   : > { %12621 = vmatpush1.bf16.msra.mxu0 %v17341_v20  ;;  %12741 = vmatpush1.bf16.msra.mxu1 %v17341_v20 }
 0x48f   : > { %12743 = vmatprep.subr.bf16.mxu0 %v16745_v51  ;;  %12863 = vmatprep.subr.bf16.mxu1 %v16745_v51 }
 0x491   : > { %3440 = vmatmul.mubr.f32.vlgmr.msra.gmra.mrb[16].mxu0 %v10019_v40  ;;  %3592 = vmatmul.mubr.f32.vlgmr.msra.gmra.mrb[16].mxu1 %v10024_v53  ;;  %v22743_v40 = vld [vmem:[#allocation7_spill] sm:$0xff]  ;;  %v22744_v53 = vld [vmem:[#allocation8_spill] sm:$0xff] }
 0x492   : > { %12745 = vmatpush1.bf16.msra.mxu0 %v16756_v55  ;;  %12865 = vmatpush1.bf16.msra.mxu1 %v16756_v55 }
 0x493   : > { %12747 = vmatprep.subr.bf16.mxu0 %v16758_v56  ;;  %12867 = vmatprep.subr.bf16.mxu1 %v16758_v56 }
 0x494   : > { %3685 = vmatprep.mubr.f32.mxu0 %v10028_v28  ;;  %3837 = vmatprep.mubr.f32.mxu1 %v10033_v63  ;;  %v22745_v28 = vld [vmem:[#allocation9_spill] sm:$0xff]  ;;  %v22746_v63 = vld [vmem:[#allocation10_spill] sm:$0xff] }
 0x496   : > { %12749 = vmatpush1.bf16.msra.mxu0 %v16776_v61  ;;  %12869 = vmatpush1.bf16.msra.mxu1 %v16776_v61 }
 0x497   : > { %12751 = vmatprep.subr.bf16.mxu0 %v16780_v62  ;;  %12871 = vmatprep.subr.bf16.mxu1 %v16780_v62 }
 0x49a   : > { %12753 = vmatpush1.bf16.msra.mxu0 %v16796_v3  ;;  %12873 = vmatpush1.bf16.msra.mxu1 %v16796_v3 }
 0x49b   : > { %12755 = vmatprep.subr.bf16.mxu0 %v16800_v4  ;;  %12875 = vmatprep.subr.bf16.mxu1 %v16800_v4 }
 0x49e   : > { %12757 = vmatpush1.bf16.msra.mxu0 %v16817_v9  ;;  %12877 = vmatpush1.bf16.msra.mxu1 %v16817_v9 }
 0x49f   : > { %12759 = vmatprep.subr.bf16.mxu0 %v16821_v10  ;;  %12879 = vmatprep.subr.bf16.mxu1 %v16821_v10 }
 0x4a2   : > { %12761 = vmatpush1.bf16.msra.mxu0 %v16837_v15  ;;  %12881 = vmatpush1.bf16.msra.mxu1 %v16837_v15 }
 0x4a3   : > { %12763 = vmatprep.subr.bf16.mxu0 %v16841_v16  ;;  %12883 = vmatprep.subr.bf16.mxu1 %v16841_v16 }
 0x4a6   : > { %12765 = vmatpush1.bf16.msra.mxu0 %v16857_v21  ;;  %12885 = vmatpush1.bf16.msra.mxu1 %v16857_v21 }
 0x4a7   : > { %12767 = vmatprep.subr.bf16.mxu0 %v16861_v22  ;;  %12887 = vmatprep.subr.bf16.mxu1 %v16861_v22 }
 0x4aa   : > { %12769 = vmatpush1.bf16.msra.mxu0 %v16881_v29  ;;  %12889 = vmatpush1.bf16.msra.mxu1 %v16881_v29 }
 0x4ab   : > { %12771 = vmatprep.subr.bf16.mxu0 %v16885_v30  ;;  %12891 = vmatprep.subr.bf16.mxu1 %v16885_v30 }
 0x4ae   : > { %12773 = vmatpush1.bf16.msra.mxu0 %v16901_v35  ;;  %12893 = vmatpush1.bf16.msra.mxu1 %v16901_v35 }
 0x4af   : > { %12775 = vmatprep.subr.bf16.mxu0 %v16905_v36  ;;  %12895 = vmatprep.subr.bf16.mxu1 %v16905_v36 }
 0x4b2   : > { %12777 = vmatpush1.bf16.msra.mxu0 %v16921_v41  ;;  %12897 = vmatpush1.bf16.msra.mxu1 %v16921_v41 }
 0x4b3   : > { %12779 = vmatprep.subr.bf16.mxu0 %v16925_v42  ;;  %12899 = vmatprep.subr.bf16.mxu1 %v16925_v42 }
 0x4b6   : > { %12781 = vmatpush1.bf16.msra.mxu0 %v16941_v47  ;;  %12901 = vmatpush1.bf16.msra.mxu1 %v16941_v47 }
 0x4b7   : > { %12783 = vmatprep.subr.bf16.mxu0 %v16945_v48  ;;  %12903 = vmatprep.subr.bf16.mxu1 %v16945_v48 }
 0x4ba   : > { %12785 = vmatpush1.bf16.msra.mxu0 %v16961_v54  ;;  %12905 = vmatpush1.bf16.msra.mxu1 %v16961_v54 }
 0x4bb   : > { %12787 = vmatprep.subr.bf16.mxu0 %v16965_v57  ;;  %12907 = vmatprep.subr.bf16.mxu1 %v16965_v57 }
 0x4be   : > { %12789 = vmatpush1.bf16.msra.mxu0 %v16981_v0  ;;  %12909 = vmatpush1.bf16.msra.mxu1 %v16981_v0 }
 0x4bf   : > { %12791 = vmatprep.subr.bf16.mxu0 %v16985_v1  ;;  %12911 = vmatprep.subr.bf16.mxu1 %v16985_v1 }
 0x4c2   : > { %12793 = vmatpush1.bf16.msra.mxu0 %v17001_v8  ;;  %12913 = vmatpush1.bf16.msra.mxu1 %v17001_v8 }
 0x4c3   : > { %12795 = vmatprep.subr.bf16.mxu0 %v17005_v11  ;;  %12915 = vmatprep.subr.bf16.mxu1 %v17005_v11 }
 0x4c6   : > { %12797 = vmatpush1.bf16.msra.mxu0 %v17021_v18  ;;  %12917 = vmatpush1.bf16.msra.mxu1 %v17021_v18 }
 0x4c7   : > { %12799 = vmatprep.subr.bf16.mxu0 %v17025_v19  ;;  %12919 = vmatprep.subr.bf16.mxu1 %v17025_v19 }
 0x4ca   : > { %12801 = vmatpush1.bf16.msra.mxu0 %v17041_v26  ;;  %12921 = vmatpush1.bf16.msra.mxu1 %v17041_v26 }
 0x4cb   : > { %12803 = vmatprep.subr.bf16.mxu0 %v17045_v27  ;;  %12923 = vmatprep.subr.bf16.mxu1 %v17045_v27 }
 0x4ce   : > { %12805 = vmatpush1.bf16.msra.mxu0 %v17061_v34  ;;  %12925 = vmatpush1.bf16.msra.mxu1 %v17061_v34 }
 0x4cf   : > { %12807 = vmatprep.subr.bf16.mxu0 %v17065_v37  ;;  %12927 = vmatprep.subr.bf16.mxu1 %v17065_v37 }
 0x4d1   : > { %3686 = vmatmul.mubr.f32.vlgmr.msra.gmra.mrb[18].mxu0 %v10027_v23  ;;  %3838 = vmatmul.mubr.f32.vlgmr.msra.gmra.mrb[18].mxu1 %v10032_v2  ;;  %v22747_v23 = vld [vmem:[#allocation11_spill] sm:$0xff]  ;;  %v22748_v2 = vld [vmem:[#allocation12_spill] sm:$0xff] }
 0x4d2   : > { %12809 = vmatpush1.bf16.msra.mxu0 %v17082_v45  ;;  %12929 = vmatpush1.bf16.msra.mxu1 %v17082_v45 }
 0x4d3   : > { %12811 = vmatprep.subr.bf16.mxu0 %v17087_v49  ;;  %12931 = vmatprep.subr.bf16.mxu1 %v17087_v49 }
 0x4d4   : > { %10031 = vmatprep.mubr.msk.f32.mxu0 %vm763_vm0, %v10030_v38  ;;  %10036 = vmatprep.mubr.msk.f32.mxu1 %vm763_vm0, %v10035_v6  ;;  %v22749_v38 = vld [vmem:[#allocation13_spill] sm:$0xff]  ;;  %v22750_v6 = vld [vmem:[#allocation14_spill] sm:$0xff] }
 0x4d6   : > { %12813 = vmatpush1.bf16.msra.mxu0 %v22691_v13  ;;  %12933 = vmatpush1.bf16.msra.mxu1 %v22691_v13 }
 0x4d7   : > { %12815 = vmatprep.subr.bf16.mxu0 %v22692_v25  ;;  %12935 = vmatprep.subr.bf16.mxu1 %v22692_v25 }
 0x4da   : > { %12817 = vmatpush1.bf16.msra.mxu0 %v22741_v50  ;;  %12937 = vmatpush1.bf16.msra.mxu1 %v22741_v50 }
 0x4db   : > { %12819 = vmatprep.subr.bf16.mxu0 %v22742_v14  ;;  %12939 = vmatprep.subr.bf16.mxu1 %v22742_v14 }
 0x4de   : > { %12821 = vmatpush1.bf16.msra.mxu0 %v22743_v40  ;;  %12941 = vmatpush1.bf16.msra.mxu1 %v22743_v40 }
 0x4df   : > { %12823 = vmatprep.subr.bf16.mxu0 %v22744_v53  ;;  %12943 = vmatprep.subr.bf16.mxu1 %v22744_v53 }
 0x4e2   : > { %12825 = vmatpush1.bf16.msra.mxu0 %v22745_v28  ;;  %12945 = vmatpush1.bf16.msra.mxu1 %v22745_v28 }
 0x4e3   : > { %12827 = vmatprep.subr.bf16.mxu0 %v22746_v63  ;;  %12947 = vmatprep.subr.bf16.mxu1 %v22746_v63 }
 0x4e6   : > { %12829 = vmatpush1.bf16.msra.mxu0 %v22747_v23  ;;  %12949 = vmatpush1.bf16.msra.mxu1 %v22747_v23 }
 0x4e7   : > { %12831 = vmatprep.subr.bf16.mxu0 %v22748_v2  ;;  %12951 = vmatprep.subr.bf16.mxu1 %v22748_v2 }
 0x4ea   : > { %12833 = vmatpush1.bf16.msra.mxu0 %v22749_v38  ;;  %12953 = vmatpush1.bf16.msra.mxu1 %v22749_v38 }
 0x4eb   : > { %12835 = vmatprep.subr.bf16.mxu0 %v22750_v6  ;;  %12955 = vmatprep.subr.bf16.mxu1 %v22750_v6 }
 0x4ec   : > { %v3124_v59 = vpop.f32.mrb[14].mxu0  ;;  %v3276_v7 = vpop.f32.mrb[14].mxu1 }
 0x4ed   : > { %v16153_v63 = vadd.f32 %v3124_v59, %v17586_v39  ;;  %v16155_v28 = vadd.f32 %v3276_v7, %v17586_v39  ;;  %v3126_v53 = vpop.f32.mrb[15].mxu0  ;;  %v3278_v23 = vpop.f32.mrb[15].mxu1 }
 0x4ee   : > { %v16154_v40 = vadd.f32 %v3126_v53, %v17592_v52  ;;  %v16156_v2 = vadd.f32 %v3278_v23, %v17592_v52  ;;  %12837 = vmatpush1.bf16.msra.mxu0 %v17227_v24  ;;  %12957 = vmatpush1.bf16.msra.mxu1 %v17227_v24  ;;  %v10038_v53 = vld [vmem:[%s16869_s22 + $0x288] sm:$0xff]  ;;  %v10042_v23 = vld [vmem:[%s16869_s22 + $0x2a0] sm:$0xff] }
 0x4ef   : > { %v3129_v38 = vmax.f32 %v16153_v63, 0.0  ;;  %v3281_v14 = vmax.f32 %v16155_v28, 0.0  ;;  %12839 = vmatprep.subr.bf16.mxu0 %v17231_v31  ;;  %12959 = vmatprep.subr.bf16.mxu1 %v17231_v31  ;;  %v10043_v28 = vld [vmem:[%s16869_s22 + $0x2a8] sm:$0xff]  ;;  %v10037_v63 = vld [vmem:[%s16869_s22 + $0x280] sm:$0xff] }
 0x4f0   : > { %v3130_v6 = vmax.f32 %v16154_v40, 0.0  ;;  %v3282_v59 = vmax.f32 %v16156_v2, 0.0  ;;  %v10034_v40 = vld [vmem:[%s16869_s22 + $0x270] sm:$0xff]  ;;  %v10040_v2 = vld [vmem:[%s16869_s22 + $0x298] sm:$0xff] }
 0x4f1   : > { %v18597_v50 = vmax.f32 %v3129_v38, %v3281_v14  ;;  %v10029_v14 = vld [vmem:[%s16869_s22 + $0x250] sm:$0xff]  ;;  %v10045_v38 = vld [vmem:[%s16869_s22 + $0x2b8] sm:$0xff] }
 0x4f2   : > { %v18599_v7 = vmax.f32 %v3130_v6, %v3282_v59  ;;  %12841 = vmatpush1.bf16.msra.mxu0 %v17247_v44  ;;  %12961 = vmatpush1.bf16.msra.mxu1 %v17247_v44  ;;  %v22753_v6 = vld [vmem:[#allocation5_spill] sm:$0xff]  ;;  %v22754_v59 = vld [vmem:[#allocation6_spill] sm:$0xff] }
 0x4f3   : > { %22751 = vst [vmem:[#allocation28_spill] sm:$0xff] %v18597_v50  ;;  %3287 = vrot.lane.b32.xlu1 %v18597_v50, %s16407_s23  ;;  %12843 = vmatprep.subr.bf16.mxu0 %v17251_v46 }
 0x4f4   : > { %22752 = vst [vmem:[#allocation29_spill] sm:$0xff] %v18599_v7  ;;  %3289 = vrot.lane.b32.xlu0 %v18599_v7, %s16407_s23  ;;  %12963 = vmatprep.subr.bf16.mxu1 %v17251_v46 }
 0x4f6   : > { %12845 = vmatpush1.bf16.msra.mxu0 %v17267_v5  ;;  %12965 = vmatpush1.bf16.msra.mxu1 %v17267_v5 }
 0x4f7   : > { %12847 = vmatprep.subr.bf16.mxu0 %v17271_v12  ;;  %12967 = vmatprep.subr.bf16.mxu1 %v17271_v12 }
 0x4fa   : > { %12849 = vmatpush1.bf16.msra.mxu0 %v17287_v33  ;;  %12969 = vmatpush1.bf16.msra.mxu1 %v17287_v33 }
 0x4fb   : > { %12851 = vmatprep.subr.bf16.mxu0 %v22660_v32  ;;  %12971 = vmatprep.subr.bf16.mxu1 %v22660_v32 }
 0x4fe   : > { %12853 = vmatpush1.bf16.msra.mxu0 %v17307_v60  ;;  %12973 = vmatpush1.bf16.msra.mxu1 %v17307_v60 }
 0x4ff   : > { %12855 = vmatprep.subr.bf16.mxu0 %v17311_v17  ;;  %12975 = vmatprep.subr.bf16.mxu1 %v17311_v17 }
 0x502   : > { %12857 = vmatpush1.bf16.msra.mxu0 %v22661_v43  ;;  %12977 = vmatpush1.bf16.msra.mxu1 %v22661_v43 }
 0x503   : > { %12859 = vmatprep.subr.bf16.mxu0 %v17331_v58  ;;  %12979 = vmatprep.subr.bf16.mxu1 %v17331_v58 }
 0x506   : > { %12861 = vmatpush1.bf16.msra.mxu0 %v17341_v20  ;;  %12981 = vmatpush1.bf16.msra.mxu1 %v17341_v20 }
 0x507   : > { %12983 = vmatprep.subr.bf16.mxu0 %v16745_v51  ;;  %13103 = vmatprep.subr.bf16.mxu1 %v16745_v51 }
 0x509   : > { %3757 = vmatmul.mubr.f32.vlgmr.msra.gmra.mrb[18].mxu0 %v10029_v14  ;;  %3909 = vmatmul.mubr.f32.vlgmr.msra.gmra.mrb[18].mxu1 %v10034_v40  ;;  %v22755_v14 = vld [vmem:[#allocation7_spill] sm:$0xff]  ;;  %v22756_v40 = vld [vmem:[#allocation8_spill] sm:$0xff] }
 0x50a   : > { %12985 = vmatpush1.bf16.msra.mxu0 %v16756_v55  ;;  %13105 = vmatpush1.bf16.msra.mxu1 %v16756_v55 }
 0x50b   : > { %12987 = vmatprep.subr.bf16.mxu0 %v16758_v56  ;;  %13107 = vmatprep.subr.bf16.mxu1 %v16758_v56 }
 0x50c   : > { %4002 = vmatprep.mubr.f32.mxu0 %v10038_v53  ;;  %4154 = vmatprep.mubr.f32.mxu1 %v10043_v28  ;;  %v22757_v53 = vld [vmem:[#allocation9_spill] sm:$0xff]  ;;  %v22758_v28 = vld [vmem:[#allocation10_spill] sm:$0xff] }
 0x50e   : > { %12989 = vmatpush1.bf16.msra.mxu0 %v16776_v61  ;;  %13109 = vmatpush1.bf16.msra.mxu1 %v16776_v61 }
 0x50f   : > { %12991 = vmatprep.subr.bf16.mxu0 %v16780_v62  ;;  %13111 = vmatprep.subr.bf16.mxu1 %v16780_v62 }
 0x512   : > { %12993 = vmatpush1.bf16.msra.mxu0 %v16796_v3  ;;  %13113 = vmatpush1.bf16.msra.mxu1 %v16796_v3 }
 0x513   : > { %12995 = vmatprep.subr.bf16.mxu0 %v16800_v4  ;;  %13115 = vmatprep.subr.bf16.mxu1 %v16800_v4 }
 0x516   : > { %12997 = vmatpush1.bf16.msra.mxu0 %v16817_v9  ;;  %13117 = vmatpush1.bf16.msra.mxu1 %v16817_v9 }
 0x517   : > { %12999 = vmatprep.subr.bf16.mxu0 %v16821_v10  ;;  %13119 = vmatprep.subr.bf16.mxu1 %v16821_v10 }
 0x51a   : > { %13001 = vmatpush1.bf16.msra.mxu0 %v16837_v15  ;;  %13121 = vmatpush1.bf16.msra.mxu1 %v16837_v15 }
 0x51b   : > { %13003 = vmatprep.subr.bf16.mxu0 %v16841_v16  ;;  %13123 = vmatprep.subr.bf16.mxu1 %v16841_v16 }
 0x51e   : > { %13005 = vmatpush1.bf16.msra.mxu0 %v16857_v21  ;;  %13125 = vmatpush1.bf16.msra.mxu1 %v16857_v21 }
 0x51f   : > { %13007 = vmatprep.subr.bf16.mxu0 %v16861_v22  ;;  %13127 = vmatprep.subr.bf16.mxu1 %v16861_v22 }
 0x522   : > { %13009 = vmatpush1.bf16.msra.mxu0 %v16881_v29  ;;  %13129 = vmatpush1.bf16.msra.mxu1 %v16881_v29 }
 0x523   : > { %13011 = vmatprep.subr.bf16.mxu0 %v16885_v30  ;;  %13131 = vmatprep.subr.bf16.mxu1 %v16885_v30 }
 0x526   : > { %13013 = vmatpush1.bf16.msra.mxu0 %v16901_v35  ;;  %13133 = vmatpush1.bf16.msra.mxu1 %v16901_v35 }
 0x527   : > { %13015 = vmatprep.subr.bf16.mxu0 %v16905_v36  ;;  %13135 = vmatprep.subr.bf16.mxu1 %v16905_v36 }
 0x52a   : > { %13017 = vmatpush1.bf16.msra.mxu0 %v16921_v41  ;;  %13137 = vmatpush1.bf16.msra.mxu1 %v16921_v41 }
 0x52b   : > { %13019 = vmatprep.subr.bf16.mxu0 %v16925_v42  ;;  %13139 = vmatprep.subr.bf16.mxu1 %v16925_v42 }
 0x52e   : > { %13021 = vmatpush1.bf16.msra.mxu0 %v16941_v47  ;;  %13141 = vmatpush1.bf16.msra.mxu1 %v16941_v47 }
 0x52f   : > { %13023 = vmatprep.subr.bf16.mxu0 %v16945_v48  ;;  %13143 = vmatprep.subr.bf16.mxu1 %v16945_v48 }
 0x532   : > { %13025 = vmatpush1.bf16.msra.mxu0 %v16961_v54  ;;  %13145 = vmatpush1.bf16.msra.mxu1 %v16961_v54 }
 0x533   : > { %13027 = vmatprep.subr.bf16.mxu0 %v16965_v57  ;;  %13147 = vmatprep.subr.bf16.mxu1 %v16965_v57 }
 0x536   : > { %13029 = vmatpush1.bf16.msra.mxu0 %v16981_v0  ;;  %13149 = vmatpush1.bf16.msra.mxu1 %v16981_v0 }
 0x537   : > { %13031 = vmatprep.subr.bf16.mxu0 %v16985_v1  ;;  %13151 = vmatprep.subr.bf16.mxu1 %v16985_v1 }
 0x53a   : > { %13033 = vmatpush1.bf16.msra.mxu0 %v17001_v8  ;;  %13153 = vmatpush1.bf16.msra.mxu1 %v17001_v8 }
 0x53b   : > { %13035 = vmatprep.subr.bf16.mxu0 %v17005_v11  ;;  %13155 = vmatprep.subr.bf16.mxu1 %v17005_v11 }
 0x53e   : > { %13037 = vmatpush1.bf16.msra.mxu0 %v17021_v18  ;;  %13157 = vmatpush1.bf16.msra.mxu1 %v17021_v18 }
 0x53f   : > { %13039 = vmatprep.subr.bf16.mxu0 %v17025_v19  ;;  %13159 = vmatprep.subr.bf16.mxu1 %v17025_v19 }
 0x542   : > { %13041 = vmatpush1.bf16.msra.mxu0 %v17041_v26  ;;  %13161 = vmatpush1.bf16.msra.mxu1 %v17041_v26 }
 0x543   : > { %13043 = vmatprep.subr.bf16.mxu0 %v17045_v27  ;;  %13163 = vmatprep.subr.bf16.mxu1 %v17045_v27 }
 0x546   : > { %13045 = vmatpush1.bf16.msra.mxu0 %v17061_v34  ;;  %13165 = vmatpush1.bf16.msra.mxu1 %v17061_v34 }
 0x547   : > { %13047 = vmatprep.subr.bf16.mxu0 %v17065_v37  ;;  %13167 = vmatprep.subr.bf16.mxu1 %v17065_v37 }
 0x549   : > { %4003 = vmatmul.mubr.f32.vlgmr.msra.gmra.mrb[20].mxu0 %v10037_v63  ;;  %4155 = vmatmul.mubr.f32.vlgmr.msra.gmra.mrb[20].mxu1 %v10042_v23  ;;  %v22759_v63 = vld [vmem:[#allocation11_spill] sm:$0xff]  ;;  %v22760_v23 = vld [vmem:[#allocation12_spill] sm:$0xff] }
 0x54a   : > { %13049 = vmatpush1.bf16.msra.mxu0 %v17082_v45  ;;  %13169 = vmatpush1.bf16.msra.mxu1 %v17082_v45 }
 0x54b   : > { %13051 = vmatprep.subr.bf16.mxu0 %v17087_v49  ;;  %13171 = vmatprep.subr.bf16.mxu1 %v17087_v49 }
 0x54c   : > { %10041 = vmatprep.mubr.msk.f32.mxu0 %vm763_vm0, %v10040_v2  ;;  %10046 = vmatprep.mubr.msk.f32.mxu1 %vm763_vm0, %v10045_v38  ;;  %v22761_v2 = vld [vmem:[#allocation13_spill] sm:$0xff]  ;;  %v22762_v38 = vld [vmem:[#allocation14_spill] sm:$0xff] }
 0x54e   : > { %13053 = vmatpush1.bf16.msra.mxu0 %v22691_v13  ;;  %13173 = vmatpush1.bf16.msra.mxu1 %v22691_v13 }
 0x54f   : > { %13055 = vmatprep.subr.bf16.mxu0 %v22692_v25  ;;  %13175 = vmatprep.subr.bf16.mxu1 %v22692_v25 }
 0x552   : > { %13057 = vmatpush1.bf16.msra.mxu0 %v22753_v6  ;;  %13177 = vmatpush1.bf16.msra.mxu1 %v22753_v6 }
 0x553   : > { %13059 = vmatprep.subr.bf16.mxu0 %v22754_v59  ;;  %13179 = vmatprep.subr.bf16.mxu1 %v22754_v59 }
 0x556   : > { %13061 = vmatpush1.bf16.msra.mxu0 %v22755_v14  ;;  %13181 = vmatpush1.bf16.msra.mxu1 %v22755_v14 }
 0x557   : > { %13063 = vmatprep.subr.bf16.mxu0 %v22756_v40  ;;  %13183 = vmatprep.subr.bf16.mxu1 %v22756_v40 }
 0x55a   : > { %13065 = vmatpush1.bf16.msra.mxu0 %v22757_v53  ;;  %13185 = vmatpush1.bf16.msra.mxu1 %v22757_v53 }
 0x55b   : > { %13067 = vmatprep.subr.bf16.mxu0 %v22758_v28  ;;  %13187 = vmatprep.subr.bf16.mxu1 %v22758_v28 }
 0x55e   : > { %13069 = vmatpush1.bf16.msra.mxu0 %v22759_v63  ;;  %13189 = vmatpush1.bf16.msra.mxu1 %v22759_v63 }
 0x55f   : > { %13071 = vmatprep.subr.bf16.mxu0 %v22760_v23  ;;  %13191 = vmatprep.subr.bf16.mxu1 %v22760_v23 }
 0x562   : > { %13073 = vmatpush1.bf16.msra.mxu0 %v22761_v2  ;;  %13193 = vmatpush1.bf16.msra.mxu1 %v22761_v2 }
 0x563   : > { %13075 = vmatprep.subr.bf16.mxu0 %v22762_v38  ;;  %13195 = vmatprep.subr.bf16.mxu1 %v22762_v38 }
 0x564   : > { %v3441_v50 = vpop.f32.mrb[16].mxu0  ;;  %v3593_v7 = vpop.f32.mrb[16].mxu1 }
 0x565   : > { %v16157_v28 = vadd.f32 %v3441_v50, %v17586_v39  ;;  %v16159_v53 = vadd.f32 %v3593_v7, %v17586_v39  ;;  %v3443_v40 = vpop.f32.mrb[17].mxu0  ;;  %v3595_v63 = vpop.f32.mrb[17].mxu1 }
 0x566   : > { %v16158_v14 = vadd.f32 %v3443_v40, %v17592_v52  ;;  %v16160_v23 = vadd.f32 %v3595_v63, %v17592_v52  ;;  %13077 = vmatpush1.bf16.msra.mxu0 %v17227_v24  ;;  %13197 = vmatpush1.bf16.msra.mxu1 %v17227_v24  ;;  %v10048_v40 = vld [vmem:[%s16869_s22 + $0x2c8] sm:$0xff]  ;;  %v10052_v63 = vld [vmem:[%s16869_s22 + $0x2e0] sm:$0xff] }
 0x567   : > { %v3446_v2 = vmax.f32 %v16157_v28, 0.0  ;;  %v3598_v59 = vmax.f32 %v16159_v53, 0.0  ;;  %13079 = vmatprep.subr.bf16.mxu0 %v17231_v31  ;;  %13199 = vmatprep.subr.bf16.mxu1 %v17231_v31  ;;  %v10053_v53 = vld [vmem:[%s16869_s22 + $0x2e8] sm:$0xff]  ;;  %v10047_v28 = vld [vmem:[%s16869_s22 + $0x2c0] sm:$0xff] }
 0x568   : > { %v3447_v38 = vmax.f32 %v16158_v14, 0.0  ;;  %v3599_v50 = vmax.f32 %v16160_v23, 0.0  ;;  %v10044_v14 = vld [vmem:[%s16869_s22 + $0x2b0] sm:$0xff]  ;;  %v10050_v23 = vld [vmem:[%s16869_s22 + $0x2d8] sm:$0xff] }
 0x569   : > { %v18739_v6 = vmax.f32 %v3446_v2, %v3598_v59  ;;  %v10039_v59 = vld [vmem:[%s16869_s22 + $0x290] sm:$0xff]  ;;  %v10055_v2 = vld [vmem:[%s16869_s22 + $0x2f8] sm:$0xff] }
 0x56a   : > { %v18741_v7 = vmax.f32 %v3447_v38, %v3599_v50  ;;  %13081 = vmatpush1.bf16.msra.mxu0 %v17247_v44  ;;  %13201 = vmatpush1.bf16.msra.mxu1 %v17247_v44  ;;  %v22765_v38 = vld [vmem:[#allocation5_spill] sm:$0xff]  ;;  %v22766_v50 = vld [vmem:[#allocation6_spill] sm:$0xff] }
 0x56b   : > { %22763 = vst [vmem:[#allocation30_spill] sm:$0xff] %v18739_v6  ;;  %3604 = vrot.lane.b32.xlu1 %v18739_v6, %s16407_s23  ;;  %13083 = vmatprep.subr.bf16.mxu0 %v17251_v46 }
 0x56c   : > { %22764 = vst [vmem:[#allocation31_spill] sm:$0xff] %v18741_v7  ;;  %3606 = vrot.lane.b32.xlu0 %v18741_v7, %s16407_s23  ;;  %13203 = vmatprep.subr.bf16.mxu1 %v17251_v46 }
 0x56e   : > { %13085 = vmatpush1.bf16.msra.mxu0 %v17267_v5  ;;  %13205 = vmatpush1.bf16.msra.mxu1 %v17267_v5 }
 0x56f   : > { %13087 = vmatprep.subr.bf16.mxu0 %v17271_v12  ;;  %13207 = vmatprep.subr.bf16.mxu1 %v17271_v12 }
 0x572   : > { %13089 = vmatpush1.bf16.msra.mxu0 %v17287_v33  ;;  %13209 = vmatpush1.bf16.msra.mxu1 %v17287_v33 }
 0x573   : > { %13091 = vmatprep.subr.bf16.mxu0 %v22660_v32  ;;  %13211 = vmatprep.subr.bf16.mxu1 %v22660_v32 }
 0x576   : > { %13093 = vmatpush1.bf16.msra.mxu0 %v17307_v60  ;;  %13213 = vmatpush1.bf16.msra.mxu1 %v17307_v60 }
 0x577   : > { %13095 = vmatprep.subr.bf16.mxu0 %v17311_v17  ;;  %13215 = vmatprep.subr.bf16.mxu1 %v17311_v17 }
 0x57a   : > { %13097 = vmatpush1.bf16.msra.mxu0 %v22661_v43  ;;  %13217 = vmatpush1.bf16.msra.mxu1 %v22661_v43 }
 0x57b   : > { %13099 = vmatprep.subr.bf16.mxu0 %v17331_v58  ;;  %13219 = vmatprep.subr.bf16.mxu1 %v17331_v58 }
 0x57e   : > { %13101 = vmatpush1.bf16.msra.mxu0 %v17341_v20  ;;  %13221 = vmatpush1.bf16.msra.mxu1 %v17341_v20 }
 0x57f   : > { %13223 = vmatprep.subr.bf16.mxu0 %v16745_v51  ;;  %13343 = vmatprep.subr.bf16.mxu1 %v16745_v51 }
 0x581   : > { %4074 = vmatmul.mubr.f32.vlgmr.msra.gmra.mrb[20].mxu0 %v10039_v59  ;;  %4226 = vmatmul.mubr.f32.vlgmr.msra.gmra.mrb[20].mxu1 %v10044_v14  ;;  %v22767_v59 = vld [vmem:[#allocation7_spill] sm:$0xff]  ;;  %v22768_v14 = vld [vmem:[#allocation8_spill] sm:$0xff] }
 0x582   : > { %13225 = vmatpush1.bf16.msra.mxu0 %v16756_v55  ;;  %13345 = vmatpush1.bf16.msra.mxu1 %v16756_v55 }
 0x583   : > { %13227 = vmatprep.subr.bf16.mxu0 %v16758_v56  ;;  %13347 = vmatprep.subr.bf16.mxu1 %v16758_v56 }
 0x584   : > { %4319 = vmatprep.mubr.f32.mxu0 %v10048_v40  ;;  %4471 = vmatprep.mubr.f32.mxu1 %v10053_v53  ;;  %v22769_v40 = vld [vmem:[#allocation9_spill] sm:$0xff]  ;;  %v22770_v53 = vld [vmem:[#allocation10_spill] sm:$0xff] }
 0x586   : > { %13229 = vmatpush1.bf16.msra.mxu0 %v16776_v61  ;;  %13349 = vmatpush1.bf16.msra.mxu1 %v16776_v61 }
 0x587   : > { %13231 = vmatprep.subr.bf16.mxu0 %v16780_v62  ;;  %13351 = vmatprep.subr.bf16.mxu1 %v16780_v62 }
 0x58a   : > { %13233 = vmatpush1.bf16.msra.mxu0 %v16796_v3  ;;  %13353 = vmatpush1.bf16.msra.mxu1 %v16796_v3 }
 0x58b   : > { %13235 = vmatprep.subr.bf16.mxu0 %v16800_v4  ;;  %13355 = vmatprep.subr.bf16.mxu1 %v16800_v4 }
 0x58e   : > { %13237 = vmatpush1.bf16.msra.mxu0 %v16817_v9  ;;  %13357 = vmatpush1.bf16.msra.mxu1 %v16817_v9 }
 0x58f   : > { %13239 = vmatprep.subr.bf16.mxu0 %v16821_v10  ;;  %13359 = vmatprep.subr.bf16.mxu1 %v16821_v10 }
 0x592   : > { %13241 = vmatpush1.bf16.msra.mxu0 %v16837_v15  ;;  %13361 = vmatpush1.bf16.msra.mxu1 %v16837_v15 }
 0x593   : > { %13243 = vmatprep.subr.bf16.mxu0 %v16841_v16  ;;  %13363 = vmatprep.subr.bf16.mxu1 %v16841_v16 }
 0x596   : > { %13245 = vmatpush1.bf16.msra.mxu0 %v16857_v21  ;;  %13365 = vmatpush1.bf16.msra.mxu1 %v16857_v21 }
 0x597   : > { %13247 = vmatprep.subr.bf16.mxu0 %v16861_v22  ;;  %13367 = vmatprep.subr.bf16.mxu1 %v16861_v22 }
 0x59a   : > { %13249 = vmatpush1.bf16.msra.mxu0 %v16881_v29  ;;  %13369 = vmatpush1.bf16.msra.mxu1 %v16881_v29 }
 0x59b   : > { %13251 = vmatprep.subr.bf16.mxu0 %v16885_v30  ;;  %13371 = vmatprep.subr.bf16.mxu1 %v16885_v30 }
 0x59e   : > { %13253 = vmatpush1.bf16.msra.mxu0 %v16901_v35  ;;  %13373 = vmatpush1.bf16.msra.mxu1 %v16901_v35 }
 0x59f   : > { %13255 = vmatprep.subr.bf16.mxu0 %v16905_v36  ;;  %13375 = vmatprep.subr.bf16.mxu1 %v16905_v36 }
 0x5a2   : > { %13257 = vmatpush1.bf16.msra.mxu0 %v16921_v41  ;;  %13377 = vmatpush1.bf16.msra.mxu1 %v16921_v41 }
 0x5a3   : > { %13259 = vmatprep.subr.bf16.mxu0 %v16925_v42  ;;  %13379 = vmatprep.subr.bf16.mxu1 %v16925_v42 }
 0x5a6   : > { %13261 = vmatpush1.bf16.msra.mxu0 %v16941_v47  ;;  %13381 = vmatpush1.bf16.msra.mxu1 %v16941_v47 }
 0x5a7   : > { %13263 = vmatprep.subr.bf16.mxu0 %v16945_v48  ;;  %13383 = vmatprep.subr.bf16.mxu1 %v16945_v48 }
 0x5aa   : > { %13265 = vmatpush1.bf16.msra.mxu0 %v16961_v54  ;;  %13385 = vmatpush1.bf16.msra.mxu1 %v16961_v54 }
 0x5ab   : > { %13267 = vmatprep.subr.bf16.mxu0 %v16965_v57  ;;  %13387 = vmatprep.subr.bf16.mxu1 %v16965_v57 }
 0x5ae   : > { %13269 = vmatpush1.bf16.msra.mxu0 %v16981_v0  ;;  %13389 = vmatpush1.bf16.msra.mxu1 %v16981_v0 }
 0x5af   : > { %13271 = vmatprep.subr.bf16.mxu0 %v16985_v1  ;;  %13391 = vmatprep.subr.bf16.mxu1 %v16985_v1 }
 0x5b2   : > { %13273 = vmatpush1.bf16.msra.mxu0 %v17001_v8  ;;  %13393 = vmatpush1.bf16.msra.mxu1 %v17001_v8 }
 0x5b3   : > { %13275 = vmatprep.subr.bf16.mxu0 %v17005_v11  ;;  %13395 = vmatprep.subr.bf16.mxu1 %v17005_v11 }
 0x5b6   : > { %13277 = vmatpush1.bf16.msra.mxu0 %v17021_v18  ;;  %13397 = vmatpush1.bf16.msra.mxu1 %v17021_v18 }
 0x5b7   : > { %13279 = vmatprep.subr.bf16.mxu0 %v17025_v19  ;;  %13399 = vmatprep.subr.bf16.mxu1 %v17025_v19 }
 0x5ba   : > { %13281 = vmatpush1.bf16.msra.mxu0 %v17041_v26  ;;  %13401 = vmatpush1.bf16.msra.mxu1 %v17041_v26 }
 0x5bb   : > { %13283 = vmatprep.subr.bf16.mxu0 %v17045_v27  ;;  %13403 = vmatprep.subr.bf16.mxu1 %v17045_v27 }
 0x5be   : > { %13285 = vmatpush1.bf16.msra.mxu0 %v17061_v34  ;;  %13405 = vmatpush1.bf16.msra.mxu1 %v17061_v34 }
 0x5bf   : > { %13287 = vmatprep.subr.bf16.mxu0 %v17065_v37  ;;  %13407 = vmatprep.subr.bf16.mxu1 %v17065_v37 }
 0x5c1   : > { %4320 = vmatmul.mubr.f32.vlgmr.msra.gmra.mrb[22].mxu0 %v10047_v28  ;;  %4472 = vmatmul.mubr.f32.vlgmr.msra.gmra.mrb[22].mxu1 %v10052_v63  ;;  %v22771_v28 = vld [vmem:[#allocation11_spill] sm:$0xff]  ;;  %v22772_v63 = vld [vmem:[#allocation12_spill] sm:$0xff] }
 0x5c2   : > { %13289 = vmatpush1.bf16.msra.mxu0 %v17082_v45  ;;  %13409 = vmatpush1.bf16.msra.mxu1 %v17082_v45 }
 0x5c3   : > { %13291 = vmatprep.subr.bf16.mxu0 %v17087_v49  ;;  %13411 = vmatprep.subr.bf16.mxu1 %v17087_v49 }
 0x5c4   : > { %10051 = vmatprep.mubr.msk.f32.mxu0 %vm763_vm0, %v10050_v23  ;;  %10056 = vmatprep.mubr.msk.f32.mxu1 %vm763_vm0, %v10055_v2  ;;  %v22773_v23 = vld [vmem:[#allocation13_spill] sm:$0xff]  ;;  %v22774_v2 = vld [vmem:[#allocation14_spill] sm:$0xff] }
 0x5c6   : > { %13293 = vmatpush1.bf16.msra.mxu0 %v22691_v13  ;;  %13413 = vmatpush1.bf16.msra.mxu1 %v22691_v13 }
 0x5c7   : > { %13295 = vmatprep.subr.bf16.mxu0 %v22692_v25  ;;  %13415 = vmatprep.subr.bf16.mxu1 %v22692_v25 }
 0x5ca   : > { %13297 = vmatpush1.bf16.msra.mxu0 %v22765_v38  ;;  %13417 = vmatpush1.bf16.msra.mxu1 %v22765_v38 }
 0x5cb   : > { %13299 = vmatprep.subr.bf16.mxu0 %v22766_v50  ;;  %13419 = vmatprep.subr.bf16.mxu1 %v22766_v50 }
 0x5ce   : > { %13301 = vmatpush1.bf16.msra.mxu0 %v22767_v59  ;;  %13421 = vmatpush1.bf16.msra.mxu1 %v22767_v59 }
 0x5cf   : > { %13303 = vmatprep.subr.bf16.mxu0 %v22768_v14  ;;  %13423 = vmatprep.subr.bf16.mxu1 %v22768_v14 }
 0x5d2   : > { %13305 = vmatpush1.bf16.msra.mxu0 %v22769_v40  ;;  %13425 = vmatpush1.bf16.msra.mxu1 %v22769_v40 }
 0x5d3   : > { %13307 = vmatprep.subr.bf16.mxu0 %v22770_v53  ;;  %13427 = vmatprep.subr.bf16.mxu1 %v22770_v53 }
 0x5d6   : > { %13309 = vmatpush1.bf16.msra.mxu0 %v22771_v28  ;;  %13429 = vmatpush1.bf16.msra.mxu1 %v22771_v28 }
 0x5d7   : > { %13311 = vmatprep.subr.bf16.mxu0 %v22772_v63  ;;  %13431 = vmatprep.subr.bf16.mxu1 %v22772_v63 }
 0x5da   : > { %13313 = vmatpush1.bf16.msra.mxu0 %v22773_v23  ;;  %13433 = vmatpush1.bf16.msra.mxu1 %v22773_v23 }
 0x5db   : > { %13315 = vmatprep.subr.bf16.mxu0 %v22774_v2  ;;  %13435 = vmatprep.subr.bf16.mxu1 %v22774_v2 }
 0x5dc   : > { %v3758_v6 = vpop.f32.mrb[18].mxu0  ;;  %v3910_v7 = vpop.f32.mrb[18].mxu1 }
 0x5dd   : > { %v16161_v53 = vadd.f32 %v3758_v6, %v17586_v39  ;;  %v16163_v40 = vadd.f32 %v3910_v7, %v17586_v39  ;;  %v3760_v14 = vpop.f32.mrb[19].mxu0  ;;  %v3912_v28 = vpop.f32.mrb[19].mxu1 }
 0x5de   : > { %v16162_v59 = vadd.f32 %v3760_v14, %v17592_v52  ;;  %v16164_v63 = vadd.f32 %v3912_v28, %v17592_v52  ;;  %13317 = vmatpush1.bf16.msra.mxu0 %v17227_v24  ;;  %13437 = vmatpush1.bf16.msra.mxu1 %v17227_v24  ;;  %v10058_v14 = vld [vmem:[%s16869_s22 + $0x308] sm:$0xff]  ;;  %v10062_v28 = vld [vmem:[%s16869_s22 + $0x320] sm:$0xff] }
 0x5df   : > { %v3763_v23 = vmax.f32 %v16161_v53, 0.0  ;;  %v3915_v50 = vmax.f32 %v16163_v40, 0.0  ;;  %13319 = vmatprep.subr.bf16.mxu0 %v17231_v31  ;;  %13439 = vmatprep.subr.bf16.mxu1 %v17231_v31  ;;  %v10063_v40 = vld [vmem:[%s16869_s22 + $0x328] sm:$0xff]  ;;  %v10057_v53 = vld [vmem:[%s16869_s22 + $0x300] sm:$0xff] }
 0x5e0   : > { %v3764_v2 = vmax.f32 %v16162_v59, 0.0  ;;  %v3916_v6 = vmax.f32 %v16164_v63, 0.0  ;;  %v10054_v59 = vld [vmem:[%s16869_s22 + $0x2f0] sm:$0xff]  ;;  %v10060_v63 = vld [vmem:[%s16869_s22 + $0x318] sm:$0xff] }
 0x5e1   : > { %v18881_v38 = vmax.f32 %v3763_v23, %v3915_v50  ;;  %v10049_v50 = vld [vmem:[%s16869_s22 + $0x2d0] sm:$0xff]  ;;  %v10065_v23 = vld [vmem:[%s16869_s22 + $0x338] sm:$0xff] }
 0x5e2   : > { %v18883_v7 = vmax.f32 %v3764_v2, %v3916_v6  ;;  %13321 = vmatpush1.bf16.msra.mxu0 %v17247_v44  ;;  %13441 = vmatpush1.bf16.msra.mxu1 %v17247_v44  ;;  %v22777_v2 = vld [vmem:[#allocation5_spill] sm:$0xff]  ;;  %v22778_v6 = vld [vmem:[#allocation6_spill] sm:$0xff] }
 0x5e3   : > { %22775 = vst [vmem:[#allocation32_spill] sm:$0xff] %v18881_v38  ;;  %3921 = vrot.lane.b32.xlu1 %v18881_v38, %s16407_s23  ;;  %13323 = vmatprep.subr.bf16.mxu0 %v17251_v46 }
 0x5e4   : > { %22776 = vst [vmem:[#allocation33_spill] sm:$0xff] %v18883_v7  ;;  %3923 = vrot.lane.b32.xlu0 %v18883_v7, %s16407_s23  ;;  %13443 = vmatprep.subr.bf16.mxu1 %v17251_v46 }
 0x5e6   : > { %13325 = vmatpush1.bf16.msra.mxu0 %v17267_v5  ;;  %13445 = vmatpush1.bf16.msra.mxu1 %v17267_v5 }
 0x5e7   : > { %13327 = vmatprep.subr.bf16.mxu0 %v17271_v12  ;;  %13447 = vmatprep.subr.bf16.mxu1 %v17271_v12 }
 0x5ea   : > { %13329 = vmatpush1.bf16.msra.mxu0 %v17287_v33  ;;  %13449 = vmatpush1.bf16.msra.mxu1 %v17287_v33 }
 0x5eb   : > { %13331 = vmatprep.subr.bf16.mxu0 %v22660_v32  ;;  %13451 = vmatprep.subr.bf16.mxu1 %v22660_v32 }
 0x5ee   : > { %13333 = vmatpush1.bf16.msra.mxu0 %v17307_v60  ;;  %13453 = vmatpush1.bf16.msra.mxu1 %v17307_v60 }
 0x5ef   : > { %13335 = vmatprep.subr.bf16.mxu0 %v17311_v17  ;;  %13455 = vmatprep.subr.bf16.mxu1 %v17311_v17 }
 0x5f2   : > { %13337 = vmatpush1.bf16.msra.mxu0 %v22661_v43  ;;  %13457 = vmatpush1.bf16.msra.mxu1 %v22661_v43 }
 0x5f3   : > { %13339 = vmatprep.subr.bf16.mxu0 %v17331_v58  ;;  %13459 = vmatprep.subr.bf16.mxu1 %v17331_v58 }
 0x5f6   : > { %13341 = vmatpush1.bf16.msra.mxu0 %v17341_v20  ;;  %13461 = vmatpush1.bf16.msra.mxu1 %v17341_v20 }
 0x5f7   : > { %13463 = vmatprep.subr.bf16.mxu0 %v16745_v51  ;;  %13583 = vmatprep.subr.bf16.mxu1 %v16745_v51 }
 0x5f9   : > { %4391 = vmatmul.mubr.f32.vlgmr.msra.gmra.mrb[22].mxu0 %v10049_v50  ;;  %4543 = vmatmul.mubr.f32.vlgmr.msra.gmra.mrb[22].mxu1 %v10054_v59  ;;  %v22779_v50 = vld [vmem:[#allocation7_spill] sm:$0xff]  ;;  %v22780_v59 = vld [vmem:[#allocation8_spill] sm:$0xff] }
 0x5fa   : > { %13465 = vmatpush1.bf16.msra.mxu0 %v16756_v55  ;;  %13585 = vmatpush1.bf16.msra.mxu1 %v16756_v55 }
 0x5fb   : > { %13467 = vmatprep.subr.bf16.mxu0 %v16758_v56  ;;  %13587 = vmatprep.subr.bf16.mxu1 %v16758_v56 }
 0x5fc   : > { %4636 = vmatprep.mubr.f32.mxu0 %v10058_v14  ;;  %4788 = vmatprep.mubr.f32.mxu1 %v10063_v40  ;;  %v22781_v14 = vld [vmem:[#allocation9_spill] sm:$0xff]  ;;  %v22782_v40 = vld [vmem:[#allocation10_spill] sm:$0xff] }
 0x5fe   : > { %13469 = vmatpush1.bf16.msra.mxu0 %v16776_v61  ;;  %13589 = vmatpush1.bf16.msra.mxu1 %v16776_v61 }
 0x5ff   : > { %13471 = vmatprep.subr.bf16.mxu0 %v16780_v62  ;;  %13591 = vmatprep.subr.bf16.mxu1 %v16780_v62 }
 0x602   : > { %13473 = vmatpush1.bf16.msra.mxu0 %v16796_v3  ;;  %13593 = vmatpush1.bf16.msra.mxu1 %v16796_v3 }
 0x603   : > { %13475 = vmatprep.subr.bf16.mxu0 %v16800_v4  ;;  %13595 = vmatprep.subr.bf16.mxu1 %v16800_v4 }
 0x606   : > { %13477 = vmatpush1.bf16.msra.mxu0 %v16817_v9  ;;  %13597 = vmatpush1.bf16.msra.mxu1 %v16817_v9 }
 0x607   : > { %13479 = vmatprep.subr.bf16.mxu0 %v16821_v10  ;;  %13599 = vmatprep.subr.bf16.mxu1 %v16821_v10 }
 0x60a   : > { %13481 = vmatpush1.bf16.msra.mxu0 %v16837_v15  ;;  %13601 = vmatpush1.bf16.msra.mxu1 %v16837_v15 }
 0x60b   : > { %13483 = vmatprep.subr.bf16.mxu0 %v16841_v16  ;;  %13603 = vmatprep.subr.bf16.mxu1 %v16841_v16 }
 0x60e   : > { %13485 = vmatpush1.bf16.msra.mxu0 %v16857_v21  ;;  %13605 = vmatpush1.bf16.msra.mxu1 %v16857_v21 }
 0x60f   : > { %13487 = vmatprep.subr.bf16.mxu0 %v16861_v22  ;;  %13607 = vmatprep.subr.bf16.mxu1 %v16861_v22 }
 0x612   : > { %13489 = vmatpush1.bf16.msra.mxu0 %v16881_v29  ;;  %13609 = vmatpush1.bf16.msra.mxu1 %v16881_v29 }
 0x613   : > { %13491 = vmatprep.subr.bf16.mxu0 %v16885_v30  ;;  %13611 = vmatprep.subr.bf16.mxu1 %v16885_v30 }
 0x616   : > { %13493 = vmatpush1.bf16.msra.mxu0 %v16901_v35  ;;  %13613 = vmatpush1.bf16.msra.mxu1 %v16901_v35 }
 0x617   : > { %13495 = vmatprep.subr.bf16.mxu0 %v16905_v36  ;;  %13615 = vmatprep.subr.bf16.mxu1 %v16905_v36 }
 0x61a   : > { %13497 = vmatpush1.bf16.msra.mxu0 %v16921_v41  ;;  %13617 = vmatpush1.bf16.msra.mxu1 %v16921_v41 }
 0x61b   : > { %13499 = vmatprep.subr.bf16.mxu0 %v16925_v42  ;;  %13619 = vmatprep.subr.bf16.mxu1 %v16925_v42 }
 0x61e   : > { %13501 = vmatpush1.bf16.msra.mxu0 %v16941_v47  ;;  %13621 = vmatpush1.bf16.msra.mxu1 %v16941_v47 }
 0x61f   : > { %13503 = vmatprep.subr.bf16.mxu0 %v16945_v48  ;;  %13623 = vmatprep.subr.bf16.mxu1 %v16945_v48 }
 0x622   : > { %13505 = vmatpush1.bf16.msra.mxu0 %v16961_v54  ;;  %13625 = vmatpush1.bf16.msra.mxu1 %v16961_v54 }
 0x623   : > { %13507 = vmatprep.subr.bf16.mxu0 %v16965_v57  ;;  %13627 = vmatprep.subr.bf16.mxu1 %v16965_v57 }
 0x626   : > { %13509 = vmatpush1.bf16.msra.mxu0 %v16981_v0  ;;  %13629 = vmatpush1.bf16.msra.mxu1 %v16981_v0 }
 0x627   : > { %13511 = vmatprep.subr.bf16.mxu0 %v16985_v1  ;;  %13631 = vmatprep.subr.bf16.mxu1 %v16985_v1 }
 0x62a   : > { %13513 = vmatpush1.bf16.msra.mxu0 %v17001_v8  ;;  %13633 = vmatpush1.bf16.msra.mxu1 %v17001_v8 }
 0x62b   : > { %13515 = vmatprep.subr.bf16.mxu0 %v17005_v11  ;;  %13635 = vmatprep.subr.bf16.mxu1 %v17005_v11 }
 0x62e   : > { %13517 = vmatpush1.bf16.msra.mxu0 %v17021_v18  ;;  %13637 = vmatpush1.bf16.msra.mxu1 %v17021_v18 }
 0x62f   : > { %13519 = vmatprep.subr.bf16.mxu0 %v17025_v19  ;;  %13639 = vmatprep.subr.bf16.mxu1 %v17025_v19 }
 0x632   : > { %13521 = vmatpush1.bf16.msra.mxu0 %v17041_v26  ;;  %13641 = vmatpush1.bf16.msra.mxu1 %v17041_v26 }
 0x633   : > { %13523 = vmatprep.subr.bf16.mxu0 %v17045_v27  ;;  %13643 = vmatprep.subr.bf16.mxu1 %v17045_v27 }
 0x636   : > { %13525 = vmatpush1.bf16.msra.mxu0 %v17061_v34  ;;  %13645 = vmatpush1.bf16.msra.mxu1 %v17061_v34 }
 0x637   : > { %13527 = vmatprep.subr.bf16.mxu0 %v17065_v37  ;;  %13647 = vmatprep.subr.bf16.mxu1 %v17065_v37 }
 0x639   : > { %4637 = vmatmul.mubr.f32.vlgmr.msra.gmra.mrb[24].mxu0 %v10057_v53  ;;  %4789 = vmatmul.mubr.f32.vlgmr.msra.gmra.mrb[24].mxu1 %v10062_v28  ;;  %v22783_v53 = vld [vmem:[#allocation11_spill] sm:$0xff]  ;;  %v22784_v28 = vld [vmem:[#allocation12_spill] sm:$0xff] }
 0x63a   : > { %13529 = vmatpush1.bf16.msra.mxu0 %v17082_v45  ;;  %13649 = vmatpush1.bf16.msra.mxu1 %v17082_v45 }
 0x63b   : > { %13531 = vmatprep.subr.bf16.mxu0 %v17087_v49  ;;  %13651 = vmatprep.subr.bf16.mxu1 %v17087_v49 }
 0x63c   : > { %10061 = vmatprep.mubr.msk.f32.mxu0 %vm763_vm0, %v10060_v63  ;;  %10066 = vmatprep.mubr.msk.f32.mxu1 %vm763_vm0, %v10065_v23  ;;  %v22785_v63 = vld [vmem:[#allocation13_spill] sm:$0xff]  ;;  %v22786_v23 = vld [vmem:[#allocation14_spill] sm:$0xff] }
 0x63e   : > { %13533 = vmatpush1.bf16.msra.mxu0 %v22691_v13  ;;  %13653 = vmatpush1.bf16.msra.mxu1 %v22691_v13 }
 0x63f   : > { %13535 = vmatprep.subr.bf16.mxu0 %v22692_v25  ;;  %13655 = vmatprep.subr.bf16.mxu1 %v22692_v25 }
 0x642   : > { %13537 = vmatpush1.bf16.msra.mxu0 %v22777_v2  ;;  %13657 = vmatpush1.bf16.msra.mxu1 %v22777_v2 }
 0x643   : > { %13539 = vmatprep.subr.bf16.mxu0 %v22778_v6  ;;  %13659 = vmatprep.subr.bf16.mxu1 %v22778_v6 }
 0x646   : > { %13541 = vmatpush1.bf16.msra.mxu0 %v22779_v50  ;;  %13661 = vmatpush1.bf16.msra.mxu1 %v22779_v50 }
 0x647   : > { %13543 = vmatprep.subr.bf16.mxu0 %v22780_v59  ;;  %13663 = vmatprep.subr.bf16.mxu1 %v22780_v59 }
 0x64a   : > { %13545 = vmatpush1.bf16.msra.mxu0 %v22781_v14  ;;  %13665 = vmatpush1.bf16.msra.mxu1 %v22781_v14 }
 0x64b   : > { %13547 = vmatprep.subr.bf16.mxu0 %v22782_v40  ;;  %13667 = vmatprep.subr.bf16.mxu1 %v22782_v40 }
 0x64e   : > { %13549 = vmatpush1.bf16.msra.mxu0 %v22783_v53  ;;  %13669 = vmatpush1.bf16.msra.mxu1 %v22783_v53 }
 0x64f   : > { %13551 = vmatprep.subr.bf16.mxu0 %v22784_v28  ;;  %13671 = vmatprep.subr.bf16.mxu1 %v22784_v28 }
 0x652   : > { %13553 = vmatpush1.bf16.msra.mxu0 %v22785_v63  ;;  %13673 = vmatpush1.bf16.msra.mxu1 %v22785_v63 }
 0x653   : > { %13555 = vmatprep.subr.bf16.mxu0 %v22786_v23  ;;  %13675 = vmatprep.subr.bf16.mxu1 %v22786_v23 }
 0x654   : > { %v4075_v38 = vpop.f32.mrb[20].mxu0  ;;  %v4227_v7 = vpop.f32.mrb[20].mxu1 }
 0x655   : > { %v16165_v40 = vadd.f32 %v4075_v38, %v17586_v39  ;;  %v16167_v14 = vadd.f32 %v4227_v7, %v17586_v39  ;;  %v4077_v59 = vpop.f32.mrb[21].mxu0  ;;  %v4229_v53 = vpop.f32.mrb[21].mxu1 }
 0x656   : > { %v16166_v50 = vadd.f32 %v4077_v59, %v17592_v52  ;;  %v16168_v28 = vadd.f32 %v4229_v53, %v17592_v52  ;;  %13557 = vmatpush1.bf16.msra.mxu0 %v17227_v24  ;;  %13677 = vmatpush1.bf16.msra.mxu1 %v17227_v24  ;;  %v10068_v59 = vld [vmem:[%s16869_s22 + $0x348] sm:$0xff] }
 0x657   : > { %v4080_v63 = vmax.f32 %v16165_v40, 0.0  ;;  %v4232_v6 = vmax.f32 %v16167_v14, 0.0  ;;  %13559 = vmatprep.subr.bf16.mxu0 %v17231_v31  ;;  %13679 = vmatprep.subr.bf16.mxu1 %v17231_v31  ;;  %v10073_v14 = vld [vmem:[%s16869_s22 + $0x368] sm:$0xff] }
 0x658   : > { %v4081_v23 = vmax.f32 %v16166_v50, 0.0  ;;  %v4233_v38 = vmax.f32 %v16168_v28, 0.0  ;;  %v10064_v50 = vld [vmem:[%s16869_s22 + $0x330] sm:$0xff] }
 0x659   : > { %v19023_v2 = vmax.f32 %v4080_v63, %v4232_v6  ;;  %v10059_v6 = vld [vmem:[%s16869_s22 + $0x310] sm:$0xff]  ;;  %v10087_v63 = vld [vmem:[%s22146_s3 + $0x1a0] sm:$0xff] }
 0x65a   : > { %v19025_v7 = vmax.f32 %v4081_v23, %v4233_v38  ;;  %13561 = vmatpush1.bf16.msra.mxu0 %v17247_v44  ;;  %13681 = vmatpush1.bf16.msra.mxu1 %v17247_v44  ;;  %v10085_v28 = vld [vmem:[%s22146_s3 + $0x190] sm:$0xff]  ;;  %v10090_v23 = vld [vmem:[%s22146_s3 + $0x1b8] sm:$0xff]  ;;  %v10092_v38 = vld [vmem:[%s22146_s3 + $0x1c8] sm:$0xff] }
 0x65b   : > { %22787 = vst [vmem:[#allocation34_spill] sm:$0xff] %v19023_v2  ;;  %4238 = vrot.lane.b32.xlu1 %v19023_v2, %s16407_s23  ;;  %13563 = vmatprep.subr.bf16.mxu0 %v17251_v46 }
 0x65c   : > { %22788 = vst [vmem:[#allocation35_spill] sm:$0xff] %v19025_v7  ;;  %4240 = vrot.lane.b32.xlu0 %v19025_v7, %s16407_s23  ;;  %13683 = vmatprep.subr.bf16.mxu1 %v17251_v46 }
 0x65e   : > { %13565 = vmatpush1.bf16.msra.mxu0 %v17267_v5  ;;  %13685 = vmatpush1.bf16.msra.mxu1 %v17267_v5 }
 0x65f   : > { %13567 = vmatprep.subr.bf16.mxu0 %v17271_v12  ;;  %13687 = vmatprep.subr.bf16.mxu1 %v17271_v12 }
 0x662   : > { %13569 = vmatpush1.bf16.msra.mxu0 %v17287_v33  ;;  %13689 = vmatpush1.bf16.msra.mxu1 %v17287_v33 }
 0x663   : > { %13571 = vmatprep.subr.bf16.mxu0 %v22660_v32  ;;  %13691 = vmatprep.subr.bf16.mxu1 %v22660_v32 }
 0x666   : > { %13573 = vmatpush1.bf16.msra.mxu0 %v17307_v60  ;;  %13693 = vmatpush1.bf16.msra.mxu1 %v17307_v60 }
 0x667   : > { %13575 = vmatprep.subr.bf16.mxu0 %v17311_v17  ;;  %13695 = vmatprep.subr.bf16.mxu1 %v17311_v17 }
 0x66a   : > { %13577 = vmatpush1.bf16.msra.mxu0 %v22661_v43  ;;  %13697 = vmatpush1.bf16.msra.mxu1 %v22661_v43 }
 0x66b   : > { %13579 = vmatprep.subr.bf16.mxu0 %v17331_v58  ;;  %13699 = vmatprep.subr.bf16.mxu1 %v17331_v58 }
 0x66e   : > { %13581 = vmatpush1.bf16.msra.mxu0 %v17341_v20  ;;  %13701 = vmatpush1.bf16.msra.mxu1 %v17341_v20 }
 0x66f   : > { %13703 = vmatprep.subr.bf16.mxu0 %v16745_v51  ;;  %13823 = vmatprep.subr.bf16.mxu1 %v16745_v51  ;;  %v10067_v51 = vld [vmem:[%s16869_s22 + $0x340] sm:$0xff] }
 0x671   : > { %4708 = vmatmul.mubr.f32.vlgmr.msra.gmra.mrb[24].mxu0 %v10059_v6  ;;  %4860 = vmatmul.mubr.f32.vlgmr.msra.gmra.mrb[24].mxu1 %v10064_v50  ;;  %v19274_v6 = vpack.c.bf16 %v10087_v63, %v10085_v28  ;;  %v19278_v50 = vpack.c.bf16 %v10092_v38, %v10090_v23  ;;  %v5200_v28 = vld [vmem:[%s22146_s3 + $0x8] sm:$0xff]  ;;  %v5202_v63 = vld [vmem:[%s22146_s3 + $0x18] sm:$0xff]  ;;  %v5201_v38 = vld [vmem:[%s22146_s3 + $0x10] sm:$0xff] }
 0x672   : > { %13705 = vmatpush1.bf16.msra.mxu0 %v16756_v55  ;;  %13825 = vmatpush1.bf16.msra.mxu1 %v16756_v55  ;;  %v10072_v55 = vld [vmem:[%s16869_s22 + $0x360] sm:$0xff] }
 0x673   : > { %13707 = vmatprep.subr.bf16.mxu0 %v16758_v56  ;;  %13827 = vmatprep.subr.bf16.mxu1 %v16758_v56  ;;  %v10070_v56 = vld [vmem:[%s16869_s22 + $0x358] sm:$0xff] }
 0x674   : > { %4953 = vmatprep.mubr.f32.mxu0 %v10068_v59  ;;  %5105 = vmatprep.mubr.f32.mxu1 %v10073_v14  ;;  %v10089_v59 = vld [vmem:[%s22146_s3 + $0x1b0] sm:$0xff]  ;;  %v10091_v14 = vld [vmem:[%s22146_s3 + $0x1c0] sm:$0xff] }
 0x676   : > { %13709 = vmatpush1.bf16.msra.mxu0 %v16776_v61  ;;  %13829 = vmatpush1.bf16.msra.mxu1 %v16776_v61  ;;  %v10075_v61 = vld [vmem:[%s16869_s22 + $0x378] sm:$0xff] }
 0x677   : > { %13711 = vmatprep.subr.bf16.mxu0 %v16780_v62  ;;  %13831 = vmatprep.subr.bf16.mxu1 %v16780_v62  ;;  %v22789_v62 = vld [vmem:[#allocation5_spill] sm:$0xff] }
 0x67a   : > { %13713 = vmatpush1.bf16.msra.mxu0 %v16796_v3  ;;  %13833 = vmatpush1.bf16.msra.mxu1 %v16796_v3  ;;  %v22790_v3 = vld [vmem:[#allocation6_spill] sm:$0xff] }
 0x67b   : > { %13715 = vmatprep.subr.bf16.mxu0 %v16800_v4  ;;  %13835 = vmatprep.subr.bf16.mxu1 %v16800_v4  ;;  %v22791_v4 = vld [vmem:[#allocation7_spill] sm:$0xff] }
 0x67e   : > { %13717 = vmatpush1.bf16.msra.mxu0 %v16817_v9  ;;  %13837 = vmatpush1.bf16.msra.mxu1 %v16817_v9  ;;  %v22792_v9 = vld [vmem:[#allocation8_spill] sm:$0xff] }
 0x67f   : > { %13719 = vmatprep.subr.bf16.mxu0 %v16821_v10  ;;  %13839 = vmatprep.subr.bf16.mxu1 %v16821_v10  ;;  %v22793_v10 = vld [vmem:[#allocation9_spill] sm:$0xff] }
 0x682   : > { %13721 = vmatpush1.bf16.msra.mxu0 %v16837_v15  ;;  %13841 = vmatpush1.bf16.msra.mxu1 %v16837_v15  ;;  %v22794_v15 = vld [vmem:[#allocation10_spill] sm:$0xff] }
 0x683   : > { %13723 = vmatprep.subr.bf16.mxu0 %v16841_v16  ;;  %13843 = vmatprep.subr.bf16.mxu1 %v16841_v16  ;;  %v22795_v16 = vld [vmem:[#allocation11_spill] sm:$0xff] }
 0x686   : > { %13725 = vmatpush1.bf16.msra.mxu0 %v16857_v21  ;;  %13845 = vmatpush1.bf16.msra.mxu1 %v16857_v21  ;;  %v22796_v21 = vld [vmem:[#allocation12_spill] sm:$0xff] }
 0x687   : > { %13727 = vmatprep.subr.bf16.mxu0 %v16861_v22  ;;  %13847 = vmatprep.subr.bf16.mxu1 %v16861_v22  ;;  %v22797_v22 = vld [vmem:[#allocation13_spill] sm:$0xff] }
 0x68a   : > { %13729 = vmatpush1.bf16.msra.mxu0 %v16881_v29  ;;  %13849 = vmatpush1.bf16.msra.mxu1 %v16881_v29  ;;  %v22798_v29 = vld [vmem:[#allocation14_spill] sm:$0xff] }
 0x68b   : > { %13731 = vmatprep.subr.bf16.mxu0 %v16885_v30  ;;  %13851 = vmatprep.subr.bf16.mxu1 %v16885_v30 }
 0x68e   : > { %13733 = vmatpush1.bf16.msra.mxu0 %v16901_v35  ;;  %13853 = vmatpush1.bf16.msra.mxu1 %v16901_v35 }
 0x68f   : > { %13735 = vmatprep.subr.bf16.mxu0 %v16905_v36  ;;  %13855 = vmatprep.subr.bf16.mxu1 %v16905_v36 }
 0x692   : > { %13737 = vmatpush1.bf16.msra.mxu0 %v16921_v41  ;;  %13857 = vmatpush1.bf16.msra.mxu1 %v16921_v41 }
 0x693   : > { %13739 = vmatprep.subr.bf16.mxu0 %v16925_v42  ;;  %13859 = vmatprep.subr.bf16.mxu1 %v16925_v42 }
 0x696   : > { %13741 = vmatpush1.bf16.msra.mxu0 %v16941_v47  ;;  %13861 = vmatpush1.bf16.msra.mxu1 %v16941_v47 }
 0x697   : > { %13743 = vmatprep.subr.bf16.mxu0 %v16945_v48  ;;  %13863 = vmatprep.subr.bf16.mxu1 %v16945_v48 }
 0x69a   : > { %13745 = vmatpush1.bf16.msra.mxu0 %v16961_v54  ;;  %13865 = vmatpush1.bf16.msra.mxu1 %v16961_v54 }
 0x69b   : > { %13747 = vmatprep.subr.bf16.mxu0 %v16965_v57  ;;  %13867 = vmatprep.subr.bf16.mxu1 %v16965_v57 }
 0x69e   : > { %13749 = vmatpush1.bf16.msra.mxu0 %v16981_v0  ;;  %13869 = vmatpush1.bf16.msra.mxu1 %v16981_v0 }
 0x69f   : > { %13751 = vmatprep.subr.bf16.mxu0 %v16985_v1  ;;  %13871 = vmatprep.subr.bf16.mxu1 %v16985_v1 }
 0x6a2   : > { %13753 = vmatpush1.bf16.msra.mxu0 %v17001_v8  ;;  %13873 = vmatpush1.bf16.msra.mxu1 %v17001_v8 }
 0x6a3   : > { %13755 = vmatprep.subr.bf16.mxu0 %v17005_v11  ;;  %13875 = vmatprep.subr.bf16.mxu1 %v17005_v11 }
 0x6a6   : > { %13757 = vmatpush1.bf16.msra.mxu0 %v17021_v18  ;;  %13877 = vmatpush1.bf16.msra.mxu1 %v17021_v18 }
 0x6a7   : > { %13759 = vmatprep.subr.bf16.mxu0 %v17025_v19  ;;  %13879 = vmatprep.subr.bf16.mxu1 %v17025_v19  ;;  %v19187_v19 = vpop.permute.xlu0 %16349 }
 0x6aa   : > { %13761 = vmatpush1.bf16.msra.mxu0 %v17041_v26  ;;  %13881 = vmatpush1.bf16.msra.mxu1 %v17041_v26  ;;  %v10078_v26 = vld [vmem:[%s22146_s3 + $0x158] sm:$0xff] }
 0x6ab   : > { %13763 = vmatprep.subr.bf16.mxu0 %v17045_v27  ;;  %13883 = vmatprep.subr.bf16.mxu1 %v17045_v27  ;;  %v10080_v27 = vld [vmem:[%s22146_s3 + $0x168] sm:$0xff] }
 0x6ae   : > { %13765 = vmatpush1.bf16.msra.mxu0 %v17061_v34  ;;  %13885 = vmatpush1.bf16.msra.mxu1 %v17061_v34  ;;  %v19201_v34 = vpack.c.bf16 %v10080_v27, %v10078_v26 }
 0x6af   : > { %13767 = vmatprep.subr.bf16.mxu0 %v17065_v37  ;;  %13887 = vmatprep.subr.bf16.mxu1 %v17065_v37  ;;  %v10077_v37 = vld [vmem:[%s22146_s3 + $0x150] sm:$0xff] }
 0x6b1   : > { %4954 = vmatmul.mubr.f32.vlgmr.msra.gmra.mrb[26].mxu0 %v10067_v51  ;;  %5106 = vmatmul.mubr.f32.vlgmr.msra.gmra.mrb[26].mxu1 %v10072_v55  ;;  %v10094_v51 = vld [vmem:[%s22146_s3 + $0x1d8] sm:$0xff]  ;;  %v10096_v55 = vld [vmem:[%s22146_s3 + $0x1e8] sm:$0xff] }
 0x6b2   : > { %13769 = vmatpush1.bf16.msra.mxu0 %v17082_v45  ;;  %13889 = vmatpush1.bf16.msra.mxu1 %v17082_v45  ;;  %v10079_v45 = vld [vmem:[%s22146_s3 + $0x160] sm:$0xff] }
 0x6b3   : > { %13771 = vmatprep.subr.bf16.mxu0 %v17087_v49  ;;  %13891 = vmatprep.subr.bf16.mxu1 %v17087_v49  ;;  %v19209_v49 = vpop.permute.xlu0 %1387 }
 0x6b4   : > { %10071 = vmatprep.mubr.msk.f32.mxu0 %vm763_vm0, %v10070_v56  ;;  %10076 = vmatprep.mubr.msk.f32.mxu1 %vm763_vm0, %v10075_v61  ;;  %v19294_v56 = vpack.c.bf16 %v10091_v14, %v10089_v59  ;;  %v19298_v61 = vpack.c.bf16 %v10096_v55, %v10094_v51  ;;  %v19441_v14 = vpack.c.bf16 %v5202_v63, %v5200_v28  ;;  %v5204_v51 = vld [vmem:[%s22146_s3 + $0x28] sm:$0xff]  ;;  %v22803_v55 = vld [vmem:[#allocation18_spill] sm:$0xff]  ;;  %v5215_v28 = vld [vmem:[%s22146_s3 + $0x80] sm:$0xff] }
 0x6b5   : > { %v5217_v63 = vld [vmem:[%s22146_s3 + $0x90] sm:$0xff] }
 0x6b6   : > { %13773 = vmatpush1.bf16.msra.mxu0 %v22691_v13  ;;  %13893 = vmatpush1.bf16.msra.mxu1 %v22691_v13  ;;  %v22802_v13 = vld [vmem:[#allocation21_spill] sm:$0xff] }
 0x6b7   : > { %13775 = vmatprep.subr.bf16.mxu0 %v22692_v25  ;;  %13895 = vmatprep.subr.bf16.mxu1 %v22692_v25 }
 0x6ba   : > { %13777 = vmatpush1.bf16.msra.mxu0 %v22789_v62  ;;  %13897 = vmatpush1.bf16.msra.mxu1 %v22789_v62  ;;  %v10093_v62 = vld [vmem:[%s22146_s3 + $0x1d0] sm:$0xff] }
 0x6bb   : > { %13779 = vmatprep.subr.bf16.mxu0 %v22790_v3  ;;  %13899 = vmatprep.subr.bf16.mxu1 %v22790_v3  ;;  %v10095_v3 = vld [vmem:[%s22146_s3 + $0x1e0] sm:$0xff] }
 0x6be   : > { %13781 = vmatpush1.bf16.msra.mxu0 %v22791_v4  ;;  %13901 = vmatpush1.bf16.msra.mxu1 %v22791_v4  ;;  %v10098_v4 = vld [vmem:[%s22146_s3 + $0x1f8] sm:$0xff] }
 0x6bf   : > { %13783 = vmatprep.subr.bf16.mxu0 %v22792_v9  ;;  %13903 = vmatprep.subr.bf16.mxu1 %v22792_v9  ;;  %v10100_v9 = vld [vmem:[%s22146_s3 + $0x208] sm:$0xff] }
 0x6c2   : > { %13785 = vmatpush1.bf16.msra.mxu0 %v22793_v10  ;;  %13905 = vmatpush1.bf16.msra.mxu1 %v22793_v10  ;;  %v19314_v10 = vpack.c.bf16 %v10095_v3, %v10093_v62  ;;  %v19452_v3 = vpop.permute.xlu0 %1069 }
 0x6c3   : > { %13787 = vmatprep.subr.bf16.mxu0 %v22794_v15  ;;  %13907 = vmatprep.subr.bf16.mxu1 %v22794_v15  ;;  %v19318_v15 = vpack.c.bf16 %v10100_v9, %v10098_v4  ;;  %v22804_v9 = vld [vmem:[#allocation20_spill] sm:$0xff] }
 0x6c6   : > { %13789 = vmatpush1.bf16.msra.mxu0 %v22795_v16  ;;  %13909 = vmatpush1.bf16.msra.mxu1 %v22795_v16  ;;  %v10097_v16 = vld [vmem:[%s22146_s3 + $0x1f0] sm:$0xff] }
 0x6c7   : > { %13791 = vmatprep.subr.bf16.mxu0 %v22796_v21  ;;  %13911 = vmatprep.subr.bf16.mxu1 %v22796_v21  ;;  %v10099_v21 = vld [vmem:[%s22146_s3 + $0x200] sm:$0xff] }
 0x6ca   : > { %13793 = vmatpush1.bf16.msra.mxu0 %v22797_v22  ;;  %13913 = vmatpush1.bf16.msra.mxu1 %v22797_v22  ;;  %v10102_v22 = vld [vmem:[%s22146_s3 + $0x218] sm:$0xff] }
 0x6cb   : > { %13795 = vmatprep.subr.bf16.mxu0 %v22798_v29  ;;  %13915 = vmatprep.subr.bf16.mxu1 %v22798_v29  ;;  %v10104_v29 = vld [vmem:[%s22146_s3 + $0x228] sm:$0xff] }
 0x6cc   : > { %v4392_v30 = vpop.f32.mrb[22].mxu0  ;;  %v4544_v35 = vpop.f32.mrb[22].mxu1 }
 0x6cd   : > { %v16169_v36 = vadd.f32 %v4392_v30, %v17586_v39  ;;  %v16171_v41 = vadd.f32 %v4544_v35, %v17586_v39  ;;  %v4394_v42 = vpop.f32.mrb[23].mxu0  ;;  %v4546_v47 = vpop.f32.mrb[23].mxu1  ;;  %v19334_v30 = vpack.c.bf16 %v10099_v21, %v10097_v16  ;;  %v19338_v35 = vpack.c.bf16 %v10104_v29, %v10102_v22  ;;  %v5203_v21 = vld [vmem:[%s22146_s3 + $0x20] sm:$0xff]  ;;  %v5205_v22 = vld [vmem:[%s22146_s3 + $0x30] sm:$0xff] }
 0x6ce   : > { %v16170_v48 = vadd.f32 %v4394_v42, %v17592_v52  ;;  %v16172_v54 = vadd.f32 %v4546_v47, %v17592_v52  ;;  %13797 = vmatpush1.bf16.msra.mxu0 %v17227_v24  ;;  %13917 = vmatpush1.bf16.msra.mxu1 %v17227_v24  ;;  %v10082_v24 = vld [vmem:[%s22146_s3 + $0x178] sm:$0xff]  ;;  %v10108_v47 = vld [vmem:[%s22146_s3 + $0x248] sm:$0xff] }
 0x6cf   : > { %v4397_v57 = vmax.f32 %v16169_v36, 0.0  ;;  %v4549_v0 = vmax.f32 %v16171_v41, 0.0  ;;  %13799 = vmatprep.subr.bf16.mxu0 %v17231_v31  ;;  %13919 = vmatprep.subr.bf16.mxu1 %v17231_v31  ;;  %v10084_v31 = vld [vmem:[%s22146_s3 + $0x188] sm:$0xff]  ;;  %v10101_v36 = vld [vmem:[%s22146_s3 + $0x210] sm:$0xff]  ;;  %v10103_v41 = vld [vmem:[%s22146_s3 + $0x220] sm:$0xff] }
 0x6d0   : > { %v4398_v1 = vmax.f32 %v16170_v48, 0.0  ;;  %v4550_v8 = vmax.f32 %v16172_v54, 0.0  ;;  %v10106_v42 = vld [vmem:[%s22146_s3 + $0x238] sm:$0xff]  ;;  %v19354_v48 = vpack.c.bf16 %v10103_v41, %v10101_v36  ;;  %v5208_v36 = vld [vmem:[%s22146_s3 + $0x48] sm:$0xff] }
 0x6d1   : > { %v19165_v11 = vmax.f32 %v4397_v57, %v4549_v0  ;;  %v19358_v54 = vpack.c.bf16 %v10108_v47, %v10106_v42  ;;  %v10105_v57 = vld [vmem:[%s22146_s3 + $0x230] sm:$0xff]  ;;  %v10107_v0 = vld [vmem:[%s22146_s3 + $0x240] sm:$0xff]  ;;  %v5210_v41 = vld [vmem:[%s22146_s3 + $0x58] sm:$0xff] }
 0x6d2   : > { %v19167_v18 = vmax.f32 %v4398_v1, %v4550_v8  ;;  %13801 = vmatpush1.bf16.msra.mxu0 %v17247_v44  ;;  %13921 = vmatpush1.bf16.msra.mxu1 %v17247_v44  ;;  %v19217_v44 = vpop.permute.xlu1 %1704  ;;  %v10110_v1 = vld [vmem:[%s22146_s3 + $0x258] sm:$0xff]  ;;  %v10112_v8 = vld [vmem:[%s22146_s3 + $0x268] sm:$0xff]  ;;  %v19374_v26 = vpack.c.bf16 %v10107_v0, %v10105_v57  ;;  %v22805_v42 = vld [vmem:[#allocation17_spill] sm:$0xff]  ;;  %v19482_v57 = vpack.c.bf16 %v5205_v22, %v5203_v21 }
 0x6d3   : > { %22799 = vst [vmem:[#allocation5_spill] sm:$0xff] %v19165_v11  ;;  %4555 = vrot.lane.b32.xlu1 %v19165_v11, %s16407_s23  ;;  %13803 = vmatprep.subr.bf16.mxu0 %v17251_v46  ;;  %v19247_v25 = vmax.f32 %v22802_v13, %v19217_v44  ;;  %v19378_v27 = vpack.c.bf16 %v10112_v8, %v10110_v1  ;;  %v10118_v13 = vld [vmem:[%s22146_s3 + $0x298] sm:$0x3]  ;;  %v5207_v1 = vld [vmem:[%s22146_s3 + $0x40] sm:$0xff]  ;;  %v5209_v8 = vld [vmem:[%s22146_s3 + $0x50] sm:$0xff] }
 0x6d4   : > { %22800 = vst [vmem:[#allocation6_spill] sm:$0xff] %v19167_v18  ;;  %4557 = vrot.lane.b32.xlu0 %v19167_v18, %s16407_s23  ;;  %13923 = vmatprep.subr.bf16.mxu1 %v17251_v46  ;;  %v10069_v46 = vld [vmem:[%s16869_s22 + $0x350] sm:$0xff]  ;;  %v1076_v47 = vmax.f32 %v22805_v42, %v19452_v3  ;;  %v19486_v0 = vpack.c.bf16 %v5210_v41, %v5208_v36  ;;  %v5223_v22 = vld [vmem:[%s22146_s3 + $0xc0] sm:$0xff]  ;;  %v5228_v41 = vld [vmem:[%s22146_s3 + $0xe8] sm:$0xff] }
 0x6d5   : > { %v5225_v36 = vld [vmem:[%s22146_s3 + $0xd0] sm:$0xff]  ;;  %v5230_v42 = vld [vmem:[%s22146_s3 + $0xf8] sm:$0xff] }
 0x6d6   : > { %13805 = vmatpush1.bf16.msra.mxu0 %v17267_v5  ;;  %13925 = vmatpush1.bf16.msra.mxu1 %v17267_v5  ;;  %v10074_v5 = vld [vmem:[%s16869_s22 + $0x370] sm:$0xff] }
 0x6d7   : > { %13807 = vmatprep.subr.bf16.mxu0 %v17271_v12  ;;  %13927 = vmatprep.subr.bf16.mxu1 %v17271_v12  ;;  %v19223_v12 = vpack.c.bf16 %v10079_v45, %v10077_v37  ;;  %v10109_v37 = vld [vmem:[%s22146_s3 + $0x250] sm:$0xff]  ;;  %v10111_v45 = vld [vmem:[%s22146_s3 + $0x260] sm:$0xff] }
 0x6da   : > { %13809 = vmatpush1.bf16.msra.mxu0 %v17287_v33  ;;  %13929 = vmatpush1.bf16.msra.mxu1 %v17287_v33  ;;  %v10081_v33 = vld [vmem:[%s22146_s3 + $0x170] sm:$0xff] }
 0x6db   : > { %13811 = vmatprep.subr.bf16.mxu0 %v22660_v32  ;;  %13931 = vmatprep.subr.bf16.mxu1 %v22660_v32  ;;  %v10086_v32 = vld [vmem:[%s22146_s3 + $0x198] sm:$0xff] }
 0x6de   : > { %13813 = vmatpush1.bf16.msra.mxu0 %v17307_v60  ;;  %13933 = vmatpush1.bf16.msra.mxu1 %v17307_v60  ;;  %v10083_v60 = vld [vmem:[%s22146_s3 + $0x180] sm:$0xff] }
 0x6df   : > { %13815 = vmatprep.subr.bf16.mxu0 %v17311_v17  ;;  %13935 = vmatprep.subr.bf16.mxu1 %v17311_v17  ;;  %v22801_v17 = vld [vmem:[#allocation19_spill] sm:$0xff]  ;;  %v19252_v40 = vpack.c.bf16 %v10083_v60, %v10081_v33  ;;  %v10113_v33 = vld [vmem:[%s22146_s3 + $0x270] sm:$0xff] }
 0x6e0   : > { %v10115_v60 = vld [vmem:[%s22146_s3 + $0x280] sm:$0xff] }
 0x6e2   : > { %13817 = vmatpush1.bf16.msra.mxu0 %v22661_v43  ;;  %13937 = vmatpush1.bf16.msra.mxu1 %v22661_v43  ;;  %v10088_v43 = vld [vmem:[%s22146_s3 + $0x1a8] sm:$0xff] }
 0x6e3   : > { %13819 = vmatprep.subr.bf16.mxu0 %v17331_v58  ;;  %13939 = vmatprep.subr.bf16.mxu1 %v17331_v58  ;;  %v19235_v58 = vmax.f32 %v22801_v17, %v19209_v49  ;;  %v19257_v53 = vpack.c.bf16 %v10088_v43, %v10086_v32  ;;  %v19408_v17 = vpack.c.bf16 %v10115_v60, %v10113_v33  ;;  %v16352_v32 = vunpack.i.h.bf16 %v19187_v19  ;;  %v5213_v33 = vld [vmem:[%s22146_s3 + $0x70] sm:$0xff]  ;;  %v5216_v60 = vld [vmem:[%s22146_s3 + $0x88] sm:$0xff] }
 0x6e4   : > { %v16351_v43 = vunpack.i.l.bf16 %v19187_v19  ;;  %v5199_v19 = vld [vmem:[%s22146_s3] sm:$0xff] }
 0x6e5   : > { %v1706_v59 = vsel %vm1071_vm2, %v16352_v32, %v19217_v44  ;;  %v5206_v44 = vld [vmem:[%s22146_s3 + $0x38] sm:$0xff]  ;;  %v19454_v4 = vpack.c.bf16 %v5201_v38, %v5199_v19  ;;  %v19545_v38 = vpack.c.bf16 %v5217_v63, %v5215_v28  ;;  %v5233_v28 = vld [vmem:[%s22146_s3 + $0x110] sm:$0xff]  ;;  %v5236_v63 = vld [vmem:[%s22146_s3 + $0x128] sm:$0xff] }
 0x6e6   : > { %13821 = vmatpush1.bf16.msra.mxu0 %v17341_v20  ;;  %13941 = vmatpush1.bf16.msra.mxu1 %v17341_v20  ;;  %v19237_v20 = vpack.c.bf16 %v10084_v31, %v10082_v24  ;;  %v10114_v24 = vld [vmem:[%s22146_s3 + $0x278] sm:$0xff]  ;;  %v10116_v31 = vld [vmem:[%s22146_s3 + $0x288] sm:$0xff]  ;;  %v1389_v23 = vsel %vm1071_vm2, %v16351_v43, %v19209_v49  ;;  %v10117_v49 = vld [vmem:[%s22146_s3 + $0x290] sm:$0x3]  ;;  %v19457_v16 = vmax.f32 %v22804_v9, %v1706_v59 }
 0x6e7   : > { %13943 = vmatprep.subr.bf16.mxu0 %v19201_v34  ;;  %14143 = vmatprep.subr.bf16.mxu1 %v19201_v34  ;;  %v19450_v62 = vmax.f32 %v22803_v55, %v1389_v23  ;;  %v19468_v29 = vpack.c.bf16 %v5206_v44, %v5204_v51  ;;  %v5218_v32 = vld [vmem:[%s22146_s3 + $0x98] sm:$0xff]  ;;  %v5220_v23 = vld [vmem:[%s22146_s3 + $0xa8] sm:$0xff]  ;;  %v5221_v51 = vld [vmem:[%s22146_s3 + $0xb0] sm:$0xff] }
 0x6e8   : > { %v5222_v19 = vld [vmem:[%s22146_s3 + $0xb8] sm:$0xff]  ;;  %v5224_v44 = vld [vmem:[%s22146_s3 + $0xc8] sm:$0xff] }
 0x6e9   : > { %5025 = vmatmul.mubr.f32.vlgmr.msra.gmra.mrb[26].mxu0 %v10069_v46  ;;  %5177 = vmatmul.mubr.f32.vlgmr.msra.gmra.mrb[26].mxu1 %v10074_v5  ;;  %v19394_v46 = vpack.c.bf16 %v10111_v45, %v10109_v37  ;;  %v19398_v5 = vpack.c.bf16 %v10116_v31, %v10114_v24  ;;  %v5212_v37 = vld [vmem:[%s22146_s3 + $0x68] sm:$0xff]  ;;  %v5214_v45 = vld [vmem:[%s22146_s3 + $0x78] sm:$0xff]  ;;  %v19505_v24 = vpack.c.bf16 %v5209_v8, %v5207_v1  ;;  %v5211_v31 = vld [vmem:[%s22146_s3 + $0x60] sm:$0xff] }
 0x6ea   : > { %13945 = vmatpush1.bf16.msra.mxu0 %v19223_v12  ;;  %10121 = vmatprep.mubr.msk.f32.mxu0 %vm5284_vm1, %v19235_v58  ;;  %v19525_v43 = vpack.c.bf16 %v5213_v33, %v5211_v31  ;;  %v19549_v59 = vpack.c.bf16 %v5222_v19, %v5220_v23  ;;  %v5226_v55 = vld [vmem:[%s22146_s3 + $0xd8] sm:$0xff]  ;;  %v19589_v1 = vpack.c.bf16 %v5230_v42, %v5228_v41  ;;  %v5227_v8 = vld [vmem:[%s22146_s3 + $0xe0] sm:$0xff]  ;;  %v10126_v41 = vld [vmem:[%s22146_s3 + $0x2a8] sm:$0xff] }
 0x6eb   : > { %14145 = vmatpush1.bf16.msra.mxu1 %v19223_v12  ;;  %10262 = vmatprep.mubr.msk.f32.mxu1 %vm5284_vm1, %v19247_v25  ;;  %v19569_v21 = vpack.c.bf16 %v5226_v55, %v5224_v44  ;;  %v5234_v31 = vld [vmem:[%s22146_s3 + $0x118] sm:$0xff]  ;;  %v5237_v44 = vld [vmem:[%s22146_s3 + $0x130] sm:$0xff] }
 0x6ec   : > { %13947 = vmatprep.subr.bf16.mxu0 %v19237_v20  ;;  %14147 = vmatprep.subr.bf16.mxu1 %v19237_v20  ;;  %v5238_v23 = vld [vmem:[%s22146_s3 + $0x138] sm:$0xff] }
 0x6ed   : > { %v10128_v42 = vld [vmem:[%s22146_s3 + $0x2b8] sm:$0xff] }
 0x6ee   : > { %13949 = vmatpush1.bf16.msra.mxu0 %v19252_v40 }
 0x6ef   : > { %14149 = vmatpush1.bf16.msra.mxu1 %v19252_v40  ;;  %13951 = vmatprep.subr.bf16.mxu0 %v19257_v53 }
 0x6f0   : > { %14151 = vmatprep.subr.bf16.mxu1 %v19257_v53 }
 0x6f2   : > { %13953 = vmatpush1.bf16.msra.mxu0 %v19274_v6 }
 0x6f3   : > { %14153 = vmatpush1.bf16.msra.mxu1 %v19274_v6  ;;  %13955 = vmatprep.subr.bf16.mxu0 %v19278_v50 }
 0x6f4   : > { %14155 = vmatprep.subr.bf16.mxu1 %v19278_v50 }
 0x6f6   : > { %13957 = vmatpush1.bf16.msra.mxu0 %v19294_v56 }
 0x6f7   : > { %14157 = vmatpush1.bf16.msra.mxu1 %v19294_v56  ;;  %13959 = vmatprep.subr.bf16.mxu0 %v19298_v61 }
 0x6f8   : > { %14159 = vmatprep.subr.bf16.mxu1 %v19298_v61 }
 0x6fa   : > { %13961 = vmatpush1.bf16.msra.mxu0 %v19314_v10 }
 0x6fb   : > { %14161 = vmatpush1.bf16.msra.mxu1 %v19314_v10  ;;  %13963 = vmatprep.subr.bf16.mxu0 %v19318_v15 }
 0x6fc   : > { %14163 = vmatprep.subr.bf16.mxu1 %v19318_v15 }
 0x6fe   : > { %13965 = vmatpush1.bf16.msra.mxu0 %v19334_v30 }
 0x6ff   : > { %14165 = vmatpush1.bf16.msra.mxu1 %v19334_v30  ;;  %13967 = vmatprep.subr.bf16.mxu0 %v19338_v35 }
 0x700   : > { %14167 = vmatprep.subr.bf16.mxu1 %v19338_v35 }
 0x702   : > { %13969 = vmatpush1.bf16.msra.mxu0 %v19354_v48 }
 0x703   : > { %14169 = vmatpush1.bf16.msra.mxu1 %v19354_v48  ;;  %13971 = vmatprep.subr.bf16.mxu0 %v19358_v54 }
 0x704   : > { %14171 = vmatprep.subr.bf16.mxu1 %v19358_v54 }
 0x706   : > { %13973 = vmatpush1.bf16.msra.mxu0 %v19374_v26 }
 0x707   : > { %14173 = vmatpush1.bf16.msra.mxu1 %v19374_v26  ;;  %13975 = vmatprep.subr.bf16.mxu0 %v19378_v27 }
 0x708   : > { %14175 = vmatprep.subr.bf16.mxu1 %v19378_v27 }
 0x70a   : > { %13977 = vmatpush1.bf16.msra.mxu0 %v19394_v46 }
 0x70b   : > { %14177 = vmatpush1.bf16.msra.mxu1 %v19394_v46  ;;  %13979 = vmatprep.subr.bf16.mxu0 %v19398_v5 }
 0x70c   : > { %14179 = vmatprep.subr.bf16.mxu1 %v19398_v5 }
 0x70e   : > { %13981 = vmatpush1.bf16.msra.mxu0 %v19408_v17 }
 0x70f   : > { %14181 = vmatpush1.bf16.msra.mxu1 %v19408_v17  ;;  %10119 = vmatprep.subr.msk.mxu0 %vm5288_vm3, %v10118_v13 }
 0x710   : > { %10260 = vmatprep.subr.msk.mxu1 %vm5288_vm3, %v10118_v13  ;;  %v19529_v13 = vpack.c.bf16 %v5218_v32, %v5216_v60  ;;  %v5231_v32 = vld [vmem:[%s22146_s3 + $0x100] sm:$0xff] }
 0x711   : > { %v19625_v19 = vpack.c.bf16 %v5233_v28, %v5231_v32  ;;  %v10130_v32 = vld [vmem:[%s22146_s3 + $0x2c8] sm:$0xff]  ;;  %v10132_v28 = vld [vmem:[%s22146_s3 + $0x2d8] sm:$0xff] }
 0x712   : > { %10120 = vmatpush1.msk.msra.mxu0 %vm5288_vm3, %v10117_v49 }
 0x713   : > { %10261 = vmatpush1.msk.msra.mxu1 %vm5288_vm3, %v10117_v49  ;;  %5360 = vmatmul.mubr.f32.vlgmr.msra.gmra.mrb[28].mxu0 %v19450_v62  ;;  %v5219_v49 = vld [vmem:[%s22146_s3 + $0xa0] sm:$0xff] }
 0x714   : > { %13983 = vmatprep.subr.bf16.mxu0 %v19441_v14  ;;  %5901 = vmatmul.mubr.f32.vlgmr.msra.gmra.mrb[28].mxu1 %v19457_v16  ;;  %v19565_v9 = vpack.c.bf16 %v5221_v51, %v5219_v49  ;;  %v19629_v49 = vpack.c.bf16 %v5238_v23, %v5236_v63  ;;  %v5235_v51 = vld [vmem:[%s22146_s3 + $0x120] sm:$0xff]  ;;  %v22809_v63 = vld [vmem:[#allocation16_spill] sm:$0xff] }
 0x715   : > { %14183 = vmatprep.subr.bf16.mxu1 %v19441_v14  ;;  %13985 = vmatpush1.bf16.msra.mxu0 %v19454_v4  ;;  %v19639_v55 = vpack.c.bf16 %v5237_v44, %v5235_v51  ;;  %v19685_v44 = vpop.permute.xlu0 %2021 }
 0x716   : > { %10124 = vmatprep.mubr.msk.f32.mxu0 %vm5284_vm1, %v1076_v47  ;;  %14185 = vmatpush1.bf16.msra.mxu1 %v19454_v4  ;;  %v19585_v47 = vpack.c.bf16 %v5225_v36, %v5223_v22  ;;  %v19647_v22 = vld [vmem:[%s22146_s3 + $0x148] sm:$0x3]  ;;  %v1068_v36 = vpop.permute.xlu1 %1067 }
 0x717   : > { %10265 = vmatprep.mubr.msk.f32.mxu1 %vm5284_vm1, %v19235_v58  ;;  %13987 = vmatprep.subr.bf16.mxu0 %v19468_v29  ;;  %v19509_v58 = vpack.c.bf16 %v5214_v45, %v5212_v37  ;;  %v5229_v37 = vld [vmem:[%s22146_s3 + $0xf0] sm:$0xff]  ;;  %v5232_v45 = vld [vmem:[%s22146_s3 + $0x108] sm:$0xff]  ;;  %22806 = vst [vmem:[#allocation7_spill] sm:$0xff] %v19647_v22 }
 0x718   : > { %14187 = vmatprep.subr.bf16.mxu1 %v19468_v29  ;;  %v19605_v33 = vpack.c.bf16 %v5229_v37, %v5227_v8  ;;  %v19609_v60 = vpack.c.bf16 %v5234_v31, %v5232_v45  ;;  %v1072_v8 = vsel %vm1071_vm2, %v1068_v36, %v19452_v3  ;;  %v10125_v37 = vld [vmem:[%s22146_s3 + $0x2a0] sm:$0xff]  ;;  %v10127_v45 = vld [vmem:[%s22146_s3 + $0x2b0] sm:$0xff]  ;;  %v19674_v3 = vpack.c.bf16 %v10128_v42, %v10126_v41 }
 0x719   : > { %13989 = vmatpush1.bf16.msra.mxu0 %v19482_v57  ;;  %v19670_v31 = vld [vmem:[%s22146_s3 + $0x140] sm:$0x3]  ;;  %v1075_v23 = vmax.f32 %v22809_v63, %v1072_v8  ;;  %v19683_v51 = vpack.c.bf16 %v10127_v45, %v10125_v37  ;;  %v10131_v41 = vld [vmem:[%s22146_s3 + $0x2d0] sm:$0xff]  ;;  %v19697_v42 = vpack.c.bf16 %v10132_v28, %v10130_v32  ;;  %v10134_v8 = vld [vmem:[%s22146_s3 + $0x2e8] sm:$0xff] }
 0x71a   : > { %14189 = vmatpush1.bf16.msra.mxu1 %v19482_v57  ;;  %13991 = vmatprep.subr.bf16.mxu0 %v19486_v0  ;;  %22807 = vst [vmem:[#allocation8_spill] sm:$0xff] %v19670_v31  ;;  %22808 = vst [vmem:[#allocation9_spill] sm:$0xff] %v19674_v3  ;;  %v10129_v36 = vld [vmem:[%s22146_s3 + $0x2c0] sm:$0xff]  ;;  %v10136_v37 = vld [vmem:[%s22146_s3 + $0x2f8] sm:$0xff] }
 0x71b   : > { %14191 = vmatprep.subr.bf16.mxu1 %v19486_v0  ;;  %22810 = vst [vmem:[#allocation10_spill] sm:$0xff] %v19683_v51  ;;  %22811 = vst [vmem:[#allocation11_spill] sm:$0xff] %v19697_v42  ;;  %v22812_v45 = vld [vmem:[#allocation4_spill] sm:$0xff]  ;;  %v19713_v32 = vpack.c.bf16 %v10131_v41, %v10129_v36  ;;  %v19718_v28 = vpack.c.bf16 %v10136_v37, %v10134_v8  ;;  %v10140_v41 = vld [vmem:[%s22146_s3 + $0x318] sm:$0xff] }
 0x71c   : > { %v19709_v63 = vmax.f32 %v22812_v45, %v19685_v44  ;;  %v10138_v36 = vld [vmem:[%s22146_s3 + $0x308] sm:$0xff] }
 0x71d   : > { %13993 = vmatpush1.bf16.msra.mxu0 %v19505_v24  ;;  %22813 = vst [vmem:[#allocation12_spill] sm:$0xff] %v19713_v32  ;;  %22814 = vst [vmem:[#allocation13_spill] sm:$0xff] %v19718_v28 }
 0x71e   : > { %14193 = vmatpush1.bf16.msra.mxu1 %v19505_v24  ;;  %13995 = vmatprep.subr.bf16.mxu0 %v19509_v58 }
 0x71f   : > { %14195 = vmatprep.subr.bf16.mxu1 %v19509_v58 }
 0x721   : > { %13997 = vmatpush1.bf16.msra.mxu0 %v19525_v43 }
 0x722   : > { %14197 = vmatpush1.bf16.msra.mxu1 %v19525_v43  ;;  %13999 = vmatprep.subr.bf16.mxu0 %v19529_v13 }
 0x723   : > { %14199 = vmatprep.subr.bf16.mxu1 %v19529_v13 }
 0x725   : > { %14001 = vmatpush1.bf16.msra.mxu0 %v19545_v38 }
 0x726   : > { %14201 = vmatpush1.bf16.msra.mxu1 %v19545_v38  ;;  %14003 = vmatprep.subr.bf16.mxu0 %v19549_v59 }
 0x727   : > { %14203 = vmatprep.subr.bf16.mxu1 %v19549_v59 }
 0x729   : > { %14005 = vmatpush1.bf16.msra.mxu0 %v19565_v9 }
 0x72a   : > { %14205 = vmatpush1.bf16.msra.mxu1 %v19565_v9  ;;  %14007 = vmatprep.subr.bf16.mxu0 %v19569_v21 }
 0x72b   : > { %14207 = vmatprep.subr.bf16.mxu1 %v19569_v21 }
 0x72d   : > { %14009 = vmatpush1.bf16.msra.mxu0 %v19585_v47 }
 0x72e   : > { %14209 = vmatpush1.bf16.msra.mxu1 %v19585_v47  ;;  %14011 = vmatprep.subr.bf16.mxu0 %v19589_v1 }
 0x72f   : > { %14211 = vmatprep.subr.bf16.mxu1 %v19589_v1 }
 0x731   : > { %14013 = vmatpush1.bf16.msra.mxu0 %v19605_v33 }
 0x732   : > { %14213 = vmatpush1.bf16.msra.mxu1 %v19605_v33  ;;  %14015 = vmatprep.subr.bf16.mxu0 %v19609_v60 }
 0x733   : > { %14215 = vmatprep.subr.bf16.mxu1 %v19609_v60 }
 0x735   : > { %14017 = vmatpush1.bf16.msra.mxu0 %v19625_v19 }
 0x736   : > { %14217 = vmatpush1.bf16.msra.mxu1 %v19625_v19  ;;  %14019 = vmatprep.subr.bf16.mxu0 %v19629_v49 }
 0x737   : > { %14219 = vmatprep.subr.bf16.mxu1 %v19629_v49 }
 0x739   : > { %14021 = vmatpush1.bf16.msra.mxu0 %v19639_v55 }
 0x73a   : > { %14221 = vmatpush1.bf16.msra.mxu1 %v19639_v55  ;;  %10122 = vmatprep.subr.msk.mxu0 %vm5288_vm3, %v19647_v22 }
 0x73b   : > { %10263 = vmatprep.subr.msk.mxu1 %vm5288_vm3, %v19647_v22 }
 0x73d   : > { %10123 = vmatpush1.msk.msra.mxu0 %vm5288_vm3, %v19670_v31 }
 0x73e   : > { %10264 = vmatpush1.msk.msra.mxu1 %vm5288_vm3, %v19670_v31  ;;  %5440 = vmatmul.mubr.f32.vlgmr.msra.gmra.mrb[28].mxu0 %v1075_v23  ;;  %v10135_v23 = vld [vmem:[%s22146_s3 + $0x2f0] sm:$0xff] }
 0x73f   : > { %14023 = vmatprep.subr.bf16.mxu0 %v19674_v3  ;;  %5972 = vmatmul.mubr.f32.vlgmr.msra.gmra.mrb[28].mxu1 %v19450_v62  ;;  %v10133_v62 = vld [vmem:[%s22146_s3 + $0x2e0] sm:$0xff] }
 0x740   : > { %14223 = vmatprep.subr.bf16.mxu1 %v19674_v3  ;;  %14025 = vmatpush1.bf16.msra.mxu0 %v19683_v51  ;;  %v19737_v45 = vpack.c.bf16 %v10135_v23, %v10133_v62  ;;  %v10139_v62 = vld [vmem:[%s22146_s3 + $0x310] sm:$0xff] }
 0x741   : > { %10169 = vmatprep.mubr.msk.f32.mxu0 %vm5284_vm1, %v19247_v25  ;;  %14225 = vmatpush1.bf16.msra.mxu1 %v19683_v51  ;;  %v19743_v51 = vpack.c.bf16 %v10140_v41, %v10138_v36  ;;  %v10144_v36 = vld [vmem:[%s22146_s3 + $0x338] sm:$0xff] }
 0x742   : > { %10268 = vmatprep.mubr.msk.f32.mxu1 %vm5284_vm1, %v19709_v63  ;;  %14027 = vmatprep.subr.bf16.mxu0 %v19697_v42  ;;  %22815 = vst [vmem:[#allocation14_spill] sm:$0xff] %v19737_v45 }
 0x743   : > { %14227 = vmatprep.subr.bf16.mxu1 %v19697_v42  ;;  %22816 = vst [vmem:[#allocation19_spill] sm:$0xff] %v19743_v51  ;;  %v10137_v42 = vld [vmem:[%s22146_s3 + $0x300] sm:$0xff] }
 0x744   : > { %14029 = vmatpush1.bf16.msra.mxu0 %v19713_v32  ;;  %v4709_v8 = vpop.f32.mrb[24].mxu0  ;;  %v4861_v37 = vpop.f32.mrb[24].mxu1  ;;  %v19761_v22 = vpack.c.bf16 %v10139_v62, %v10137_v42  ;;  %v10146_v42 = vld [vmem:[%s22146_s3 + $0x348] sm:$0xff]  ;;  %v10145_v62 = vld [vmem:[%s22146_s3 + $0x340] sm:$0xff] }
 0x745   : > { %14229 = vmatpush1.bf16.msra.mxu1 %v19713_v32  ;;  %v16173_v11 = vadd.f32 %v4709_v8, %v17586_v39  ;;  %v16175_v18 = vadd.f32 %v4861_v37, %v17586_v39  ;;  %v4711_v2 = vpop.f32.mrb[25].mxu0  ;;  %v4863_v7 = vpop.f32.mrb[25].mxu1  ;;  %14031 = vmatprep.subr.bf16.mxu0 %v19718_v28  ;;  %v10142_v37 = vld [vmem:[%s22146_s3 + $0x328] sm:$0xff] }
 0x746   : > { %v16174_v23 = vadd.f32 %v4711_v2, %v17592_v52  ;;  %v16176_v8 = vadd.f32 %v4863_v7, %v17592_v52  ;;  %14231 = vmatprep.subr.bf16.mxu1 %v19718_v28  ;;  %22817 = vst [vmem:[#allocation21_spill] sm:$0xff] %v19761_v22  ;;  %v19767_v7 = vpack.c.bf16 %v10144_v36, %v10142_v37  ;;  %v10141_v28 = vld [vmem:[%s22146_s3 + $0x320] sm:$0xff] }
 0x747   : > { %v4714_v41 = vmax.f32 %v16173_v11, 0.0  ;;  %v4866_v32 = vmax.f32 %v16175_v18, 0.0  ;;  %v10143_v11 = vld [vmem:[%s22146_s3 + $0x330] sm:$0xff] }
 0x748   : > { %v4715_v3 = vmax.f32 %v16174_v23, 0.0  ;;  %v4867_v31 = vmax.f32 %v16176_v8, 0.0  ;;  %14033 = vmatpush1.bf16.msra.mxu0 %v19737_v45  ;;  %22819 = vst [vmem:[#allocation20_spill] sm:$0xff] %v19767_v7  ;;  %v10147_v23 = vld [vmem:[%s22146_s3 + $0x350] sm:$0xff]  ;;  %v10152_v8 = vld [vmem:[%s22146_s3 + $0x378] sm:$0xff] }
 0x749   : > { %v19763_v2 = vmax.f32 %v4714_v41, %v4866_v32  ;;  %14233 = vmatpush1.bf16.msra.mxu1 %v19737_v45  ;;  %14035 = vmatprep.subr.bf16.mxu0 %v19743_v51  ;;  %v10148_v32 = vld [vmem:[%s22146_s3 + $0x358] sm:$0xff]  ;;  %v19809_v37 = vpack.c.bf16 %v10147_v23, %v10145_v62  ;;  %v10149_v41 = vld [vmem:[%s22146_s3 + $0x360] sm:$0xff] }
 0x74a   : > { %v19775_v18 = vmax.f32 %v4715_v3, %v4867_v31  ;;  %14235 = vmatprep.subr.bf16.mxu1 %v19743_v51  ;;  %v19789_v31 = vpack.c.bf16 %v10143_v11, %v10141_v28  ;;  %v19793_v3 = vpack.c.bf16 %v10148_v32, %v10146_v42  ;;  %v10150_v28 = vld [vmem:[%s22146_s3 + $0x368] sm:$0xff]  ;;  %v10151_v11 = vld [vmem:[%s22146_s3 + $0x370] sm:$0xff]  ;;  %v10156_v32 = vld [vmem:[%s22146_s3 + $0x398] sm:$0xff] }
 0x74b   : > { %22818 = vst [vmem:[#allocation18_spill] sm:$0xff] %v19763_v2  ;;  %4872 = vrot.lane.b32.xlu1 %v19763_v2, %s16407_s23  ;;  %22823 = vst [vmem:[#allocation36_spill] sm:$0xff] %v19809_v37  ;;  %v19813_v36 = vpack.c.bf16 %v10152_v8, %v10150_v28  ;;  %v10154_v42 = vld [vmem:[%s22146_s3 + $0x388] sm:$0xff]  ;;  %v19829_v62 = vpack.c.bf16 %v10151_v11, %v10149_v41  ;;  %v10153_v28 = vld [vmem:[%s22146_s3 + $0x380] sm:$0xff] }
 0x74c   : > { %22820 = vst [vmem:[#allocation17_spill] sm:$0xff] %v19775_v18  ;;  %14037 = vmatpush1.bf16.msra.mxu0 %v19761_v22  ;;  %4874 = vrot.lane.b32.xlu0 %v19775_v18, %s16407_s23  ;;  %22821 = vst [vmem:[#allocation16_spill] sm:$0xff] %v19789_v31  ;;  %v19833_v23 = vpack.c.bf16 %v10156_v32, %v10154_v42  ;;  %v10155_v8 = vld [vmem:[%s22146_s3 + $0x390] sm:$0xff]  ;;  %v10158_v41 = vld [vmem:[%s22146_s3 + $0x3a8] sm:$0xff] }
 0x74d   : > { %14237 = vmatpush1.bf16.msra.mxu1 %v19761_v22  ;;  %14039 = vmatprep.subr.bf16.mxu0 %v19767_v7  ;;  %22822 = vst [vmem:[#allocation4_spill] sm:$0xff] %v19793_v3  ;;  %22824 = vst [vmem:[#allocation37_spill] sm:$0xff] %v19813_v36  ;;  %v10160_v11 = vld [vmem:[%s22146_s3 + $0x3b8] sm:$0xff]  ;;  %v19849_v42 = vpack.c.bf16 %v10155_v8, %v10153_v28  ;;  %v10157_v2 = vld [vmem:[%s22146_s3 + $0x3a0] sm:$0xff] }
 0x74e   : > { %14239 = vmatprep.subr.bf16.mxu1 %v19767_v7  ;;  %22825 = vst [vmem:[#allocation38_spill] sm:$0xff] %v19829_v62  ;;  %22826 = vst [vmem:[#allocation39_spill] sm:$0xff] %v19833_v23  ;;  %v19853_v32 = vpack.c.bf16 %v10160_v11, %v10158_v41  ;;  %v10159_v18 = vld [vmem:[%s22146_s3 + $0x3b0] sm:$0xff]  ;;  %v10162_v28 = vld [vmem:[%s22146_s3 + $0x3c8] sm:$0xff] }
 0x74f   : > { %22827 = vst [vmem:[#allocation40_spill] sm:$0xff] %v19849_v42  ;;  %v10164_v8 = vld [vmem:[%s22146_s3 + $0x3d8] sm:$0xff]  ;;  %v19869_v41 = vpack.c.bf16 %v10159_v18, %v10157_v2  ;;  %v2020_v18 = vpop.permute.xlu1 %2019 }
 0x750   : > { %14041 = vmatpush1.bf16.msra.mxu0 %v19789_v31  ;;  %22828 = vst [vmem:[#allocation41_spill] sm:$0xff] %v19853_v32  ;;  %v19873_v11 = vpack.c.bf16 %v10164_v8, %v10162_v28  ;;  %v19891_v28 = vld [vmem:[%s22146_s3 + $0x3e8] sm:$0x3]  ;;  %v10171_v8 = vld [vmem:[%s22146_s3 + $0x3f8] sm:$0xff] }
 0x751   : > { %14241 = vmatpush1.bf16.msra.mxu1 %v19789_v31  ;;  %14043 = vmatprep.subr.bf16.mxu0 %v19793_v3  ;;  %22829 = vst [vmem:[#allocation42_spill] sm:$0xff] %v19869_v41  ;;  %22832 = vst [vmem:[#allocation45_spill] sm:$0xff] %v19891_v28 }
 0x752   : > { %14243 = vmatprep.subr.bf16.mxu1 %v19793_v3  ;;  %22830 = vst [vmem:[#allocation43_spill] sm:$0xff] %v19873_v11  ;;  %v19931_v3 = vpop.permute.xlu0 %2338 }
 0x754   : > { %14045 = vmatpush1.bf16.msra.mxu0 %v19809_v37 }
 0x755   : > { %14245 = vmatpush1.bf16.msra.mxu1 %v19809_v37  ;;  %14047 = vmatprep.subr.bf16.mxu0 %v19813_v36 }
 0x756   : > { %14247 = vmatprep.subr.bf16.mxu1 %v19813_v36  ;;  %v10175_v36 = vld [vmem:[%s22146_s3 + $0x418] sm:$0xff]  ;;  %v20166_v7 = vpop.permute.xlu0 %2655 }
 0x758   : > { %14049 = vmatpush1.bf16.msra.mxu0 %v19829_v62 }
 0x759   : > { %14249 = vmatpush1.bf16.msra.mxu1 %v19829_v62  ;;  %14051 = vmatprep.subr.bf16.mxu0 %v19833_v23  ;;  %v10163_v62 = vld [vmem:[%s22146_s3 + $0x3d0] sm:$0xff] }
 0x75a   : > { %14251 = vmatprep.subr.bf16.mxu1 %v19833_v23  ;;  %v10161_v23 = vld [vmem:[%s22146_s3 + $0x3c0] sm:$0xff] }
 0x75b   : > { %v19883_v2 = vpack.c.bf16 %v10163_v62, %v10161_v23  ;;  %v10173_v62 = vld [vmem:[%s22146_s3 + $0x408] sm:$0xff]  ;;  %v10170_v23 = vld [vmem:[%s22146_s3 + $0x3f0] sm:$0xff] }
 0x75c   : > { %14053 = vmatpush1.bf16.msra.mxu0 %v19849_v42 }
 0x75d   : > { %14253 = vmatpush1.bf16.msra.mxu1 %v19849_v42  ;;  %14055 = vmatprep.subr.bf16.mxu0 %v19853_v32  ;;  %22831 = vst [vmem:[#allocation44_spill] sm:$0xff] %v19883_v2  ;;  %v19918_v42 = vpack.c.bf16 %v10173_v62, %v10171_v8  ;;  %v10174_v8 = vld [vmem:[%s22146_s3 + $0x410] sm:$0xff]  ;;  %v10176_v62 = vld [vmem:[%s22146_s3 + $0x420] sm:$0xff] }
 0x75e   : > { %14255 = vmatprep.subr.bf16.mxu1 %v19853_v32  ;;  %v19914_v32 = vld [vmem:[%s22146_s3 + $0x3e0] sm:$0x3] }
 0x75f   : > { %22833 = vst [vmem:[#allocation46_spill] sm:$0xff] %v19914_v32  ;;  %22834 = vst [vmem:[#allocation47_spill] sm:$0xff] %v19918_v42 }
 0x760   : > { %14057 = vmatpush1.bf16.msra.mxu0 %v19869_v41 }
 0x761   : > { %14257 = vmatpush1.bf16.msra.mxu1 %v19869_v41  ;;  %14059 = vmatprep.subr.bf16.mxu0 %v19873_v11  ;;  %v2023_v41 = vsel %vm1071_vm2, %v2020_v18, %v19685_v44  ;;  %v10177_v44 = vld [vmem:[%s22146_s3 + $0x428] sm:$0xff] }
 0x762   : > { %14259 = vmatprep.subr.bf16.mxu1 %v19873_v11  ;;  %v10172_v11 = vld [vmem:[%s22146_s3 + $0x400] sm:$0xff] }
 0x763   : > { %v19926_v18 = vpack.c.bf16 %v10172_v11, %v10170_v23  ;;  %v10179_v11 = vld [vmem:[%s22146_s3 + $0x438] sm:$0xff]  ;;  %v22838_v23 = vld [vmem:[#allocation23_spill] sm:$0xff] }
 0x764   : > { %14061 = vmatpush1.bf16.msra.mxu0 %v19883_v2 }
 0x765   : > { %14261 = vmatpush1.bf16.msra.mxu1 %v19883_v2  ;;  %10167 = vmatprep.subr.msk.mxu0 %vm5288_vm3, %v19891_v28  ;;  %22835 = vst [vmem:[#allocation48_spill] sm:$0xff] %v19926_v18  ;;  %v22836_v2 = vld [vmem:[#allocation3_spill] sm:$0xff] }
 0x766   : > { %10266 = vmatprep.subr.msk.mxu1 %vm5288_vm3, %v19891_v28  ;;  %v19929_v37 = vmax.f32 %v22836_v2, %v2023_v41  ;;  %v19944_v41 = vpack.c.bf16 %v10177_v44, %v10175_v36  ;;  %v10181_v2 = vld [vmem:[%s22146_s3 + $0x448] sm:$0xff]  ;;  %v19956_v28 = vmax.f32 %v22838_v23, %v19931_v3  ;;  %v19960_v36 = vpack.c.bf16 %v10176_v62, %v10174_v8  ;;  %v10180_v23 = vld [vmem:[%s22146_s3 + $0x440] sm:$0xff]  ;;  %v10183_v8 = vld [vmem:[%s22146_s3 + $0x458] sm:$0xff] }
 0x767   : > { %v19965_v44 = vpack.c.bf16 %v10181_v2, %v10179_v11  ;;  %v10185_v62 = vld [vmem:[%s22146_s3 + $0x468] sm:$0xff] }
 0x768   : > { %10168 = vmatpush1.msk.msra.mxu0 %vm5288_vm3, %v19914_v32  ;;  %22837 = vst [vmem:[#allocation3_spill] sm:$0xff] %v19944_v41  ;;  %22839 = vst [vmem:[#allocation23_spill] sm:$0xff] %v19960_v36  ;;  %v19988_v2 = vpack.c.bf16 %v10185_v62, %v10183_v8 }
 0x769   : > { %10267 = vmatpush1.msk.msra.mxu1 %vm5288_vm3, %v19914_v32  ;;  %5563 = vmatmul.mubr.f32.vlgmr.msra.gmra.mrb[28].mxu0 %v19457_v16  ;;  %22840 = vst [vmem:[#allocation49_spill] sm:$0xff] %v19965_v44  ;;  %v10178_v32 = vld [vmem:[%s22146_s3 + $0x430] sm:$0xff] }
 0x76a   : > { %14063 = vmatprep.subr.bf16.mxu0 %v19918_v42  ;;  %6043 = vmatmul.mubr.f32.vlgmr.msra.gmra.mrb[28].mxu1 %v19929_v37  ;;  %v19984_v11 = vpack.c.bf16 %v10180_v23, %v10178_v32  ;;  %22842 = vst [vmem:[#allocation51_spill] sm:$0xff] %v19988_v2  ;;  %v10187_v32 = vld [vmem:[%s22146_s3 + $0x478] sm:$0xff]  ;;  %v10189_v23 = vld [vmem:[%s22146_s3 + $0x488] sm:$0xff] }
 0x76b   : > { %14263 = vmatprep.subr.bf16.mxu1 %v19918_v42  ;;  %14065 = vmatpush1.bf16.msra.mxu0 %v19926_v18  ;;  %v10184_v42 = vld [vmem:[%s22146_s3 + $0x460] sm:$0xff]  ;;  %v20008_v62 = vpack.c.bf16 %v10189_v23, %v10187_v32 }
 0x76c   : > { %10214 = vmatprep.mubr.msk.f32.mxu0 %vm5284_vm1, %v19709_v63  ;;  %14265 = vmatpush1.bf16.msra.mxu1 %v19926_v18  ;;  %22841 = vst [vmem:[#allocation50_spill] sm:$0xff] %v19984_v11  ;;  %v10182_v18 = vld [vmem:[%s22146_s3 + $0x450] sm:$0xff] }
 0x76d   : > { %10271 = vmatprep.mubr.msk.f32.mxu1 %vm5284_vm1, %v19956_v28  ;;  %14067 = vmatprep.subr.bf16.mxu0 %v19944_v41  ;;  %v20004_v8 = vpack.c.bf16 %v10184_v42, %v10182_v18  ;;  %22844 = vst [vmem:[#allocation53_spill] sm:$0xff] %v20008_v62  ;;  %v10191_v42 = vld [vmem:[%s22146_s3 + $0x498] sm:$0xff]  ;;  %v10193_v18 = vld [vmem:[%s22146_s3 + $0x4a8] sm:$0xff] }
 0x76e   : > { %14267 = vmatprep.subr.bf16.mxu1 %v19944_v41  ;;  %v20028_v23 = vpack.c.bf16 %v10193_v18, %v10191_v42  ;;  %v10220_v41 = vld [vmem:[%s22146_s3 + $0x568] sm:$0xff] }
 0x76f   : > { %14069 = vmatpush1.bf16.msra.mxu0 %v19960_v36  ;;  %22843 = vst [vmem:[#allocation52_spill] sm:$0xff] %v20004_v8 }
 0x770   : > { %14269 = vmatpush1.bf16.msra.mxu1 %v19960_v36  ;;  %14071 = vmatprep.subr.bf16.mxu0 %v19965_v44  ;;  %v10188_v36 = vld [vmem:[%s22146_s3 + $0x480] sm:$0xff]  ;;  %22846 = vst [vmem:[#allocation55_spill] sm:$0xff] %v20028_v23 }
 0x771   : > { %14271 = vmatprep.subr.bf16.mxu1 %v19965_v44  ;;  %v10186_v44 = vld [vmem:[%s22146_s3 + $0x470] sm:$0xff] }
 0x772   : > { %v20024_v32 = vpack.c.bf16 %v10188_v36, %v10186_v44  ;;  %v10195_v36 = vld [vmem:[%s22146_s3 + $0x4b8] sm:$0xff]  ;;  %v10197_v44 = vld [vmem:[%s22146_s3 + $0x4c8] sm:$0xff] }
 0x773   : > { %14073 = vmatpush1.bf16.msra.mxu0 %v19984_v11  ;;  %v20048_v18 = vpack.c.bf16 %v10197_v44, %v10195_v36 }
 0x774   : > { %14273 = vmatpush1.bf16.msra.mxu1 %v19984_v11  ;;  %14075 = vmatprep.subr.bf16.mxu0 %v19988_v2  ;;  %22845 = vst [vmem:[#allocation54_spill] sm:$0xff] %v20024_v32  ;;  %v10192_v11 = vld [vmem:[%s22146_s3 + $0x4a0] sm:$0xff] }
 0x775   : > { %14275 = vmatprep.subr.bf16.mxu1 %v19988_v2  ;;  %v10190_v2 = vld [vmem:[%s22146_s3 + $0x490] sm:$0xff]  ;;  %22848 = vst [vmem:[#allocation57_spill] sm:$0xff] %v20048_v18 }
 0x776   : > { %v20044_v42 = vpack.c.bf16 %v10192_v11, %v10190_v2  ;;  %v10199_v11 = vld [vmem:[%s22146_s3 + $0x4d8] sm:$0xff]  ;;  %v10201_v2 = vld [vmem:[%s22146_s3 + $0x4e8] sm:$0xff] }
 0x777   : > { %14077 = vmatpush1.bf16.msra.mxu0 %v20004_v8  ;;  %v20068_v44 = vpack.c.bf16 %v10201_v2, %v10199_v11 }
 0x778   : > { %14277 = vmatpush1.bf16.msra.mxu1 %v20004_v8  ;;  %14079 = vmatprep.subr.bf16.mxu0 %v20008_v62  ;;  %22847 = vst [vmem:[#allocation56_spill] sm:$0xff] %v20044_v42  ;;  %v10196_v8 = vld [vmem:[%s22146_s3 + $0x4c0] sm:$0xff] }
 0x779   : > { %14279 = vmatprep.subr.bf16.mxu1 %v20008_v62  ;;  %v10194_v62 = vld [vmem:[%s22146_s3 + $0x4b0] sm:$0xff]  ;;  %22850 = vst [vmem:[#allocation59_spill] sm:$0xff] %v20068_v44 }
 0x77a   : > { %v20064_v36 = vpack.c.bf16 %v10196_v8, %v10194_v62  ;;  %v10203_v8 = vld [vmem:[%s22146_s3 + $0x4f8] sm:$0xff]  ;;  %v10205_v62 = vld [vmem:[%s22146_s3 + $0x508] sm:$0xff] }
 0x77b   : > { %14081 = vmatpush1.bf16.msra.mxu0 %v20024_v32  ;;  %v20088_v2 = vpack.c.bf16 %v10205_v62, %v10203_v8 }
 0x77c   : > { %14281 = vmatpush1.bf16.msra.mxu1 %v20024_v32  ;;  %14083 = vmatprep.subr.bf16.mxu0 %v20028_v23  ;;  %22849 = vst [vmem:[#allocation58_spill] sm:$0xff] %v20064_v36  ;;  %v10200_v32 = vld [vmem:[%s22146_s3 + $0x4e0] sm:$0xff] }
 0x77d   : > { %14283 = vmatprep.subr.bf16.mxu1 %v20028_v23  ;;  %v10198_v23 = vld [vmem:[%s22146_s3 + $0x4d0] sm:$0xff]  ;;  %22852 = vst [vmem:[#allocation61_spill] sm:$0xff] %v20088_v2 }
 0x77e   : > { %v20084_v11 = vpack.c.bf16 %v10200_v32, %v10198_v23  ;;  %v10207_v32 = vld [vmem:[%s22146_s3 + $0x518] sm:$0xff]  ;;  %v10209_v23 = vld [vmem:[%s22146_s3 + $0x528] sm:$0xff] }
 0x77f   : > { %14085 = vmatpush1.bf16.msra.mxu0 %v20044_v42  ;;  %v20108_v62 = vpack.c.bf16 %v10209_v23, %v10207_v32  ;;  %v20126_v32 = vld [vmem:[%s22146_s3 + $0x538] sm:$0x3]  ;;  %v10216_v23 = vld [vmem:[%s22146_s3 + $0x548] sm:$0xff] }
 0x780   : > { %14285 = vmatpush1.bf16.msra.mxu1 %v20044_v42  ;;  %14087 = vmatprep.subr.bf16.mxu0 %v20048_v18  ;;  %22851 = vst [vmem:[#allocation60_spill] sm:$0xff] %v20084_v11  ;;  %v10204_v42 = vld [vmem:[%s22146_s3 + $0x500] sm:$0xff]  ;;  %22856 = vst [vmem:[#allocation65_spill] sm:$0xff] %v20126_v32 }
 0x781   : > { %14287 = vmatprep.subr.bf16.mxu1 %v20048_v18  ;;  %v10202_v18 = vld [vmem:[%s22146_s3 + $0x4f0] sm:$0xff]  ;;  %22854 = vst [vmem:[#allocation63_spill] sm:$0xff] %v20108_v62 }
 0x782   : > { %v20104_v8 = vpack.c.bf16 %v10204_v42, %v10202_v18  ;;  %v2337_v18 = vpop.permute.xlu1 %2336 }
 0x783   : > { %14089 = vmatpush1.bf16.msra.mxu0 %v20064_v36 }
 0x784   : > { %14289 = vmatpush1.bf16.msra.mxu1 %v20064_v36  ;;  %14091 = vmatprep.subr.bf16.mxu0 %v20068_v44  ;;  %22853 = vst [vmem:[#allocation62_spill] sm:$0xff] %v20104_v8  ;;  %v10208_v36 = vld [vmem:[%s22146_s3 + $0x520] sm:$0xff] }
 0x785   : > { %14291 = vmatprep.subr.bf16.mxu1 %v20068_v44  ;;  %v10206_v44 = vld [vmem:[%s22146_s3 + $0x510] sm:$0xff] }
 0x786   : > { %v20118_v42 = vpack.c.bf16 %v10208_v36, %v10206_v44  ;;  %v10218_v36 = vld [vmem:[%s22146_s3 + $0x558] sm:$0xff]  ;;  %v10215_v44 = vld [vmem:[%s22146_s3 + $0x540] sm:$0xff] }
 0x787   : > { %14093 = vmatpush1.bf16.msra.mxu0 %v20084_v11 }
 0x788   : > { %14293 = vmatpush1.bf16.msra.mxu1 %v20084_v11  ;;  %14095 = vmatprep.subr.bf16.mxu0 %v20088_v2  ;;  %22855 = vst [vmem:[#allocation64_spill] sm:$0xff] %v20118_v42  ;;  %v20153_v11 = vpack.c.bf16 %v10218_v36, %v10216_v23  ;;  %v10219_v23 = vld [vmem:[%s22146_s3 + $0x560] sm:$0xff]  ;;  %v10221_v36 = vld [vmem:[%s22146_s3 + $0x570] sm:$0xff] }
 0x789   : > { %14295 = vmatprep.subr.bf16.mxu1 %v20088_v2  ;;  %v20149_v2 = vld [vmem:[%s22146_s3 + $0x530] sm:$0x3] }
 0x78a   : > { %22857 = vst [vmem:[#allocation66_spill] sm:$0xff] %v20149_v2  ;;  %22858 = vst [vmem:[#allocation67_spill] sm:$0xff] %v20153_v11 }
 0x78b   : > { %14097 = vmatpush1.bf16.msra.mxu0 %v20104_v8 }
 0x78c   : > { %14297 = vmatpush1.bf16.msra.mxu1 %v20104_v8  ;;  %14099 = vmatprep.subr.bf16.mxu0 %v20108_v62  ;;  %v2340_v8 = vsel %vm1071_vm2, %v2337_v18, %v19931_v3  ;;  %v10222_v3 = vld [vmem:[%s22146_s3 + $0x578] sm:$0xff] }
 0x78d   : > { %14299 = vmatprep.subr.bf16.mxu1 %v20108_v62  ;;  %v10217_v62 = vld [vmem:[%s22146_s3 + $0x550] sm:$0xff] }
 0x78e   : > { %v20161_v18 = vpack.c.bf16 %v10217_v62, %v10215_v44  ;;  %v10224_v62 = vld [vmem:[%s22146_s3 + $0x588] sm:$0xff]  ;;  %v22862_v44 = vld [vmem:[#allocation25_spill] sm:$0xff] }
 0x78f   : > { %14101 = vmatpush1.bf16.msra.mxu0 %v20118_v42 }
 0x790   : > { %14301 = vmatpush1.bf16.msra.mxu1 %v20118_v42  ;;  %10212 = vmatprep.subr.msk.mxu0 %vm5288_vm3, %v20126_v32  ;;  %22859 = vst [vmem:[#allocation68_spill] sm:$0xff] %v20161_v18  ;;  %v22860_v42 = vld [vmem:[#allocation22_spill] sm:$0xff] }
 0x791   : > { %10269 = vmatprep.subr.msk.mxu1 %vm5288_vm3, %v20126_v32  ;;  %v20164_v31 = vmax.f32 %v22860_v42, %v2340_v8  ;;  %v20179_v8 = vpack.c.bf16 %v10222_v3, %v10220_v41  ;;  %v10226_v42 = vld [vmem:[%s22146_s3 + $0x598] sm:$0xff]  ;;  %v20191_v32 = vmax.f32 %v22862_v44, %v20166_v7  ;;  %v20195_v41 = vpack.c.bf16 %v10221_v36, %v10219_v23  ;;  %v10225_v44 = vld [vmem:[%s22146_s3 + $0x590] sm:$0xff]  ;;  %v10228_v23 = vld [vmem:[%s22146_s3 + $0x5a8] sm:$0xff] }
 0x792   : > { %v20200_v3 = vpack.c.bf16 %v10226_v42, %v10224_v62  ;;  %v10230_v36 = vld [vmem:[%s22146_s3 + $0x5b8] sm:$0xff] }
 0x793   : > { %10213 = vmatpush1.msk.msra.mxu0 %vm5288_vm3, %v20149_v2  ;;  %22861 = vst [vmem:[#allocation22_spill] sm:$0xff] %v20179_v8  ;;  %22863 = vst [vmem:[#allocation25_spill] sm:$0xff] %v20195_v41  ;;  %v20223_v42 = vpack.c.bf16 %v10230_v36, %v10228_v23 }
 0x794   : > { %10270 = vmatpush1.msk.msra.mxu1 %vm5288_vm3, %v20149_v2  ;;  %5688 = vmatmul.mubr.f32.vlgmr.msra.gmra.mrb[28].mxu0 %v19929_v37  ;;  %22864 = vst [vmem:[#allocation69_spill] sm:$0xff] %v20200_v3  ;;  %v10223_v2 = vld [vmem:[%s22146_s3 + $0x580] sm:$0xff] }
 0x795   : > { %14103 = vmatprep.subr.bf16.mxu0 %v20153_v11  ;;  %6116 = vmatmul.mubr.f32.vlgmr.msra.gmra.mrb[28].mxu1 %v20164_v31  ;;  %v20219_v62 = vpack.c.bf16 %v10225_v44, %v10223_v2  ;;  %22866 = vst [vmem:[#allocation71_spill] sm:$0xff] %v20223_v42  ;;  %v10232_v2 = vld [vmem:[%s22146_s3 + $0x5c8] sm:$0xff]  ;;  %v10234_v44 = vld [vmem:[%s22146_s3 + $0x5d8] sm:$0xff] }
 0x796   : > { %14303 = vmatprep.subr.bf16.mxu1 %v20153_v11  ;;  %14105 = vmatpush1.bf16.msra.mxu0 %v20161_v18  ;;  %v10229_v11 = vld [vmem:[%s22146_s3 + $0x5b0] sm:$0xff]  ;;  %v20243_v36 = vpack.c.bf16 %v10234_v44, %v10232_v2 }
 0x797   : > { %10259 = vmatprep.mubr.msk.f32.mxu0 %vm5284_vm1, %v19956_v28  ;;  %14305 = vmatpush1.bf16.msra.mxu1 %v20161_v18  ;;  %22865 = vst [vmem:[#allocation70_spill] sm:$0xff] %v20219_v62  ;;  %v10227_v18 = vld [vmem:[%s22146_s3 + $0x5a0] sm:$0xff] }
 0x798   : > { %10274 = vmatprep.mubr.msk.f32.mxu1 %vm5284_vm1, %v20191_v32  ;;  %14107 = vmatprep.subr.bf16.mxu0 %v20179_v8  ;;  %v20239_v23 = vpack.c.bf16 %v10229_v11, %v10227_v18  ;;  %22868 = vst [vmem:[#allocation73_spill] sm:$0xff] %v20243_v36  ;;  %v10236_v11 = vld [vmem:[%s22146_s3 + $0x5e8] sm:$0xff]  ;;  %v10238_v18 = vld [vmem:[%s22146_s3 + $0x5f8] sm:$0xff] }
 0x799   : > { %14307 = vmatprep.subr.bf16.mxu1 %v20179_v8  ;;  %v20263_v44 = vpack.c.bf16 %v10238_v18, %v10236_v11 }
 0x79a   : > { %14109 = vmatpush1.bf16.msra.mxu0 %v20195_v41  ;;  %22867 = vst [vmem:[#allocation72_spill] sm:$0xff] %v20239_v23 }
 0x79b   : > { %14309 = vmatpush1.bf16.msra.mxu1 %v20195_v41  ;;  %14111 = vmatprep.subr.bf16.mxu0 %v20200_v3  ;;  %v10233_v41 = vld [vmem:[%s22146_s3 + $0x5d0] sm:$0xff]  ;;  %22870 = vst [vmem:[#allocation75_spill] sm:$0xff] %v20263_v44 }
 0x79c   : > { %14311 = vmatprep.subr.bf16.mxu1 %v20200_v3  ;;  %v10231_v3 = vld [vmem:[%s22146_s3 + $0x5c0] sm:$0xff] }
 0x79d   : > { %v20259_v2 = vpack.c.bf16 %v10233_v41, %v10231_v3  ;;  %v10240_v41 = vld [vmem:[%s22146_s3 + $0x608] sm:$0xff]  ;;  %v10242_v3 = vld [vmem:[%s22146_s3 + $0x618] sm:$0xff] }
 0x79e   : > { %14113 = vmatpush1.bf16.msra.mxu0 %v20219_v62  ;;  %v20283_v18 = vpack.c.bf16 %v10242_v3, %v10240_v41 }
 0x79f   : > { %14313 = vmatpush1.bf16.msra.mxu1 %v20219_v62  ;;  %14115 = vmatprep.subr.bf16.mxu0 %v20223_v42  ;;  %22869 = vst [vmem:[#allocation74_spill] sm:$0xff] %v20259_v2  ;;  %v10237_v62 = vld [vmem:[%s22146_s3 + $0x5f0] sm:$0xff] }
 0x7a0   : > { %14315 = vmatprep.subr.bf16.mxu1 %v20223_v42  ;;  %v10235_v42 = vld [vmem:[%s22146_s3 + $0x5e0] sm:$0xff]  ;;  %22872 = vst [vmem:[#allocation77_spill] sm:$0xff] %v20283_v18 }
 0x7a1   : > { %v20279_v11 = vpack.c.bf16 %v10237_v62, %v10235_v42  ;;  %v10244_v62 = vld [vmem:[%s22146_s3 + $0x628] sm:$0xff]  ;;  %v10246_v42 = vld [vmem:[%s22146_s3 + $0x638] sm:$0xff] }
 0x7a2   : > { %14117 = vmatpush1.bf16.msra.mxu0 %v20239_v23  ;;  %v20303_v3 = vpack.c.bf16 %v10246_v42, %v10244_v62 }
 0x7a3   : > { %14317 = vmatpush1.bf16.msra.mxu1 %v20239_v23  ;;  %14119 = vmatprep.subr.bf16.mxu0 %v20243_v36  ;;  %22871 = vst [vmem:[#allocation76_spill] sm:$0xff] %v20279_v11  ;;  %v10241_v23 = vld [vmem:[%s22146_s3 + $0x610] sm:$0xff] }
 0x7a4   : > { %14319 = vmatprep.subr.bf16.mxu1 %v20243_v36  ;;  %v10239_v36 = vld [vmem:[%s22146_s3 + $0x600] sm:$0xff]  ;;  %22874 = vst [vmem:[#allocation79_spill] sm:$0xff] %v20303_v3 }
 0x7a5   : > { %v20299_v41 = vpack.c.bf16 %v10241_v23, %v10239_v36  ;;  %v10248_v23 = vld [vmem:[%s22146_s3 + $0x648] sm:$0xff]  ;;  %v10250_v36 = vld [vmem:[%s22146_s3 + $0x658] sm:$0xff] }
 0x7a6   : > { %14121 = vmatpush1.bf16.msra.mxu0 %v20259_v2  ;;  %v20323_v42 = vpack.c.bf16 %v10250_v36, %v10248_v23 }
 0x7a7   : > { %14321 = vmatpush1.bf16.msra.mxu1 %v20259_v2  ;;  %14123 = vmatprep.subr.bf16.mxu0 %v20263_v44  ;;  %22873 = vst [vmem:[#allocation78_spill] sm:$0xff] %v20299_v41  ;;  %v10245_v2 = vld [vmem:[%s22146_s3 + $0x630] sm:$0xff] }
 0x7a8   : > { %14323 = vmatprep.subr.bf16.mxu1 %v20263_v44  ;;  %v10243_v44 = vld [vmem:[%s22146_s3 + $0x620] sm:$0xff]  ;;  %22876 = vst [vmem:[#allocation81_spill] sm:$0xff] %v20323_v42 }
 0x7a9   : > { %v20319_v62 = vpack.c.bf16 %v10245_v2, %v10243_v44  ;;  %v10252_v2 = vld [vmem:[%s22146_s3 + $0x668] sm:$0xff]  ;;  %v10254_v44 = vld [vmem:[%s22146_s3 + $0x678] sm:$0xff] }
 0x7aa   : > { %14125 = vmatpush1.bf16.msra.mxu0 %v20279_v11  ;;  %v20343_v36 = vpack.c.bf16 %v10254_v44, %v10252_v2  ;;  %v20361_v2 = vld [vmem:[%s22146_s3 + $0x688] sm:$0x3] }
 0x7ab   : > { %14325 = vmatpush1.bf16.msra.mxu1 %v20279_v11  ;;  %14127 = vmatprep.subr.bf16.mxu0 %v20283_v18  ;;  %22875 = vst [vmem:[#allocation80_spill] sm:$0xff] %v20319_v62  ;;  %v10249_v11 = vld [vmem:[%s22146_s3 + $0x650] sm:$0xff]  ;;  %22880 = vst [vmem:[#allocation85_spill] sm:$0xff] %v20361_v2 }
 0x7ac   : > { %14327 = vmatprep.subr.bf16.mxu1 %v20283_v18  ;;  %v10247_v18 = vld [vmem:[%s22146_s3 + $0x640] sm:$0xff]  ;;  %22878 = vst [vmem:[#allocation83_spill] sm:$0xff] %v20343_v36 }
 0x7ad   : > { %v20339_v23 = vpack.c.bf16 %v10249_v11, %v10247_v18  ;;  %v2654_v18 = vpop.permute.xlu1 %2653 }
 0x7ae   : > { %14129 = vmatpush1.bf16.msra.mxu0 %v20299_v41  ;;  %v2657_v44 = vsel %vm1071_vm2, %v2654_v18, %v20166_v7 }
 0x7af   : > { %14329 = vmatpush1.bf16.msra.mxu1 %v20299_v41  ;;  %14131 = vmatprep.subr.bf16.mxu0 %v20303_v3  ;;  %22877 = vst [vmem:[#allocation82_spill] sm:$0xff] %v20339_v23  ;;  %v10253_v41 = vld [vmem:[%s22146_s3 + $0x670] sm:$0xff] }
 0x7b0   : > { %14331 = vmatprep.subr.bf16.mxu1 %v20303_v3  ;;  %v10251_v3 = vld [vmem:[%s22146_s3 + $0x660] sm:$0xff] }
 0x7b1   : > { %v20353_v11 = vpack.c.bf16 %v10253_v41, %v10251_v3  ;;  %v20372_v41 = vld [vmem:[%s22146_s3 + $0x680] sm:$0x3] }
 0x7b2   : > { %14133 = vmatpush1.bf16.msra.mxu0 %v20319_v62 }
 0x7b3   : > { %14333 = vmatpush1.bf16.msra.mxu1 %v20319_v62  ;;  %14135 = vmatprep.subr.bf16.mxu0 %v20323_v42  ;;  %22879 = vst [vmem:[#allocation84_spill] sm:$0xff] %v20353_v11 }
 0x7b4   : > { %14335 = vmatprep.subr.bf16.mxu1 %v20323_v42 }
 0x7b6   : > { %14137 = vmatpush1.bf16.msra.mxu0 %v20339_v23 }
 0x7b7   : > { %14337 = vmatpush1.bf16.msra.mxu1 %v20339_v23  ;;  %14139 = vmatprep.subr.bf16.mxu0 %v20343_v36 }
 0x7b8   : > { %14339 = vmatprep.subr.bf16.mxu1 %v20343_v36 }
 0x7ba   : > { %14141 = vmatpush1.bf16.msra.mxu0 %v20353_v11 }
 0x7bb   : > { %14341 = vmatpush1.bf16.msra.mxu1 %v20353_v11  ;;  %10257 = vmatprep.subr.msk.mxu0 %vm5288_vm3, %v20361_v2  ;;  %v22881_v11 = vld [vmem:[#allocation24_spill] sm:$0xff] }
 0x7bc   : > { %10272 = vmatprep.subr.msk.mxu1 %vm5288_vm3, %v20361_v2  ;;  %v5026_v3 = vpop.f32.mrb[26].mxu0  ;;  %v5178_v36 = vpop.f32.mrb[26].mxu1  ;;  %v20379_v62 = vmax.f32 %v22881_v11, %v2657_v44  ;;  %v22891_v44 = vld [vmem:[#allocation21_spill] sm:$0xff] }
 0x7bd   : > { %v16177_v23 = vadd.f32 %v5026_v3, %v17586_v39  ;;  %v16179_v42 = vadd.f32 %v5178_v36, %v17586_v39  ;;  %v5028_v7 = vpop.f32.mrb[27].mxu0  ;;  %v5180_v18 = vpop.f32.mrb[27].mxu1 }
 0x7be   : > { %10258 = vmatpush1.msk.msra.mxu0 %vm5288_vm3, %v20372_v41  ;;  %v16178_v8 = vadd.f32 %v5028_v7, %v17592_v52  ;;  %v16180_v22 = vadd.f32 %v5180_v18, %v17592_v52  ;;  %v22892_v7 = vld [vmem:[#allocation20_spill] sm:$0xff] }
 0x7bf   : > { %10273 = vmatpush1.msk.msra.mxu1 %vm5288_vm3, %v20372_v41  ;;  %5813 = vmatmul.mubr.f32.vlgmr.msra.gmra.mrb[28].mxu0 %v20164_v31  ;;  %v5031_v3 = vmax.f32 %v16177_v23, 0.0  ;;  %v5183_v2 = vmax.f32 %v16179_v42, 0.0  ;;  %v22886_v42 = vld [vmem:[#allocation9_spill] sm:$0xff]  ;;  %v22887_v23 = vld [vmem:[#allocation10_spill] sm:$0xff]  ;;  %v22893_v18 = vld [vmem:[#allocation16_spill] sm:$0xff] }
 0x7c0   : > { %6192 = vmatmul.mubr.f32.vlgmr.msra.gmra.mrb[28].mxu1 %v20379_v62  ;;  %14343 = vmatprep.subr.bf16.mxu0 %v19201_v34  ;;  %v5032_v39 = vmax.f32 %v16178_v8, 0.0  ;;  %v5184_v36 = vmax.f32 %v16180_v22, 0.0  ;;  %v20444_v22 = vld [vmem:[%s22146_s3 + $0x298] sm:$0x3]  ;;  %v20453_v8 = vld [vmem:[%s22146_s3 + $0x290] sm:$0x3] }
 0x7c1   : > { %14543 = vmatprep.subr.bf16.mxu1 %v19201_v34  ;;  %v20391_v11 = vmax.f32 %v5031_v3, %v5183_v2  ;;  %14345 = vmatpush1.bf16.msra.mxu0 %v19223_v12  ;;  %v22888_v2 = vld [vmem:[#allocation11_spill] sm:$0xff]  ;;  %v22894_v3 = vld [vmem:[#allocation4_spill] sm:$0xff] }
 0x7c2   : > { %10277 = vmatprep.mubr.msk.f32.mxu0 %vm5284_vm1, %v19709_v63  ;;  %14545 = vmatpush1.bf16.msra.mxu1 %v19223_v12  ;;  %v20397_v52 = vmax.f32 %v5032_v39, %v5184_v36  ;;  %v22895_v39 = vld [vmem:[#allocation36_spill] sm:$0xff]  ;;  %v22896_v36 = vld [vmem:[#allocation37_spill] sm:$0xff] }
 0x7c3   : > { %22882 = vst [vmem:[#allocation24_spill] sm:$0xff] %v20391_v11  ;;  %10292 = vmatprep.mubr.msk.f32.mxu1 %vm5284_vm1, %v19956_v28  ;;  %14347 = vmatprep.subr.bf16.mxu0 %v19237_v20 }
 0x7c4   : > { %22883 = vst [vmem:[#allocation86_spill] sm:$0xff] %v20397_v52  ;;  %14547 = vmatprep.subr.bf16.mxu1 %v19237_v20  ;;  %5189 = vrot.lane.b32.xlu1 %v20391_v11, %s16407_s23  ;;  %v22899_v11 = vld [vmem:[#allocation40_spill] sm:$0xff] }
 0x7c5   : > { %14349 = vmatpush1.bf16.msra.mxu0 %v19252_v40  ;;  %5191 = vrot.lane.b32.xlu0 %v20397_v52, %s16407_s23  ;;  %v22900_v52 = vld [vmem:[#allocation41_spill] sm:$0xff] }
 0x7c6   : > { %14549 = vmatpush1.bf16.msra.mxu1 %v19252_v40  ;;  %14351 = vmatprep.subr.bf16.mxu0 %v19257_v53 }
 0x7c7   : > { %14551 = vmatprep.subr.bf16.mxu1 %v19257_v53 }
 0x7c9   : > { %14353 = vmatpush1.bf16.msra.mxu0 %v19274_v6 }
 0x7ca   : > { %14553 = vmatpush1.bf16.msra.mxu1 %v19274_v6  ;;  %14355 = vmatprep.subr.bf16.mxu0 %v19278_v50 }
 0x7cb   : > { %14555 = vmatprep.subr.bf16.mxu1 %v19278_v50 }
 0x7cd   : > { %14357 = vmatpush1.bf16.msra.mxu0 %v19294_v56 }
 0x7ce   : > { %14557 = vmatpush1.bf16.msra.mxu1 %v19294_v56  ;;  %14359 = vmatprep.subr.bf16.mxu0 %v19298_v61 }
 0x7cf   : > { %14559 = vmatprep.subr.bf16.mxu1 %v19298_v61 }
 0x7d1   : > { %14361 = vmatpush1.bf16.msra.mxu0 %v19314_v10 }
 0x7d2   : > { %14561 = vmatpush1.bf16.msra.mxu1 %v19314_v10  ;;  %14363 = vmatprep.subr.bf16.mxu0 %v19318_v15 }
 0x7d3   : > { %14563 = vmatprep.subr.bf16.mxu1 %v19318_v15 }
 0x7d5   : > { %14365 = vmatpush1.bf16.msra.mxu0 %v19334_v30 }
 0x7d6   : > { %14565 = vmatpush1.bf16.msra.mxu1 %v19334_v30  ;;  %14367 = vmatprep.subr.bf16.mxu0 %v19338_v35 }
 0x7d7   : > { %14567 = vmatprep.subr.bf16.mxu1 %v19338_v35 }
 0x7d9   : > { %14369 = vmatpush1.bf16.msra.mxu0 %v19354_v48 }
 0x7da   : > { %14569 = vmatpush1.bf16.msra.mxu1 %v19354_v48  ;;  %14371 = vmatprep.subr.bf16.mxu0 %v19358_v54 }
 0x7db   : > { %14571 = vmatprep.subr.bf16.mxu1 %v19358_v54 }
 0x7dd   : > { %14373 = vmatpush1.bf16.msra.mxu0 %v19374_v26 }
 0x7de   : > { %14573 = vmatpush1.bf16.msra.mxu1 %v19374_v26  ;;  %14375 = vmatprep.subr.bf16.mxu0 %v19378_v27 }
 0x7df   : > { %14575 = vmatprep.subr.bf16.mxu1 %v19378_v27 }
 0x7e1   : > { %14377 = vmatpush1.bf16.msra.mxu0 %v19394_v46 }
 0x7e2   : > { %14577 = vmatpush1.bf16.msra.mxu1 %v19394_v46  ;;  %14379 = vmatprep.subr.bf16.mxu0 %v19398_v5 }
 0x7e3   : > { %14579 = vmatprep.subr.bf16.mxu1 %v19398_v5 }
 0x7e5   : > { %14381 = vmatpush1.bf16.msra.mxu0 %v19408_v17 }
 0x7e6   : > { %14581 = vmatpush1.bf16.msra.mxu1 %v19408_v17  ;;  %10275 = vmatprep.subr.msk.mxu0 %vm5288_vm3, %v20444_v22 }
 0x7e7   : > { %10290 = vmatprep.subr.msk.mxu1 %vm5288_vm3, %v20444_v22 }
 0x7e9   : > { %10276 = vmatpush1.msk.msra.mxu0 %vm5288_vm3, %v20453_v8 }
 0x7ea   : > { %10291 = vmatpush1.msk.msra.mxu1 %vm5288_vm3, %v20453_v8  ;;  %6283 = vmatmul.mubr.f32.vlgmr.msra.gmra.mrb[30].mxu0 %v19929_v37 }
 0x7eb   : > { %14383 = vmatprep.subr.bf16.mxu0 %v19441_v14  ;;  %6651 = vmatmul.mubr.f32.vlgmr.msra.gmra.mrb[30].mxu1 %v20164_v31 }
 0x7ec   : > { %14583 = vmatprep.subr.bf16.mxu1 %v19441_v14  ;;  %14385 = vmatpush1.bf16.msra.mxu0 %v19454_v4 }
 0x7ed   : > { %10280 = vmatprep.mubr.msk.f32.mxu0 %vm5284_vm1, %v19247_v25  ;;  %14585 = vmatpush1.bf16.msra.mxu1 %v19454_v4  ;;  %v22884_v25 = vld [vmem:[#allocation7_spill] sm:$0xff] }
 0x7ee   : > { %10295 = vmatprep.mubr.msk.f32.mxu1 %vm5284_vm1, %v19709_v63  ;;  %14387 = vmatprep.subr.bf16.mxu0 %v19468_v29  ;;  %v22885_v63 = vld [vmem:[#allocation8_spill] sm:$0xff] }
 0x7ef   : > { %14587 = vmatprep.subr.bf16.mxu1 %v19468_v29 }
 0x7f0   : > { %14389 = vmatpush1.bf16.msra.mxu0 %v19482_v57 }
 0x7f1   : > { %14589 = vmatpush1.bf16.msra.mxu1 %v19482_v57  ;;  %14391 = vmatprep.subr.bf16.mxu0 %v19486_v0 }
 0x7f2   : > { %14591 = vmatprep.subr.bf16.mxu1 %v19486_v0 }
 0x7f4   : > { %14393 = vmatpush1.bf16.msra.mxu0 %v19505_v24 }
 0x7f5   : > { %14593 = vmatpush1.bf16.msra.mxu1 %v19505_v24  ;;  %14395 = vmatprep.subr.bf16.mxu0 %v19509_v58 }
 0x7f6   : > { %14595 = vmatprep.subr.bf16.mxu1 %v19509_v58 }
 0x7f8   : > { %14397 = vmatpush1.bf16.msra.mxu0 %v19525_v43 }
 0x7f9   : > { %14597 = vmatpush1.bf16.msra.mxu1 %v19525_v43  ;;  %14399 = vmatprep.subr.bf16.mxu0 %v19529_v13 }
 0x7fa   : > { %14599 = vmatprep.subr.bf16.mxu1 %v19529_v13 }
 0x7fc   : > { %14401 = vmatpush1.bf16.msra.mxu0 %v19545_v38 }
 0x7fd   : > { %14601 = vmatpush1.bf16.msra.mxu1 %v19545_v38  ;;  %14403 = vmatprep.subr.bf16.mxu0 %v19549_v59 }
 0x7fe   : > { %14603 = vmatprep.subr.bf16.mxu1 %v19549_v59 }
 0x800   : > { %14405 = vmatpush1.bf16.msra.mxu0 %v19565_v9 }
 0x801   : > { %14605 = vmatpush1.bf16.msra.mxu1 %v19565_v9  ;;  %14407 = vmatprep.subr.bf16.mxu0 %v19569_v21 }
 0x802   : > { %14607 = vmatprep.subr.bf16.mxu1 %v19569_v21 }
 0x804   : > { %14409 = vmatpush1.bf16.msra.mxu0 %v19585_v47 }
 0x805   : > { %14609 = vmatpush1.bf16.msra.mxu1 %v19585_v47  ;;  %14411 = vmatprep.subr.bf16.mxu0 %v19589_v1 }
 0x806   : > { %14611 = vmatprep.subr.bf16.mxu1 %v19589_v1 }
 0x808   : > { %14413 = vmatpush1.bf16.msra.mxu0 %v19605_v33 }
 0x809   : > { %14613 = vmatpush1.bf16.msra.mxu1 %v19605_v33  ;;  %14415 = vmatprep.subr.bf16.mxu0 %v19609_v60 }
 0x80a   : > { %14615 = vmatprep.subr.bf16.mxu1 %v19609_v60 }
 0x80c   : > { %14417 = vmatpush1.bf16.msra.mxu0 %v19625_v19 }
 0x80d   : > { %14617 = vmatpush1.bf16.msra.mxu1 %v19625_v19  ;;  %14419 = vmatprep.subr.bf16.mxu0 %v19629_v49 }
 0x80e   : > { %14619 = vmatprep.subr.bf16.mxu1 %v19629_v49 }
 0x810   : > { %14421 = vmatpush1.bf16.msra.mxu0 %v19639_v55 }
 0x811   : > { %14621 = vmatpush1.bf16.msra.mxu1 %v19639_v55  ;;  %10278 = vmatprep.subr.msk.mxu0 %vm5288_vm3, %v22884_v25 }
 0x812   : > { %10293 = vmatprep.subr.msk.mxu1 %vm5288_vm3, %v22884_v25  ;;  %v22897_v25 = vld [vmem:[#allocation38_spill] sm:$0xff] }
 0x814   : > { %10279 = vmatpush1.msk.msra.mxu0 %vm5288_vm3, %v22885_v63 }
 0x815   : > { %10294 = vmatpush1.msk.msra.mxu1 %vm5288_vm3, %v22885_v63  ;;  %6354 = vmatmul.mubr.f32.vlgmr.msra.gmra.mrb[30].mxu0 %v19457_v16  ;;  %v22889_v16 = vld [vmem:[#allocation12_spill] sm:$0xff]  ;;  %v22898_v63 = vld [vmem:[#allocation39_spill] sm:$0xff] }
 0x816   : > { %14423 = vmatprep.subr.bf16.mxu0 %v22886_v42  ;;  %6722 = vmatmul.mubr.f32.vlgmr.msra.gmra.mrb[30].mxu1 %v19929_v37  ;;  %v22890_v37 = vld [vmem:[#allocation13_spill] sm:$0xff] }
 0x817   : > { %14623 = vmatprep.subr.bf16.mxu1 %v22886_v42  ;;  %14425 = vmatpush1.bf16.msra.mxu0 %v22887_v23  ;;  %v22956_v42 = vld [vmem:[#allocation28_spill] sm:$0xff] }
 0x818   : > { %10283 = vmatprep.mubr.msk.f32.mxu0 %vm5284_vm1, %v19956_v28  ;;  %14625 = vmatpush1.bf16.msra.mxu1 %v22887_v23 }
 0x819   : > { %10298 = vmatprep.mubr.msk.f32.mxu1 %vm5284_vm1, %v20191_v32  ;;  %14427 = vmatprep.subr.bf16.mxu0 %v22888_v2 }
 0x81a   : > { %14627 = vmatprep.subr.bf16.mxu1 %v22888_v2 }
 0x81b   : > { %14429 = vmatpush1.bf16.msra.mxu0 %v22889_v16 }
 0x81c   : > { %14629 = vmatpush1.bf16.msra.mxu1 %v22889_v16  ;;  %14431 = vmatprep.subr.bf16.mxu0 %v22890_v37  ;;  %v22954_v16 = vld [vmem:[#allocation84_spill] sm:$0xff] }
 0x81d   : > { %14631 = vmatprep.subr.bf16.mxu1 %v22890_v37 }
 0x81f   : > { %14433 = vmatpush1.bf16.msra.mxu0 %v19737_v45 }
 0x820   : > { %14633 = vmatpush1.bf16.msra.mxu1 %v19737_v45  ;;  %14435 = vmatprep.subr.bf16.mxu0 %v19743_v51 }
 0x821   : > { %14635 = vmatprep.subr.bf16.mxu1 %v19743_v51  ;;  %v22929_v51 = vld [vmem:[#allocation66_spill] sm:$0xff] }
 0x823   : > { %14437 = vmatpush1.bf16.msra.mxu0 %v22891_v44 }
 0x824   : > { %14637 = vmatpush1.bf16.msra.mxu1 %v22891_v44  ;;  %14439 = vmatprep.subr.bf16.mxu0 %v22892_v7 }
 0x825   : > { %14639 = vmatprep.subr.bf16.mxu1 %v22892_v7  ;;  %v2971_v7 = vpop.permute.xlu1 %2970 }
 0x827   : > { %14441 = vmatpush1.bf16.msra.mxu0 %v22893_v18 }
 0x828   : > { %14641 = vmatpush1.bf16.msra.mxu1 %v22893_v18  ;;  %14443 = vmatprep.subr.bf16.mxu0 %v22894_v3  ;;  %v22914_v18 = vld [vmem:[#allocation52_spill] sm:$0xff] }
 0x829   : > { %14643 = vmatprep.subr.bf16.mxu1 %v22894_v3  ;;  %v22908_v3 = vld [vmem:[#allocation48_spill] sm:$0xff] }
 0x82b   : > { %14445 = vmatpush1.bf16.msra.mxu0 %v22895_v39 }
 0x82c   : > { %14645 = vmatpush1.bf16.msra.mxu1 %v22895_v39  ;;  %14447 = vmatprep.subr.bf16.mxu0 %v22896_v36  ;;  %v22901_v39 = vld [vmem:[#allocation42_spill] sm:$0xff] }
 0x82d   : > { %14647 = vmatprep.subr.bf16.mxu1 %v22896_v36  ;;  %v22902_v36 = vld [vmem:[#allocation43_spill] sm:$0xff] }
 0x82f   : > { %14449 = vmatpush1.bf16.msra.mxu0 %v22897_v25 }
 0x830   : > { %14649 = vmatpush1.bf16.msra.mxu1 %v22897_v25  ;;  %14451 = vmatprep.subr.bf16.mxu0 %v22898_v63  ;;  %v22903_v25 = vld [vmem:[#allocation44_spill] sm:$0xff] }
 0x831   : > { %14651 = vmatprep.subr.bf16.mxu1 %v22898_v63  ;;  %v22904_v63 = vld [vmem:[#allocation45_spill] sm:$0xff] }
 0x833   : > { %14453 = vmatpush1.bf16.msra.mxu0 %v22899_v11 }
 0x834   : > { %14653 = vmatpush1.bf16.msra.mxu1 %v22899_v11  ;;  %14455 = vmatprep.subr.bf16.mxu0 %v22900_v52  ;;  %v2973_v11 = vpop.permute.xlu0 %2972 }
 0x835   : > { %14655 = vmatprep.subr.bf16.mxu1 %v22900_v52  ;;  %v22905_v52 = vld [vmem:[#allocation46_spill] sm:$0xff] }
 0x837   : > { %14457 = vmatpush1.bf16.msra.mxu0 %v22901_v39 }
 0x838   : > { %14657 = vmatpush1.bf16.msra.mxu1 %v22901_v39  ;;  %14459 = vmatprep.subr.bf16.mxu0 %v22902_v36 }
 0x839   : > { %14659 = vmatprep.subr.bf16.mxu1 %v22902_v36  ;;  %v22906_v36 = vld [vmem:[#allocation47_spill] sm:$0xff] }
 0x83b   : > { %14461 = vmatpush1.bf16.msra.mxu0 %v22903_v25 }
 0x83c   : > { %14661 = vmatpush1.bf16.msra.mxu1 %v22903_v25  ;;  %10281 = vmatprep.subr.msk.mxu0 %vm5288_vm3, %v22904_v63  ;;  %v22907_v25 = vld [vmem:[#allocation27_spill] sm:$0xff] }
 0x83d   : > { %10296 = vmatprep.subr.msk.mxu1 %vm5288_vm3, %v22904_v63  ;;  %v20571_v39 = vmax.f32 %v22907_v25, %v2973_v11  ;;  %v22910_v63 = vld [vmem:[#allocation23_spill] sm:$0xff]  ;;  %v22911_v25 = vld [vmem:[#allocation49_spill] sm:$0xff] }
 0x83f   : > { %10282 = vmatpush1.msk.msra.mxu0 %vm5288_vm3, %v22905_v52 }
 0x840   : > { %10297 = vmatpush1.msk.msra.mxu1 %vm5288_vm3, %v22905_v52  ;;  %6425 = vmatmul.mubr.f32.vlgmr.msra.gmra.mrb[30].mxu0 %v20164_v31  ;;  %v22909_v52 = vld [vmem:[#allocation3_spill] sm:$0xff] }
 0x841   : > { %14463 = vmatprep.subr.bf16.mxu0 %v22906_v36  ;;  %6793 = vmatmul.mubr.f32.vlgmr.msra.gmra.mrb[30].mxu1 %v20379_v62 }
 0x842   : > { %14663 = vmatprep.subr.bf16.mxu1 %v22906_v36  ;;  %14465 = vmatpush1.bf16.msra.mxu0 %v22908_v3  ;;  %v22912_v36 = vld [vmem:[#allocation50_spill] sm:$0xff] }
 0x843   : > { %10286 = vmatprep.mubr.msk.f32.mxu0 %vm5284_vm1, %v20191_v32  ;;  %14665 = vmatpush1.bf16.msra.mxu1 %v22908_v3  ;;  %v22913_v3 = vld [vmem:[#allocation51_spill] sm:$0xff] }
 0x844   : > { %10301 = vmatprep.mubr.msk.f32.mxu1 %vm5284_vm1, %v20571_v39  ;;  %14467 = vmatprep.subr.bf16.mxu0 %v22909_v52 }
 0x845   : > { %14667 = vmatprep.subr.bf16.mxu1 %v22909_v52  ;;  %v22915_v52 = vld [vmem:[#allocation53_spill] sm:$0xff] }
 0x846   : > { %14469 = vmatpush1.bf16.msra.mxu0 %v22910_v63 }
 0x847   : > { %14669 = vmatpush1.bf16.msra.mxu1 %v22910_v63  ;;  %14471 = vmatprep.subr.bf16.mxu0 %v22911_v25  ;;  %v22916_v63 = vld [vmem:[#allocation54_spill] sm:$0xff] }
 0x848   : > { %14671 = vmatprep.subr.bf16.mxu1 %v22911_v25  ;;  %v22917_v25 = vld [vmem:[#allocation55_spill] sm:$0xff] }
 0x84a   : > { %14473 = vmatpush1.bf16.msra.mxu0 %v22912_v36 }
 0x84b   : > { %14673 = vmatpush1.bf16.msra.mxu1 %v22912_v36  ;;  %14475 = vmatprep.subr.bf16.mxu0 %v22913_v3  ;;  %v22918_v36 = vld [vmem:[#allocation56_spill] sm:$0xff] }
 0x84c   : > { %14675 = vmatprep.subr.bf16.mxu1 %v22913_v3  ;;  %v22919_v3 = vld [vmem:[#allocation57_spill] sm:$0xff] }
 0x84e   : > { %14477 = vmatpush1.bf16.msra.mxu0 %v22914_v18 }
 0x84f   : > { %14677 = vmatpush1.bf16.msra.mxu1 %v22914_v18  ;;  %14479 = vmatprep.subr.bf16.mxu0 %v22915_v52  ;;  %v22920_v18 = vld [vmem:[#allocation58_spill] sm:$0xff] }
 0x850   : > { %14679 = vmatprep.subr.bf16.mxu1 %v22915_v52  ;;  %v22921_v52 = vld [vmem:[#allocation59_spill] sm:$0xff] }
 0x852   : > { %14481 = vmatpush1.bf16.msra.mxu0 %v22916_v63 }
 0x853   : > { %14681 = vmatpush1.bf16.msra.mxu1 %v22916_v63  ;;  %14483 = vmatprep.subr.bf16.mxu0 %v22917_v25  ;;  %v22922_v63 = vld [vmem:[#allocation60_spill] sm:$0xff] }
 0x854   : > { %14683 = vmatprep.subr.bf16.mxu1 %v22917_v25  ;;  %v22923_v25 = vld [vmem:[#allocation61_spill] sm:$0xff] }
 0x856   : > { %14485 = vmatpush1.bf16.msra.mxu0 %v22918_v36 }
 0x857   : > { %14685 = vmatpush1.bf16.msra.mxu1 %v22918_v36  ;;  %14487 = vmatprep.subr.bf16.mxu0 %v22919_v3  ;;  %v22924_v36 = vld [vmem:[#allocation62_spill] sm:$0xff] }
 0x858   : > { %14687 = vmatprep.subr.bf16.mxu1 %v22919_v3  ;;  %v22925_v3 = vld [vmem:[#allocation63_spill] sm:$0xff] }
 0x85a   : > { %14489 = vmatpush1.bf16.msra.mxu0 %v22920_v18 }
 0x85b   : > { %14689 = vmatpush1.bf16.msra.mxu1 %v22920_v18  ;;  %14491 = vmatprep.subr.bf16.mxu0 %v22921_v52  ;;  %v22926_v18 = vld [vmem:[#allocation64_spill] sm:$0xff] }
 0x85c   : > { %14691 = vmatprep.subr.bf16.mxu1 %v22921_v52  ;;  %v2974_v52 = vsel %vm1071_vm2, %v2971_v7, %v2973_v11  ;;  %v22930_v11 = vld [vmem:[#allocation67_spill] sm:$0xff]  ;;  %v22931_v7 = vld [vmem:[#allocation29_spill] sm:$0xff] }
 0x85e   : > { %14493 = vmatpush1.bf16.msra.mxu0 %v22922_v63 }
 0x85f   : > { %14693 = vmatpush1.bf16.msra.mxu1 %v22922_v63  ;;  %14495 = vmatprep.subr.bf16.mxu0 %v22923_v25  ;;  %v22927_v63 = vld [vmem:[#allocation65_spill] sm:$0xff] }
 0x860   : > { %14695 = vmatprep.subr.bf16.mxu1 %v22923_v25  ;;  %v22928_v25 = vld [vmem:[#allocation26_spill] sm:$0xff] }
 0x861   : > { %v20622_v44 = vmax.f32 %v22928_v25, %v2974_v52  ;;  %v22933_v52 = vld [vmem:[#allocation68_spill] sm:$0xff]  ;;  %v22936_v25 = vld [vmem:[#allocation69_spill] sm:$0xff] }
 0x862   : > { %14497 = vmatpush1.bf16.msra.mxu0 %v22924_v36 }
 0x863   : > { %14697 = vmatpush1.bf16.msra.mxu1 %v22924_v36  ;;  %14499 = vmatprep.subr.bf16.mxu0 %v22925_v3  ;;  %v3290_v36 = vpop.permute.xlu0 %3289 }
 0x864   : > { %14699 = vmatprep.subr.bf16.mxu1 %v22925_v3  ;;  %v3288_v3 = vpop.permute.xlu1 %3287 }
 0x865   : > { %v3291_v2 = vsel %vm1071_vm2, %v3288_v3, %v3290_v36 }
 0x866   : > { %14501 = vmatpush1.bf16.msra.mxu0 %v22926_v18  ;;  %v20697_v3 = vmax.f32 %v22956_v42, %v3291_v2 }
 0x867   : > { %14701 = vmatpush1.bf16.msra.mxu1 %v22926_v18  ;;  %10284 = vmatprep.subr.msk.mxu0 %vm5288_vm3, %v22927_v63  ;;  %v20632_v18 = vmax.f32 %v22931_v7, %v3290_v36  ;;  %v22937_v7 = vld [vmem:[#allocation70_spill] sm:$0xff] }
 0x868   : > { %10299 = vmatprep.subr.msk.mxu1 %vm5288_vm3, %v22927_v63  ;;  %v22935_v63 = vld [vmem:[#allocation25_spill] sm:$0xff] }
 0x869   : > { %22932 = vst [vmem:[#allocation7_spill] sm:$0xff] %v20632_v18 }
 0x86a   : > { %10285 = vmatpush1.msk.msra.mxu0 %vm5288_vm3, %v22929_v51 }
 0x86b   : > { %10300 = vmatpush1.msk.msra.mxu1 %vm5288_vm3, %v22929_v51  ;;  %6498 = vmatmul.mubr.f32.vlgmr.msra.gmra.mrb[30].mxu0 %v20379_v62  ;;  %v22934_v51 = vld [vmem:[#allocation22_spill] sm:$0xff] }
 0x86c   : > { %14503 = vmatprep.subr.bf16.mxu0 %v22930_v11  ;;  %6866 = vmatmul.mubr.f32.vlgmr.msra.gmra.mrb[30].mxu1 %v20622_v44 }
 0x86d   : > { %14703 = vmatprep.subr.bf16.mxu1 %v22930_v11  ;;  %14505 = vmatpush1.bf16.msra.mxu0 %v22933_v52  ;;  %v22939_v11 = vld [vmem:[#allocation72_spill] sm:$0xff] }
 0x86e   : > { %10289 = vmatprep.mubr.msk.f32.mxu0 %vm5284_vm1, %v20571_v39  ;;  %14705 = vmatpush1.bf16.msra.mxu1 %v22933_v52  ;;  %v22938_v52 = vld [vmem:[#allocation71_spill] sm:$0xff] }
 0x86f   : > { %10304 = vmatprep.mubr.msk.f32.mxu1 %vm5284_vm1, %v20632_v18  ;;  %14507 = vmatprep.subr.bf16.mxu0 %v22934_v51 }
 0x870   : > { %14707 = vmatprep.subr.bf16.mxu1 %v22934_v51  ;;  %v22940_v51 = vld [vmem:[#allocation73_spill] sm:$0xff]  ;;  %v22961_v2 = vld [vmem:[#allocation7_spill] sm:$0xff] }
 0x871   : > { %14509 = vmatpush1.bf16.msra.mxu0 %v22935_v63 }
 0x872   : > { %14709 = vmatpush1.bf16.msra.mxu1 %v22935_v63  ;;  %14511 = vmatprep.subr.bf16.mxu0 %v22936_v25  ;;  %v22941_v63 = vld [vmem:[#allocation74_spill] sm:$0xff] }
 0x873   : > { %14711 = vmatprep.subr.bf16.mxu1 %v22936_v25  ;;  %v22942_v25 = vld [vmem:[#allocation75_spill] sm:$0xff] }
 0x875   : > { %14513 = vmatpush1.bf16.msra.mxu0 %v22937_v7 }
 0x876   : > { %14713 = vmatpush1.bf16.msra.mxu1 %v22937_v7  ;;  %14515 = vmatprep.subr.bf16.mxu0 %v22938_v52  ;;  %v22943_v7 = vld [vmem:[#allocation76_spill] sm:$0xff] }
 0x877   : > { %14715 = vmatprep.subr.bf16.mxu1 %v22938_v52  ;;  %v22944_v52 = vld [vmem:[#allocation77_spill] sm:$0xff] }
 0x879   : > { %14517 = vmatpush1.bf16.msra.mxu0 %v22939_v11 }
 0x87a   : > { %14717 = vmatpush1.bf16.msra.mxu1 %v22939_v11  ;;  %14519 = vmatprep.subr.bf16.mxu0 %v22940_v51  ;;  %v22945_v11 = vld [vmem:[#allocation78_spill] sm:$0xff] }
 0x87b   : > { %14719 = vmatprep.subr.bf16.mxu1 %v22940_v51  ;;  %v22946_v51 = vld [vmem:[#allocation79_spill] sm:$0xff] }
 0x87d   : > { %14521 = vmatpush1.bf16.msra.mxu0 %v22941_v63 }
 0x87e   : > { %14721 = vmatpush1.bf16.msra.mxu1 %v22941_v63  ;;  %14523 = vmatprep.subr.bf16.mxu0 %v22942_v25  ;;  %v22947_v63 = vld [vmem:[#allocation80_spill] sm:$0xff] }
 0x87f   : > { %14723 = vmatprep.subr.bf16.mxu1 %v22942_v25  ;;  %v22948_v25 = vld [vmem:[#allocation81_spill] sm:$0xff] }
 0x881   : > { %14525 = vmatpush1.bf16.msra.mxu0 %v22943_v7 }
 0x882   : > { %14725 = vmatpush1.bf16.msra.mxu1 %v22943_v7  ;;  %14527 = vmatprep.subr.bf16.mxu0 %v22944_v52  ;;  %v22949_v7 = vld [vmem:[#allocation82_spill] sm:$0xff] }
 0x883   : > { %14727 = vmatprep.subr.bf16.mxu1 %v22944_v52  ;;  %v5198_v52 = vld [vmem:[%s22147_s4] sm:$0x3] }
 0x885   : > { %14529 = vmatpush1.bf16.msra.mxu0 %v22945_v11 }
 0x886   : > { %14729 = vmatpush1.bf16.msra.mxu1 %v22945_v11  ;;  %14531 = vmatprep.subr.bf16.mxu0 %v22946_v51  ;;  %v22950_v11 = vld [vmem:[#allocation83_spill] sm:$0xff] }
 0x887   : > { %14731 = vmatprep.subr.bf16.mxu1 %v22946_v51  ;;  %v22951_v51 = vld [vmem:[#allocation15_spill] sm:$0xff] }
 0x888   : > { %v22952_v45 = vsub.s32 0, %v22951_v51  ;;  %v22953_v37 = vsub.s32 1, %v22951_v51 }
 0x889   : > { %14533 = vmatpush1.bf16.msra.mxu0 %v22947_v63 }
 0x88a   : > { %14733 = vmatpush1.bf16.msra.mxu1 %v22947_v63  ;;  %14535 = vmatprep.subr.bf16.mxu0 %v22948_v25  ;;  %v20680_v63 = vrot.slane %v5198_v52, %v22952_v45 }
 0x88b   : > { %14735 = vmatprep.subr.bf16.mxu1 %v22948_v25  ;;  %v20684_v25 = vrot.slane %v5198_v52, %v22953_v37 }
 0x88d   : > { %14537 = vmatpush1.bf16.msra.mxu0 %v22949_v7 }
 0x88e   : > { %14737 = vmatpush1.bf16.msra.mxu1 %v22949_v7  ;;  %14539 = vmatprep.subr.bf16.mxu0 %v22950_v11  ;;  %v22955_v7 = vld [vmem:[#allocation85_spill] sm:$0xff] }
 0x88f   : > { %14739 = vmatprep.subr.bf16.mxu1 %v22950_v11 }
 0x891   : > { %14541 = vmatpush1.bf16.msra.mxu0 %v22954_v16 }
 0x892   : > { %14741 = vmatpush1.bf16.msra.mxu1 %v22954_v16  ;;  %10287 = vmatprep.subr.msk.mxu0 %vm5288_vm3, %v22955_v7  ;;  %v5814_v18 = vpop.f32.mrb[28].mxu0 }
 0x893   : > { %10302 = vmatprep.subr.msk.mxu1 %vm5288_vm3, %v22955_v7  ;;  %v5832_v45 = vadd.f32 %v20680_v63, %v5814_v18  ;;  %v6193_v11 = vpop.f32.mrb[28].mxu1  ;;  %v5816_v23 = vpop.f32.mrb[29].mxu0 }
 0x894   : > { %v6200_v37 = vadd.f32 %v6193_v11, %v20680_v63  ;;  %v5833_v52 = vadd.f32 %v20684_v25, %v5816_v23  ;;  %v6195_v51 = vpop.f32.mrb[29].mxu1  ;;  %v22965_v11 = vld [vmem:[#allocation14_spill] sm:$0xff] }
 0x895   : > { %10288 = vmatpush1.msk.msra.mxu0 %vm5288_vm3, %v20372_v41  ;;  %v5834_v36 = vmax.f32 %v5832_v45, 0.0  ;;  %v6201_v16 = vadd.f32 %v6195_v51, %v20684_v25  ;;  %v22966_v45 = vld [vmem:[#allocation19_spill] sm:$0xff]  ;;  %v22969_v51 = vld [vmem:[#allocation16_spill] sm:$0xff] }
 0x896   : > { %10303 = vmatpush1.msk.msra.mxu1 %vm5288_vm3, %v20372_v41  ;;  %6574 = vmatmul.mubr.f32.vlgmr.msra.gmra.mrb[30].mxu0 %v20622_v44  ;;  %v6202_v18 = vmax.f32 %v6200_v37, 0.0  ;;  %v5835_v7 = vmax.f32 %v5833_v52, 0.0  ;;  %v22967_v37 = vld [vmem:[#allocation21_spill] sm:$0xff]  ;;  %v22968_v52 = vld [vmem:[#allocation20_spill] sm:$0xff] }
 0x897   : > { %6942 = vmatmul.mubr.f32.vlgmr.msra.gmra.mrb[30].mxu1 %v20697_v3  ;;  %14743 = vmatprep.subr.bf16.mxu0 %v19201_v34  ;;  %v6203_v23 = vmax.f32 %v6201_v16, 0.0  ;;  %v22962_v16 = vld [vmem:[#allocation11_spill] sm:$0xff] }
 0x898   : > { %14943 = vmatprep.subr.bf16.mxu1 %v19201_v34  ;;  %v20708_v42 = vmax.f32 %v5834_v36, %v6202_v18  ;;  %14745 = vmatpush1.bf16.msra.mxu0 %v19223_v12  ;;  %v22970_v36 = vld [vmem:[#allocation4_spill] sm:$0xff] }
 0x899   : > { %10307 = vmatprep.mubr.msk.f32.mxu0 %vm5284_vm1, %v20191_v32  ;;  %14945 = vmatpush1.bf16.msra.mxu1 %v19223_v12  ;;  %v20714_v41 = vmax.f32 %v5835_v7, %v6203_v23  ;;  %v22971_v18 = vld [vmem:[#allocation36_spill] sm:$0xff]  ;;  %v22972_v7 = vld [vmem:[#allocation37_spill] sm:$0xff]  ;;  %v22973_v23 = vld [vmem:[#allocation38_spill] sm:$0xff] }
 0x89a   : > { %22957 = vst [vmem:[#allocation8_spill] sm:$0xff] %v20708_v42  ;;  %10322 = vmatprep.mubr.msk.f32.mxu1 %vm5284_vm1, %v20571_v39  ;;  %14747 = vmatprep.subr.bf16.mxu0 %v19237_v20  ;;  %v22974_v42 = vld [vmem:[#allocation39_spill] sm:$0xff] }
 0x89b   : > { %22958 = vst [vmem:[#allocation45_spill] sm:$0xff] %v20714_v41  ;;  %14947 = vmatprep.subr.bf16.mxu1 %v19237_v20 }
 0x89c   : > { %14749 = vmatpush1.bf16.msra.mxu0 %v19252_v40 }
 0x89d   : > { %14949 = vmatpush1.bf16.msra.mxu1 %v19252_v40  ;;  %14751 = vmatprep.subr.bf16.mxu0 %v19257_v53 }
 0x89e   : > { %14951 = vmatprep.subr.bf16.mxu1 %v19257_v53 }
 0x8a0   : > { %14753 = vmatpush1.bf16.msra.mxu0 %v19274_v6 }
 0x8a1   : > { %14953 = vmatpush1.bf16.msra.mxu1 %v19274_v6  ;;  %14755 = vmatprep.subr.bf16.mxu0 %v19278_v50 }
 0x8a2   : > { %14955 = vmatprep.subr.bf16.mxu1 %v19278_v50 }
 0x8a4   : > { %14757 = vmatpush1.bf16.msra.mxu0 %v19294_v56 }
 0x8a5   : > { %14957 = vmatpush1.bf16.msra.mxu1 %v19294_v56  ;;  %14759 = vmatprep.subr.bf16.mxu0 %v19298_v61 }
 0x8a6   : > { %14959 = vmatprep.subr.bf16.mxu1 %v19298_v61 }
 0x8a8   : > { %14761 = vmatpush1.bf16.msra.mxu0 %v19314_v10 }
 0x8a9   : > { %14961 = vmatpush1.bf16.msra.mxu1 %v19314_v10  ;;  %14763 = vmatprep.subr.bf16.mxu0 %v19318_v15 }
 0x8aa   : > { %14963 = vmatprep.subr.bf16.mxu1 %v19318_v15 }
 0x8ac   : > { %14765 = vmatpush1.bf16.msra.mxu0 %v19334_v30 }
 0x8ad   : > { %14965 = vmatpush1.bf16.msra.mxu1 %v19334_v30  ;;  %14767 = vmatprep.subr.bf16.mxu0 %v19338_v35 }
 0x8ae   : > { %14967 = vmatprep.subr.bf16.mxu1 %v19338_v35 }
 0x8b0   : > { %14769 = vmatpush1.bf16.msra.mxu0 %v19354_v48 }
 0x8b1   : > { %14969 = vmatpush1.bf16.msra.mxu1 %v19354_v48  ;;  %14771 = vmatprep.subr.bf16.mxu0 %v19358_v54 }
 0x8b2   : > { %14971 = vmatprep.subr.bf16.mxu1 %v19358_v54 }
 0x8b4   : > { %14773 = vmatpush1.bf16.msra.mxu0 %v19374_v26 }
 0x8b5   : > { %14973 = vmatpush1.bf16.msra.mxu1 %v19374_v26  ;;  %14775 = vmatprep.subr.bf16.mxu0 %v19378_v27 }
 0x8b6   : > { %14975 = vmatprep.subr.bf16.mxu1 %v19378_v27 }
 0x8b8   : > { %14777 = vmatpush1.bf16.msra.mxu0 %v19394_v46 }
 0x8b9   : > { %14977 = vmatpush1.bf16.msra.mxu1 %v19394_v46  ;;  %14779 = vmatprep.subr.bf16.mxu0 %v19398_v5 }
 0x8ba   : > { %14979 = vmatprep.subr.bf16.mxu1 %v19398_v5 }
 0x8bc   : > { %14781 = vmatpush1.bf16.msra.mxu0 %v19408_v17 }
 0x8bd   : > { %14981 = vmatpush1.bf16.msra.mxu1 %v19408_v17  ;;  %10305 = vmatprep.subr.msk.mxu0 %vm5288_vm3, %v20444_v22 }
 0x8be   : > { %10320 = vmatprep.subr.msk.mxu1 %vm5288_vm3, %v20444_v22  ;;  %v22959_v22 = vld [vmem:[#allocation9_spill] sm:$0xff] }
 0x8c0   : > { %10306 = vmatpush1.msk.msra.mxu0 %vm5288_vm3, %v20453_v8 }
 0x8c1   : > { %10321 = vmatpush1.msk.msra.mxu1 %vm5288_vm3, %v20453_v8  ;;  %7032 = vmatmul.mubr.f32.vlgmr.msra.gmra.mrb[32].mxu0 %v20379_v62  ;;  %v22960_v8 = vld [vmem:[#allocation10_spill] sm:$0xff] }
 0x8c2   : > { %14783 = vmatprep.subr.bf16.mxu0 %v19441_v14  ;;  %7400 = vmatmul.mubr.f32.vlgmr.msra.gmra.mrb[32].mxu1 %v20622_v44 }
 0x8c3   : > { %14983 = vmatprep.subr.bf16.mxu1 %v19441_v14  ;;  %14785 = vmatpush1.bf16.msra.mxu0 %v19454_v4 }
 0x8c4   : > { %10310 = vmatprep.mubr.msk.f32.mxu0 %vm5284_vm1, %v19956_v28  ;;  %14985 = vmatpush1.bf16.msra.mxu1 %v19454_v4  ;;  %v20811_v28 = vld [vmem:[%s22146_s3 + $0x148] sm:$0x3] }
 0x8c5   : > { %10325 = vmatprep.mubr.msk.f32.mxu1 %vm5284_vm1, %v20191_v32  ;;  %14787 = vmatprep.subr.bf16.mxu0 %v19468_v29  ;;  %v20820_v32 = vld [vmem:[%s22146_s3 + $0x140] sm:$0x3] }
 0x8c6   : > { %14987 = vmatprep.subr.bf16.mxu1 %v19468_v29 }
 0x8c7   : > { %14789 = vmatpush1.bf16.msra.mxu0 %v19482_v57 }
 0x8c8   : > { %14989 = vmatpush1.bf16.msra.mxu1 %v19482_v57  ;;  %14791 = vmatprep.subr.bf16.mxu0 %v19486_v0 }
 0x8c9   : > { %14991 = vmatprep.subr.bf16.mxu1 %v19486_v0 }
 0x8cb   : > { %14793 = vmatpush1.bf16.msra.mxu0 %v19505_v24 }
 0x8cc   : > { %14993 = vmatpush1.bf16.msra.mxu1 %v19505_v24  ;;  %14795 = vmatprep.subr.bf16.mxu0 %v19509_v58 }
 0x8cd   : > { %14995 = vmatprep.subr.bf16.mxu1 %v19509_v58 }
 0x8cf   : > { %14797 = vmatpush1.bf16.msra.mxu0 %v19525_v43 }
 0x8d0   : > { %14997 = vmatpush1.bf16.msra.mxu1 %v19525_v43  ;;  %14799 = vmatprep.subr.bf16.mxu0 %v19529_v13 }
 0x8d1   : > { %14999 = vmatprep.subr.bf16.mxu1 %v19529_v13 }
 0x8d3   : > { %14801 = vmatpush1.bf16.msra.mxu0 %v19545_v38 }
 0x8d4   : > { %15001 = vmatpush1.bf16.msra.mxu1 %v19545_v38  ;;  %14803 = vmatprep.subr.bf16.mxu0 %v19549_v59 }
 0x8d5   : > { %15003 = vmatprep.subr.bf16.mxu1 %v19549_v59 }
 0x8d7   : > { %14805 = vmatpush1.bf16.msra.mxu0 %v19565_v9 }
 0x8d8   : > { %15005 = vmatpush1.bf16.msra.mxu1 %v19565_v9  ;;  %14807 = vmatprep.subr.bf16.mxu0 %v19569_v21 }
 0x8d9   : > { %15007 = vmatprep.subr.bf16.mxu1 %v19569_v21 }
 0x8db   : > { %14809 = vmatpush1.bf16.msra.mxu0 %v19585_v47 }
 0x8dc   : > { %15009 = vmatpush1.bf16.msra.mxu1 %v19585_v47  ;;  %14811 = vmatprep.subr.bf16.mxu0 %v19589_v1 }
 0x8dd   : > { %15011 = vmatprep.subr.bf16.mxu1 %v19589_v1 }
 0x8df   : > { %14813 = vmatpush1.bf16.msra.mxu0 %v19605_v33 }
 0x8e0   : > { %15013 = vmatpush1.bf16.msra.mxu1 %v19605_v33  ;;  %14815 = vmatprep.subr.bf16.mxu0 %v19609_v60 }
 0x8e1   : > { %15015 = vmatprep.subr.bf16.mxu1 %v19609_v60 }
 0x8e3   : > { %14817 = vmatpush1.bf16.msra.mxu0 %v19625_v19 }
 0x8e4   : > { %15017 = vmatpush1.bf16.msra.mxu1 %v19625_v19  ;;  %14819 = vmatprep.subr.bf16.mxu0 %v19629_v49 }
 0x8e5   : > { %15019 = vmatprep.subr.bf16.mxu1 %v19629_v49 }
 0x8e7   : > { %14821 = vmatpush1.bf16.msra.mxu0 %v19639_v55 }
 0x8e8   : > { %15021 = vmatpush1.bf16.msra.mxu1 %v19639_v55  ;;  %10308 = vmatprep.subr.msk.mxu0 %vm5288_vm3, %v20811_v28 }
 0x8e9   : > { %10323 = vmatprep.subr.msk.mxu1 %vm5288_vm3, %v20811_v28 }
 0x8eb   : > { %10309 = vmatpush1.msk.msra.mxu0 %vm5288_vm3, %v20820_v32 }
 0x8ec   : > { %10324 = vmatpush1.msk.msra.mxu1 %vm5288_vm3, %v20820_v32  ;;  %7103 = vmatmul.mubr.f32.vlgmr.msra.gmra.mrb[32].mxu0 %v20164_v31  ;;  %v22963_v31 = vld [vmem:[#allocation12_spill] sm:$0xff] }
 0x8ed   : > { %14823 = vmatprep.subr.bf16.mxu0 %v22959_v22  ;;  %7471 = vmatmul.mubr.f32.vlgmr.msra.gmra.mrb[32].mxu1 %v20379_v62  ;;  %v22964_v62 = vld [vmem:[#allocation13_spill] sm:$0xff] }
 0x8ee   : > { %15023 = vmatprep.subr.bf16.mxu1 %v22959_v22  ;;  %14825 = vmatpush1.bf16.msra.mxu0 %v22960_v8 }
 0x8ef   : > { %10313 = vmatprep.mubr.msk.f32.mxu0 %vm5284_vm1, %v20571_v39  ;;  %15025 = vmatpush1.bf16.msra.mxu1 %v22960_v8  ;;  %v21029_v8 = vld [vmem:[%s22146_s3 + $0x680] sm:$0x3] }
 0x8f0   : > { %10328 = vmatprep.mubr.msk.f32.mxu1 %vm5284_vm1, %v22961_v2  ;;  %14827 = vmatprep.subr.bf16.mxu0 %v22962_v16 }
 0x8f1   : > { %15027 = vmatprep.subr.bf16.mxu1 %v22962_v16  ;;  %v23029_v16 = vld [vmem:[#allocation32_spill] sm:$0xff] }
 0x8f2   : > { %14829 = vmatpush1.bf16.msra.mxu0 %v22963_v31 }
 0x8f3   : > { %15029 = vmatpush1.bf16.msra.mxu1 %v22963_v31  ;;  %14831 = vmatprep.subr.bf16.mxu0 %v22964_v62 }
 0x8f4   : > { %15031 = vmatprep.subr.bf16.mxu1 %v22964_v62 }
 0x8f6   : > { %14833 = vmatpush1.bf16.msra.mxu0 %v22965_v11 }
 0x8f7   : > { %15033 = vmatpush1.bf16.msra.mxu1 %v22965_v11  ;;  %14835 = vmatprep.subr.bf16.mxu0 %v22966_v45  ;;  %v23015_v11 = vld [vmem:[#allocation72_spill] sm:$0xff] }
 0x8f8   : > { %15035 = vmatprep.subr.bf16.mxu1 %v22966_v45  ;;  %v3605_v45 = vpop.permute.xlu1 %3604 }
 0x8fa   : > { %14837 = vmatpush1.bf16.msra.mxu0 %v22967_v37 }
 0x8fb   : > { %15037 = vmatpush1.bf16.msra.mxu1 %v22967_v37  ;;  %14839 = vmatprep.subr.bf16.mxu0 %v22968_v52  ;;  %v22990_v37 = vld [vmem:[#allocation52_spill] sm:$0xff] }
 0x8fc   : > { %15039 = vmatprep.subr.bf16.mxu1 %v22968_v52  ;;  %v22986_v52 = vld [vmem:[#allocation23_spill] sm:$0xff]  ;;  %v3922_v62 = vpop.permute.xlu1 %3921 }
 0x8fe   : > { %14841 = vmatpush1.bf16.msra.mxu0 %v22969_v51 }
 0x8ff   : > { %15041 = vmatpush1.bf16.msra.mxu1 %v22969_v51  ;;  %14843 = vmatprep.subr.bf16.mxu0 %v22970_v36  ;;  %v22975_v51 = vld [vmem:[#allocation40_spill] sm:$0xff] }
 0x900   : > { %15043 = vmatprep.subr.bf16.mxu1 %v22970_v36  ;;  %v22976_v36 = vld [vmem:[#allocation41_spill] sm:$0xff] }
 0x902   : > { %14845 = vmatpush1.bf16.msra.mxu0 %v22971_v18 }
 0x903   : > { %15045 = vmatpush1.bf16.msra.mxu1 %v22971_v18  ;;  %14847 = vmatprep.subr.bf16.mxu0 %v22972_v7  ;;  %v22977_v18 = vld [vmem:[#allocation42_spill] sm:$0xff] }
 0x904   : > { %15047 = vmatprep.subr.bf16.mxu1 %v22972_v7  ;;  %v22978_v7 = vld [vmem:[#allocation43_spill] sm:$0xff] }
 0x906   : > { %14849 = vmatpush1.bf16.msra.mxu0 %v22973_v23 }
 0x907   : > { %15049 = vmatpush1.bf16.msra.mxu1 %v22973_v23  ;;  %14851 = vmatprep.subr.bf16.mxu0 %v22974_v42  ;;  %v22979_v23 = vld [vmem:[#allocation44_spill] sm:$0xff] }
 0x908   : > { %15051 = vmatprep.subr.bf16.mxu1 %v22974_v42  ;;  %v22984_v42 = vld [vmem:[#allocation48_spill] sm:$0xff] }
 0x90a   : > { %14853 = vmatpush1.bf16.msra.mxu0 %v22975_v51 }
 0x90b   : > { %15053 = vmatpush1.bf16.msra.mxu1 %v22975_v51  ;;  %14855 = vmatprep.subr.bf16.mxu0 %v22976_v36  ;;  %v20875_v51 = vld [vmem:[%s22146_s3 + $0x3e8] sm:$0x3] }
 0x90c   : > { %15055 = vmatprep.subr.bf16.mxu1 %v22976_v36  ;;  %22980 = vst [vmem:[#allocation46_spill] sm:$0xff] %v20875_v51  ;;  %v22983_v36 = vld [vmem:[#allocation31_spill] sm:$0xff] }
 0x90e   : > { %14857 = vmatpush1.bf16.msra.mxu0 %v22977_v18 }
 0x90f   : > { %15057 = vmatpush1.bf16.msra.mxu1 %v22977_v18  ;;  %14859 = vmatprep.subr.bf16.mxu0 %v22978_v7  ;;  %v3607_v18 = vpop.permute.xlu0 %3606 }
 0x910   : > { %15059 = vmatprep.subr.bf16.mxu1 %v22978_v7  ;;  %v20884_v7 = vld [vmem:[%s22146_s3 + $0x3e0] sm:$0x3] }
 0x911   : > { %22981 = vst [vmem:[#allocation27_spill] sm:$0xff] %v20884_v7 }
 0x912   : > { %14861 = vmatpush1.bf16.msra.mxu0 %v22979_v23 }
 0x913   : > { %15061 = vmatpush1.bf16.msra.mxu1 %v22979_v23  ;;  %10311 = vmatprep.subr.msk.mxu0 %vm5288_vm3, %v20875_v51  ;;  %v22982_v23 = vld [vmem:[#allocation47_spill] sm:$0xff] }
 0x914   : > { %10326 = vmatprep.subr.msk.mxu1 %vm5288_vm3, %v20875_v51  ;;  %v20894_v51 = vmax.f32 %v22983_v36, %v3607_v18  ;;  %v22987_v36 = vld [vmem:[#allocation49_spill] sm:$0xff] }
 0x916   : > { %10312 = vmatpush1.msk.msra.mxu0 %vm5288_vm3, %v20884_v7 }
 0x917   : > { %10327 = vmatpush1.msk.msra.mxu1 %vm5288_vm3, %v20884_v7  ;;  %7174 = vmatmul.mubr.f32.vlgmr.msra.gmra.mrb[32].mxu0 %v20622_v44  ;;  %v22985_v7 = vld [vmem:[#allocation3_spill] sm:$0xff] }
 0x918   : > { %14863 = vmatprep.subr.bf16.mxu0 %v22982_v23  ;;  %7542 = vmatmul.mubr.f32.vlgmr.msra.gmra.mrb[32].mxu1 %v20697_v3 }
 0x919   : > { %15063 = vmatprep.subr.bf16.mxu1 %v22982_v23  ;;  %14865 = vmatpush1.bf16.msra.mxu0 %v22984_v42  ;;  %v22988_v23 = vld [vmem:[#allocation50_spill] sm:$0xff] }
 0x91a   : > { %10316 = vmatprep.mubr.msk.f32.mxu0 %vm5284_vm1, %v22961_v2  ;;  %15065 = vmatpush1.bf16.msra.mxu1 %v22984_v42  ;;  %v22989_v42 = vld [vmem:[#allocation51_spill] sm:$0xff] }
 0x91b   : > { %10331 = vmatprep.mubr.msk.f32.mxu1 %vm5284_vm1, %v20894_v51  ;;  %14867 = vmatprep.subr.bf16.mxu0 %v22985_v7 }
 0x91c   : > { %15067 = vmatprep.subr.bf16.mxu1 %v22985_v7  ;;  %v22991_v7 = vld [vmem:[#allocation53_spill] sm:$0xff] }
 0x91d   : > { %14869 = vmatpush1.bf16.msra.mxu0 %v22986_v52 }
 0x91e   : > { %15069 = vmatpush1.bf16.msra.mxu1 %v22986_v52  ;;  %14871 = vmatprep.subr.bf16.mxu0 %v22987_v36  ;;  %v22992_v52 = vld [vmem:[#allocation54_spill] sm:$0xff] }
 0x91f   : > { %15071 = vmatprep.subr.bf16.mxu1 %v22987_v36  ;;  %v22993_v36 = vld [vmem:[#allocation55_spill] sm:$0xff] }
 0x921   : > { %14873 = vmatpush1.bf16.msra.mxu0 %v22988_v23 }
 0x922   : > { %15073 = vmatpush1.bf16.msra.mxu1 %v22988_v23  ;;  %14875 = vmatprep.subr.bf16.mxu0 %v22989_v42  ;;  %v22994_v23 = vld [vmem:[#allocation56_spill] sm:$0xff] }
 0x923   : > { %15075 = vmatprep.subr.bf16.mxu1 %v22989_v42  ;;  %v22995_v42 = vld [vmem:[#allocation57_spill] sm:$0xff] }
 0x925   : > { %14877 = vmatpush1.bf16.msra.mxu0 %v22990_v37 }
 0x926   : > { %15077 = vmatpush1.bf16.msra.mxu1 %v22990_v37  ;;  %14879 = vmatprep.subr.bf16.mxu0 %v22991_v7  ;;  %v22996_v37 = vld [vmem:[#allocation58_spill] sm:$0xff] }
 0x927   : > { %15079 = vmatprep.subr.bf16.mxu1 %v22991_v7  ;;  %v22997_v7 = vld [vmem:[#allocation59_spill] sm:$0xff] }
 0x929   : > { %14881 = vmatpush1.bf16.msra.mxu0 %v22992_v52 }
 0x92a   : > { %15081 = vmatpush1.bf16.msra.mxu1 %v22992_v52  ;;  %14883 = vmatprep.subr.bf16.mxu0 %v22993_v36  ;;  %v22998_v52 = vld [vmem:[#allocation60_spill] sm:$0xff] }
 0x92b   : > { %15083 = vmatprep.subr.bf16.mxu1 %v22993_v36  ;;  %v22999_v36 = vld [vmem:[#allocation61_spill] sm:$0xff] }
 0x92d   : > { %14885 = vmatpush1.bf16.msra.mxu0 %v22994_v23 }
 0x92e   : > { %15085 = vmatpush1.bf16.msra.mxu1 %v22994_v23  ;;  %14887 = vmatprep.subr.bf16.mxu0 %v22995_v42  ;;  %v23000_v23 = vld [vmem:[#allocation62_spill] sm:$0xff] }
 0x92f   : > { %15087 = vmatprep.subr.bf16.mxu1 %v22995_v42  ;;  %v23001_v42 = vld [vmem:[#allocation63_spill] sm:$0xff] }
 0x931   : > { %14889 = vmatpush1.bf16.msra.mxu0 %v22996_v37 }
 0x932   : > { %15089 = vmatpush1.bf16.msra.mxu1 %v22996_v37  ;;  %14891 = vmatprep.subr.bf16.mxu0 %v22997_v7  ;;  %v23002_v37 = vld [vmem:[#allocation64_spill] sm:$0xff] }
 0x933   : > { %15091 = vmatprep.subr.bf16.mxu1 %v22997_v7  ;;  %v3608_v7 = vsel %vm1071_vm2, %v3605_v45, %v3607_v18  ;;  %v20955_v45 = vld [vmem:[%s22146_s3 + $0x530] sm:$0x3]  ;;  %v23006_v18 = vld [vmem:[#allocation67_spill] sm:$0xff] }
 0x934   : > { %23005 = vst [vmem:[#allocation26_spill] sm:$0xff] %v20955_v45 }
 0x935   : > { %14893 = vmatpush1.bf16.msra.mxu0 %v22998_v52 }
 0x936   : > { %15093 = vmatpush1.bf16.msra.mxu1 %v22998_v52  ;;  %14895 = vmatprep.subr.bf16.mxu0 %v22999_v36  ;;  %v20943_v52 = vld [vmem:[%s22146_s3 + $0x538] sm:$0x3] }
 0x937   : > { %15095 = vmatprep.subr.bf16.mxu1 %v22999_v36  ;;  %23003 = vst [vmem:[#allocation65_spill] sm:$0xff] %v20943_v52 }
 0x939   : > { %14897 = vmatpush1.bf16.msra.mxu0 %v23000_v23 }
 0x93a   : > { %15097 = vmatpush1.bf16.msra.mxu1 %v23000_v23  ;;  %14899 = vmatprep.subr.bf16.mxu0 %v23001_v42  ;;  %v23004_v23 = vld [vmem:[#allocation30_spill] sm:$0xff] }
 0x93b   : > { %15099 = vmatprep.subr.bf16.mxu1 %v23001_v42  ;;  %v20950_v36 = vmax.f32 %v23004_v23, %v3608_v7  ;;  %v3924_v42 = vpop.permute.xlu0 %3923  ;;  %v23007_v7 = vld [vmem:[#allocation33_spill] sm:$0xff] }
 0x93c   : > { %v20965_v23 = vmax.f32 %v23007_v7, %v3924_v42  ;;  %v23012_v7 = vld [vmem:[#allocation69_spill] sm:$0xff] }
 0x93d   : > { %14901 = vmatpush1.bf16.msra.mxu0 %v23002_v37 }
 0x93e   : > { %15101 = vmatpush1.bf16.msra.mxu1 %v23002_v37  ;;  %10314 = vmatprep.subr.msk.mxu0 %vm5288_vm3, %v20943_v52  ;;  %23008 = vst [vmem:[#allocation66_spill] sm:$0xff] %v20965_v23  ;;  %v23011_v37 = vld [vmem:[#allocation25_spill] sm:$0xff] }
 0x93f   : > { %10329 = vmatprep.subr.msk.mxu1 %vm5288_vm3, %v20943_v52  ;;  %v23009_v52 = vld [vmem:[#allocation68_spill] sm:$0xff] }
 0x941   : > { %10315 = vmatpush1.msk.msra.mxu0 %vm5288_vm3, %v20955_v45 }
 0x942   : > { %10330 = vmatpush1.msk.msra.mxu1 %vm5288_vm3, %v20955_v45  ;;  %7247 = vmatmul.mubr.f32.vlgmr.msra.gmra.mrb[32].mxu0 %v20697_v3  ;;  %v23010_v45 = vld [vmem:[#allocation22_spill] sm:$0xff] }
 0x943   : > { %14903 = vmatprep.subr.bf16.mxu0 %v23006_v18  ;;  %7615 = vmatmul.mubr.f32.vlgmr.msra.gmra.mrb[32].mxu1 %v20950_v36 }
 0x944   : > { %15103 = vmatprep.subr.bf16.mxu1 %v23006_v18  ;;  %14905 = vmatpush1.bf16.msra.mxu0 %v23009_v52  ;;  %v23013_v18 = vld [vmem:[#allocation70_spill] sm:$0xff] }
 0x945   : > { %10319 = vmatprep.mubr.msk.f32.mxu0 %vm5284_vm1, %v20894_v51  ;;  %15105 = vmatpush1.bf16.msra.mxu1 %v23009_v52  ;;  %v23014_v52 = vld [vmem:[#allocation71_spill] sm:$0xff] }
 0x946   : > { %10334 = vmatprep.mubr.msk.f32.mxu1 %vm5284_vm1, %v20965_v23  ;;  %14907 = vmatprep.subr.bf16.mxu0 %v23010_v45 }
 0x947   : > { %15107 = vmatprep.subr.bf16.mxu1 %v23010_v45  ;;  %v23016_v45 = vld [vmem:[#allocation73_spill] sm:$0xff] }
 0x948   : > { %14909 = vmatpush1.bf16.msra.mxu0 %v23011_v37 }
 0x949   : > { %15109 = vmatpush1.bf16.msra.mxu1 %v23011_v37  ;;  %14911 = vmatprep.subr.bf16.mxu0 %v23012_v7  ;;  %v23017_v37 = vld [vmem:[#allocation74_spill] sm:$0xff] }
 0x94a   : > { %15111 = vmatprep.subr.bf16.mxu1 %v23012_v7  ;;  %v23018_v7 = vld [vmem:[#allocation75_spill] sm:$0xff] }
 0x94c   : > { %14913 = vmatpush1.bf16.msra.mxu0 %v23013_v18 }
 0x94d   : > { %15113 = vmatpush1.bf16.msra.mxu1 %v23013_v18  ;;  %14915 = vmatprep.subr.bf16.mxu0 %v23014_v52  ;;  %v23019_v18 = vld [vmem:[#allocation76_spill] sm:$0xff] }
 0x94e   : > { %15115 = vmatprep.subr.bf16.mxu1 %v23014_v52  ;;  %v23020_v52 = vld [vmem:[#allocation77_spill] sm:$0xff] }
 0x950   : > { %14917 = vmatpush1.bf16.msra.mxu0 %v23015_v11 }
 0x951   : > { %15117 = vmatpush1.bf16.msra.mxu1 %v23015_v11  ;;  %14919 = vmatprep.subr.bf16.mxu0 %v23016_v45  ;;  %v23021_v11 = vld [vmem:[#allocation78_spill] sm:$0xff] }
 0x952   : > { %15119 = vmatprep.subr.bf16.mxu1 %v23016_v45  ;;  %v23022_v45 = vld [vmem:[#allocation79_spill] sm:$0xff] }
 0x954   : > { %14921 = vmatpush1.bf16.msra.mxu0 %v23017_v37 }
 0x955   : > { %15121 = vmatpush1.bf16.msra.mxu1 %v23017_v37  ;;  %14923 = vmatprep.subr.bf16.mxu0 %v23018_v7  ;;  %v23023_v37 = vld [vmem:[#allocation80_spill] sm:$0xff] }
 0x956   : > { %15123 = vmatprep.subr.bf16.mxu1 %v23018_v7  ;;  %v23024_v7 = vld [vmem:[#allocation81_spill] sm:$0xff] }
 0x958   : > { %14925 = vmatpush1.bf16.msra.mxu0 %v23019_v18 }
 0x959   : > { %15125 = vmatpush1.bf16.msra.mxu1 %v23019_v18  ;;  %14927 = vmatprep.subr.bf16.mxu0 %v23020_v52  ;;  %v23025_v18 = vld [vmem:[#allocation82_spill] sm:$0xff] }
 0x95a   : > { %15127 = vmatprep.subr.bf16.mxu1 %v23020_v52  ;;  %v23026_v52 = vld [vmem:[#allocation83_spill] sm:$0xff] }
 0x95c   : > { %14929 = vmatpush1.bf16.msra.mxu0 %v23021_v11 }
 0x95d   : > { %15129 = vmatpush1.bf16.msra.mxu1 %v23021_v11  ;;  %14931 = vmatprep.subr.bf16.mxu0 %v23022_v45  ;;  %v23027_v11 = vld [vmem:[#allocation84_spill] sm:$0xff] }
 0x95e   : > { %15131 = vmatprep.subr.bf16.mxu1 %v23022_v45  ;;  %v3925_v45 = vsel %vm1071_vm2, %v3922_v62, %v3924_v42 }
 0x95f   : > { %v21024_v23 = vmax.f32 %v23029_v16, %v3925_v45 }
 0x960   : > { %14933 = vmatpush1.bf16.msra.mxu0 %v23023_v37 }
 0x961   : > { %15133 = vmatpush1.bf16.msra.mxu1 %v23023_v37  ;;  %14935 = vmatprep.subr.bf16.mxu0 %v23024_v7  ;;  %v21014_v37 = vld [vmem:[%s22146_s3 + $0x688] sm:$0x3] }
 0x962   : > { %15135 = vmatprep.subr.bf16.mxu1 %v23024_v7  ;;  %23028 = vst [vmem:[#allocation29_spill] sm:$0xff] %v21014_v37 }
 0x964   : > { %14937 = vmatpush1.bf16.msra.mxu0 %v23025_v18 }
 0x965   : > { %15137 = vmatpush1.bf16.msra.mxu1 %v23025_v18  ;;  %14939 = vmatprep.subr.bf16.mxu0 %v23026_v52 }
 0x966   : > { %15139 = vmatprep.subr.bf16.mxu1 %v23026_v52 }
 0x968   : > { %14941 = vmatpush1.bf16.msra.mxu0 %v23027_v11 }
 0x969   : > { %15141 = vmatpush1.bf16.msra.mxu1 %v23027_v11  ;;  %10317 = vmatprep.subr.msk.mxu0 %vm5288_vm3, %v21014_v37  ;;  %v6575_v18 = vpop.f32.mrb[30].mxu0 }
 0x96a   : > { %10332 = vmatprep.subr.msk.mxu1 %vm5288_vm3, %v21014_v37  ;;  %v6582_v52 = vadd.f32 %v6575_v18, %v20680_v63  ;;  %v6943_v7 = vpop.f32.mrb[30].mxu1  ;;  %v6577_v31 = vpop.f32.mrb[31].mxu0 }
 0x96b   : > { %v6950_v42 = vadd.f32 %v6943_v7, %v20680_v63  ;;  %v6583_v62 = vadd.f32 %v6577_v31, %v20684_v25  ;;  %v6945_v11 = vpop.f32.mrb[31].mxu1 }
 0x96c   : > { %10318 = vmatpush1.msk.msra.mxu0 %vm5288_vm3, %v21029_v8  ;;  %v6584_v37 = vmax.f32 %v6582_v52, 0.0  ;;  %v6951_v18 = vadd.f32 %v6945_v11, %v20684_v25  ;;  %v21104_v52 = vld [vmem:[%s22146_s3 + $0x290] sm:$0x3] }
 0x96d   : > { %10333 = vmatpush1.msk.msra.mxu1 %vm5288_vm3, %v21029_v8  ;;  %7323 = vmatmul.mubr.f32.vlgmr.msra.gmra.mrb[32].mxu0 %v20950_v36  ;;  %v6952_v31 = vmax.f32 %v6950_v42, 0.0  ;;  %v6585_v7 = vmax.f32 %v6583_v62, 0.0  ;;  %v23038_v42 = vld [vmem:[#allocation19_spill] sm:$0xff]  ;;  %v23039_v62 = vld [vmem:[#allocation21_spill] sm:$0xff] }
 0x96e   : > { %7691 = vmatmul.mubr.f32.vlgmr.msra.gmra.mrb[32].mxu1 %v21024_v23  ;;  %15143 = vmatprep.subr.bf16.mxu0 %v19201_v34  ;;  %v6953_v16 = vmax.f32 %v6951_v18, 0.0  ;;  %v23040_v18 = vld [vmem:[#allocation20_spill] sm:$0xff] }
 0x96f   : > { %15343 = vmatprep.subr.bf16.mxu1 %v19201_v34  ;;  %v21040_v45 = vmax.f32 %v6584_v37, %v6952_v31  ;;  %15145 = vmatpush1.bf16.msra.mxu0 %v19223_v12  ;;  %v21095_v37 = vld [vmem:[%s22146_s3 + $0x298] sm:$0x3]  ;;  %v23041_v31 = vld [vmem:[#allocation16_spill] sm:$0xff] }
 0x970   : > { %10337 = vmatprep.mubr.msk.f32.mxu0 %vm5284_vm1, %v22961_v2  ;;  %15345 = vmatpush1.bf16.msra.mxu1 %v19223_v12  ;;  %v21046_v11 = vmax.f32 %v6585_v7, %v6953_v16  ;;  %v23042_v7 = vld [vmem:[#allocation4_spill] sm:$0xff] }
 0x971   : > { %23030 = vst [vmem:[#allocation15_spill] sm:$0xff] %v21040_v45  ;;  %10352 = vmatprep.mubr.msk.f32.mxu1 %vm5284_vm1, %v20894_v51  ;;  %15147 = vmatprep.subr.bf16.mxu0 %v19237_v20  ;;  %v23043_v16 = vld [vmem:[#allocation36_spill] sm:$0xff] }
 0x972   : > { %23031 = vst [vmem:[#allocation85_spill] sm:$0xff] %v21046_v11  ;;  %15347 = vmatprep.subr.bf16.mxu1 %v19237_v20  ;;  %6958 = vrot.lane.b32.xlu1 %v21040_v45, %s16408_s28  ;;  %v23044_v45 = vld [vmem:[#allocation37_spill] sm:$0xff] }
 0x973   : > { %15149 = vmatpush1.bf16.msra.mxu0 %v19252_v40  ;;  %6960 = vrot.lane.b32.xlu0 %v21046_v11, %s16408_s28  ;;  %v23046_v11 = vld [vmem:[#allocation39_spill] sm:$0xff] }
 0x974   : > { %15349 = vmatpush1.bf16.msra.mxu1 %v19252_v40  ;;  %15151 = vmatprep.subr.bf16.mxu0 %v19257_v53 }
 0x975   : > { %15351 = vmatprep.subr.bf16.mxu1 %v19257_v53 }
 0x977   : > { %15153 = vmatpush1.bf16.msra.mxu0 %v19274_v6  ;;  %6210 = vrot.lane.b32.xlu0 %v20714_v41, %s16408_s28  ;;  %v23045_v41 = vld [vmem:[#allocation38_spill] sm:$0xff] }
 0x978   : > { %15353 = vmatpush1.bf16.msra.mxu1 %v19274_v6  ;;  %15155 = vmatprep.subr.bf16.mxu0 %v19278_v50 }
 0x979   : > { %15355 = vmatprep.subr.bf16.mxu1 %v19278_v50 }
 0x97b   : > { %15157 = vmatpush1.bf16.msra.mxu0 %v19294_v56 }
 0x97c   : > { %15357 = vmatpush1.bf16.msra.mxu1 %v19294_v56  ;;  %15159 = vmatprep.subr.bf16.mxu0 %v19298_v61 }
 0x97d   : > { %15359 = vmatprep.subr.bf16.mxu1 %v19298_v61 }
 0x97f   : > { %15161 = vmatpush1.bf16.msra.mxu0 %v19314_v10 }
 0x980   : > { %15361 = vmatpush1.bf16.msra.mxu1 %v19314_v10  ;;  %15163 = vmatprep.subr.bf16.mxu0 %v19318_v15 }
 0x981   : > { %15363 = vmatprep.subr.bf16.mxu1 %v19318_v15 }
 0x983   : > { %15165 = vmatpush1.bf16.msra.mxu0 %v19334_v30 }
 0x984   : > { %15365 = vmatpush1.bf16.msra.mxu1 %v19334_v30  ;;  %15167 = vmatprep.subr.bf16.mxu0 %v19338_v35 }
 0x985   : > { %15367 = vmatprep.subr.bf16.mxu1 %v19338_v35 }
 0x987   : > { %15169 = vmatpush1.bf16.msra.mxu0 %v19354_v48 }
 0x988   : > { %15369 = vmatpush1.bf16.msra.mxu1 %v19354_v48  ;;  %15171 = vmatprep.subr.bf16.mxu0 %v19358_v54 }
 0x989   : > { %15371 = vmatprep.subr.bf16.mxu1 %v19358_v54 }
 0x98b   : > { %15173 = vmatpush1.bf16.msra.mxu0 %v19374_v26 }
 0x98c   : > { %15373 = vmatpush1.bf16.msra.mxu1 %v19374_v26  ;;  %15175 = vmatprep.subr.bf16.mxu0 %v19378_v27 }
 0x98d   : > { %15375 = vmatprep.subr.bf16.mxu1 %v19378_v27 }
 0x98f   : > { %15177 = vmatpush1.bf16.msra.mxu0 %v19394_v46 }
 0x990   : > { %15377 = vmatpush1.bf16.msra.mxu1 %v19394_v46  ;;  %15179 = vmatprep.subr.bf16.mxu0 %v19398_v5 }
 0x991   : > { %15379 = vmatprep.subr.bf16.mxu1 %v19398_v5 }
 0x993   : > { %15181 = vmatpush1.bf16.msra.mxu0 %v19408_v17 }
 0x994   : > { %15381 = vmatpush1.bf16.msra.mxu1 %v19408_v17  ;;  %10335 = vmatprep.subr.msk.mxu0 %vm5288_vm3, %v21095_v37 }
 0x995   : > { %10350 = vmatprep.subr.msk.mxu1 %vm5288_vm3, %v21095_v37 }
 0x997   : > { %10336 = vmatpush1.msk.msra.mxu0 %vm5288_vm3, %v21104_v52 }
 0x998   : > { %10351 = vmatpush1.msk.msra.mxu1 %vm5288_vm3, %v21104_v52  ;;  %7781 = vmatmul.mubr.f32.vlgmr.msra.gmra.mrb[34].mxu0 %v20697_v3 }
 0x999   : > { %15183 = vmatprep.subr.bf16.mxu0 %v19441_v14  ;;  %8149 = vmatmul.mubr.f32.vlgmr.msra.gmra.mrb[34].mxu1 %v20950_v36 }
 0x99a   : > { %15383 = vmatprep.subr.bf16.mxu1 %v19441_v14  ;;  %15185 = vmatpush1.bf16.msra.mxu0 %v19454_v4 }
 0x99b   : > { %10340 = vmatprep.mubr.msk.f32.mxu0 %vm5284_vm1, %v20571_v39  ;;  %15385 = vmatpush1.bf16.msra.mxu1 %v19454_v4  ;;  %v23032_v39 = vld [vmem:[#allocation10_spill] sm:$0xff] }
 0x99c   : > { %10355 = vmatprep.mubr.msk.f32.mxu1 %vm5284_vm1, %v22961_v2  ;;  %15187 = vmatprep.subr.bf16.mxu0 %v19468_v29  ;;  %v23034_v2 = vld [vmem:[#allocation11_spill] sm:$0xff] }
 0x99d   : > { %15387 = vmatprep.subr.bf16.mxu1 %v19468_v29 }
 0x99e   : > { %15189 = vmatpush1.bf16.msra.mxu0 %v19482_v57 }
 0x99f   : > { %15389 = vmatpush1.bf16.msra.mxu1 %v19482_v57  ;;  %15191 = vmatprep.subr.bf16.mxu0 %v19486_v0 }
 0x9a0   : > { %15391 = vmatprep.subr.bf16.mxu1 %v19486_v0 }
 0x9a2   : > { %15193 = vmatpush1.bf16.msra.mxu0 %v19505_v24 }
 0x9a3   : > { %15393 = vmatpush1.bf16.msra.mxu1 %v19505_v24  ;;  %15195 = vmatprep.subr.bf16.mxu0 %v19509_v58 }
 0x9a4   : > { %15395 = vmatprep.subr.bf16.mxu1 %v19509_v58 }
 0x9a6   : > { %15197 = vmatpush1.bf16.msra.mxu0 %v19525_v43 }
 0x9a7   : > { %15397 = vmatpush1.bf16.msra.mxu1 %v19525_v43  ;;  %15199 = vmatprep.subr.bf16.mxu0 %v19529_v13 }
 0x9a8   : > { %15399 = vmatprep.subr.bf16.mxu1 %v19529_v13 }
 0x9aa   : > { %15201 = vmatpush1.bf16.msra.mxu0 %v19545_v38 }
 0x9ab   : > { %15401 = vmatpush1.bf16.msra.mxu1 %v19545_v38  ;;  %15203 = vmatprep.subr.bf16.mxu0 %v19549_v59 }
 0x9ac   : > { %15403 = vmatprep.subr.bf16.mxu1 %v19549_v59 }
 0x9ae   : > { %15205 = vmatpush1.bf16.msra.mxu0 %v19565_v9 }
 0x9af   : > { %15405 = vmatpush1.bf16.msra.mxu1 %v19565_v9  ;;  %15207 = vmatprep.subr.bf16.mxu0 %v19569_v21 }
 0x9b0   : > { %15407 = vmatprep.subr.bf16.mxu1 %v19569_v21 }
 0x9b2   : > { %15209 = vmatpush1.bf16.msra.mxu0 %v19585_v47 }
 0x9b3   : > { %15409 = vmatpush1.bf16.msra.mxu1 %v19585_v47  ;;  %15211 = vmatprep.subr.bf16.mxu0 %v19589_v1 }
 0x9b4   : > { %15411 = vmatprep.subr.bf16.mxu1 %v19589_v1 }
 0x9b6   : > { %15213 = vmatpush1.bf16.msra.mxu0 %v19605_v33 }
 0x9b7   : > { %15413 = vmatpush1.bf16.msra.mxu1 %v19605_v33  ;;  %15215 = vmatprep.subr.bf16.mxu0 %v19609_v60 }
 0x9b8   : > { %15415 = vmatprep.subr.bf16.mxu1 %v19609_v60 }
 0x9ba   : > { %15217 = vmatpush1.bf16.msra.mxu0 %v19625_v19 }
 0x9bb   : > { %15417 = vmatpush1.bf16.msra.mxu1 %v19625_v19  ;;  %15219 = vmatprep.subr.bf16.mxu0 %v19629_v49 }
 0x9bc   : > { %15419 = vmatprep.subr.bf16.mxu1 %v19629_v49 }
 0x9be   : > { %15221 = vmatpush1.bf16.msra.mxu0 %v19639_v55 }
 0x9bf   : > { %15421 = vmatpush1.bf16.msra.mxu1 %v19639_v55  ;;  %10338 = vmatprep.subr.msk.mxu0 %vm5288_vm3, %v20811_v28 }
 0x9c0   : > { %10353 = vmatprep.subr.msk.mxu1 %vm5288_vm3, %v20811_v28  ;;  %v23033_v28 = vld [vmem:[#allocation66_spill] sm:$0xff] }
 0x9c2   : > { %10339 = vmatpush1.msk.msra.mxu0 %vm5288_vm3, %v20820_v32 }
 0x9c3   : > { %10354 = vmatpush1.msk.msra.mxu1 %vm5288_vm3, %v20820_v32  ;;  %7852 = vmatmul.mubr.f32.vlgmr.msra.gmra.mrb[34].mxu0 %v20622_v44  ;;  %v23035_v44 = vld [vmem:[#allocation12_spill] sm:$0xff]  ;;  %v23037_v32 = vld [vmem:[#allocation14_spill] sm:$0xff] }
 0x9c4   : > { %15223 = vmatprep.subr.bf16.mxu0 %v22959_v22  ;;  %8220 = vmatmul.mubr.f32.vlgmr.msra.gmra.mrb[34].mxu1 %v20697_v3  ;;  %v23036_v3 = vld [vmem:[#allocation13_spill] sm:$0xff] }
 0x9c5   : > { %15423 = vmatprep.subr.bf16.mxu1 %v22959_v22  ;;  %15225 = vmatpush1.bf16.msra.mxu0 %v23032_v39  ;;  %v23101_v22 = vld [vmem:[#allocation5_spill] sm:$0xff] }
 0x9c6   : > { %10343 = vmatprep.mubr.msk.f32.mxu0 %vm5284_vm1, %v20894_v51  ;;  %15425 = vmatpush1.bf16.msra.mxu1 %v23032_v39 }
 0x9c7   : > { %10358 = vmatprep.mubr.msk.f32.mxu1 %vm5284_vm1, %v23033_v28  ;;  %15227 = vmatprep.subr.bf16.mxu0 %v23034_v2 }
 0x9c8   : > { %15427 = vmatprep.subr.bf16.mxu1 %v23034_v2 }
 0x9c9   : > { %15229 = vmatpush1.bf16.msra.mxu0 %v23035_v44 }
 0x9ca   : > { %15429 = vmatpush1.bf16.msra.mxu1 %v23035_v44  ;;  %15231 = vmatprep.subr.bf16.mxu0 %v23036_v3 }
 0x9cb   : > { %15431 = vmatprep.subr.bf16.mxu1 %v23036_v3  ;;  %v23077_v3 = vld [vmem:[#allocation26_spill] sm:$0xff] }
 0x9cd   : > { %15233 = vmatpush1.bf16.msra.mxu0 %v23037_v32 }
 0x9ce   : > { %15433 = vmatpush1.bf16.msra.mxu1 %v23037_v32  ;;  %15235 = vmatprep.subr.bf16.mxu0 %v23038_v42 }
 0x9cf   : > { %15435 = vmatprep.subr.bf16.mxu1 %v23038_v42  ;;  %v4239_v42 = vpop.permute.xlu1 %4238 }
 0x9d1   : > { %15237 = vmatpush1.bf16.msra.mxu0 %v23039_v62 }
 0x9d2   : > { %15437 = vmatpush1.bf16.msra.mxu1 %v23039_v62  ;;  %15239 = vmatprep.subr.bf16.mxu0 %v23040_v18  ;;  %v23062_v62 = vld [vmem:[#allocation52_spill] sm:$0xff] }
 0x9d3   : > { %15439 = vmatprep.subr.bf16.mxu1 %v23040_v18  ;;  %v23056_v18 = vld [vmem:[#allocation48_spill] sm:$0xff] }
 0x9d5   : > { %15241 = vmatpush1.bf16.msra.mxu0 %v23041_v31 }
 0x9d6   : > { %15441 = vmatpush1.bf16.msra.mxu1 %v23041_v31  ;;  %15243 = vmatprep.subr.bf16.mxu0 %v23042_v7  ;;  %v23047_v31 = vld [vmem:[#allocation40_spill] sm:$0xff] }
 0x9d7   : > { %15443 = vmatprep.subr.bf16.mxu1 %v23042_v7  ;;  %v23048_v7 = vld [vmem:[#allocation41_spill] sm:$0xff] }
 0x9d9   : > { %15245 = vmatpush1.bf16.msra.mxu0 %v23043_v16 }
 0x9da   : > { %15445 = vmatpush1.bf16.msra.mxu1 %v23043_v16  ;;  %15247 = vmatprep.subr.bf16.mxu0 %v23044_v45  ;;  %v23049_v16 = vld [vmem:[#allocation42_spill] sm:$0xff] }
 0x9db   : > { %15447 = vmatprep.subr.bf16.mxu1 %v23044_v45  ;;  %v23050_v45 = vld [vmem:[#allocation43_spill] sm:$0xff] }
 0x9dd   : > { %15249 = vmatpush1.bf16.msra.mxu0 %v23045_v41 }
 0x9de   : > { %15449 = vmatpush1.bf16.msra.mxu1 %v23045_v41  ;;  %15251 = vmatprep.subr.bf16.mxu0 %v23046_v11  ;;  %v23051_v41 = vld [vmem:[#allocation44_spill] sm:$0xff] }
 0x9df   : > { %15451 = vmatprep.subr.bf16.mxu1 %v23046_v11  ;;  %v23052_v11 = vld [vmem:[#allocation46_spill] sm:$0xff] }
 0x9e1   : > { %15253 = vmatpush1.bf16.msra.mxu0 %v23047_v31 }
 0x9e2   : > { %15453 = vmatpush1.bf16.msra.mxu1 %v23047_v31  ;;  %15255 = vmatprep.subr.bf16.mxu0 %v23048_v7  ;;  %v4241_v31 = vpop.permute.xlu0 %4240 }
 0x9e3   : > { %15455 = vmatprep.subr.bf16.mxu1 %v23048_v7  ;;  %v23053_v7 = vld [vmem:[#allocation27_spill] sm:$0xff] }
 0x9e5   : > { %15257 = vmatpush1.bf16.msra.mxu0 %v23049_v16 }
 0x9e6   : > { %15457 = vmatpush1.bf16.msra.mxu1 %v23049_v16  ;;  %15259 = vmatprep.subr.bf16.mxu0 %v23050_v45 }
 0x9e7   : > { %15459 = vmatprep.subr.bf16.mxu1 %v23050_v45  ;;  %v23054_v45 = vld [vmem:[#allocation47_spill] sm:$0xff] }
 0x9e9   : > { %15261 = vmatpush1.bf16.msra.mxu0 %v23051_v41 }
 0x9ea   : > { %15461 = vmatpush1.bf16.msra.mxu1 %v23051_v41  ;;  %10341 = vmatprep.subr.msk.mxu0 %vm5288_vm3, %v23052_v11  ;;  %v23055_v41 = vld [vmem:[#allocation35_spill] sm:$0xff] }
 0x9eb   : > { %10356 = vmatprep.subr.msk.mxu1 %vm5288_vm3, %v23052_v11  ;;  %v21222_v16 = vmax.f32 %v23055_v41, %v4241_v31  ;;  %v23057_v11 = vld [vmem:[#allocation3_spill] sm:$0xff]  ;;  %v23059_v41 = vld [vmem:[#allocation49_spill] sm:$0xff] }
 0x9ed   : > { %10342 = vmatpush1.msk.msra.mxu0 %vm5288_vm3, %v23053_v7 }
 0x9ee   : > { %10357 = vmatpush1.msk.msra.mxu1 %vm5288_vm3, %v23053_v7  ;;  %7923 = vmatmul.mubr.f32.vlgmr.msra.gmra.mrb[34].mxu0 %v20950_v36  ;;  %v23058_v7 = vld [vmem:[#allocation23_spill] sm:$0xff] }
 0x9ef   : > { %15263 = vmatprep.subr.bf16.mxu0 %v23054_v45  ;;  %8291 = vmatmul.mubr.f32.vlgmr.msra.gmra.mrb[34].mxu1 %v21024_v23 }
 0x9f0   : > { %15463 = vmatprep.subr.bf16.mxu1 %v23054_v45  ;;  %15265 = vmatpush1.bf16.msra.mxu0 %v23056_v18  ;;  %v23060_v45 = vld [vmem:[#allocation50_spill] sm:$0xff] }
 0x9f1   : > { %10346 = vmatprep.mubr.msk.f32.mxu0 %vm5284_vm1, %v23033_v28  ;;  %15465 = vmatpush1.bf16.msra.mxu1 %v23056_v18  ;;  %v23061_v18 = vld [vmem:[#allocation51_spill] sm:$0xff] }
 0x9f2   : > { %10361 = vmatprep.mubr.msk.f32.mxu1 %vm5284_vm1, %v21222_v16  ;;  %15267 = vmatprep.subr.bf16.mxu0 %v23057_v11 }
 0x9f3   : > { %15467 = vmatprep.subr.bf16.mxu1 %v23057_v11  ;;  %v23063_v11 = vld [vmem:[#allocation53_spill] sm:$0xff] }
 0x9f4   : > { %15269 = vmatpush1.bf16.msra.mxu0 %v23058_v7 }
 0x9f5   : > { %15469 = vmatpush1.bf16.msra.mxu1 %v23058_v7  ;;  %15271 = vmatprep.subr.bf16.mxu0 %v23059_v41  ;;  %v23064_v7 = vld [vmem:[#allocation54_spill] sm:$0xff] }
 0x9f6   : > { %15471 = vmatprep.subr.bf16.mxu1 %v23059_v41  ;;  %v23065_v41 = vld [vmem:[#allocation55_spill] sm:$0xff] }
 0x9f8   : > { %15273 = vmatpush1.bf16.msra.mxu0 %v23060_v45 }
 0x9f9   : > { %15473 = vmatpush1.bf16.msra.mxu1 %v23060_v45  ;;  %15275 = vmatprep.subr.bf16.mxu0 %v23061_v18  ;;  %v23066_v45 = vld [vmem:[#allocation56_spill] sm:$0xff] }
 0x9fa   : > { %15475 = vmatprep.subr.bf16.mxu1 %v23061_v18  ;;  %v23067_v18 = vld [vmem:[#allocation57_spill] sm:$0xff] }
 0x9fc   : > { %15277 = vmatpush1.bf16.msra.mxu0 %v23062_v62 }
 0x9fd   : > { %15477 = vmatpush1.bf16.msra.mxu1 %v23062_v62  ;;  %15279 = vmatprep.subr.bf16.mxu0 %v23063_v11  ;;  %v23068_v62 = vld [vmem:[#allocation58_spill] sm:$0xff] }
 0x9fe   : > { %15479 = vmatprep.subr.bf16.mxu1 %v23063_v11  ;;  %v23069_v11 = vld [vmem:[#allocation59_spill] sm:$0xff] }
 0xa00   : > { %15281 = vmatpush1.bf16.msra.mxu0 %v23064_v7 }
 0xa01   : > { %15481 = vmatpush1.bf16.msra.mxu1 %v23064_v7  ;;  %15283 = vmatprep.subr.bf16.mxu0 %v23065_v41  ;;  %v23070_v7 = vld [vmem:[#allocation60_spill] sm:$0xff] }
 0xa02   : > { %15483 = vmatprep.subr.bf16.mxu1 %v23065_v41  ;;  %v23071_v41 = vld [vmem:[#allocation61_spill] sm:$0xff] }
 0xa04   : > { %15285 = vmatpush1.bf16.msra.mxu0 %v23066_v45 }
 0xa05   : > { %15485 = vmatpush1.bf16.msra.mxu1 %v23066_v45  ;;  %15287 = vmatprep.subr.bf16.mxu0 %v23067_v18  ;;  %v23072_v45 = vld [vmem:[#allocation62_spill] sm:$0xff] }
 0xa06   : > { %15487 = vmatprep.subr.bf16.mxu1 %v23067_v18  ;;  %v23073_v18 = vld [vmem:[#allocation63_spill] sm:$0xff] }
 0xa08   : > { %15289 = vmatpush1.bf16.msra.mxu0 %v23068_v62 }
 0xa09   : > { %15489 = vmatpush1.bf16.msra.mxu1 %v23068_v62  ;;  %15291 = vmatprep.subr.bf16.mxu0 %v23069_v11  ;;  %v23074_v62 = vld [vmem:[#allocation64_spill] sm:$0xff] }
 0xa0a   : > { %15491 = vmatprep.subr.bf16.mxu1 %v23069_v11  ;;  %v4242_v11 = vsel %vm1071_vm2, %v4239_v42, %v4241_v31  ;;  %v23078_v42 = vld [vmem:[#allocation67_spill] sm:$0xff]  ;;  %v23079_v31 = vld [vmem:[#allocation6_spill] sm:$0xff] }
 0xa0c   : > { %15293 = vmatpush1.bf16.msra.mxu0 %v23070_v7 }
 0xa0d   : > { %15493 = vmatpush1.bf16.msra.mxu1 %v23070_v7  ;;  %15295 = vmatprep.subr.bf16.mxu0 %v23071_v41  ;;  %v23075_v7 = vld [vmem:[#allocation65_spill] sm:$0xff] }
 0xa0e   : > { %15495 = vmatprep.subr.bf16.mxu1 %v23071_v41  ;;  %v23076_v41 = vld [vmem:[#allocation34_spill] sm:$0xff] }
 0xa0f   : > { %v21273_v32 = vmax.f32 %v23076_v41, %v4242_v11  ;;  %v23081_v11 = vld [vmem:[#allocation68_spill] sm:$0xff]  ;;  %v23084_v41 = vld [vmem:[#allocation69_spill] sm:$0xff] }
 0xa10   : > { %15297 = vmatpush1.bf16.msra.mxu0 %v23072_v45 }
 0xa11   : > { %15497 = vmatpush1.bf16.msra.mxu1 %v23072_v45  ;;  %15299 = vmatprep.subr.bf16.mxu0 %v23073_v18  ;;  %v4558_v45 = vpop.permute.xlu0 %4557 }
 0xa12   : > { %15499 = vmatprep.subr.bf16.mxu1 %v23073_v18  ;;  %v4556_v18 = vpop.permute.xlu1 %4555 }
 0xa14   : > { %15301 = vmatpush1.bf16.msra.mxu0 %v23074_v62 }
 0xa15   : > { %15501 = vmatpush1.bf16.msra.mxu1 %v23074_v62  ;;  %10344 = vmatprep.subr.msk.mxu0 %vm5288_vm3, %v23075_v7  ;;  %v21283_v62 = vmax.f32 %v23079_v31, %v4558_v45  ;;  %v23085_v31 = vld [vmem:[#allocation70_spill] sm:$0xff] }
 0xa16   : > { %10359 = vmatprep.subr.msk.mxu1 %vm5288_vm3, %v23075_v7  ;;  %v23083_v7 = vld [vmem:[#allocation25_spill] sm:$0xff] }
 0xa17   : > { %23080 = vst [vmem:[#allocation28_spill] sm:$0xff] %v21283_v62 }
 0xa18   : > { %10345 = vmatpush1.msk.msra.mxu0 %vm5288_vm3, %v23077_v3 }
 0xa19   : > { %10360 = vmatpush1.msk.msra.mxu1 %vm5288_vm3, %v23077_v3  ;;  %7996 = vmatmul.mubr.f32.vlgmr.msra.gmra.mrb[34].mxu0 %v21024_v23  ;;  %v23082_v3 = vld [vmem:[#allocation22_spill] sm:$0xff] }
 0xa1a   : > { %15303 = vmatprep.subr.bf16.mxu0 %v23078_v42  ;;  %8364 = vmatmul.mubr.f32.vlgmr.msra.gmra.mrb[34].mxu1 %v21273_v32 }
 0xa1b   : > { %15503 = vmatprep.subr.bf16.mxu1 %v23078_v42  ;;  %15305 = vmatpush1.bf16.msra.mxu0 %v23081_v11  ;;  %v23087_v42 = vld [vmem:[#allocation72_spill] sm:$0xff] }
 0xa1c   : > { %10349 = vmatprep.mubr.msk.f32.mxu0 %vm5284_vm1, %v21222_v16  ;;  %15505 = vmatpush1.bf16.msra.mxu1 %v23081_v11  ;;  %v23086_v11 = vld [vmem:[#allocation71_spill] sm:$0xff] }
 0xa1d   : > { %10364 = vmatprep.mubr.msk.f32.mxu1 %vm5284_vm1, %v21283_v62  ;;  %15307 = vmatprep.subr.bf16.mxu0 %v23082_v3 }
 0xa1e   : > { %15507 = vmatprep.subr.bf16.mxu1 %v23082_v3  ;;  %v23088_v3 = vld [vmem:[#allocation73_spill] sm:$0xff] }
 0xa1f   : > { %15309 = vmatpush1.bf16.msra.mxu0 %v23083_v7 }
 0xa20   : > { %15509 = vmatpush1.bf16.msra.mxu1 %v23083_v7  ;;  %15311 = vmatprep.subr.bf16.mxu0 %v23084_v41  ;;  %v23089_v7 = vld [vmem:[#allocation74_spill] sm:$0xff] }
 0xa21   : > { %15511 = vmatprep.subr.bf16.mxu1 %v23084_v41  ;;  %v23090_v41 = vld [vmem:[#allocation75_spill] sm:$0xff] }
 0xa23   : > { %15313 = vmatpush1.bf16.msra.mxu0 %v23085_v31 }
 0xa24   : > { %15513 = vmatpush1.bf16.msra.mxu1 %v23085_v31  ;;  %15315 = vmatprep.subr.bf16.mxu0 %v23086_v11  ;;  %v23091_v31 = vld [vmem:[#allocation76_spill] sm:$0xff] }
 0xa25   : > { %15515 = vmatprep.subr.bf16.mxu1 %v23086_v11  ;;  %v23092_v11 = vld [vmem:[#allocation77_spill] sm:$0xff] }
 0xa27   : > { %15317 = vmatpush1.bf16.msra.mxu0 %v23087_v42 }
 0xa28   : > { %15517 = vmatpush1.bf16.msra.mxu1 %v23087_v42  ;;  %15319 = vmatprep.subr.bf16.mxu0 %v23088_v3  ;;  %v23093_v42 = vld [vmem:[#allocation78_spill] sm:$0xff] }
 0xa29   : > { %15519 = vmatprep.subr.bf16.mxu1 %v23088_v3  ;;  %v23094_v3 = vld [vmem:[#allocation79_spill] sm:$0xff] }
 0xa2b   : > { %15321 = vmatpush1.bf16.msra.mxu0 %v23089_v7 }
 0xa2c   : > { %15521 = vmatpush1.bf16.msra.mxu1 %v23089_v7  ;;  %15323 = vmatprep.subr.bf16.mxu0 %v23090_v41  ;;  %v23095_v7 = vld [vmem:[#allocation80_spill] sm:$0xff] }
 0xa2d   : > { %15523 = vmatprep.subr.bf16.mxu1 %v23090_v41  ;;  %v23096_v41 = vld [vmem:[#allocation81_spill] sm:$0xff] }
 0xa2f   : > { %15325 = vmatpush1.bf16.msra.mxu0 %v23091_v31 }
 0xa30   : > { %15525 = vmatpush1.bf16.msra.mxu1 %v23091_v31  ;;  %15327 = vmatprep.subr.bf16.mxu0 %v23092_v11  ;;  %v23097_v31 = vld [vmem:[#allocation82_spill] sm:$0xff] }
 0xa31   : > { %15527 = vmatprep.subr.bf16.mxu1 %v23092_v11  ;;  %v23098_v11 = vld [vmem:[#allocation83_spill] sm:$0xff] }
 0xa33   : > { %15329 = vmatpush1.bf16.msra.mxu0 %v23093_v42 }
 0xa34   : > { %15529 = vmatpush1.bf16.msra.mxu1 %v23093_v42  ;;  %15331 = vmatprep.subr.bf16.mxu0 %v23094_v3  ;;  %v23099_v42 = vld [vmem:[#allocation84_spill] sm:$0xff] }
 0xa35   : > { %15531 = vmatprep.subr.bf16.mxu1 %v23094_v3  ;;  %v4559_v3 = vsel %vm1071_vm2, %v4556_v18, %v4558_v45 }
 0xa36   : > { %v21337_v45 = vmax.f32 %v23101_v22, %v4559_v3  ;;  %v16379_v3 = vld [vmem:[%s22146_s3 + $0x538] sm:$0x3] }
 0xa37   : > { %15333 = vmatpush1.bf16.msra.mxu0 %v23095_v7 }
 0xa38   : > { %15533 = vmatpush1.bf16.msra.mxu1 %v23095_v7  ;;  %15335 = vmatprep.subr.bf16.mxu0 %v23096_v41  ;;  %v23100_v7 = vld [vmem:[#allocation29_spill] sm:$0xff] }
 0xa39   : > { %15535 = vmatprep.subr.bf16.mxu1 %v23096_v41 }
 0xa3b   : > { %15337 = vmatpush1.bf16.msra.mxu0 %v23097_v31 }
 0xa3c   : > { %15537 = vmatpush1.bf16.msra.mxu1 %v23097_v31  ;;  %15339 = vmatprep.subr.bf16.mxu0 %v23098_v11 }
 0xa3d   : > { %15539 = vmatprep.subr.bf16.mxu1 %v23098_v11 }
 0xa3f   : > { %15341 = vmatpush1.bf16.msra.mxu0 %v23099_v42 }
 0xa40   : > { %15541 = vmatpush1.bf16.msra.mxu1 %v23099_v42  ;;  %10347 = vmatprep.subr.msk.mxu0 %vm5288_vm3, %v23100_v7  ;;  %v7324_v44 = vpop.f32.mrb[32].mxu0 }
 0xa41   : > { %10362 = vmatprep.subr.msk.mxu1 %vm5288_vm3, %v23100_v7  ;;  %v7331_v31 = vadd.f32 %v7324_v44, %v20680_v63  ;;  %v7692_v41 = vpop.f32.mrb[32].mxu1  ;;  %v7326_v2 = vpop.f32.mrb[33].mxu0 }
 0xa42   : > { %v7699_v62 = vadd.f32 %v7692_v41, %v20680_v63  ;;  %v7332_v11 = vadd.f32 %v7326_v2, %v20684_v25  ;;  %v7694_v39 = vpop.f32.mrb[33].mxu1  ;;  %v23145_v41 = vld [vmem:[#allocation18_spill] sm:$0xff] }
 0xa43   : > { %10348 = vmatpush1.msk.msra.mxu0 %vm5288_vm3, %v21029_v8  ;;  %v7333_v18 = vmax.f32 %v7331_v31, 0.0  ;;  %v7700_v42 = vadd.f32 %v7694_v39, %v20684_v25  ;;  %v23102_v39 = vld [vmem:[#allocation8_spill] sm:$0xff] }
 0xa44   : > { %10363 = vmatpush1.msk.msra.mxu1 %vm5288_vm3, %v21029_v8  ;;  %8072 = vmatmul.mubr.f32.vlgmr.msra.gmra.mrb[34].mxu0 %v21273_v32  ;;  %v7701_v44 = vmax.f32 %v7699_v62, 0.0  ;;  %v7334_v7 = vmax.f32 %v7332_v11, 0.0 }
 0xa45   : > { %8440 = vmatmul.mubr.f32.vlgmr.msra.gmra.mrb[34].mxu1 %v21337_v45  ;;  %15543 = vmatprep.subr.bf16.mxu0 %v19201_v34  ;;  %v7702_v2 = vmax.f32 %v7700_v42, 0.0  ;;  %v23144_v42 = vld [vmem:[#allocation64_spill] sm:$0xff] }
 0xa46   : > { %15743 = vmatprep.subr.bf16.mxu1 %v19201_v34  ;;  %v21348_v22 = vmax.f32 %v7333_v18, %v7701_v44  ;;  %15545 = vmatpush1.bf16.msra.mxu0 %v19223_v12  ;;  %v16375_v34 = vld [vmem:[%s22146_s3 + $0x148] sm:$0x3]  ;;  %v16380_v44 = vld [vmem:[%s22146_s3 + $0x530] sm:$0x3] }
 0xa47   : > { %10367 = vmatprep.mubr.msk.f32.mxu0 %vm5284_vm1, %v23033_v28  ;;  %15745 = vmatpush1.bf16.msra.mxu1 %v19223_v12  ;;  %v21354_v8 = vmax.f32 %v7334_v7, %v7702_v2  ;;  %v16376_v12 = vld [vmem:[%s22146_s3 + $0x140] sm:$0x3]  ;;  %v23147_v2 = vld [vmem:[#allocation86_spill] sm:$0xff] }
 0xa48   : > { %10382 = vmatprep.mubr.msk.f32.mxu1 %vm5284_vm1, %v21222_v16  ;;  %15547 = vmatprep.subr.bf16.mxu0 %v19237_v20  ;;  %v16353_v62 = vpack.i.bf16 %v21348_v22, %v23102_v39  ;;  %v23146_v7 = vld [vmem:[#allocation67_spill] sm:$0xff] }
 0xa49   : > { %15747 = vmatprep.subr.bf16.mxu1 %v19237_v20  ;;  %v23103_v20 = vld [vmem:[#allocation9_spill] sm:$0xff] }
 0xa4a   : > { %15549 = vmatpush1.bf16.msra.mxu0 %v19252_v40  ;;  %16354 = vrot.lane.b32.xlu1 %v16353_v62, %s16408_s28 }
 0xa4b   : > { %15749 = vmatpush1.bf16.msra.mxu1 %v19252_v40  ;;  %15551 = vmatprep.subr.bf16.mxu0 %v19257_v53  ;;  %v23104_v40 = vld [vmem:[#allocation10_spill] sm:$0xff] }
 0xa4c   : > { %15751 = vmatprep.subr.bf16.mxu1 %v19257_v53  ;;  %v23105_v53 = vld [vmem:[#allocation28_spill] sm:$0xff] }
 0xa4e   : > { %15553 = vmatpush1.bf16.msra.mxu0 %v19274_v6  ;;  %7709 = vrot.lane.b32.xlu1 %v21354_v8, %s16408_s28 }
 0xa4f   : > { %15753 = vmatpush1.bf16.msra.mxu1 %v19274_v6  ;;  %15555 = vmatprep.subr.bf16.mxu0 %v19278_v50  ;;  %v23106_v6 = vld [vmem:[#allocation11_spill] sm:$0xff] }
 0xa50   : > { %15755 = vmatprep.subr.bf16.mxu1 %v19278_v50  ;;  %v23107_v50 = vld [vmem:[#allocation12_spill] sm:$0xff] }
 0xa52   : > { %15557 = vmatpush1.bf16.msra.mxu0 %v19294_v56 }
 0xa53   : > { %15757 = vmatpush1.bf16.msra.mxu1 %v19294_v56  ;;  %15559 = vmatprep.subr.bf16.mxu0 %v19298_v61  ;;  %v23108_v56 = vld [vmem:[#allocation13_spill] sm:$0xff] }
 0xa54   : > { %15759 = vmatprep.subr.bf16.mxu1 %v19298_v61  ;;  %v23109_v61 = vld [vmem:[#allocation14_spill] sm:$0xff] }
 0xa56   : > { %15561 = vmatpush1.bf16.msra.mxu0 %v19314_v10 }
 0xa57   : > { %15761 = vmatpush1.bf16.msra.mxu1 %v19314_v10  ;;  %15563 = vmatprep.subr.bf16.mxu0 %v19318_v15  ;;  %v23110_v10 = vld [vmem:[#allocation19_spill] sm:$0xff] }
 0xa58   : > { %15763 = vmatprep.subr.bf16.mxu1 %v19318_v15  ;;  %v23111_v15 = vld [vmem:[#allocation21_spill] sm:$0xff] }
 0xa5a   : > { %15565 = vmatpush1.bf16.msra.mxu0 %v19334_v30 }
 0xa5b   : > { %15765 = vmatpush1.bf16.msra.mxu1 %v19334_v30  ;;  %15567 = vmatprep.subr.bf16.mxu0 %v19338_v35  ;;  %v23112_v30 = vld [vmem:[#allocation20_spill] sm:$0xff] }
 0xa5c   : > { %15767 = vmatprep.subr.bf16.mxu1 %v19338_v35  ;;  %v23113_v35 = vld [vmem:[#allocation16_spill] sm:$0xff] }
 0xa5e   : > { %15569 = vmatpush1.bf16.msra.mxu0 %v19354_v48 }
 0xa5f   : > { %15769 = vmatpush1.bf16.msra.mxu1 %v19354_v48  ;;  %15571 = vmatprep.subr.bf16.mxu0 %v19358_v54  ;;  %v23114_v48 = vld [vmem:[#allocation4_spill] sm:$0xff] }
 0xa60   : > { %15771 = vmatprep.subr.bf16.mxu1 %v19358_v54  ;;  %v23115_v54 = vld [vmem:[#allocation36_spill] sm:$0xff] }
 0xa62   : > { %15573 = vmatpush1.bf16.msra.mxu0 %v19374_v26 }
 0xa63   : > { %15773 = vmatpush1.bf16.msra.mxu1 %v19374_v26  ;;  %15575 = vmatprep.subr.bf16.mxu0 %v19378_v27  ;;  %v23116_v26 = vld [vmem:[#allocation37_spill] sm:$0xff] }
 0xa64   : > { %15775 = vmatprep.subr.bf16.mxu1 %v19378_v27  ;;  %v23117_v27 = vld [vmem:[#allocation38_spill] sm:$0xff] }
 0xa66   : > { %15577 = vmatpush1.bf16.msra.mxu0 %v19394_v46 }
 0xa67   : > { %15777 = vmatpush1.bf16.msra.mxu1 %v19394_v46  ;;  %15579 = vmatprep.subr.bf16.mxu0 %v19398_v5  ;;  %v23118_v46 = vld [vmem:[#allocation39_spill] sm:$0xff] }
 0xa68   : > { %15779 = vmatprep.subr.bf16.mxu1 %v19398_v5  ;;  %v23119_v5 = vld [vmem:[#allocation40_spill] sm:$0xff] }
 0xa6a   : > { %15581 = vmatpush1.bf16.msra.mxu0 %v19408_v17 }
 0xa6b   : > { %15781 = vmatpush1.bf16.msra.mxu1 %v19408_v17  ;;  %10365 = vmatprep.subr.msk.mxu0 %vm5288_vm3, %v21095_v37  ;;  %v23120_v17 = vld [vmem:[#allocation41_spill] sm:$0xff] }
 0xa6c   : > { %10380 = vmatprep.subr.msk.mxu1 %vm5288_vm3, %v21095_v37  ;;  %v23140_v37 = vld [vmem:[#allocation60_spill] sm:$0xff] }
 0xa6e   : > { %10366 = vmatpush1.msk.msra.mxu0 %vm5288_vm3, %v21104_v52 }
 0xa6f   : > { %10381 = vmatpush1.msk.msra.mxu1 %vm5288_vm3, %v21104_v52  ;;  %8530 = vmatmul.mubr.f32.vlgmr.msra.gmra.mrb[36].mxu0 %v21024_v23  ;;  %v23141_v52 = vld [vmem:[#allocation61_spill] sm:$0xff] }
 0xa70   : > { %15583 = vmatprep.subr.bf16.mxu0 %v19441_v14  ;;  %8898 = vmatmul.mubr.f32.vlgmr.msra.gmra.mrb[36].mxu1 %v21273_v32 }
 0xa71   : > { %15783 = vmatprep.subr.bf16.mxu1 %v19441_v14  ;;  %15585 = vmatpush1.bf16.msra.mxu0 %v19454_v4  ;;  %v23121_v14 = vld [vmem:[#allocation42_spill] sm:$0xff] }
 0xa72   : > { %10370 = vmatprep.mubr.msk.f32.mxu0 %vm5284_vm1, %v20894_v51  ;;  %15785 = vmatpush1.bf16.msra.mxu1 %v19454_v4  ;;  %v23122_v4 = vld [vmem:[#allocation43_spill] sm:$0xff]  ;;  %v23137_v51 = vld [vmem:[#allocation57_spill] sm:$0xff] }
 0xa73   : > { %10385 = vmatprep.mubr.msk.f32.mxu1 %vm5284_vm1, %v23033_v28  ;;  %15587 = vmatprep.subr.bf16.mxu0 %v19468_v29  ;;  %v23142_v28 = vld [vmem:[#allocation62_spill] sm:$0xff] }
 0xa74   : > { %15787 = vmatprep.subr.bf16.mxu1 %v19468_v29  ;;  %v23123_v29 = vld [vmem:[#allocation44_spill] sm:$0xff] }
 0xa75   : > { %15589 = vmatpush1.bf16.msra.mxu0 %v19482_v57 }
 0xa76   : > { %15789 = vmatpush1.bf16.msra.mxu1 %v19482_v57  ;;  %15591 = vmatprep.subr.bf16.mxu0 %v19486_v0  ;;  %v16377_v57 = vld [vmem:[%s22146_s3 + $0x3e8] sm:$0x3] }
 0xa77   : > { %15791 = vmatprep.subr.bf16.mxu1 %v19486_v0  ;;  %v4875_v0 = vpop.permute.xlu0 %4874 }
 0xa79   : > { %15593 = vmatpush1.bf16.msra.mxu0 %v19505_v24 }
 0xa7a   : > { %15793 = vmatpush1.bf16.msra.mxu1 %v19505_v24  ;;  %15595 = vmatprep.subr.bf16.mxu0 %v19509_v58  ;;  %v16378_v24 = vld [vmem:[%s22146_s3 + $0x3e0] sm:$0x3] }
 0xa7b   : > { %15795 = vmatprep.subr.bf16.mxu1 %v19509_v58  ;;  %v23124_v58 = vld [vmem:[#allocation47_spill] sm:$0xff]  ;;  %v5192_v18 = vpop.permute.xlu0 %5191 }
 0xa7c   : > { %v5197_v62 = vmax.f32 %v23147_v2, %v5192_v18 }
 0xa7d   : > { %15597 = vmatpush1.bf16.msra.mxu0 %v19525_v43 }
 0xa7e   : > { %15797 = vmatpush1.bf16.msra.mxu1 %v19525_v43  ;;  %15599 = vmatprep.subr.bf16.mxu0 %v19529_v13  ;;  %v23125_v43 = vld [vmem:[#allocation17_spill] sm:$0xff] }
 0xa7f   : > { %15799 = vmatprep.subr.bf16.mxu1 %v19529_v13  ;;  %v4880_v13 = vmax.f32 %v23125_v43, %v4875_v0 }
 0xa81   : > { %15601 = vmatpush1.bf16.msra.mxu0 %v19545_v38 }
 0xa82   : > { %15801 = vmatpush1.bf16.msra.mxu1 %v19545_v38  ;;  %15603 = vmatprep.subr.bf16.mxu0 %v19549_v59  ;;  %v23126_v38 = vld [vmem:[#allocation48_spill] sm:$0xff] }
 0xa83   : > { %15803 = vmatprep.subr.bf16.mxu1 %v19549_v59  ;;  %v23127_v59 = vld [vmem:[#allocation3_spill] sm:$0xff] }
 0xa85   : > { %15605 = vmatpush1.bf16.msra.mxu0 %v19565_v9 }
 0xa86   : > { %15805 = vmatpush1.bf16.msra.mxu1 %v19565_v9  ;;  %15607 = vmatprep.subr.bf16.mxu0 %v19569_v21  ;;  %v23128_v9 = vld [vmem:[#allocation23_spill] sm:$0xff] }
 0xa87   : > { %15807 = vmatprep.subr.bf16.mxu1 %v19569_v21  ;;  %v23129_v21 = vld [vmem:[#allocation49_spill] sm:$0xff] }
 0xa89   : > { %15609 = vmatpush1.bf16.msra.mxu0 %v19585_v47 }
 0xa8a   : > { %15809 = vmatpush1.bf16.msra.mxu1 %v19585_v47  ;;  %15611 = vmatprep.subr.bf16.mxu0 %v19589_v1  ;;  %v23130_v47 = vld [vmem:[#allocation50_spill] sm:$0xff] }
 0xa8b   : > { %15811 = vmatprep.subr.bf16.mxu1 %v19589_v1  ;;  %v23131_v1 = vld [vmem:[#allocation51_spill] sm:$0xff] }
 0xa8d   : > { %15613 = vmatpush1.bf16.msra.mxu0 %v19605_v33 }
 0xa8e   : > { %15813 = vmatpush1.bf16.msra.mxu1 %v19605_v33  ;;  %15615 = vmatprep.subr.bf16.mxu0 %v19609_v60  ;;  %v23132_v33 = vld [vmem:[#allocation52_spill] sm:$0xff] }
 0xa8f   : > { %15815 = vmatprep.subr.bf16.mxu1 %v19609_v60  ;;  %v23133_v60 = vld [vmem:[#allocation53_spill] sm:$0xff] }
 0xa91   : > { %15617 = vmatpush1.bf16.msra.mxu0 %v19625_v19 }
 0xa92   : > { %15817 = vmatpush1.bf16.msra.mxu1 %v19625_v19  ;;  %15619 = vmatprep.subr.bf16.mxu0 %v19629_v49  ;;  %v23134_v19 = vld [vmem:[#allocation54_spill] sm:$0xff] }
 0xa93   : > { %15819 = vmatprep.subr.bf16.mxu1 %v19629_v49  ;;  %v23135_v49 = vld [vmem:[#allocation55_spill] sm:$0xff] }
 0xa95   : > { %15621 = vmatpush1.bf16.msra.mxu0 %v19639_v55 }
 0xa96   : > { %15821 = vmatpush1.bf16.msra.mxu1 %v19639_v55  ;;  %10368 = vmatprep.subr.msk.mxu0 %vm5288_vm3, %v16375_v34  ;;  %v23136_v55 = vld [vmem:[#allocation56_spill] sm:$0xff] }
 0xa97   : > { %10383 = vmatprep.subr.msk.mxu1 %vm5288_vm3, %v16375_v34  ;;  %v23148_v34 = vld [vmem:[#allocation68_spill] sm:$0xff] }
 0xa99   : > { %10369 = vmatpush1.msk.msra.mxu0 %vm5288_vm3, %v16376_v12 }
 0xa9a   : > { %10384 = vmatpush1.msk.msra.mxu1 %vm5288_vm3, %v16376_v12  ;;  %8601 = vmatmul.mubr.f32.vlgmr.msra.gmra.mrb[36].mxu0 %v20950_v36  ;;  %v23138_v36 = vld [vmem:[#allocation58_spill] sm:$0xff] }
 0xa9b   : > { %15623 = vmatprep.subr.bf16.mxu0 %v23103_v20  ;;  %8969 = vmatmul.mubr.f32.vlgmr.msra.gmra.mrb[36].mxu1 %v21024_v23  ;;  %v23139_v23 = vld [vmem:[#allocation59_spill] sm:$0xff]  ;;  %v23149_v12 = vld [vmem:[#allocation22_spill] sm:$0xff] }
 0xa9c   : > { %15823 = vmatprep.subr.bf16.mxu1 %v23103_v20  ;;  %15625 = vmatpush1.bf16.msra.mxu0 %v23104_v40  ;;  %v23151_v20 = vld [vmem:[#allocation69_spill] sm:$0xff] }
 0xa9d   : > { %10373 = vmatprep.mubr.msk.f32.mxu0 %vm5284_vm1, %v21222_v16  ;;  %15825 = vmatpush1.bf16.msra.mxu1 %v23104_v40  ;;  %v4873_v16 = vpop.permute.xlu1 %4872  ;;  %v23152_v40 = vld [vmem:[#allocation70_spill] sm:$0xff] }
 0xa9e   : > { %10388 = vmatprep.mubr.msk.f32.mxu1 %vm5284_vm1, %v23105_v53  ;;  %15627 = vmatprep.subr.bf16.mxu0 %v23106_v6  ;;  %v4876_v11 = vsel %vm1071_vm2, %v4873_v16, %v4875_v0  ;;  %v23168_v16 = vld [vmem:[#allocation85_spill] sm:$0xff] }
 0xa9f   : > { %15827 = vmatprep.subr.bf16.mxu1 %v23106_v6  ;;  %v21572_v31 = vmax.f32 %v23145_v41, %v4876_v11  ;;  %v23154_v6 = vld [vmem:[#allocation72_spill] sm:$0xff]  ;;  %v16409_v11 = vmov 0.0|0.0   ;;  %v23169_v41 = vld [vmem:[#allocation45_spill] sm:$0xff] }
 0xaa0   : > { %15629 = vmatpush1.bf16.msra.mxu0 %v23107_v50 }
 0xaa1   : > { %15829 = vmatpush1.bf16.msra.mxu1 %v23107_v50  ;;  %15631 = vmatprep.subr.bf16.mxu0 %v23108_v56  ;;  %v23155_v50 = vld [vmem:[#allocation73_spill] sm:$0xff] }
 0xaa2   : > { %15831 = vmatprep.subr.bf16.mxu1 %v23108_v56  ;;  %v23156_v56 = vld [vmem:[#allocation74_spill] sm:$0xff] }
 0xaa4   : > { %15633 = vmatpush1.bf16.msra.mxu0 %v23109_v61 }
 0xaa5   : > { %15833 = vmatpush1.bf16.msra.mxu1 %v23109_v61  ;;  %15635 = vmatprep.subr.bf16.mxu0 %v23110_v10  ;;  %v23157_v61 = vld [vmem:[#allocation75_spill] sm:$0xff] }
 0xaa6   : > { %15835 = vmatprep.subr.bf16.mxu1 %v23110_v10  ;;  %v23158_v10 = vld [vmem:[#allocation76_spill] sm:$0xff] }
 0xaa8   : > { %15637 = vmatpush1.bf16.msra.mxu0 %v23111_v15 }
 0xaa9   : > { %15837 = vmatpush1.bf16.msra.mxu1 %v23111_v15  ;;  %15639 = vmatprep.subr.bf16.mxu0 %v23112_v30  ;;  %v23159_v15 = vld [vmem:[#allocation77_spill] sm:$0xff] }
 0xaaa   : > { %15839 = vmatprep.subr.bf16.mxu1 %v23112_v30  ;;  %v23160_v30 = vld [vmem:[#allocation78_spill] sm:$0xff] }
 0xaac   : > { %15641 = vmatpush1.bf16.msra.mxu0 %v23113_v35 }
 0xaad   : > { %15841 = vmatpush1.bf16.msra.mxu1 %v23113_v35  ;;  %15643 = vmatprep.subr.bf16.mxu0 %v23114_v48  ;;  %v23161_v35 = vld [vmem:[#allocation79_spill] sm:$0xff] }
 0xaae   : > { %15843 = vmatprep.subr.bf16.mxu1 %v23114_v48  ;;  %v23162_v48 = vld [vmem:[#allocation80_spill] sm:$0xff] }
 0xab0   : > { %15645 = vmatpush1.bf16.msra.mxu0 %v23115_v54 }
 0xab1   : > { %15845 = vmatpush1.bf16.msra.mxu1 %v23115_v54  ;;  %15647 = vmatprep.subr.bf16.mxu0 %v23116_v26  ;;  %v23163_v54 = vld [vmem:[#allocation81_spill] sm:$0xff] }
 0xab2   : > { %15847 = vmatprep.subr.bf16.mxu1 %v23116_v26  ;;  %v23164_v26 = vld [vmem:[#allocation82_spill] sm:$0xff] }
 0xab4   : > { %15649 = vmatpush1.bf16.msra.mxu0 %v23117_v27 }
 0xab5   : > { %15849 = vmatpush1.bf16.msra.mxu1 %v23117_v27  ;;  %15651 = vmatprep.subr.bf16.mxu0 %v23118_v46  ;;  %v23165_v27 = vld [vmem:[#allocation83_spill] sm:$0xff] }
 0xab6   : > { %15851 = vmatprep.subr.bf16.mxu1 %v23118_v46  ;;  %v5190_v46 = vpop.permute.xlu1 %5189 }
 0xab8   : > { %15653 = vmatpush1.bf16.msra.mxu0 %v23119_v5 }
 0xab9   : > { %15853 = vmatpush1.bf16.msra.mxu1 %v23119_v5  ;;  %15655 = vmatprep.subr.bf16.mxu0 %v23120_v17  ;;  %v21621_v5 = vpop.permute.xlu0 %6960 }
 0xaba   : > { %15855 = vmatprep.subr.bf16.mxu1 %v23120_v17  ;;  %v23166_v17 = vld [vmem:[#allocation84_spill] sm:$0xff] }
 0xabc   : > { %15657 = vmatpush1.bf16.msra.mxu0 %v23121_v14 }
 0xabd   : > { %15857 = vmatpush1.bf16.msra.mxu1 %v23121_v14  ;;  %15659 = vmatprep.subr.bf16.mxu0 %v23122_v4  ;;  %v10395_v14 = vld [vmem:[%s22148_s5 + $0x90] sm:$0xff] }
 0xabe   : > { %15859 = vmatprep.subr.bf16.mxu1 %v23122_v4  ;;  %v10396_v4 = vld [vmem:[%s22148_s5 + $0x98] sm:$0xff] }
 0xac0   : > { %15661 = vmatpush1.bf16.msra.mxu0 %v23123_v29 }
 0xac1   : > { %15861 = vmatpush1.bf16.msra.mxu1 %v23123_v29  ;;  %10371 = vmatprep.subr.msk.mxu0 %vm5288_vm3, %v16377_v57  ;;  %v5193_v29 = vsel %vm1071_vm2, %v5190_v46, %v5192_v18  ;;  %v10406_v46 = vld [vmem:[%s22148_s5 + $0xe8] sm:$0xff] }
 0xac2   : > { %10386 = vmatprep.subr.msk.mxu1 %vm5288_vm3, %v16377_v57  ;;  %v16381_v57 = vld [vmem:[%s22146_s3 + $0x688] sm:$0x3] }
 0xac4   : > { %10372 = vmatpush1.msk.msra.mxu0 %vm5288_vm3, %v16378_v24 }
 0xac5   : > { %10387 = vmatpush1.msk.msra.mxu1 %vm5288_vm3, %v16378_v24  ;;  %8672 = vmatmul.mubr.f32.vlgmr.msra.gmra.mrb[36].mxu0 %v21273_v32  ;;  %v23143_v32 = vld [vmem:[#allocation63_spill] sm:$0xff] }
 0xac6   : > { %15663 = vmatprep.subr.bf16.mxu0 %v23124_v58  ;;  %9040 = vmatmul.mubr.f32.vlgmr.msra.gmra.mrb[36].mxu1 %v21337_v45  ;;  %v9214_v24 = vld [vmem:[%s22148_s5] sm:$0xff] }
 0xac7   : > { %15863 = vmatprep.subr.bf16.mxu1 %v23124_v58  ;;  %15665 = vmatpush1.bf16.msra.mxu0 %v23126_v38  ;;  %v9215_v58 = vld [vmem:[%s22148_s5 + $0x8] sm:$0xff] }
 0xac8   : > { %10376 = vmatprep.mubr.msk.f32.mxu0 %vm5284_vm1, %v23105_v53  ;;  %15865 = vmatpush1.bf16.msra.mxu1 %v23126_v38  ;;  %v23153_v53 = vld [vmem:[#allocation71_spill] sm:$0xff] }
 0xac9   : > { %10391 = vmatprep.mubr.msk.f32.mxu1 %vm5284_vm1, %v4880_v13  ;;  %15667 = vmatprep.subr.bf16.mxu0 %v23127_v59 }
 0xaca   : > { %15867 = vmatprep.subr.bf16.mxu1 %v23127_v59 }
 0xacb   : > { %15669 = vmatpush1.bf16.msra.mxu0 %v23128_v9 }
 0xacc   : > { %15869 = vmatpush1.bf16.msra.mxu1 %v23128_v9  ;;  %15671 = vmatprep.subr.bf16.mxu0 %v23129_v21  ;;  %v15943_v9 = vpack.c.bf16 %v10396_v4, %v10395_v14  ;;  %v9225_v14 = vld [vmem:[%s22148_s5 + $0x58] sm:$0xff] }
 0xacd   : > { %15871 = vmatprep.subr.bf16.mxu1 %v23129_v21 }
 0xacf   : > { %15673 = vmatpush1.bf16.msra.mxu0 %v23130_v47 }
 0xad0   : > { %15873 = vmatpush1.bf16.msra.mxu1 %v23130_v47  ;;  %15675 = vmatprep.subr.bf16.mxu0 %v23131_v1 }
 0xad1   : > { %15875 = vmatprep.subr.bf16.mxu1 %v23131_v1  ;;  %v23167_v1 = vld [vmem:[#allocation24_spill] sm:$0xff] }
 0xad3   : > { %15677 = vmatpush1.bf16.msra.mxu0 %v23132_v33 }
 0xad4   : > { %15877 = vmatpush1.bf16.msra.mxu1 %v23132_v33  ;;  %15679 = vmatprep.subr.bf16.mxu0 %v23133_v60  ;;  %v5196_v33 = vmax.f32 %v23167_v1, %v5193_v29 }
 0xad5   : > { %15879 = vmatprep.subr.bf16.mxu1 %v23133_v60  ;;  %v21648_v60 = vpop.permute.xlu0 %6210 }
 0xad7   : > { %15681 = vmatpush1.bf16.msra.mxu0 %v23134_v19 }
 0xad8   : > { %15881 = vmatpush1.bf16.msra.mxu1 %v23134_v19  ;;  %15683 = vmatprep.subr.bf16.mxu0 %v23135_v49  ;;  %v16382_v19 = vld [vmem:[%s22146_s3 + $0x680] sm:$0x3] }
 0xad9   : > { %15883 = vmatprep.subr.bf16.mxu1 %v23135_v49 }
 0xadb   : > { %15685 = vmatpush1.bf16.msra.mxu0 %v23136_v55 }
 0xadc   : > { %15885 = vmatpush1.bf16.msra.mxu1 %v23136_v55  ;;  %15687 = vmatprep.subr.bf16.mxu0 %v23137_v51  ;;  %v15970_v55 = vpack.c.bf16 %v9215_v58, %v9214_v24  ;;  %v9226_v24 = vld [vmem:[%s22148_s5 + $0x60] sm:$0xff]  ;;  %v9227_v58 = vld [vmem:[%s22148_s5 + $0x68] sm:$0xff] }
 0xadd   : > { %15887 = vmatprep.subr.bf16.mxu1 %v23137_v51 }
 0xadf   : > { %15689 = vmatpush1.bf16.msra.mxu0 %v23138_v36 }
 0xae0   : > { %15889 = vmatpush1.bf16.msra.mxu1 %v23138_v36  ;;  %15691 = vmatprep.subr.bf16.mxu0 %v23139_v23  ;;  %v10397_v36 = vld [vmem:[%s22148_s5 + $0xa0] sm:$0xff] }
 0xae1   : > { %15891 = vmatprep.subr.bf16.mxu1 %v23139_v23  ;;  %v10398_v23 = vld [vmem:[%s22148_s5 + $0xa8] sm:$0xff] }
 0xae3   : > { %15693 = vmatpush1.bf16.msra.mxu0 %v23140_v37 }
 0xae4   : > { %15893 = vmatpush1.bf16.msra.mxu1 %v23140_v37  ;;  %15695 = vmatprep.subr.bf16.mxu0 %v23141_v52 }
 0xae5   : > { %15895 = vmatprep.subr.bf16.mxu1 %v23141_v52 }
 0xae7   : > { %15697 = vmatpush1.bf16.msra.mxu0 %v23142_v28 }
 0xae8   : > { %15897 = vmatpush1.bf16.msra.mxu1 %v23142_v28  ;;  %15699 = vmatprep.subr.bf16.mxu0 %v23143_v32  ;;  %v9216_v28 = vld [vmem:[%s22148_s5 + $0x10] sm:$0xff] }
 0xae9   : > { %15899 = vmatprep.subr.bf16.mxu1 %v23143_v32  ;;  %v9217_v32 = vld [vmem:[%s22148_s5 + $0x18] sm:$0xff] }
 0xaea   : > { %v15973_v2 = vpack.c.bf16 %v9217_v32, %v9216_v28  ;;  %v10415_v28 = vld [vmem:[%s22148_s5 + $0x120] sm:$0xff]  ;;  %v10416_v32 = vld [vmem:[%s22148_s5 + $0x128] sm:$0xff] }
 0xaeb   : > { %15701 = vmatpush1.bf16.msra.mxu0 %v23144_v42 }
 0xaec   : > { %15901 = vmatpush1.bf16.msra.mxu1 %v23144_v42  ;;  %10374 = vmatprep.subr.msk.mxu0 %vm5288_vm3, %v16379_v3  ;;  %v6966_v42 = vmax.f32 %v23168_v16, %v21621_v5 }
 0xaed   : > { %10389 = vmatprep.subr.msk.mxu1 %vm5288_vm3, %v16379_v3 }
 0xaef   : > { %10375 = vmatpush1.msk.msra.mxu0 %vm5288_vm3, %v16380_v44 }
 0xaf0   : > { %10390 = vmatpush1.msk.msra.mxu1 %vm5288_vm3, %v16380_v44  ;;  %8745 = vmatmul.mubr.f32.vlgmr.msra.gmra.mrb[36].mxu0 %v21337_v45  ;;  %v23150_v45 = vld [vmem:[#allocation25_spill] sm:$0xff]  ;;  %v15946_v44 = vpack.c.bf16 %v10398_v23, %v10397_v36  ;;  %v9231_v36 = vld [vmem:[%s22148_s5 + $0x88] sm:$0xff] }
 0xaf1   : > { %15703 = vmatprep.subr.bf16.mxu0 %v23146_v7  ;;  %9113 = vmatmul.mubr.f32.vlgmr.msra.gmra.mrb[36].mxu1 %v21572_v31 }
 0xaf2   : > { %15903 = vmatprep.subr.bf16.mxu1 %v23146_v7  ;;  %15705 = vmatpush1.bf16.msra.mxu0 %v23148_v34 }
 0xaf3   : > { %10379 = vmatprep.mubr.msk.f32.mxu0 %vm5284_vm1, %v4880_v13  ;;  %15905 = vmatpush1.bf16.msra.mxu1 %v23148_v34  ;;  %v10400_v34 = vld [vmem:[%s22148_s5 + $0xb8] sm:$0xff] }
 0xaf4   : > { %10394 = vmatprep.mubr.msk.f32.mxu1 %vm5284_vm1, %v5197_v62  ;;  %15707 = vmatprep.subr.bf16.mxu0 %v23149_v12  ;;  %v10399_v62 = vld [vmem:[%s22148_s5 + $0xb0] sm:$0xff] }
 0xaf5   : > { %15907 = vmatprep.subr.bf16.mxu1 %v23149_v12  ;;  %v9218_v12 = vld [vmem:[%s22148_s5 + $0x20] sm:$0xff] }
 0xaf6   : > { %15709 = vmatpush1.bf16.msra.mxu0 %v23150_v45 }
 0xaf7   : > { %15909 = vmatpush1.bf16.msra.mxu1 %v23150_v45  ;;  %15711 = vmatprep.subr.bf16.mxu0 %v23151_v20  ;;  %v9219_v45 = vld [vmem:[%s22148_s5 + $0x28] sm:$0xff] }
 0xaf8   : > { %15911 = vmatprep.subr.bf16.mxu1 %v23151_v20  ;;  %v15949_v20 = vpack.c.bf16 %v10400_v34, %v10399_v62 }
 0xafa   : > { %15713 = vmatpush1.bf16.msra.mxu0 %v23152_v40 }
 0xafb   : > { %15913 = vmatpush1.bf16.msra.mxu1 %v23152_v40  ;;  %15715 = vmatprep.subr.bf16.mxu0 %v23153_v53  ;;  %v15976_v40 = vpack.c.bf16 %v9219_v45, %v9218_v12  ;;  %v10419_v12 = vld [vmem:[%s22148_s5 + $0x140] sm:$0xff] }
 0xafc   : > { %15915 = vmatprep.subr.bf16.mxu1 %v23153_v53  ;;  %v10401_v53 = vld [vmem:[%s22148_s5 + $0xc0] sm:$0xff] }
 0xafe   : > { %15717 = vmatpush1.bf16.msra.mxu0 %v23154_v6 }
 0xaff   : > { %15917 = vmatpush1.bf16.msra.mxu1 %v23154_v6  ;;  %15719 = vmatprep.subr.bf16.mxu0 %v23155_v50  ;;  %v10402_v6 = vld [vmem:[%s22148_s5 + $0xc8] sm:$0xff] }
 0xb00   : > { %15919 = vmatprep.subr.bf16.mxu1 %v23155_v50  ;;  %v9220_v50 = vld [vmem:[%s22148_s5 + $0x30] sm:$0xff] }
 0xb02   : > { %15721 = vmatpush1.bf16.msra.mxu0 %v23156_v56 }
 0xb03   : > { %15921 = vmatpush1.bf16.msra.mxu1 %v23156_v56  ;;  %15723 = vmatprep.subr.bf16.mxu0 %v23157_v61  ;;  %v9221_v56 = vld [vmem:[%s22148_s5 + $0x38] sm:$0xff] }
 0xb04   : > { %15923 = vmatprep.subr.bf16.mxu1 %v23157_v61  ;;  %v15952_v61 = vpack.c.bf16 %v10402_v6, %v10401_v53  ;;  %v10423_v53 = vld [vmem:[%s22148_s5 + $0x160] sm:$0xff]  ;;  %v10424_v6 = vld [vmem:[%s22148_s5 + $0x168] sm:$0xff] }
 0xb06   : > { %15725 = vmatpush1.bf16.msra.mxu0 %v23158_v10 }
 0xb07   : > { %15925 = vmatpush1.bf16.msra.mxu1 %v23158_v10  ;;  %15727 = vmatprep.subr.bf16.mxu0 %v23159_v15  ;;  %v15979_v10 = vpack.c.bf16 %v9221_v56, %v9220_v50  ;;  %v16009_v50 = vpack.c.bf16 %v10424_v6, %v10423_v53  ;;  %v10425_v56 = vld [vmem:[%s22148_s5 + $0x170] sm:$0xff] }
 0xb08   : > { %15927 = vmatprep.subr.bf16.mxu1 %v23159_v15  ;;  %v10403_v15 = vld [vmem:[%s22148_s5 + $0xd0] sm:$0xff] }
 0xb0a   : > { %15729 = vmatpush1.bf16.msra.mxu0 %v23160_v30 }
 0xb0b   : > { %15929 = vmatpush1.bf16.msra.mxu1 %v23160_v30  ;;  %15731 = vmatprep.subr.bf16.mxu0 %v23161_v35  ;;  %v10404_v30 = vld [vmem:[%s22148_s5 + $0xd8] sm:$0xff] }
 0xb0c   : > { %15931 = vmatprep.subr.bf16.mxu1 %v23161_v35  ;;  %v9222_v35 = vld [vmem:[%s22148_s5 + $0x40] sm:$0xff] }
 0xb0e   : > { %15733 = vmatpush1.bf16.msra.mxu0 %v23162_v48 }
 0xb0f   : > { %15933 = vmatpush1.bf16.msra.mxu1 %v23162_v48  ;;  %15735 = vmatprep.subr.bf16.mxu0 %v23163_v54  ;;  %v9223_v48 = vld [vmem:[%s22148_s5 + $0x48] sm:$0xff] }
 0xb10   : > { %15935 = vmatprep.subr.bf16.mxu1 %v23163_v54  ;;  %v15955_v54 = vpack.c.bf16 %v10404_v30, %v10403_v15  ;;  %v10427_v15 = vld [vmem:[%s22148_s5 + $0x180] sm:$0xff]  ;;  %v10428_v30 = vld [vmem:[%s22148_s5 + $0x188] sm:$0xff] }
 0xb12   : > { %15737 = vmatpush1.bf16.msra.mxu0 %v23164_v26 }
 0xb13   : > { %15937 = vmatpush1.bf16.msra.mxu1 %v23164_v26  ;;  %15739 = vmatprep.subr.bf16.mxu0 %v23165_v27  ;;  %v15982_v26 = vpack.c.bf16 %v9223_v48, %v9222_v35  ;;  %v16015_v35 = vpack.c.bf16 %v10428_v30, %v10427_v15  ;;  %v10429_v48 = vld [vmem:[%s22148_s5 + $0x190] sm:$0xff]  ;;  %v10468_v15 = vld [vmem:[%s22148_s5 + $0x2b8] sm:$0xff] }
 0xb14   : > { %15939 = vmatprep.subr.bf16.mxu1 %v23165_v27  ;;  %v10405_v27 = vld [vmem:[%s22148_s5 + $0xe0] sm:$0xff] }
 0xb15   : > { %v15958_v4 = vpack.c.bf16 %v10406_v46, %v10405_v27  ;;  %v10431_v27 = vld [vmem:[%s22148_s5 + $0x1a0] sm:$0xff]  ;;  %v10432_v46 = vld [vmem:[%s22148_s5 + $0x1a8] sm:$0xff] }
 0xb16   : > { %15741 = vmatpush1.bf16.msra.mxu0 %v23166_v17 }
 0xb17   : > { %15941 = vmatpush1.bf16.msra.mxu1 %v23166_v17  ;;  %10377 = vmatprep.subr.msk.mxu0 %vm5288_vm3, %v16381_v57  ;;  %v8073_v0 = vpop.f32.mrb[34].mxu0  ;;  %v9224_v17 = vld [vmem:[%s22148_s5 + $0x50] sm:$0xff] }
 0xb18   : > { %10392 = vmatprep.subr.msk.mxu1 %vm5288_vm3, %v16381_v57  ;;  %v8080_v43 = vadd.f32 %v8073_v0, %v20680_v63  ;;  %v8441_v13 = vpop.f32.mrb[34].mxu1  ;;  %v8075_v38 = vpop.f32.mrb[35].mxu0  ;;  %v15985_v29 = vpack.c.bf16 %v9225_v14, %v9224_v17  ;;  %v10407_v57 = vld [vmem:[%s22148_s5 + $0xf0] sm:$0xff]  ;;  %v10408_v0 = vld [vmem:[%s22148_s5 + $0xf8] sm:$0xff]  ;;  %v16021_v14 = vpack.c.bf16 %v10432_v46, %v10431_v27  ;;  %v10469_v27 = vld [vmem:[%s22148_s5 + $0x2c0] sm:$0xff] }
 0xb19   : > { %v8448_v59 = vadd.f32 %v8441_v13, %v20680_v63  ;;  %v8081_v21 = vadd.f32 %v8075_v38, %v20684_v25  ;;  %v8443_v47 = vpop.f32.mrb[35].mxu1  ;;  %v15961_v13 = vpack.c.bf16 %v10408_v0, %v10407_v57  ;;  %v15988_v38 = vpack.c.bf16 %v9227_v58, %v9226_v24  ;;  %v10434_v24 = vld [vmem:[%s22148_s5 + $0x1b0] sm:$0xff]  ;;  %v10435_v58 = vld [vmem:[%s22148_s5 + $0x1b8] sm:$0xff]  ;;  %v10470_v46 = vld [vmem:[%s22148_s5 + $0x2c8] sm:$0xff] }
 0xb1a   : > { %10378 = vmatpush1.msk.msra.mxu0 %vm5288_vm3, %v16382_v19  ;;  %v8082_v49 = vmax.f32 %v8080_v43, 0.0  ;;  %v8449_v51 = vadd.f32 %v8443_v47, %v20684_v25  ;;  %v6959_v43 = vpop.permute.xlu1 %6958  ;;  %v9229_v47 = vld [vmem:[%s22148_s5 + $0x78] sm:$0xff] }
 0xb1b   : > { %10393 = vmatpush1.msk.msra.mxu1 %vm5288_vm3, %v16382_v19  ;;  %8821 = vmatmul.mubr.f32.vlgmr.msra.gmra.mrb[36].mxu0 %v21572_v31  ;;  %v8450_v37 = vmax.f32 %v8448_v59, 0.0  ;;  %v8083_v52 = vmax.f32 %v8081_v21, 0.0  ;;  %v6217_v31 = vmax.f32 %v23169_v41, %v21648_v60  ;;  %v10409_v59 = vld [vmem:[%s22148_s5 + $0x100] sm:$0xff]  ;;  %v9228_v21 = vld [vmem:[%s22148_s5 + $0x70] sm:$0xff]  ;;  %v6962_v16 = vsel %vm6212_vm5, %v6959_v43, %v21621_v5  ;;  %v10418_v5 = vld [vmem:[%s22148_s5 + $0x138] sm:$0xff] }
 0xb1c   : > { %9189 = vmatmul.mubr.f32.vlgmr.msra.gmra.mrb[36].mxu1 %v5196_v33  ;;  %15942 = vmatprep.subr.bf16.mxu0 %v16409_v11  ;;  %v8451_v3 = vmax.f32 %v8449_v51, 0.0  ;;  %v15991_v19 = vpack.c.bf16 %v9229_v47, %v9228_v21  ;;  %v9230_v51 = vld [vmem:[%s22148_s5 + $0x80] sm:$0xff]  ;;  %v15997_v41 = vpack.c.bf16 %v10416_v32, %v10415_v28  ;;  %v16024_v43 = vpack.c.bf16 %v10435_v58, %v10434_v24  ;;  %v10456_v21 = vld [vmem:[%s22148_s5 + $0x258] sm:$0xff] }
 0xb1d   : > { %15969 = vmatprep.subr.bf16.mxu1 %v16409_v11  ;;  %v21675_v18 = vmax.f32 %v8082_v49, %v8450_v37  ;;  %15944 = vmatpush1.bf16.msra.mxu0 %v15943_v9  ;;  %v10410_v9 = vld [vmem:[%s22148_s5 + $0x108] sm:$0xff]  ;;  %v10411_v49 = vld [vmem:[%s22148_s5 + $0x110] sm:$0xff]  ;;  %v10460_v28 = vld [vmem:[%s22148_s5 + $0x278] sm:$0xff] }
 0xb1e   : > { %10413 = vmatprep.mubr.msk.f32.mxu0 %vm9251_vm4, %v6966_v42  ;;  %15971 = vmatpush1.bf16.msra.mxu1 %v15970_v55  ;;  %v21678_v7 = vmax.f32 %v8083_v52, %v8451_v3  ;;  %v21767_v1 = vpop.permute.xlu1 %16354  ;;  %v15964_v33 = vpack.c.bf16 %v10410_v9, %v10409_v59  ;;  %v10412_v55 = vld [vmem:[%s22148_s5 + $0x118] sm:$0xff]  ;;  %v15994_v52 = vpack.c.bf16 %v9231_v36, %v9230_v51  ;;  %v10455_v9 = vld [vmem:[%s22148_s5 + $0x250] sm:$0xff] }
 0xb1f   : > { %10414 = vmatprep.mubr.msk.f32.mxu1 %vm9251_vm4, %v6217_v31  ;;  %15945 = vmatprep.subr.bf16.mxu0 %v16409_v11  ;;  %v16356_v23 = vunpack.i.l.bf16 %v21767_v1  ;;  %v15967_v37 = vpack.c.bf16 %v10412_v55, %v10411_v49  ;;  %v23170_v31 = vld [vmem:[#allocation15_spill] sm:$0xff]  ;;  %v16357_v17 = vunpack.i.h.bf16 %v21767_v1  ;;  %v16054_v1 = vpack.c.bf16 %v10456_v21, %v10455_v9  ;;  %v10458_v55 = vld [vmem:[%s22148_s5 + $0x268] sm:$0xff] }
 0xb20   : > { %15972 = vmatprep.subr.bf16.mxu1 %v16409_v11  ;;  %8458 = vrot.lane.b32.xlu1 %v21678_v7, %s16408_s28  ;;  %v10457_v49 = vld [vmem:[%s22148_s5 + $0x260] sm:$0xff] }
 0xb21   : > { %15947 = vmatpush1.bf16.msra.mxu0 %v15946_v44  ;;  %v6213_v42 = vsel %vm6212_vm5, %v16356_v23, %v21648_v60  ;;  %v6965_v44 = vmax.f32 %v23170_v31, %v6962_v16  ;;  %v16057_v36 = vpack.c.bf16 %v10458_v55, %v10457_v49  ;;  %v10440_v23 = vld [vmem:[%s22148_s5 + $0x1e0] sm:$0xff]  ;;  %v10462_v31 = vld [vmem:[%s22148_s5 + $0x288] sm:$0xff] }
 0xb22   : > { %15974 = vmatpush1.bf16.msra.mxu1 %v15973_v2  ;;  %15948 = vmatprep.subr.bf16.mxu0 %v16409_v11  ;;  %v7710_v3 = vpop.permute.xlu1 %7709  ;;  %v10417_v2 = vld [vmem:[%s22148_s5 + $0x130] sm:$0xff]  ;;  %v6216_v62 = vmax.f32 %v23102_v39, %v6213_v42  ;;  %v10420_v39 = vld [vmem:[%s22148_s5 + $0x148] sm:$0xff] }
 0xb23   : > { %15975 = vmatprep.subr.bf16.mxu1 %v16409_v11  ;;  %v7715_v60 = vmax.f32 %v21354_v8, %v7710_v3  ;;  %v16000_v34 = vpack.c.bf16 %v10418_v5, %v10417_v2  ;;  %v16003_v45 = vpack.c.bf16 %v10420_v39, %v10419_v12  ;;  %v10421_v8 = vld [vmem:[%s22148_s5 + $0x150] sm:$0xff]  ;;  %v10444_v5 = vld [vmem:[%s22148_s5 + $0x200] sm:$0xff] }
 0xb24   : > { %v10442_v42 = vld [vmem:[%s22148_s5 + $0x1f0] sm:$0xff] }
 0xb25   : > { %15950 = vmatpush1.bf16.msra.mxu0 %v15949_v20  ;;  %v10422_v20 = vld [vmem:[%s22148_s5 + $0x158] sm:$0xff] }
 0xb26   : > { %15977 = vmatpush1.bf16.msra.mxu1 %v15976_v40  ;;  %15951 = vmatprep.subr.bf16.mxu0 %v16409_v11  ;;  %v16006_v40 = vpack.c.bf16 %v10422_v20, %v10421_v8  ;;  %v10447_v8 = vld [vmem:[%s22148_s5 + $0x218] sm:$0xff]  ;;  %v10465_v20 = vld [vmem:[%s22148_s5 + $0x2a0] sm:$0xff] }
 0xb27   : > { %15978 = vmatprep.subr.bf16.mxu1 %v16409_v11 }
 0xb29   : > { %15953 = vmatpush1.bf16.msra.mxu0 %v15952_v61  ;;  %v10426_v61 = vld [vmem:[%s22148_s5 + $0x178] sm:$0xff] }
 0xb2a   : > { %15980 = vmatpush1.bf16.msra.mxu1 %v15979_v10  ;;  %15954 = vmatprep.subr.bf16.mxu0 %v16409_v11  ;;  %v16012_v10 = vpack.c.bf16 %v10426_v61, %v10425_v56  ;;  %v10449_v56 = vld [vmem:[%s22148_s5 + $0x228] sm:$0xff] }
 0xb2b   : > { %15981 = vmatprep.subr.bf16.mxu1 %v16409_v11 }
 0xb2d   : > { %15956 = vmatpush1.bf16.msra.mxu0 %v15955_v54  ;;  %v10430_v54 = vld [vmem:[%s22148_s5 + $0x198] sm:$0xff] }
 0xb2e   : > { %15983 = vmatpush1.bf16.msra.mxu1 %v15982_v26  ;;  %15957 = vmatprep.subr.bf16.mxu0 %v16409_v11  ;;  %v16018_v26 = vpack.c.bf16 %v10430_v54, %v10429_v48  ;;  %v10451_v48 = vld [vmem:[%s22148_s5 + $0x238] sm:$0xff] }
 0xb2f   : > { %15984 = vmatprep.subr.bf16.mxu1 %v16409_v11 }
 0xb31   : > { %15959 = vmatpush1.bf16.msra.mxu0 %v15958_v4  ;;  %v7711_v4 = vsel %vm6212_vm5, %v16357_v17, %v7710_v3  ;;  %v10443_v3 = vld [vmem:[%s22148_s5 + $0x1f8] sm:$0xff] }
 0xb32   : > { %15986 = vmatpush1.bf16.msra.mxu1 %v15985_v29  ;;  %15960 = vmatprep.subr.bf16.mxu0 %v16409_v11  ;;  %v7714_v29 = vmax.f32 %v21348_v22, %v7711_v4  ;;  %v10453_v22 = vld [vmem:[%s22148_s5 + $0x240] sm:$0xff] }
 0xb33   : > { %15987 = vmatprep.subr.bf16.mxu1 %v16409_v11 }
 0xb35   : > { %15962 = vmatpush1.bf16.msra.mxu0 %v15961_v13  ;;  %v10454_v13 = vld [vmem:[%s22148_s5 + $0x248] sm:$0xff] }
 0xb36   : > { %15989 = vmatpush1.bf16.msra.mxu1 %v15988_v38  ;;  %15963 = vmatprep.subr.bf16.mxu0 %v16409_v11  ;;  %v10437_v38 = vld [vmem:[%s22148_s5 + $0x1c8] sm:$0xff]  ;;  %v16051_v59 = vpack.c.bf16 %v10454_v13, %v10453_v22 }
 0xb37   : > { %15990 = vmatprep.subr.bf16.mxu1 %v16409_v11 }
 0xb39   : > { %15965 = vmatpush1.bf16.msra.mxu0 %v15964_v33  ;;  %v10438_v33 = vld [vmem:[%s22148_s5 + $0x1d0] sm:$0xff] }
 0xb3a   : > { %15992 = vmatpush1.bf16.msra.mxu1 %v15991_v19  ;;  %15966 = vmatprep.subr.bf16.mxu0 %v16409_v11  ;;  %v10439_v19 = vld [vmem:[%s22148_s5 + $0x1d8] sm:$0xff] }
 0xb3b   : > { %15993 = vmatprep.subr.bf16.mxu1 %v16409_v11  ;;  %v16030_v51 = vpack.c.bf16 %v10439_v19, %v10438_v33 }
 0xb3d   : > { %15968 = vmatpush1.bf16.msra.mxu0 %v15967_v37  ;;  %v10441_v37 = vld [vmem:[%s22148_s5 + $0x1e8] sm:$0xff] }
 0xb3e   : > { %15995 = vmatpush1.bf16.msra.mxu1 %v15994_v52  ;;  %15996 = vmatprep.subr.bf16.mxu0 %v16409_v11  ;;  %v10459_v52 = vld [vmem:[%s22148_s5 + $0x270] sm:$0xff]  ;;  %v16033_v32 = vpack.c.bf16 %v10441_v37, %v10440_v23  ;;  %v9687_v23 = vld [vmem:[%s22150_s7 + $0x8] sm:$0xff] }
 0xb3f   : > { %16023 = vmatprep.subr.bf16.mxu1 %v16409_v11  ;;  %v16060_v16 = vpack.c.bf16 %v10460_v28, %v10459_v52 }
 0xb40   : > { %9320 = vmatmul.mubr.f32.vlgmr.msra.gmra.mrb[38].mxu0 %v6965_v44  ;;  %v16036_v44 = vpack.c.bf16 %v10443_v3, %v10442_v42  ;;  %v9688_v3 = vld [vmem:[%s22150_s7 + $0x10] sm:$0xff] }
 0xb41   : > { %9393 = vmatmul.mubr.f32.vlgmr.msra.gmra.mrb[38].mxu1 %v6216_v62  ;;  %15998 = vmatpush1.bf16.msra.mxu0 %v15997_v41  ;;  %v10461_v41 = vld [vmem:[%s22148_s5 + $0x280] sm:$0xff]  ;;  %v10445_v62 = vld [vmem:[%s22148_s5 + $0x208] sm:$0xff] }
 0xb42   : > { %10433 = vmatprep.mubr.msk.f32.mxu0 %vm9251_vm4, %v7715_v60  ;;  %15999 = vmatprep.subr.bf16.mxu0 %v16409_v11  ;;  %v16063_v2 = vpack.c.bf16 %v10462_v31, %v10461_v41  ;;  %v10463_v60 = vld [vmem:[%s22148_s5 + $0x290] sm:$0xff]  ;;  %v16039_v12 = vpack.c.bf16 %v10445_v62, %v10444_v5  ;;  %v9689_v41 = vld [vmem:[%s22150_s7 + $0x18] sm:$0xff]  ;;  %v9691_v5 = vld [vmem:[%s22150_s7 + $0x28] sm:$0xff] }
 0xb43   : > { %16025 = vmatpush1.bf16.msra.mxu1 %v16024_v43 }
 0xb44   : > { %16026 = vmatprep.subr.bf16.mxu1 %v16409_v11 }
 0xb45   : > { %16001 = vmatpush1.bf16.msra.mxu0 %v16000_v34  ;;  %v10464_v34 = vld [vmem:[%s22148_s5 + $0x298] sm:$0xff] }
 0xb46   : > { %16002 = vmatprep.subr.bf16.mxu0 %v16409_v11  ;;  %v16066_v39 = vpack.c.bf16 %v10464_v34, %v10463_v60  ;;  %v9692_v60 = vld [vmem:[%s22150_s7 + $0x30] sm:$0xff]  ;;  %v9693_v34 = vld [vmem:[%s22150_s7 + $0x38] sm:$0xff] }
 0xb49   : > { %16004 = vmatpush1.bf16.msra.mxu0 %v16003_v45  ;;  %v10446_v45 = vld [vmem:[%s22148_s5 + $0x210] sm:$0xff] }
 0xb4a   : > { %16005 = vmatprep.subr.bf16.mxu0 %v16409_v11  ;;  %v16042_v53 = vpack.c.bf16 %v10447_v8, %v10446_v45  ;;  %v9695_v45 = vld [vmem:[%s22150_s7 + $0x48] sm:$0xff] }
 0xb4d   : > { %16007 = vmatpush1.bf16.msra.mxu0 %v16006_v40  ;;  %v10466_v40 = vld [vmem:[%s22148_s5 + $0x2a8] sm:$0xff] }
 0xb4e   : > { %16008 = vmatprep.subr.bf16.mxu0 %v16409_v11  ;;  %v16069_v6 = vpack.c.bf16 %v10466_v40, %v10465_v20  ;;  %v9696_v20 = vld [vmem:[%s22150_s7 + $0x50] sm:$0xff]  ;;  %v9697_v40 = vld [vmem:[%s22150_s7 + $0x58] sm:$0xff] }
 0xb51   : > { %16010 = vmatpush1.bf16.msra.mxu0 %v16009_v50  ;;  %v10448_v50 = vld [vmem:[%s22148_s5 + $0x220] sm:$0xff] }
 0xb52   : > { %16011 = vmatprep.subr.bf16.mxu0 %v16409_v11  ;;  %v16045_v61 = vpack.c.bf16 %v10449_v56, %v10448_v50  ;;  %v9699_v50 = vld [vmem:[%s22150_s7 + $0x68] sm:$0xff] }
 0xb55   : > { %16013 = vmatpush1.bf16.msra.mxu0 %v16012_v10  ;;  %v10467_v10 = vld [vmem:[%s22148_s5 + $0x2b0] sm:$0xff] }
 0xb56   : > { %16014 = vmatprep.subr.bf16.mxu0 %v16409_v11  ;;  %v16072_v30 = vpack.c.bf16 %v10468_v15, %v10467_v10  ;;  %v9701_v10 = vld [vmem:[%s22150_s7 + $0x78] sm:$0xff] }
 0xb59   : > { %16016 = vmatpush1.bf16.msra.mxu0 %v16015_v35  ;;  %v10450_v35 = vld [vmem:[%s22148_s5 + $0x230] sm:$0xff] }
 0xb5a   : > { %16017 = vmatprep.subr.bf16.mxu0 %v16409_v11  ;;  %v16048_v54 = vpack.c.bf16 %v10451_v48, %v10450_v35 }
 0xb5d   : > { %16019 = vmatpush1.bf16.msra.mxu0 %v16018_v26 }
 0xb5e   : > { %16020 = vmatprep.subr.bf16.mxu0 %v16409_v11 }
 0xb61   : > { %16022 = vmatpush1.bf16.msra.mxu0 %v16021_v14 }
 0xb62   : > { %16050 = vmatprep.subr.bf16.mxu0 %v16409_v11 }
 0xb64   : > { %9485 = vmatmul.mubr.f32.vlgmr.msra.gmra.mrb[40].mxu0 %v7714_v29  ;;  %v16075_v29 = vpack.c.bf16 %v10470_v46, %v10469_v27  ;;  %v10472_v27 = vld [vmem:[%s22149_s6] ss:$0 sm:$0xff] }
 0xb65   : > { %16052 = vmatpush1.bf16.msra.mxu0 %v16051_v59 }
 0xb66   : > { %16053 = vmatprep.subr.bf16.mxu0 %v16409_v11 }
 0xb69   : > { %16055 = vmatpush1.bf16.msra.mxu0 %v16054_v1 }
 0xb6a   : > { %16056 = vmatprep.subr.bf16.mxu0 %v16409_v11 }
 0xb6d   : > { %16058 = vmatpush1.bf16.msra.mxu0 %v16057_v36  ;;  %v9686_v36 = vld [vmem:[%s22150_s7] sm:$0xff] }
 0xb6e   : > { %16059 = vmatprep.subr.bf16.mxu0 %v16409_v11 }
 0xb71   : > { %16061 = vmatpush1.bf16.msra.mxu0 %v16060_v16 }
 0xb72   : > { %16062 = vmatprep.subr.bf16.mxu0 %v16409_v11 }
 0xb75   : > { %16064 = vmatpush1.bf16.msra.mxu0 %v16063_v2 }
 0xb76   : > { %16065 = vmatprep.subr.bf16.mxu0 %v16409_v11 }
 0xb79   : > { %16067 = vmatpush1.bf16.msra.mxu0 %v16066_v39  ;;  %v9694_v39 = vld [vmem:[%s22150_s7 + $0x40] sm:$0xff] }
 0xb7a   : > { %16068 = vmatprep.subr.bf16.mxu0 %v16409_v11  ;;  %v16090_v8 = vpack.c.bf16 %v9695_v45, %v9694_v39 }
 0xb7d   : > { %16070 = vmatpush1.bf16.msra.mxu0 %v16069_v6  ;;  %v9698_v6 = vld [vmem:[%s22150_s7 + $0x60] sm:$0xff] }
 0xb7e   : > { %16071 = vmatprep.subr.bf16.mxu0 %v16409_v11  ;;  %v16096_v56 = vpack.c.bf16 %v9699_v50, %v9698_v6 }
 0xb81   : > { %16073 = vmatpush1.bf16.msra.mxu0 %v16072_v30  ;;  %v16411_v30 = vmov 0.0  }
 0xb82   : > { %16074 = vmatprep.subr.bf16.mxu0 %v16409_v11 }
 0xb85   : > { %16076 = vmatpush1.bf16.msra.mxu0 %v16075_v29 }
 0xb92   : > { %v21862_v57 = vpop.permute.xlu1 %8458 }
 0xb93   : > { %v8464_v0 = vmax.f32 %v21678_v7, %v21862_v57  ;;  %v10436_v7 = vld [vmem:[%s22148_s5 + $0x1c0] sm:$0xff] }
 0xb94   : > { %v16027_v47 = vpack.c.bf16 %v10437_v38, %v10436_v7 }
 0xb95   : > { %10452 = vmatprep.mubr.msk.f32.mxu1 %vm9251_vm4, %v8464_v0 }
 0xb96   : > { %16028 = vmatpush1.bf16.msra.mxu1 %v16027_v47 }
 0xb97   : > { %16029 = vmatprep.subr.bf16.mxu1 %v16409_v11 }
 0xb9a   : > { %16031 = vmatpush1.bf16.msra.mxu1 %v16030_v51 }
 0xb9b   : > { %16032 = vmatprep.subr.bf16.mxu1 %v16409_v11 }
 0xb9e   : > { %16034 = vmatpush1.bf16.msra.mxu1 %v16033_v32  ;;  %v16078_v32 = vpack.c.bf16 %v9687_v23, %v9686_v36  ;;  %v9794_v36 = vld [vmem:[%s22152_s9 + $0x70] sm:$0xff]  ;;  %v9795_v23 = vld [vmem:[%s22152_s9 + $0x78] sm:$0xff] }
 0xb9f   : > { %16035 = vmatprep.subr.bf16.mxu1 %v16409_v11 }
 0xba2   : > { %16037 = vmatpush1.bf16.msra.mxu1 %v16036_v44 }
 0xba3   : > { %16038 = vmatprep.subr.bf16.mxu1 %v16409_v11 }
 0xba6   : > { %16040 = vmatpush1.bf16.msra.mxu1 %v16039_v12  ;;  %v16087_v12 = vpack.c.bf16 %v9693_v34, %v9692_v60 }
 0xba7   : > { %16041 = vmatprep.subr.bf16.mxu1 %v16409_v11 }
 0xbaa   : > { %16043 = vmatpush1.bf16.msra.mxu1 %v16042_v53  ;;  %v16093_v53 = vpack.c.bf16 %v9697_v40, %v9696_v20 }
 0xbab   : > { %16044 = vmatprep.subr.bf16.mxu1 %v16409_v11 }
 0xbae   : > { %16046 = vmatpush1.bf16.msra.mxu1 %v16045_v61  ;;  %v9700_v61 = vld [vmem:[%s22150_s7 + $0x70] sm:$0xff] }
 0xbaf   : > { %16047 = vmatprep.subr.bf16.mxu1 %v16409_v11  ;;  %v16099_v15 = vpack.c.bf16 %v9701_v10, %v9700_v61 }
 0xbb2   : > { %16049 = vmatpush1.bf16.msra.mxu1 %v16048_v54 }
 0xbb3   : > { %16077 = vmatprep.subr.bf16.mxu1 %v16409_v11 }
 0xbee   : > { %v8822_v26 = vpop.f32.mrb[36].mxu0 }
 0xbef   : > { %v8829_v17 = vadd.f32 %v8822_v26, %v20680_v63  ;;  %v9190_v14 = vpop.f32.mrb[36].mxu1  ;;  %v8824_v4 = vpop.f32.mrb[37].mxu0 }
 0xbf0   : > { %v9197_v0 = vadd.f32 %v9190_v14, %v20680_v63  ;;  %v8830_v24 = vadd.f32 %v8824_v4, %v20684_v25  ;;  %v9192_v58 = vpop.f32.mrb[37].mxu1  ;;  %v9780_v14 = vld [vmem:[%s22152_s9] sm:$0xff]  ;;  %v9781_v4 = vld [vmem:[%s22152_s9 + $0x8] sm:$0xff] }
 0xbf1   : > { %v8831_v22 = vmax.f32 %v8829_v17, 0.0  ;;  %v9198_v43 = vadd.f32 %v9192_v58, %v20684_v25  ;;  %v9782_v58 = vld [vmem:[%s22152_s9 + $0x10] sm:$0xff] }
 0xbf2   : > { %v9199_v13 = vmax.f32 %v9197_v0, 0.0  ;;  %v8832_v7 = vmax.f32 %v8830_v24, 0.0  ;;  %v16102_v0 = vpack.c.bf16 %v9781_v4, %v9780_v14 }
 0xbf3   : > { %v9200_v38 = vmax.f32 %v9198_v43, 0.0 }
 0xbf4   : > { %v9201_v59 = vmax.f32 %v8831_v22, %v9199_v13  ;;  %v9783_v22 = vld [vmem:[%s22152_s9 + $0x18] sm:$0xff]  ;;  %v9784_v13 = vld [vmem:[%s22152_s9 + $0x20] sm:$0xff] }
 0xbf5   : > { %v9202_v9 = vmax.f32 %v8832_v7, %v9200_v38  ;;  %v16105_v43 = vpack.c.bf16 %v9783_v22, %v9782_v58  ;;  %v9785_v7 = vld [vmem:[%s22152_s9 + $0x28] sm:$0xff] }
 0xbf6   : > { %v16358_v21 = vpack.i.bf16 %v9201_v59, %v21675_v18  ;;  %v16108_v38 = vpack.c.bf16 %v9785_v7, %v9784_v13 }
 0xbf8   : > { %16359 = vrot.lane.b32.xlu0 %v16358_v21, %s16408_s28 }
 0xbfc   : > { %9207 = vrot.lane.b32.xlu0 %v9202_v9, %s16408_s28 }
 0xc13   : > { %v9321_v63 = vpop.f32.mrb[38].mxu0 }
 0xc14   : > { %v9394_v47 = vpop.f32.mrb[38].mxu1  ;;  %v9323_v1 = vpop.f32.mrb[39].mxu0 }
 0xc15   : > { %v9395_v33 = vadd.f32 %v9394_v47, %v9321_v63  ;;  %v9396_v19 = vpop.f32.mrb[39].mxu1  ;;  %v9788_v63 = vld [vmem:[%s22152_s9 + $0x40] sm:$0xff]  ;;  %v9789_v47 = vld [vmem:[%s22152_s9 + $0x48] sm:$0xff] }
 0xc16   : > { %v16114_v1 = vpack.c.bf16 %v9789_v47, %v9788_v63  ;;  %v9791_v19 = vld [vmem:[%s22152_s9 + $0x58] sm:$0xff] }
 0xc37   : > { %v9486_v49 = vpop.f32.mrb[40].mxu0 }
 0xc38   : > { %v9490_v55 = vadd.f32 %v9486_v49, %v9395_v33  ;;  %v9488_v25 = vpop.f32.mrb[41].mxu0  ;;  %v9790_v33 = vld [vmem:[%s22152_s9 + $0x50] sm:$0xff] }
 0xc39   : > { %v16117_v49 = vpack.c.bf16 %v9791_v19, %v9790_v33  ;;  %v9793_v25 = vld [vmem:[%s22152_s9 + $0x68] sm:$0xff] }
 0xc6a   : > { %v16360_v51 = vpop.permute.xlu0 %16359 }
 0xc6b   : > { %v16361_v37 = vunpack.i.l.bf16 %v16360_v51  ;;  %v16362_v52 = vunpack.i.h.bf16 %v16360_v51 }
 0xc6d   : > { %v8460_v28 = vsel %vm6212_vm5, %v16361_v37, %v21862_v57  ;;  %v16081_v57 = vpack.c.bf16 %v9689_v41, %v9688_v3  ;;  %v16123_v37 = vpack.c.bf16 %v9795_v23, %v9794_v36 }
 0xc6e   : > { %v8463_v16 = vmax.f32 %v21675_v18, %v8460_v28  ;;  %v9208_v42 = vpop.permute.xlu0 %9207  ;;  %v9690_v18 = vld [vmem:[%s22150_s7 + $0x20] sm:$0xff] }
 0xc6f   : > { %v9209_v31 = vsel %vm6212_vm5, %v16362_v52, %v9208_v42  ;;  %v9213_v44 = vmax.f32 %v9202_v9, %v9208_v42  ;;  %v16084_v62 = vpack.c.bf16 %v9691_v5, %v9690_v18  ;;  %v9787_v9 = vld [vmem:[%s22152_s9 + $0x38] sm:$0xff]  ;;  %v10473_v52 = vld [vmem:[%s22151_s8] ss:$0 sm:$0xff] }
 0xc70   : > { %v9212_v2 = vmax.f32 %v9201_v59, %v9209_v31  ;;  %9578 = vmatmul.mubr.f32.vlgmr.msra.gmra.mrb[40].mxu1 %v8463_v16  ;;  %v9786_v59 = vld [vmem:[%s22152_s9 + $0x30] sm:$0xff] }
 0xc71   : > { %10471 = vmatprep.mubr.msk.f32.mxu0 %vm9251_vm4, %v9213_v44  ;;  %16079 = vmatpush3.bf16.msra.mxu1 %v16078_v32  ;;  %v16111_v21 = vpack.c.bf16 %v9787_v9, %v9786_v59 }
 0xc72   : > { %9671 = vmatmul.mubr.f32.vlgmr.msra.gmra.mrb[42].mxu0 %v9212_v2  ;;  %16080 = vmatprep.subr.bf16.mxu1 %v16409_v11 }
 0xc73   : > { %10544 = vmatprep.mubr.msk.f32.mxu1 %vm16410_vm6, %v16411_v30 }
 0xc75   : > { %16082 = vmatpush3.bf16.msra.mxu1 %v16081_v57 }
 0xc76   : > { %16083 = vmatprep.subr.bf16.mxu1 %v16409_v11 }
 0xc79   : > { %16085 = vmatpush3.bf16.msra.mxu1 %v16084_v62 }
 0xc7a   : > { %16086 = vmatprep.subr.bf16.mxu1 %v16409_v11 }
 0xc7d   : > { %16088 = vmatpush3.bf16.msra.mxu1 %v16087_v12 }
 0xc7e   : > { %16089 = vmatprep.subr.bf16.mxu1 %v16409_v11 }
 0xc81   : > { %16091 = vmatpush3.bf16.msra.mxu1 %v16090_v8 }
 0xc82   : > { %16092 = vmatprep.subr.bf16.mxu1 %v16409_v11 }
 0xc85   : > { %16094 = vmatpush3.bf16.msra.mxu1 %v16093_v53 }
 0xc86   : > { %16095 = vmatprep.subr.bf16.mxu1 %v16409_v11 }
 0xc89   : > { %16097 = vmatpush3.bf16.msra.mxu1 %v16096_v56 }
 0xc8a   : > { %16098 = vmatprep.subr.bf16.mxu1 %v16409_v11 }
 0xc8d   : > { %16100 = vmatpush3.bf16.msra.mxu1 %v16099_v15 }
 0xc8e   : > { %16101 = vmatprep.subr.bf16.mxu1 %v16409_v11 }
 0xd43   : > { %v9579_v35 = vpop.f32.mrb[40].mxu1 }
 0xd44   : > { %v9583_v48 = vadd.f32 %v9579_v35, %v9490_v55  ;;  %v9581_v54 = vpop.f32.mrb[41].mxu1  ;;  %v9792_v55 = vld [vmem:[%s22152_s9 + $0x60] sm:$0xff] }
 0xd45   : > { %v9672_v26 = vpop.f32.mrb[42].mxu0  ;;  %v16120_v51 = vpack.c.bf16 %v9793_v25, %v9792_v55 }
 0xd46   : > { %v9676_v46 = vadd.f32 %v9672_v26, %v9583_v48  ;;  %v9674_v17 = vpop.f32.mrb[43].mxu0 }
 0xd48   : > { %v9684_v29 = vadd.f32 %v10472_v27, %v9676_v46 }
 0xd4a   : > { %v9685_v24 = vmax.f32 %v9684_v29, 0.0 }
 0xd4c   : > { %10545 = vmatmul.mubr.f32.vlgmr.msra.gmra.mrb[42].mxu1 %v9685_v24 }
 0xd4d   : > { %16103 = vmatpush3.bf16.msra.mxu1 %v16102_v0  ;;  %10579 = vmatprep.mubr.msk.f32.mxu1 %vm16410_vm6, %v16411_v30 }
 0xd4e   : > { %16104 = vmatprep.subr.bf16.mxu1 %v16409_v11 }
 0xd51   : > { %16106 = vmatpush3.bf16.msra.mxu1 %v16105_v43 }
 0xd52   : > { %16107 = vmatprep.subr.bf16.mxu1 %v16409_v11 }
 0xd55   : > { %16109 = vmatpush3.bf16.msra.mxu1 %v16108_v38 }
 0xd56   : > { %16110 = vmatprep.subr.bf16.mxu1 %v16409_v11 }
 0xd59   : > { %16112 = vmatpush3.bf16.msra.mxu1 %v16111_v21 }
 0xd5a   : > { %16113 = vmatprep.subr.bf16.mxu1 %v16409_v11 }
 0xd5d   : > { %16115 = vmatpush3.bf16.msra.mxu1 %v16114_v1 }
 0xd5e   : > { %16116 = vmatprep.subr.bf16.mxu1 %v16409_v11 }
 0xd61   : > { %16118 = vmatpush3.bf16.msra.mxu1 %v16117_v49 }
 0xd62   : > { %16119 = vmatprep.subr.bf16.mxu1 %v16409_v11 }
 0xd65   : > { %16121 = vmatpush3.bf16.msra.mxu1 %v16120_v51 }
 0xd66   : > { %16122 = vmatprep.subr.bf16.mxu1 %v16409_v11  ;;  %v10474_v11 = vld [vmem:[%s22153_s10] ss:$0 sm:$0xff] }
 0xd69   : > { %16124 = vmatpush3.bf16.msra.mxu1 %v16123_v37 }
 0xe1f   : > { %v9775_v28 = vpop.f32.mrb[42].mxu1 }
 0xe20   : > { %v9776_v32 = vadd.f32 %v10473_v52, %v9775_v28  ;;  %v10546_v16 = vpop.f32.mrb[43].mxu1 }
 0xe22   : > { %v9779_v42 = vmax.f32 %v9776_v32, 0.0 }
 0xe24   : > { %10580 = vmatmul.mubr.f32.vlgmr.msra.gmra.mrb[44].mxu1 %v9779_v42 }
 0xef7   : > { %v9869_v3 = vpop.f32.mrb[44].mxu1 }
 0xef8   : > { %v9870_v41 = vadd.f32 %v10474_v11, %v9869_v3  ;;  %v10581_v31 = vpop.f32.mrb[45].mxu1 }
 0xefa   : > { %9873 = vst [vmem:[%s626_s15] sm:$0xff] %v9870_v41 }
 0xefb PF: > { %p18_p9 = scmp.ge.s32.totalorder %s16489_s21, 4   ;;  %s23171_s17 = smov %s16401_s18 }
 0xefc   : > { %s23172_s18 = smov %s16498_s24  ;;  %s23173_s19 = smov %s16489_s21 }
 0xefd   :  { %20 = sbr.rel (!%p18_p9) target bundleno = 2 (0x2), region = 157 }

</bundles_post_ra>
